<compile_context>
chip_gen: v5e
topology: v5e:2x2
jax: 0.10.0
libtpu: 0.0.40
codegen_flags: <defaults>
</compile_context>

<pallas_src>
import functools

import jax
import jax.numpy as jnp
from jax.experimental import pallas as pl
from jax.experimental.pallas import tpu as pltpu


NEG_SLOPE = 0.2  # LeakyReLU slope used throughout RABlock


# ---------------------------------------------------------------------------
# Fused Pallas kernel: one grid step == one image of the batch.
# ---------------------------------------------------------------------------

def _rablock_kernel(x_ref, w3_ref, b3_ref, wb3_ref, bb3_ref, web3_ref, beb3_ref,
                    wca1t_ref, bca1_ref, wca2_ref, bca2_ref,
                    o_ref, buf_ref, *, H, W, PAD):
    HW = H * W
    x = x_ref[0]                                        # (C, H*W), lane-dense f32

    # Column coordinate of every flattened pixel (hoisted; reused by all convs).
    pidx = jax.lax.broadcasted_iota(jnp.int32, (1, HW), 1)
    ww = jax.lax.rem(pidx, W)

    # Horizontal-wrap masks, one single compare per shift amount, built once.
    col_ok = {}
    for rx in (1, 2, 3, 4):
        col_ok[rx] = ww < (W - rx)      # ww + rx <  W   (ww + rx >= 0 trivially)
        col_ok[-rx] = ww >= rx          # ww - rx >= 0   (ww - rx <  W trivially)

    # Zero the halo scratch every step: row over/under-flow taps read zeros
    # from the halo, and state never leaks across (possibly core-sharded)
    # grid iterations.  ~32 vreg stores; negligible.
    buf_ref[...] = jnp.zeros_like(buf_ref)

    def lrelu(v):
        return jnp.maximum(v, NEG_SLOPE * v)

    def conv3x3(a, wmat, bias, d, stage=True):
        """'same' 3x3 conv with dilation d, as one im2col matmul on the MXU.

        a    : (C_in, H*W)      channels on sublanes, pixels on lanes
        wmat : (C_out, 9*C_in)  tap-major / in-channel-minor repacked weights
        bias : (C_out, 1)
        stage=False reuses the activation already staged in the halo scratch.
        """
        cin = a.shape[0]
        if stage:
            buf_ref[0:cin, PAD:PAD + HW] = a            # stage into halo scratch
        taps = []
        for dy in (-1, 0, 1):
            for dx in (-1, 0, 1):
                if dy == 0 and dx == 0:
                    taps.append(a)                      # center tap: no shift/mask
                    continue
                start = PAD + dy * d * W + dx * d       # static lane offset
                sh = buf_ref[0:cin, start:start + HW]   # shifted pixels
                if dx == 0:
                    taps.append(sh)                     # rows handled by zero halo
                else:
                    taps.append(jnp.where(col_ok[dx * d], sh, 0.0))
        xcol = jnp.concatenate(taps, axis=0)            # (9*C_in, H*W)
        y = jnp.dot(wmat, xcol, preferred_element_type=jnp.float32)
        return y + bias

    # ---- Merge_Run_dual ------------------------------------------------------
    t1 = lrelu(conv3x3(x, w3_ref[0], b3_ref[0], 1))                 # body1 conv1
    t2 = lrelu(conv3x3(x, w3_ref[2], b3_ref[2], 3, stage=False))    # body2 conv1 (x reused)
    out1 = lrelu(conv3x3(t1, w3_ref[1], b3_ref[1], 2))              # body1 conv2 (dil 2)
    out2 = lrelu(conv3x3(t2, w3_ref[3], b3_ref[3], 4))              # body2 conv2 (dil 4)
    cat = jnp.concatenate([out1, out2], axis=0)                     # (2C, H*W)
    r1 = lrelu(conv3x3(cat, wb3_ref[...], bb3_ref[...], 1)) + x

    # ---- ResidualBlock -------------------------------------------------------
    t = lrelu(conv3x3(r1, w3_ref[4], b3_ref[4], 1))
    t = conv3x3(t, w3_ref[5], b3_ref[5], 1)
    r2 = jnp.maximum(t + r1, 0.0)                                   # ReLU

    # ---- EResidualBlock ------------------------------------------------------
    t = lrelu(conv3x3(r2, w3_ref[6], b3_ref[6], 1))
    t = lrelu(conv3x3(t, w3_ref[7], b3_ref[7], 1))
    t = jnp.dot(web3_ref[...], t, preferred_element_type=jnp.float32) + beb3_ref[...]
    r3 = jnp.maximum(t + r2, 0.0)

    # ---- CALayer (channel attention) -----------------------------------------
    # TODO(synk): the PyTorch CALayer passes (1, 1, 0) positionally into
    # BasicBlock's (init, ksize, stride) slots, yielding Conv2d(stride=0) which
    # cannot run in PyTorch; we implement the intended 1x1 / stride-1 / pad-0
    # squeeze-excite convs (RIDNet semantics).
    gap = jnp.mean(r3, axis=1, keepdims=True)                          # (C, 1)
    mid = jnp.sum(wca1t_ref[...] * gap, axis=0, keepdims=True)         # (1, C/r)
    mid = lrelu(mid + bca1_ref[...])
    scale = jnp.sum(wca2_ref[...] * mid, axis=1, keepdims=True)        # (C, 1)
    scale = jax.nn.sigmoid(scale + bca2_ref[...])
    o_ref[0] = (r3 * scale).astype(o_ref.dtype)


# ---------------------------------------------------------------------------
# Wrapper
# ---------------------------------------------------------------------------

def _pack3x3(w_oihw):
    """(O, I, 3, 3) PyTorch weights -> (O, 9*I), tap-major / in-channel-minor,
    matching the im2col row order built inside the kernel."""
    o, i = w_oihw.shape[0], w_oihw.shape[1]
    return jnp.transpose(w_oihw, (0, 2, 3, 1)).reshape(o, 9 * i)


# stacked 3x3 C->C convs, in the order they are consumed inside the kernel
_ORDER8 = ("b1c1", "b1c2", "b2c1", "b2c2", "rb1", "rb2", "eb1", "eb2")


def rablock_forward(x_nchw, params):
    """RABlock.forward as a single fused Pallas TPU kernel. NCHW in / out."""
    B, C, H, W = x_nchw.shape
    HW = H * W
    Cr = params["ca1_w"].shape[0]
    PAD = 4 * (W + 1)                       # halo for the largest dilation (4)

    w3 = jnp.stack([_pack3x3(params[k + "_w"]) for k in _ORDER8])       # (8, C, 9C)
    b3 = jnp.stack([params[k + "_b"].reshape(C, 1) for k in _ORDER8])   # (8, C, 1)
    wb3 = _pack3x3(params["b3_w"])                                      # (C, 18C)
    bb3 = params["b3_b"].reshape(C, 1)
    web3 = params["eb3_w"][:, :, 0, 0]                                  # (C, C)
    beb3 = params["eb3_b"].reshape(C, 1)
    wca1t = jnp.transpose(params["ca1_w"][:, :, 0, 0])                  # (C, Cr)
    bca1 = params["ca1_b"].reshape(1, Cr)
    wca2 = params["ca2_w"][:, :, 0, 0]                                  # (C, Cr)
    bca2 = params["ca2_b"].reshape(C, 1)

    xf = x_nchw.reshape(B, C, HW)           # free reshape; stays NCHW / lane-dense

    def whole(arr):
        nd = arr.ndim
        return pl.BlockSpec(arr.shape, lambda i, _n=nd: (0,) * _n)

    kern = functools.partial(_rablock_kernel, H=H, W=W, PAD=PAD)
    out = pl.pallas_call(
        kern,
        out_shape=jax.ShapeDtypeStruct((B, C, HW), x_nchw.dtype),
        grid=(B,),
        in_specs=[
            pl.BlockSpec((1, C, HW), lambda i: (i, 0, 0)),
            whole(w3), whole(b3), whole(wb3), whole(bb3),
            whole(web3), whole(beb3),
            whole(wca1t), whole(bca1), whole(wca2), whole(bca2),
        ],
        out_specs=pl.BlockSpec((1, C, HW), lambda i: (i, 0, 0)),
        scratch_shapes=[pltpu.VMEM((2 * C, HW + 2 * PAD), jnp.float32)],
        compiler_params=pltpu.CompilerParams(
            # batch axis is "parallel" -> megacore chips split the batch.
            # TODO(synk): for B == 1 at large resolutions, add a second
            # "parallel" grid axis over row tiles (with a 4-row halo) instead.
            dimension_semantics=("parallel",)),
    )(xf, w3, b3, wb3, bb3, web3, beb3, wca1t, bca1, wca2, bca2)
    return out.reshape(B, C, H, W)


# ---------------------------------------------------------------------------
# Pure-JAX reference (for verification)
# ---------------------------------------------------------------------------

def _forward_ref(x, p):
    def lrelu(v):
        return jnp.where(v >= 0, v, NEG_SLOPE * v)

    def conv(v, w, b, d=1):
        k = w.shape[-1]
        pad = d if k == 3 else 0
        y = jax.lax.conv_general_dilated(
            v, w, window_strides=(1, 1), padding=((pad, pad), (pad, pad)),
            rhs_dilation=(d, d), dimension_numbers=("NCHW", "OIHW", "NCHW"),
            precision=jax.lax.Precision.HIGHEST)
        return y + b.reshape(1, -1, 1, 1)

    # Merge_Run_dual
    o1 = lrelu(conv(x, p["b1c1_w"], p["b1c1_b"], 1))
    o1 = lrelu(conv(o1, p["b1c2_w"], p["b1c2_b"], 2))
    o2 = lrelu(conv(x, p["b2c1_w"], p["b2c1_b"], 3))
    o2 = lrelu(conv(o2, p["b2c2_w"], p["b2c2_b"], 4))
    c = jnp.concatenate([o1, o2], axis=1)
    r1 = lrelu(conv(c, p["b3_w"], p["b3_b"], 1)) + x
    # ResidualBlock
    t = lrelu(conv(r1, p["rb1_w"], p["rb1_b"], 1))
    t = conv(t, p["rb2_w"], p["rb2_b"], 1)
    r2 = jax.nn.relu(t + r1)
    # EResidualBlock
    t = lrelu(conv(r2, p["eb1_w"], p["eb1_b"], 1))
    t = lrelu(conv(t, p["eb2_w"], p["eb2_b"], 1))
    t = conv(t, p["eb3_w"], p["eb3_b"], 1)
    r3 = jax.nn.relu(t + r2)
    # CALayer
    gap = jnp.mean(r3, axis=(2, 3), keepdims=True)
    y1 = lrelu(conv(gap, p["ca1_w"], p["ca1_b"], 1))
    y2 = jax.nn.sigmoid(conv(y1, p["ca2_w"], p["ca2_b"], 1))
    return r3 * y2


# ---------------------------------------------------------------------------
# Main
# ---------------------------------------------------------------------------

if __name__ == "__main__":
    key = jax.random.PRNGKey(0)

    # channels must be >= 16 so CALayer's channel // 16 bottleneck is nonempty
    B, C, H, W = 2, 32, 16, 16
    reduction = 16
    Cr = C // reduction                     # = 2

    conv_defs = {
        # Merge_Run_dual
        "b1c1": (C, C, 3), "b1c2": (C, C, 3),
        "b2c1": (C, C, 3), "b2c2": (C, C, 3),
        "b3": (C, 2 * C, 3),
        # ResidualBlock
        "rb1": (C, C, 3), "rb2": (C, C, 3),
        # EResidualBlock
        "eb1": (C, C, 3), "eb2": (C, C, 3), "eb3": (C, C, 1),
        # CALayer
        "ca1": (Cr, C, 1), "ca2": (C, Cr, 1),
    }

    keys = jax.random.split(key, len(conv_defs) + 1)
    x = jax.random.normal(keys[0], (B, C, H, W), jnp.float32)

    params = {}
    for (name, (co, ci, k)), kk in zip(conv_defs.items(), keys[1:]):
        kw, kb = jax.random.split(kk)
        params[name + "_w"] = 0.05 * jax.random.normal(kw, (co, ci, k, k), jnp.float32)
        params[name + "_b"] = 0.05 * jax.random.normal(kb, (co,), jnp.float32)

    out = jax.block_until_ready(jax.jit(rablock_forward)(x, params))
    ref = jax.block_until_ready(_forward_ref(x, params))

    assert out.shape == (B, C, H, W), out.shape
    max_err = float(jnp.max(jnp.abs(out - ref)))
    assert jnp.allclose(out, ref, atol=2e-3, rtol=2e-3), max_err

    print("KERNEL_OK")
</pallas_src>

<mosaic_0001>
module attributes {stable_mosaic.version = 11 : i64} {
  func.func @_rablock_kernel(%arg0: i32, %arg1: memref<1x32x256xf32, #tpu.memory_space<vmem>>, %arg2: memref<8x32x288xf32, #tpu.memory_space<vmem>>, %arg3: memref<8x32x1xf32, #tpu.memory_space<vmem>>, %arg4: memref<32x576xf32, #tpu.memory_space<vmem>>, %arg5: memref<32x1xf32, #tpu.memory_space<vmem>>, %arg6: memref<32x32xf32, #tpu.memory_space<vmem>>, %arg7: memref<32x1xf32, #tpu.memory_space<vmem>>, %arg8: memref<32x2xf32, #tpu.memory_space<vmem>>, %arg9: memref<1x2xf32, #tpu.memory_space<vmem>>, %arg10: memref<32x2xf32, #tpu.memory_space<vmem>>, %arg11: memref<32x1xf32, #tpu.memory_space<vmem>>, %arg12: memref<1x32x256xf32, #tpu.memory_space<vmem>>, %arg13: memref<64x392xf32, #tpu.memory_space<vmem>>) attributes {dimension_semantics = [#tpu.dimension_semantics<parallel>], iteration_bounds = array<i64: 2>, scalar_prefetch = 0 : i64, scratch_operands = 1 : i64, tpu.core_type = #tpu.core_type<tc>, window_params = [{transform_indices = @transform_0, window_bounds = array<i64: 1, 32, 256>}, {pipeline_mode = #tpu.pipeline_mode<synchronous>, transform_indices = @transform_1, window_bounds = array<i64: 8, 32, 288>}, {pipeline_mode = #tpu.pipeline_mode<synchronous>, transform_indices = @transform_2, window_bounds = array<i64: 8, 32, 1>}, {pipeline_mode = #tpu.pipeline_mode<synchronous>, transform_indices = @transform_3, window_bounds = array<i64: 32, 576>}, {pipeline_mode = #tpu.pipeline_mode<synchronous>, transform_indices = @transform_4, window_bounds = array<i64: 32, 1>}, {pipeline_mode = #tpu.pipeline_mode<synchronous>, transform_indices = @transform_5, window_bounds = array<i64: 32, 32>}, {pipeline_mode = #tpu.pipeline_mode<synchronous>, transform_indices = @transform_6, window_bounds = array<i64: 32, 1>}, {pipeline_mode = #tpu.pipeline_mode<synchronous>, transform_indices = @transform_7, window_bounds = array<i64: 32, 2>}, {pipeline_mode = #tpu.pipeline_mode<synchronous>, transform_indices = @transform_8, window_bounds = array<i64: 1, 2>}, {pipeline_mode = #tpu.pipeline_mode<synchronous>, transform_indices = @transform_9, window_bounds = array<i64: 32, 2>}, {pipeline_mode = #tpu.pipeline_mode<synchronous>, transform_indices = @transform_10, window_bounds = array<i64: 32, 1>}, {transform_indices = @transform_11, window_bounds = array<i64: 1, 32, 256>}]} {
    %c0 = arith.constant 0 : index
    %c0_0 = arith.constant 0 : index
    %c0_1 = arith.constant 0 : index
    %0 = vector.load %arg1[%c0, %c0_0, %c0_1] : memref<1x32x256xf32, #tpu.memory_space<vmem>>, vector<1x32x256xf32>
    %1 = vector.shape_cast %0 : vector<1x32x256xf32> to vector<32x256xf32>
    %2 = tpu.iota {dimensions = array<i32: 1>} : vector<1x256xi32>
    %c16_i32 = arith.constant 16 : i32
    %3 = vector.broadcast %c16_i32 : i32 to vector<1x256xi32>
    %4 = arith.remsi %2, %3 : vector<1x256xi32>
    %c15_i32 = arith.constant 15 : i32
    %5 = vector.broadcast %c15_i32 : i32 to vector<1x256xi32>
    %6 = arith.cmpi slt, %4, %5 : vector<1x256xi32>
    %c1_i32 = arith.constant 1 : i32
    %7 = vector.broadcast %c1_i32 : i32 to vector<1x256xi32>
    %8 = arith.cmpi sge, %4, %7 : vector<1x256xi32>
    %c14_i32 = arith.constant 14 : i32
    %9 = vector.broadcast %c14_i32 : i32 to vector<1x256xi32>
    %10 = arith.cmpi slt, %4, %9 : vector<1x256xi32>
    %c2_i32 = arith.constant 2 : i32
    %11 = vector.broadcast %c2_i32 : i32 to vector<1x256xi32>
    %12 = arith.cmpi sge, %4, %11 : vector<1x256xi32>
    %c13_i32 = arith.constant 13 : i32
    %13 = vector.broadcast %c13_i32 : i32 to vector<1x256xi32>
    %14 = arith.cmpi slt, %4, %13 : vector<1x256xi32>
    %c3_i32 = arith.constant 3 : i32
    %15 = vector.broadcast %c3_i32 : i32 to vector<1x256xi32>
    %16 = arith.cmpi sge, %4, %15 : vector<1x256xi32>
    %c12_i32 = arith.constant 12 : i32
    %17 = vector.broadcast %c12_i32 : i32 to vector<1x256xi32>
    %18 = arith.cmpi slt, %4, %17 : vector<1x256xi32>
    %c4_i32 = arith.constant 4 : i32
    %19 = vector.broadcast %c4_i32 : i32 to vector<1x256xi32>
    %20 = arith.cmpi sge, %4, %19 : vector<1x256xi32>
    %cst = arith.constant 0.000000e+00 : f32
    %21 = vector.broadcast %cst : f32 to vector<64x392xf32>
    %c0_2 = arith.constant 0 : index
    %c0_3 = arith.constant 0 : index
    %22 = vector.load %arg13[%c0_2, %c0_3] : memref<64x392xf32, #tpu.memory_space<vmem>>, vector<64x392xf32>
    tpu.vector_store %arg13[%c0_2, %c0_3], %21 {strides = array<i32>} : memref<64x392xf32, #tpu.memory_space<vmem>>, vector<64x392xf32>,
    %c0_4 = arith.constant 0 : index
    %c0_5 = arith.constant 0 : index
    %c0_6 = arith.constant 0 : index
    %23 = vector.load %arg2[%c0_4, %c0_5, %c0_6] : memref<8x32x288xf32, #tpu.memory_space<vmem>>, vector<1x32x288xf32>
    %24 = vector.shape_cast %23 : vector<1x32x288xf32> to vector<32x288xf32>
    %c0_7 = arith.constant 0 : index
    %c0_8 = arith.constant 0 : index
    %c0_9 = arith.constant 0 : index
    %25 = vector.load %arg3[%c0_7, %c0_8, %c0_9] : memref<8x32x1xf32, #tpu.memory_space<vmem>>, vector<1x32x1xf32>
    %26 = vector.shape_cast %25 : vector<1x32x1xf32> to vector<32x1xf32>
    %c0_10 = arith.constant 0 : index
    %c68 = arith.constant 68 : index
    %27 = vector.load %arg13[%c0_10, %c68] : memref<64x392xf32, #tpu.memory_space<vmem>>, vector<32x256xf32>
    tpu.vector_store %arg13[%c0_10, %c68], %1 {strides = array<i32>} : memref<64x392xf32, #tpu.memory_space<vmem>>, vector<32x256xf32>,
    %c0_11 = arith.constant 0 : index
    %c51 = arith.constant 51 : index
    %28 = vector.load %arg13[%c0_11, %c51] : memref<64x392xf32, #tpu.memory_space<vmem>>, vector<32x256xf32>
    %cst_12 = arith.constant 0.000000e+00 : f32
    %29 = vector.shape_cast %8 : vector<1x256xi1> to vector<1x256xi1>
    %30 = vector.broadcast %29 : vector<1x256xi1> to vector<32x256xi1>
    %31 = vector.broadcast %cst_12 : f32 to vector<32x256xf32>
    %32 = arith.select %30, %28, %31 : vector<32x256xi1>, vector<32x256xf32>
    %c0_13 = arith.constant 0 : index
    %c52 = arith.constant 52 : index
    %33 = vector.load %arg13[%c0_13, %c52] : memref<64x392xf32, #tpu.memory_space<vmem>>, vector<32x256xf32>
    %c0_14 = arith.constant 0 : index
    %c53 = arith.constant 53 : index
    %34 = vector.load %arg13[%c0_14, %c53] : memref<64x392xf32, #tpu.memory_space<vmem>>, vector<32x256xf32>
    %cst_15 = arith.constant 0.000000e+00 : f32
    %35 = vector.shape_cast %6 : vector<1x256xi1> to vector<1x256xi1>
    %36 = vector.broadcast %35 : vector<1x256xi1> to vector<32x256xi1>
    %37 = vector.broadcast %cst_15 : f32 to vector<32x256xf32>
    %38 = arith.select %36, %34, %37 : vector<32x256xi1>, vector<32x256xf32>
    %c0_16 = arith.constant 0 : index
    %c67 = arith.constant 67 : index
    %39 = vector.load %arg13[%c0_16, %c67] : memref<64x392xf32, #tpu.memory_space<vmem>>, vector<32x256xf32>
    %cst_17 = arith.constant 0.000000e+00 : f32
    %40 = vector.shape_cast %8 : vector<1x256xi1> to vector<1x256xi1>
    %41 = vector.broadcast %40 : vector<1x256xi1> to vector<32x256xi1>
    %42 = vector.broadcast %cst_17 : f32 to vector<32x256xf32>
    %43 = arith.select %41, %39, %42 : vector<32x256xi1>, vector<32x256xf32>
    %c0_18 = arith.constant 0 : index
    %c69 = arith.constant 69 : index
    %44 = vector.load %arg13[%c0_18, %c69] : memref<64x392xf32, #tpu.memory_space<vmem>>, vector<32x256xf32>
    %cst_19 = arith.constant 0.000000e+00 : f32
    %45 = vector.shape_cast %6 : vector<1x256xi1> to vector<1x256xi1>
    %46 = vector.broadcast %45 : vector<1x256xi1> to vector<32x256xi1>
    %47 = vector.broadcast %cst_19 : f32 to vector<32x256xf32>
    %48 = arith.select %46, %44, %47 : vector<32x256xi1>, vector<32x256xf32>
    %c0_20 = arith.constant 0 : index
    %c83 = arith.constant 83 : index
    %49 = vector.load %arg13[%c0_20, %c83] : memref<64x392xf32, #tpu.memory_space<vmem>>, vector<32x256xf32>
    %cst_21 = arith.constant 0.000000e+00 : f32
    %50 = vector.shape_cast %8 : vector<1x256xi1> to vector<1x256xi1>
    %51 = vector.broadcast %50 : vector<1x256xi1> to vector<32x256xi1>
    %52 = vector.broadcast %cst_21 : f32 to vector<32x256xf32>
    %53 = arith.select %51, %49, %52 : vector<32x256xi1>, vector<32x256xf32>
    %c0_22 = arith.constant 0 : index
    %c84 = arith.constant 84 : index
    %54 = vector.load %arg13[%c0_22, %c84] : memref<64x392xf32, #tpu.memory_space<vmem>>, vector<32x256xf32>
    %c0_23 = arith.constant 0 : index
    %c85 = arith.constant 85 : index
    %55 = vector.load %arg13[%c0_23, %c85] : memref<64x392xf32, #tpu.memory_space<vmem>>, vector<32x256xf32>
    %cst_24 = arith.constant 0.000000e+00 : f32
    %56 = vector.shape_cast %6 : vector<1x256xi1> to vector<1x256xi1>
    %57 = vector.broadcast %56 : vector<1x256xi1> to vector<32x256xi1>
    %58 = vector.broadcast %cst_24 : f32 to vector<32x256xf32>
    %59 = arith.select %57, %55, %58 : vector<32x256xi1>, vector<32x256xf32>
    %60 = tpu.concatenate %32, %33, %38, %43, %1, %48, %53, %54, %59 in 0 : vector<32x256xf32>, vector<32x256xf32>, vector<32x256xf32>, vector<32x256xf32>, vector<32x256xf32>, vector<32x256xf32>, vector<32x256xf32>, vector<32x256xf32>, vector<32x256xf32> -> vector<288x256xf32>
    %cst_25 = arith.constant dense<0.000000e+00> : vector<32x256xf32>
    %61 = tpu.matmul %24, %60, %cst_25 {dimension_numbers = #tpu.dot_dimension_numbers<[1], [0], [0], [1], [0, 0, 1, 1], [], []>} : vector<32x288xf32>, vector<288x256xf32>, vector<32x256xf32> -> vector<32x256xf32>
    %62 = vector.broadcast %26 : vector<32x1xf32> to vector<32x256xf32>
    %63 = arith.addf %61, %62 : vector<32x256xf32>
    %cst_26 = arith.constant 2.000000e-01 : f32
    %64 = vector.broadcast %cst_26 : f32 to vector<32x256xf32>
    %65 = arith.mulf %64, %63 : vector<32x256xf32>
    %66 = arith.maximumf %63, %65 : vector<32x256xf32>
    %c2 = arith.constant 2 : index
    %c0_27 = arith.constant 0 : index
    %c0_28 = arith.constant 0 : index
    %67 = vector.load %arg2[%c2, %c0_27, %c0_28] : memref<8x32x288xf32, #tpu.memory_space<vmem>>, vector<1x32x288xf32>
    %68 = vector.shape_cast %67 : vector<1x32x288xf32> to vector<32x288xf32>
    %c2_29 = arith.constant 2 : index
    %c0_30 = arith.constant 0 : index
    %c0_31 = arith.constant 0 : index
    %69 = vector.load %arg3[%c2_29, %c0_30, %c0_31] : memref<8x32x1xf32, #tpu.memory_space<vmem>>, vector<1x32x1xf32>
    %70 = vector.shape_cast %69 : vector<1x32x1xf32> to vector<32x1xf32>
    %c0_32 = arith.constant 0 : index
    %c17 = arith.constant 17 : index
    %71 = vector.load %arg13[%c0_32, %c17] : memref<64x392xf32, #tpu.memory_space<vmem>>, vector<32x256xf32>
    %cst_33 = arith.constant 0.000000e+00 : f32
    %72 = vector.shape_cast %16 : vector<1x256xi1> to vector<1x256xi1>
    %73 = vector.broadcast %72 : vector<1x256xi1> to vector<32x256xi1>
    %74 = vector.broadcast %cst_33 : f32 to vector<32x256xf32>
    %75 = arith.select %73, %71, %74 : vector<32x256xi1>, vector<32x256xf32>
    %c0_34 = arith.constant 0 : index
    %c20 = arith.constant 20 : index
    %76 = vector.load %arg13[%c0_34, %c20] : memref<64x392xf32, #tpu.memory_space<vmem>>, vector<32x256xf32>
    %c0_35 = arith.constant 0 : index
    %c23 = arith.constant 23 : index
    %77 = vector.load %arg13[%c0_35, %c23] : memref<64x392xf32, #tpu.memory_space<vmem>>, vector<32x256xf32>
    %cst_36 = arith.constant 0.000000e+00 : f32
    %78 = vector.shape_cast %14 : vector<1x256xi1> to vector<1x256xi1>
    %79 = vector.broadcast %78 : vector<1x256xi1> to vector<32x256xi1>
    %80 = vector.broadcast %cst_36 : f32 to vector<32x256xf32>
    %81 = arith.select %79, %77, %80 : vector<32x256xi1>, vector<32x256xf32>
    %c0_37 = arith.constant 0 : index
    %c65 = arith.constant 65 : index
    %82 = vector.load %arg13[%c0_37, %c65] : memref<64x392xf32, #tpu.memory_space<vmem>>, vector<32x256xf32>
    %cst_38 = arith.constant 0.000000e+00 : f32
    %83 = vector.shape_cast %16 : vector<1x256xi1> to vector<1x256xi1>
    %84 = vector.broadcast %83 : vector<1x256xi1> to vector<32x256xi1>
    %85 = vector.broadcast %cst_38 : f32 to vector<32x256xf32>
    %86 = arith.select %84, %82, %85 : vector<32x256xi1>, vector<32x256xf32>
    %c0_39 = arith.constant 0 : index
    %c71 = arith.constant 71 : index
    %87 = vector.load %arg13[%c0_39, %c71] : memref<64x392xf32, #tpu.memory_space<vmem>>, vector<32x256xf32>
    %cst_40 = arith.constant 0.000000e+00 : f32
    %88 = vector.shape_cast %14 : vector<1x256xi1> to vector<1x256xi1>
    %89 = vector.broadcast %88 : vector<1x256xi1> to vector<32x256xi1>
    %90 = vector.broadcast %cst_40 : f32 to vector<32x256xf32>
    %91 = arith.select %89, %87, %90 : vector<32x256xi1>, vector<32x256xf32>
    %c0_41 = arith.constant 0 : index
    %c113 = arith.constant 113 : index
    %92 = vector.load %arg13[%c0_41, %c113] : memref<64x392xf32, #tpu.memory_space<vmem>>, vector<32x256xf32>
    %cst_42 = arith.constant 0.000000e+00 : f32
    %93 = vector.shape_cast %16 : vector<1x256xi1> to vector<1x256xi1>
    %94 = vector.broadcast %93 : vector<1x256xi1> to vector<32x256xi1>
    %95 = vector.broadcast %cst_42 : f32 to vector<32x256xf32>
    %96 = arith.select %94, %92, %95 : vector<32x256xi1>, vector<32x256xf32>
    %c0_43 = arith.constant 0 : index
    %c116 = arith.constant 116 : index
    %97 = vector.load %arg13[%c0_43, %c116] : memref<64x392xf32, #tpu.memory_space<vmem>>, vector<32x256xf32>
    %c0_44 = arith.constant 0 : index
    %c119 = arith.constant 119 : index
    %98 = vector.load %arg13[%c0_44, %c119] : memref<64x392xf32, #tpu.memory_space<vmem>>, vector<32x256xf32>
    %cst_45 = arith.constant 0.000000e+00 : f32
    %99 = vector.shape_cast %14 : vector<1x256xi1> to vector<1x256xi1>
    %100 = vector.broadcast %99 : vector<1x256xi1> to vector<32x256xi1>
    %101 = vector.broadcast %cst_45 : f32 to vector<32x256xf32>
    %102 = arith.select %100, %98, %101 : vector<32x256xi1>, vector<32x256xf32>
    %103 = tpu.concatenate %75, %76, %81, %86, %1, %91, %96, %97, %102 in 0 : vector<32x256xf32>, vector<32x256xf32>, vector<32x256xf32>, vector<32x256xf32>, vector<32x256xf32>, vector<32x256xf32>, vector<32x256xf32>, vector<32x256xf32>, vector<32x256xf32> -> vector<288x256xf32>
    %cst_46 = arith.constant dense<0.000000e+00> : vector<32x256xf32>
    %104 = tpu.matmul %68, %103, %cst_46 {dimension_numbers = #tpu.dot_dimension_numbers<[1], [0], [0], [1], [0, 0, 1, 1], [], []>} : vector<32x288xf32>, vector<288x256xf32>, vector<32x256xf32> -> vector<32x256xf32>
    %105 = vector.broadcast %70 : vector<32x1xf32> to vector<32x256xf32>
    %106 = arith.addf %104, %105 : vector<32x256xf32>
    %cst_47 = arith.constant 2.000000e-01 : f32
    %107 = vector.broadcast %cst_47 : f32 to vector<32x256xf32>
    %108 = arith.mulf %107, %106 : vector<32x256xf32>
    %109 = arith.maximumf %106, %108 : vector<32x256xf32>
    %c1 = arith.constant 1 : index
    %c0_48 = arith.constant 0 : index
    %c0_49 = arith.constant 0 : index
    %110 = vector.load %arg2[%c1, %c0_48, %c0_49] : memref<8x32x288xf32, #tpu.memory_space<vmem>>, vector<1x32x288xf32>
    %111 = vector.shape_cast %110 : vector<1x32x288xf32> to vector<32x288xf32>
    %c1_50 = arith.constant 1 : index
    %c0_51 = arith.constant 0 : index
    %c0_52 = arith.constant 0 : index
    %112 = vector.load %arg3[%c1_50, %c0_51, %c0_52] : memref<8x32x1xf32, #tpu.memory_space<vmem>>, vector<1x32x1xf32>
    %113 = vector.shape_cast %112 : vector<1x32x1xf32> to vector<32x1xf32>
    %c0_53 = arith.constant 0 : index
    %c68_54 = arith.constant 68 : index
    %114 = vector.load %arg13[%c0_53, %c68_54] : memref<64x392xf32, #tpu.memory_space<vmem>>, vector<32x256xf32>
    tpu.vector_store %arg13[%c0_53, %c68_54], %66 {strides = array<i32>} : memref<64x392xf32, #tpu.memory_space<vmem>>, vector<32x256xf32>,
    %c0_55 = arith.constant 0 : index
    %c34 = arith.constant 34 : index
    %115 = vector.load %arg13[%c0_55, %c34] : memref<64x392xf32, #tpu.memory_space<vmem>>, vector<32x256xf32>
    %cst_56 = arith.constant 0.000000e+00 : f32
    %116 = vector.shape_cast %12 : vector<1x256xi1> to vector<1x256xi1>
    %117 = vector.broadcast %116 : vector<1x256xi1> to vector<32x256xi1>
    %118 = vector.broadcast %cst_56 : f32 to vector<32x256xf32>
    %119 = arith.select %117, %115, %118 : vector<32x256xi1>, vector<32x256xf32>
    %c0_57 = arith.constant 0 : index
    %c36 = arith.constant 36 : index
    %120 = vector.load %arg13[%c0_57, %c36] : memref<64x392xf32, #tpu.memory_space<vmem>>, vector<32x256xf32>
    %c0_58 = arith.constant 0 : index
    %c38 = arith.constant 38 : index
    %121 = vector.load %arg13[%c0_58, %c38] : memref<64x392xf32, #tpu.memory_space<vmem>>, vector<32x256xf32>
    %cst_59 = arith.constant 0.000000e+00 : f32
    %122 = vector.shape_cast %10 : vector<1x256xi1> to vector<1x256xi1>
    %123 = vector.broadcast %122 : vector<1x256xi1> to vector<32x256xi1>
    %124 = vector.broadcast %cst_59 : f32 to vector<32x256xf32>
    %125 = arith.select %123, %121, %124 : vector<32x256xi1>, vector<32x256xf32>
    %c0_60 = arith.constant 0 : index
    %c66 = arith.constant 66 : index
    %126 = vector.load %arg13[%c0_60, %c66] : memref<64x392xf32, #tpu.memory_space<vmem>>, vector<32x256xf32>
    %cst_61 = arith.constant 0.000000e+00 : f32
    %127 = vector.shape_cast %12 : vector<1x256xi1> to vector<1x256xi1>
    %128 = vector.broadcast %127 : vector<1x256xi1> to vector<32x256xi1>
    %129 = vector.broadcast %cst_61 : f32 to vector<32x256xf32>
    %130 = arith.select %128, %126, %129 : vector<32x256xi1>, vector<32x256xf32>
    %c0_62 = arith.constant 0 : index
    %c70 = arith.constant 70 : index
    %131 = vector.load %arg13[%c0_62, %c70] : memref<64x392xf32, #tpu.memory_space<vmem>>, vector<32x256xf32>
    %cst_63 = arith.constant 0.000000e+00 : f32
    %132 = vector.shape_cast %10 : vector<1x256xi1> to vector<1x256xi1>
    %133 = vector.broadcast %132 : vector<1x256xi1> to vector<32x256xi1>
    %134 = vector.broadcast %cst_63 : f32 to vector<32x256xf32>
    %135 = arith.select %133, %131, %134 : vector<32x256xi1>, vector<32x256xf32>
    %c0_64 = arith.constant 0 : index
    %c98 = arith.constant 98 : index
    %136 = vector.load %arg13[%c0_64, %c98] : memref<64x392xf32, #tpu.memory_space<vmem>>, vector<32x256xf32>
    %cst_65 = arith.constant 0.000000e+00 : f32
    %137 = vector.shape_cast %12 : vector<1x256xi1> to vector<1x256xi1>
    %138 = vector.broadcast %137 : vector<1x256xi1> to vector<32x256xi1>
    %139 = vector.broadcast %cst_65 : f32 to vector<32x256xf32>
    %140 = arith.select %138, %136, %139 : vector<32x256xi1>, vector<32x256xf32>
    %c0_66 = arith.constant 0 : index
    %c100 = arith.constant 100 : index
    %141 = vector.load %arg13[%c0_66, %c100] : memref<64x392xf32, #tpu.memory_space<vmem>>, vector<32x256xf32>
    %c0_67 = arith.constant 0 : index
    %c102 = arith.constant 102 : index
    %142 = vector.load %arg13[%c0_67, %c102] : memref<64x392xf32, #tpu.memory_space<vmem>>, vector<32x256xf32>
    %cst_68 = arith.constant 0.000000e+00 : f32
    %143 = vector.shape_cast %10 : vector<1x256xi1> to vector<1x256xi1>
    %144 = vector.broadcast %143 : vector<1x256xi1> to vector<32x256xi1>
    %145 = vector.broadcast %cst_68 : f32 to vector<32x256xf32>
    %146 = arith.select %144, %142, %145 : vector<32x256xi1>, vector<32x256xf32>
    %147 = tpu.concatenate %119, %120, %125, %130, %66, %135, %140, %141, %146 in 0 : vector<32x256xf32>, vector<32x256xf32>, vector<32x256xf32>, vector<32x256xf32>, vector<32x256xf32>, vector<32x256xf32>, vector<32x256xf32>, vector<32x256xf32>, vector<32x256xf32> -> vector<288x256xf32>
    %cst_69 = arith.constant dense<0.000000e+00> : vector<32x256xf32>
    %148 = tpu.matmul %111, %147, %cst_69 {dimension_numbers = #tpu.dot_dimension_numbers<[1], [0], [0], [1], [0, 0, 1, 1], [], []>} : vector<32x288xf32>, vector<288x256xf32>, vector<32x256xf32> -> vector<32x256xf32>
    %149 = vector.broadcast %113 : vector<32x1xf32> to vector<32x256xf32>
    %150 = arith.addf %148, %149 : vector<32x256xf32>
    %cst_70 = arith.constant 2.000000e-01 : f32
    %151 = vector.broadcast %cst_70 : f32 to vector<32x256xf32>
    %152 = arith.mulf %151, %150 : vector<32x256xf32>
    %153 = arith.maximumf %150, %152 : vector<32x256xf32>
    %c3 = arith.constant 3 : index
    %c0_71 = arith.constant 0 : index
    %c0_72 = arith.constant 0 : index
    %154 = vector.load %arg2[%c3, %c0_71, %c0_72] : memref<8x32x288xf32, #tpu.memory_space<vmem>>, vector<1x32x288xf32>
    %155 = vector.shape_cast %154 : vector<1x32x288xf32> to vector<32x288xf32>
    %c3_73 = arith.constant 3 : index
    %c0_74 = arith.constant 0 : index
    %c0_75 = arith.constant 0 : index
    %156 = vector.load %arg3[%c3_73, %c0_74, %c0_75] : memref<8x32x1xf32, #tpu.memory_space<vmem>>, vector<1x32x1xf32>
    %157 = vector.shape_cast %156 : vector<1x32x1xf32> to vector<32x1xf32>
    %c0_76 = arith.constant 0 : index
    %c68_77 = arith.constant 68 : index
    %158 = vector.load %arg13[%c0_76, %c68_77] : memref<64x392xf32, #tpu.memory_space<vmem>>, vector<32x256xf32>
    tpu.vector_store %arg13[%c0_76, %c68_77], %109 {strides = array<i32>} : memref<64x392xf32, #tpu.memory_space<vmem>>, vector<32x256xf32>,
    %c0_78 = arith.constant 0 : index
    %c0_79 = arith.constant 0 : index
    %159 = vector.load %arg13[%c0_78, %c0_79] : memref<64x392xf32, #tpu.memory_space<vmem>>, vector<32x256xf32>
    %cst_80 = arith.constant 0.000000e+00 : f32
    %160 = vector.shape_cast %20 : vector<1x256xi1> to vector<1x256xi1>
    %161 = vector.broadcast %160 : vector<1x256xi1> to vector<32x256xi1>
    %162 = vector.broadcast %cst_80 : f32 to vector<32x256xf32>
    %163 = arith.select %161, %159, %162 : vector<32x256xi1>, vector<32x256xf32>
    %c0_81 = arith.constant 0 : index
    %c4 = arith.constant 4 : index
    %164 = vector.load %arg13[%c0_81, %c4] : memref<64x392xf32, #tpu.memory_space<vmem>>, vector<32x256xf32>
    %c0_82 = arith.constant 0 : index
    %c8 = arith.constant 8 : index
    %165 = vector.load %arg13[%c0_82, %c8] : memref<64x392xf32, #tpu.memory_space<vmem>>, vector<32x256xf32>
    %cst_83 = arith.constant 0.000000e+00 : f32
    %166 = vector.shape_cast %18 : vector<1x256xi1> to vector<1x256xi1>
    %167 = vector.broadcast %166 : vector<1x256xi1> to vector<32x256xi1>
    %168 = vector.broadcast %cst_83 : f32 to vector<32x256xf32>
    %169 = arith.select %167, %165, %168 : vector<32x256xi1>, vector<32x256xf32>
    %c0_84 = arith.constant 0 : index
    %c64 = arith.constant 64 : index
    %170 = vector.load %arg13[%c0_84, %c64] : memref<64x392xf32, #tpu.memory_space<vmem>>, vector<32x256xf32>
    %cst_85 = arith.constant 0.000000e+00 : f32
    %171 = vector.shape_cast %20 : vector<1x256xi1> to vector<1x256xi1>
    %172 = vector.broadcast %171 : vector<1x256xi1> to vector<32x256xi1>
    %173 = vector.broadcast %cst_85 : f32 to vector<32x256xf32>
    %174 = arith.select %172, %170, %173 : vector<32x256xi1>, vector<32x256xf32>
    %c0_86 = arith.constant 0 : index
    %c72 = arith.constant 72 : index
    %175 = vector.load %arg13[%c0_86, %c72] : memref<64x392xf32, #tpu.memory_space<vmem>>, vector<32x256xf32>
    %cst_87 = arith.constant 0.000000e+00 : f32
    %176 = vector.shape_cast %18 : vector<1x256xi1> to vector<1x256xi1>
    %177 = vector.broadcast %176 : vector<1x256xi1> to vector<32x256xi1>
    %178 = vector.broadcast %cst_87 : f32 to vector<32x256xf32>
    %179 = arith.select %177, %175, %178 : vector<32x256xi1>, vector<32x256xf32>
    %c0_88 = arith.constant 0 : index
    %c128 = arith.constant 128 : index
    %180 = vector.load %arg13[%c0_88, %c128] : memref<64x392xf32, #tpu.memory_space<vmem>>, vector<32x256xf32>
    %cst_89 = arith.constant 0.000000e+00 : f32
    %181 = vector.shape_cast %20 : vector<1x256xi1> to vector<1x256xi1>
    %182 = vector.broadcast %181 : vector<1x256xi1> to vector<32x256xi1>
    %183 = vector.broadcast %cst_89 : f32 to vector<32x256xf32>
    %184 = arith.select %182, %180, %183 : vector<32x256xi1>, vector<32x256xf32>
    %c0_90 = arith.constant 0 : index
    %c132 = arith.constant 132 : index
    %185 = vector.load %arg13[%c0_90, %c132] : memref<64x392xf32, #tpu.memory_space<vmem>>, vector<32x256xf32>
    %c0_91 = arith.constant 0 : index
    %c136 = arith.constant 136 : index
    %186 = vector.load %arg13[%c0_91, %c136] : memref<64x392xf32, #tpu.memory_space<vmem>>, vector<32x256xf32>
    %cst_92 = arith.constant 0.000000e+00 : f32
    %187 = vector.shape_cast %18 : vector<1x256xi1> to vector<1x256xi1>
    %188 = vector.broadcast %187 : vector<1x256xi1> to vector<32x256xi1>
    %189 = vector.broadcast %cst_92 : f32 to vector<32x256xf32>
    %190 = arith.select %188, %186, %189 : vector<32x256xi1>, vector<32x256xf32>
    %191 = tpu.concatenate %163, %164, %169, %174, %109, %179, %184, %185, %190 in 0 : vector<32x256xf32>, vector<32x256xf32>, vector<32x256xf32>, vector<32x256xf32>, vector<32x256xf32>, vector<32x256xf32>, vector<32x256xf32>, vector<32x256xf32>, vector<32x256xf32> -> vector<288x256xf32>
    %cst_93 = arith.constant dense<0.000000e+00> : vector<32x256xf32>
    %192 = tpu.matmul %155, %191, %cst_93 {dimension_numbers = #tpu.dot_dimension_numbers<[1], [0], [0], [1], [0, 0, 1, 1], [], []>} : vector<32x288xf32>, vector<288x256xf32>, vector<32x256xf32> -> vector<32x256xf32>
    %193 = vector.broadcast %157 : vector<32x1xf32> to vector<32x256xf32>
    %194 = arith.addf %192, %193 : vector<32x256xf32>
    %cst_94 = arith.constant 2.000000e-01 : f32
    %195 = vector.broadcast %cst_94 : f32 to vector<32x256xf32>
    %196 = arith.mulf %195, %194 : vector<32x256xf32>
    %197 = arith.maximumf %194, %196 : vector<32x256xf32>
    %198 = tpu.concatenate %153, %197 in 0 : vector<32x256xf32>, vector<32x256xf32> -> vector<64x256xf32>
    %c0_95 = arith.constant 0 : index
    %c0_96 = arith.constant 0 : index
    %199 = vector.load %arg4[%c0_95, %c0_96] : memref<32x576xf32, #tpu.memory_space<vmem>>, vector<32x576xf32>
    %c0_97 = arith.constant 0 : index
    %c0_98 = arith.constant 0 : index
    %200 = vector.load %arg5[%c0_97, %c0_98] : memref<32x1xf32, #tpu.memory_space<vmem>>, vector<32x1xf32>
    %c0_99 = arith.constant 0 : index
    %c68_100 = arith.constant 68 : index
    %201 = vector.load %arg13[%c0_99, %c68_100] : memref<64x392xf32, #tpu.memory_space<vmem>>, vector<64x256xf32>
    tpu.vector_store %arg13[%c0_99, %c68_100], %198 {strides = array<i32>} : memref<64x392xf32, #tpu.memory_space<vmem>>, vector<64x256xf32>,
    %c0_101 = arith.constant 0 : index
    %c51_102 = arith.constant 51 : index
    %202 = vector.load %arg13[%c0_101, %c51_102] : memref<64x392xf32, #tpu.memory_space<vmem>>, vector<64x256xf32>
    %cst_103 = arith.constant 0.000000e+00 : f32
    %203 = vector.shape_cast %8 : vector<1x256xi1> to vector<1x256xi1>
    %204 = vector.broadcast %203 : vector<1x256xi1> to vector<64x256xi1>
    %205 = vector.broadcast %cst_103 : f32 to vector<64x256xf32>
    %206 = arith.select %204, %202, %205 : vector<64x256xi1>, vector<64x256xf32>
    %c0_104 = arith.constant 0 : index
    %c52_105 = arith.constant 52 : index
    %207 = vector.load %arg13[%c0_104, %c52_105] : memref<64x392xf32, #tpu.memory_space<vmem>>, vector<64x256xf32>
    %c0_106 = arith.constant 0 : index
    %c53_107 = arith.constant 53 : index
    %208 = vector.load %arg13[%c0_106, %c53_107] : memref<64x392xf32, #tpu.memory_space<vmem>>, vector<64x256xf32>
    %cst_108 = arith.constant 0.000000e+00 : f32
    %209 = vector.shape_cast %6 : vector<1x256xi1> to vector<1x256xi1>
    %210 = vector.broadcast %209 : vector<1x256xi1> to vector<64x256xi1>
    %211 = vector.broadcast %cst_108 : f32 to vector<64x256xf32>
    %212 = arith.select %210, %208, %211 : vector<64x256xi1>, vector<64x256xf32>
    %c0_109 = arith.constant 0 : index
    %c67_110 = arith.constant 67 : index
    %213 = vector.load %arg13[%c0_109, %c67_110] : memref<64x392xf32, #tpu.memory_space<vmem>>, vector<64x256xf32>
    %cst_111 = arith.constant 0.000000e+00 : f32
    %214 = vector.shape_cast %8 : vector<1x256xi1> to vector<1x256xi1>
    %215 = vector.broadcast %214 : vector<1x256xi1> to vector<64x256xi1>
    %216 = vector.broadcast %cst_111 : f32 to vector<64x256xf32>
    %217 = arith.select %215, %213, %216 : vector<64x256xi1>, vector<64x256xf32>
    %c0_112 = arith.constant 0 : index
    %c69_113 = arith.constant 69 : index
    %218 = vector.load %arg13[%c0_112, %c69_113] : memref<64x392xf32, #tpu.memory_space<vmem>>, vector<64x256xf32>
    %cst_114 = arith.constant 0.000000e+00 : f32
    %219 = vector.shape_cast %6 : vector<1x256xi1> to vector<1x256xi1>
    %220 = vector.broadcast %219 : vector<1x256xi1> to vector<64x256xi1>
    %221 = vector.broadcast %cst_114 : f32 to vector<64x256xf32>
    %222 = arith.select %220, %218, %221 : vector<64x256xi1>, vector<64x256xf32>
    %c0_115 = arith.constant 0 : index
    %c83_116 = arith.constant 83 : index
    %223 = vector.load %arg13[%c0_115, %c83_116] : memref<64x392xf32, #tpu.memory_space<vmem>>, vector<64x256xf32>
    %cst_117 = arith.constant 0.000000e+00 : f32
    %224 = vector.shape_cast %8 : vector<1x256xi1> to vector<1x256xi1>
    %225 = vector.broadcast %224 : vector<1x256xi1> to vector<64x256xi1>
    %226 = vector.broadcast %cst_117 : f32 to vector<64x256xf32>
    %227 = arith.select %225, %223, %226 : vector<64x256xi1>, vector<64x256xf32>
    %c0_118 = arith.constant 0 : index
    %c84_119 = arith.constant 84 : index
    %228 = vector.load %arg13[%c0_118, %c84_119] : memref<64x392xf32, #tpu.memory_space<vmem>>, vector<64x256xf32>
    %c0_120 = arith.constant 0 : index
    %c85_121 = arith.constant 85 : index
    %229 = vector.load %arg13[%c0_120, %c85_121] : memref<64x392xf32, #tpu.memory_space<vmem>>, vector<64x256xf32>
    %cst_122 = arith.constant 0.000000e+00 : f32
    %230 = vector.shape_cast %6 : vector<1x256xi1> to vector<1x256xi1>
    %231 = vector.broadcast %230 : vector<1x256xi1> to vector<64x256xi1>
    %232 = vector.broadcast %cst_122 : f32 to vector<64x256xf32>
    %233 = arith.select %231, %229, %232 : vector<64x256xi1>, vector<64x256xf32>
    %234 = tpu.concatenate %206, %207, %212, %217, %198, %222, %227, %228, %233 in 0 : vector<64x256xf32>, vector<64x256xf32>, vector<64x256xf32>, vector<64x256xf32>, vector<64x256xf32>, vector<64x256xf32>, vector<64x256xf32>, vector<64x256xf32>, vector<64x256xf32> -> vector<576x256xf32>
    %cst_123 = arith.constant dense<0.000000e+00> : vector<32x256xf32>
    %235 = tpu.matmul %199, %234, %cst_123 {dimension_numbers = #tpu.dot_dimension_numbers<[1], [0], [0], [1], [0, 0, 1, 1], [], []>} : vector<32x576xf32>, vector<576x256xf32>, vector<32x256xf32> -> vector<32x256xf32>
    %236 = vector.broadcast %200 : vector<32x1xf32> to vector<32x256xf32>
    %237 = arith.addf %235, %236 : vector<32x256xf32>
    %cst_124 = arith.constant 2.000000e-01 : f32
    %238 = vector.broadcast %cst_124 : f32 to vector<32x256xf32>
    %239 = arith.mulf %238, %237 : vector<32x256xf32>
    %240 = arith.maximumf %237, %239 : vector<32x256xf32>
    %241 = arith.addf %240, %1 : vector<32x256xf32>
    %c4_125 = arith.constant 4 : index
    %c0_126 = arith.constant 0 : index
    %c0_127 = arith.constant 0 : index
    %242 = vector.load %arg2[%c4_125, %c0_126, %c0_127] : memref<8x32x288xf32, #tpu.memory_space<vmem>>, vector<1x32x288xf32>
    %243 = vector.shape_cast %242 : vector<1x32x288xf32> to vector<32x288xf32>
    %c4_128 = arith.constant 4 : index
    %c0_129 = arith.constant 0 : index
    %c0_130 = arith.constant 0 : index
    %244 = vector.load %arg3[%c4_128, %c0_129, %c0_130] : memref<8x32x1xf32, #tpu.memory_space<vmem>>, vector<1x32x1xf32>
    %245 = vector.shape_cast %244 : vector<1x32x1xf32> to vector<32x1xf32>
    %c0_131 = arith.constant 0 : index
    %c68_132 = arith.constant 68 : index
    %246 = vector.load %arg13[%c0_131, %c68_132] : memref<64x392xf32, #tpu.memory_space<vmem>>, vector<32x256xf32>
    tpu.vector_store %arg13[%c0_131, %c68_132], %241 {strides = array<i32>} : memref<64x392xf32, #tpu.memory_space<vmem>>, vector<32x256xf32>,
    %c0_133 = arith.constant 0 : index
    %c51_134 = arith.constant 51 : index
    %247 = vector.load %arg13[%c0_133, %c51_134] : memref<64x392xf32, #tpu.memory_space<vmem>>, vector<32x256xf32>
    %cst_135 = arith.constant 0.000000e+00 : f32
    %248 = vector.shape_cast %8 : vector<1x256xi1> to vector<1x256xi1>
    %249 = vector.broadcast %248 : vector<1x256xi1> to vector<32x256xi1>
    %250 = vector.broadcast %cst_135 : f32 to vector<32x256xf32>
    %251 = arith.select %249, %247, %250 : vector<32x256xi1>, vector<32x256xf32>
    %c0_136 = arith.constant 0 : index
    %c52_137 = arith.constant 52 : index
    %252 = vector.load %arg13[%c0_136, %c52_137] : memref<64x392xf32, #tpu.memory_space<vmem>>, vector<32x256xf32>
    %c0_138 = arith.constant 0 : index
    %c53_139 = arith.constant 53 : index
    %253 = vector.load %arg13[%c0_138, %c53_139] : memref<64x392xf32, #tpu.memory_space<vmem>>, vector<32x256xf32>
    %cst_140 = arith.constant 0.000000e+00 : f32
    %254 = vector.shape_cast %6 : vector<1x256xi1> to vector<1x256xi1>
    %255 = vector.broadcast %254 : vector<1x256xi1> to vector<32x256xi1>
    %256 = vector.broadcast %cst_140 : f32 to vector<32x256xf32>
    %257 = arith.select %255, %253, %256 : vector<32x256xi1>, vector<32x256xf32>
    %c0_141 = arith.constant 0 : index
    %c67_142 = arith.constant 67 : index
    %258 = vector.load %arg13[%c0_141, %c67_142] : memref<64x392xf32, #tpu.memory_space<vmem>>, vector<32x256xf32>
    %cst_143 = arith.constant 0.000000e+00 : f32
    %259 = vector.shape_cast %8 : vector<1x256xi1> to vector<1x256xi1>
    %260 = vector.broadcast %259 : vector<1x256xi1> to vector<32x256xi1>
    %261 = vector.broadcast %cst_143 : f32 to vector<32x256xf32>
    %262 = arith.select %260, %258, %261 : vector<32x256xi1>, vector<32x256xf32>
    %c0_144 = arith.constant 0 : index
    %c69_145 = arith.constant 69 : index
    %263 = vector.load %arg13[%c0_144, %c69_145] : memref<64x392xf32, #tpu.memory_space<vmem>>, vector<32x256xf32>
    %cst_146 = arith.constant 0.000000e+00 : f32
    %264 = vector.shape_cast %6 : vector<1x256xi1> to vector<1x256xi1>
    %265 = vector.broadcast %264 : vector<1x256xi1> to vector<32x256xi1>
    %266 = vector.broadcast %cst_146 : f32 to vector<32x256xf32>
    %267 = arith.select %265, %263, %266 : vector<32x256xi1>, vector<32x256xf32>
    %c0_147 = arith.constant 0 : index
    %c83_148 = arith.constant 83 : index
    %268 = vector.load %arg13[%c0_147, %c83_148] : memref<64x392xf32, #tpu.memory_space<vmem>>, vector<32x256xf32>
    %cst_149 = arith.constant 0.000000e+00 : f32
    %269 = vector.shape_cast %8 : vector<1x256xi1> to vector<1x256xi1>
    %270 = vector.broadcast %269 : vector<1x256xi1> to vector<32x256xi1>
    %271 = vector.broadcast %cst_149 : f32 to vector<32x256xf32>
    %272 = arith.select %270, %268, %271 : vector<32x256xi1>, vector<32x256xf32>
    %c0_150 = arith.constant 0 : index
    %c84_151 = arith.constant 84 : index
    %273 = vector.load %arg13[%c0_150, %c84_151] : memref<64x392xf32, #tpu.memory_space<vmem>>, vector<32x256xf32>
    %c0_152 = arith.constant 0 : index
    %c85_153 = arith.constant 85 : index
    %274 = vector.load %arg13[%c0_152, %c85_153] : memref<64x392xf32, #tpu.memory_space<vmem>>, vector<32x256xf32>
    %cst_154 = arith.constant 0.000000e+00 : f32
    %275 = vector.shape_cast %6 : vector<1x256xi1> to vector<1x256xi1>
    %276 = vector.broadcast %275 : vector<1x256xi1> to vector<32x256xi1>
    %277 = vector.broadcast %cst_154 : f32 to vector<32x256xf32>
    %278 = arith.select %276, %274, %277 : vector<32x256xi1>, vector<32x256xf32>
    %279 = tpu.concatenate %251, %252, %257, %262, %241, %267, %272, %273, %278 in 0 : vector<32x256xf32>, vector<32x256xf32>, vector<32x256xf32>, vector<32x256xf32>, vector<32x256xf32>, vector<32x256xf32>, vector<32x256xf32>, vector<32x256xf32>, vector<32x256xf32> -> vector<288x256xf32>
    %cst_155 = arith.constant dense<0.000000e+00> : vector<32x256xf32>
    %280 = tpu.matmul %243, %279, %cst_155 {dimension_numbers = #tpu.dot_dimension_numbers<[1], [0], [0], [1], [0, 0, 1, 1], [], []>} : vector<32x288xf32>, vector<288x256xf32>, vector<32x256xf32> -> vector<32x256xf32>
    %281 = vector.broadcast %245 : vector<32x1xf32> to vector<32x256xf32>
    %282 = arith.addf %280, %281 : vector<32x256xf32>
    %cst_156 = arith.constant 2.000000e-01 : f32
    %283 = vector.broadcast %cst_156 : f32 to vector<32x256xf32>
    %284 = arith.mulf %283, %282 : vector<32x256xf32>
    %285 = arith.maximumf %282, %284 : vector<32x256xf32>
    %c5 = arith.constant 5 : index
    %c0_157 = arith.constant 0 : index
    %c0_158 = arith.constant 0 : index
    %286 = vector.load %arg2[%c5, %c0_157, %c0_158] : memref<8x32x288xf32, #tpu.memory_space<vmem>>, vector<1x32x288xf32>
    %287 = vector.shape_cast %286 : vector<1x32x288xf32> to vector<32x288xf32>
    %c5_159 = arith.constant 5 : index
    %c0_160 = arith.constant 0 : index
    %c0_161 = arith.constant 0 : index
    %288 = vector.load %arg3[%c5_159, %c0_160, %c0_161] : memref<8x32x1xf32, #tpu.memory_space<vmem>>, vector<1x32x1xf32>
    %289 = vector.shape_cast %288 : vector<1x32x1xf32> to vector<32x1xf32>
    %c0_162 = arith.constant 0 : index
    %c68_163 = arith.constant 68 : index
    %290 = vector.load %arg13[%c0_162, %c68_163] : memref<64x392xf32, #tpu.memory_space<vmem>>, vector<32x256xf32>
    tpu.vector_store %arg13[%c0_162, %c68_163], %285 {strides = array<i32>} : memref<64x392xf32, #tpu.memory_space<vmem>>, vector<32x256xf32>,
    %c0_164 = arith.constant 0 : index
    %c51_165 = arith.constant 51 : index
    %291 = vector.load %arg13[%c0_164, %c51_165] : memref<64x392xf32, #tpu.memory_space<vmem>>, vector<32x256xf32>
    %cst_166 = arith.constant 0.000000e+00 : f32
    %292 = vector.shape_cast %8 : vector<1x256xi1> to vector<1x256xi1>
    %293 = vector.broadcast %292 : vector<1x256xi1> to vector<32x256xi1>
    %294 = vector.broadcast %cst_166 : f32 to vector<32x256xf32>
    %295 = arith.select %293, %291, %294 : vector<32x256xi1>, vector<32x256xf32>
    %c0_167 = arith.constant 0 : index
    %c52_168 = arith.constant 52 : index
    %296 = vector.load %arg13[%c0_167, %c52_168] : memref<64x392xf32, #tpu.memory_space<vmem>>, vector<32x256xf32>
    %c0_169 = arith.constant 0 : index
    %c53_170 = arith.constant 53 : index
    %297 = vector.load %arg13[%c0_169, %c53_170] : memref<64x392xf32, #tpu.memory_space<vmem>>, vector<32x256xf32>
    %cst_171 = arith.constant 0.000000e+00 : f32
    %298 = vector.shape_cast %6 : vector<1x256xi1> to vector<1x256xi1>
    %299 = vector.broadcast %298 : vector<1x256xi1> to vector<32x256xi1>
    %300 = vector.broadcast %cst_171 : f32 to vector<32x256xf32>
    %301 = arith.select %299, %297, %300 : vector<32x256xi1>, vector<32x256xf32>
    %c0_172 = arith.constant 0 : index
    %c67_173 = arith.constant 67 : index
    %302 = vector.load %arg13[%c0_172, %c67_173] : memref<64x392xf32, #tpu.memory_space<vmem>>, vector<32x256xf32>
    %cst_174 = arith.constant 0.000000e+00 : f32
    %303 = vector.shape_cast %8 : vector<1x256xi1> to vector<1x256xi1>
    %304 = vector.broadcast %303 : vector<1x256xi1> to vector<32x256xi1>
    %305 = vector.broadcast %cst_174 : f32 to vector<32x256xf32>
    %306 = arith.select %304, %302, %305 : vector<32x256xi1>, vector<32x256xf32>
    %c0_175 = arith.constant 0 : index
    %c69_176 = arith.constant 69 : index
    %307 = vector.load %arg13[%c0_175, %c69_176] : memref<64x392xf32, #tpu.memory_space<vmem>>, vector<32x256xf32>
    %cst_177 = arith.constant 0.000000e+00 : f32
    %308 = vector.shape_cast %6 : vector<1x256xi1> to vector<1x256xi1>
    %309 = vector.broadcast %308 : vector<1x256xi1> to vector<32x256xi1>
    %310 = vector.broadcast %cst_177 : f32 to vector<32x256xf32>
    %311 = arith.select %309, %307, %310 : vector<32x256xi1>, vector<32x256xf32>
    %c0_178 = arith.constant 0 : index
    %c83_179 = arith.constant 83 : index
    %312 = vector.load %arg13[%c0_178, %c83_179] : memref<64x392xf32, #tpu.memory_space<vmem>>, vector<32x256xf32>
    %cst_180 = arith.constant 0.000000e+00 : f32
    %313 = vector.shape_cast %8 : vector<1x256xi1> to vector<1x256xi1>
    %314 = vector.broadcast %313 : vector<1x256xi1> to vector<32x256xi1>
    %315 = vector.broadcast %cst_180 : f32 to vector<32x256xf32>
    %316 = arith.select %314, %312, %315 : vector<32x256xi1>, vector<32x256xf32>
    %c0_181 = arith.constant 0 : index
    %c84_182 = arith.constant 84 : index
    %317 = vector.load %arg13[%c0_181, %c84_182] : memref<64x392xf32, #tpu.memory_space<vmem>>, vector<32x256xf32>
    %c0_183 = arith.constant 0 : index
    %c85_184 = arith.constant 85 : index
    %318 = vector.load %arg13[%c0_183, %c85_184] : memref<64x392xf32, #tpu.memory_space<vmem>>, vector<32x256xf32>
    %cst_185 = arith.constant 0.000000e+00 : f32
    %319 = vector.shape_cast %6 : vector<1x256xi1> to vector<1x256xi1>
    %320 = vector.broadcast %319 : vector<1x256xi1> to vector<32x256xi1>
    %321 = vector.broadcast %cst_185 : f32 to vector<32x256xf32>
    %322 = arith.select %320, %318, %321 : vector<32x256xi1>, vector<32x256xf32>
    %323 = tpu.concatenate %295, %296, %301, %306, %285, %311, %316, %317, %322 in 0 : vector<32x256xf32>, vector<32x256xf32>, vector<32x256xf32>, vector<32x256xf32>, vector<32x256xf32>, vector<32x256xf32>, vector<32x256xf32>, vector<32x256xf32>, vector<32x256xf32> -> vector<288x256xf32>
    %cst_186 = arith.constant dense<0.000000e+00> : vector<32x256xf32>
    %324 = tpu.matmul %287, %323, %cst_186 {dimension_numbers = #tpu.dot_dimension_numbers<[1], [0], [0], [1], [0, 0, 1, 1], [], []>} : vector<32x288xf32>, vector<288x256xf32>, vector<32x256xf32> -> vector<32x256xf32>
    %325 = vector.broadcast %289 : vector<32x1xf32> to vector<32x256xf32>
    %326 = arith.addf %324, %325 : vector<32x256xf32>
    %327 = arith.addf %326, %241 : vector<32x256xf32>
    %cst_187 = arith.constant 0.000000e+00 : f32
    %328 = vector.broadcast %cst_187 : f32 to vector<32x256xf32>
    %329 = arith.maximumf %327, %328 : vector<32x256xf32>
    %c6 = arith.constant 6 : index
    %c0_188 = arith.constant 0 : index
    %c0_189 = arith.constant 0 : index
    %330 = vector.load %arg2[%c6, %c0_188, %c0_189] : memref<8x32x288xf32, #tpu.memory_space<vmem>>, vector<1x32x288xf32>
    %331 = vector.shape_cast %330 : vector<1x32x288xf32> to vector<32x288xf32>
    %c6_190 = arith.constant 6 : index
    %c0_191 = arith.constant 0 : index
    %c0_192 = arith.constant 0 : index
    %332 = vector.load %arg3[%c6_190, %c0_191, %c0_192] : memref<8x32x1xf32, #tpu.memory_space<vmem>>, vector<1x32x1xf32>
    %333 = vector.shape_cast %332 : vector<1x32x1xf32> to vector<32x1xf32>
    %c0_193 = arith.constant 0 : index
    %c68_194 = arith.constant 68 : index
    %334 = vector.load %arg13[%c0_193, %c68_194] : memref<64x392xf32, #tpu.memory_space<vmem>>, vector<32x256xf32>
    tpu.vector_store %arg13[%c0_193, %c68_194], %329 {strides = array<i32>} : memref<64x392xf32, #tpu.memory_space<vmem>>, vector<32x256xf32>,
    %c0_195 = arith.constant 0 : index
    %c51_196 = arith.constant 51 : index
    %335 = vector.load %arg13[%c0_195, %c51_196] : memref<64x392xf32, #tpu.memory_space<vmem>>, vector<32x256xf32>
    %cst_197 = arith.constant 0.000000e+00 : f32
    %336 = vector.shape_cast %8 : vector<1x256xi1> to vector<1x256xi1>
    %337 = vector.broadcast %336 : vector<1x256xi1> to vector<32x256xi1>
    %338 = vector.broadcast %cst_197 : f32 to vector<32x256xf32>
    %339 = arith.select %337, %335, %338 : vector<32x256xi1>, vector<32x256xf32>
    %c0_198 = arith.constant 0 : index
    %c52_199 = arith.constant 52 : index
    %340 = vector.load %arg13[%c0_198, %c52_199] : memref<64x392xf32, #tpu.memory_space<vmem>>, vector<32x256xf32>
    %c0_200 = arith.constant 0 : index
    %c53_201 = arith.constant 53 : index
    %341 = vector.load %arg13[%c0_200, %c53_201] : memref<64x392xf32, #tpu.memory_space<vmem>>, vector<32x256xf32>
    %cst_202 = arith.constant 0.000000e+00 : f32
    %342 = vector.shape_cast %6 : vector<1x256xi1> to vector<1x256xi1>
    %343 = vector.broadcast %342 : vector<1x256xi1> to vector<32x256xi1>
    %344 = vector.broadcast %cst_202 : f32 to vector<32x256xf32>
    %345 = arith.select %343, %341, %344 : vector<32x256xi1>, vector<32x256xf32>
    %c0_203 = arith.constant 0 : index
    %c67_204 = arith.constant 67 : index
    %346 = vector.load %arg13[%c0_203, %c67_204] : memref<64x392xf32, #tpu.memory_space<vmem>>, vector<32x256xf32>
    %cst_205 = arith.constant 0.000000e+00 : f32
    %347 = vector.shape_cast %8 : vector<1x256xi1> to vector<1x256xi1>
    %348 = vector.broadcast %347 : vector<1x256xi1> to vector<32x256xi1>
    %349 = vector.broadcast %cst_205 : f32 to vector<32x256xf32>
    %350 = arith.select %348, %346, %349 : vector<32x256xi1>, vector<32x256xf32>
    %c0_206 = arith.constant 0 : index
    %c69_207 = arith.constant 69 : index
    %351 = vector.load %arg13[%c0_206, %c69_207] : memref<64x392xf32, #tpu.memory_space<vmem>>, vector<32x256xf32>
    %cst_208 = arith.constant 0.000000e+00 : f32
    %352 = vector.shape_cast %6 : vector<1x256xi1> to vector<1x256xi1>
    %353 = vector.broadcast %352 : vector<1x256xi1> to vector<32x256xi1>
    %354 = vector.broadcast %cst_208 : f32 to vector<32x256xf32>
    %355 = arith.select %353, %351, %354 : vector<32x256xi1>, vector<32x256xf32>
    %c0_209 = arith.constant 0 : index
    %c83_210 = arith.constant 83 : index
    %356 = vector.load %arg13[%c0_209, %c83_210] : memref<64x392xf32, #tpu.memory_space<vmem>>, vector<32x256xf32>
    %cst_211 = arith.constant 0.000000e+00 : f32
    %357 = vector.shape_cast %8 : vector<1x256xi1> to vector<1x256xi1>
    %358 = vector.broadcast %357 : vector<1x256xi1> to vector<32x256xi1>
    %359 = vector.broadcast %cst_211 : f32 to vector<32x256xf32>
    %360 = arith.select %358, %356, %359 : vector<32x256xi1>, vector<32x256xf32>
    %c0_212 = arith.constant 0 : index
    %c84_213 = arith.constant 84 : index
    %361 = vector.load %arg13[%c0_212, %c84_213] : memref<64x392xf32, #tpu.memory_space<vmem>>, vector<32x256xf32>
    %c0_214 = arith.constant 0 : index
    %c85_215 = arith.constant 85 : index
    %362 = vector.load %arg13[%c0_214, %c85_215] : memref<64x392xf32, #tpu.memory_space<vmem>>, vector<32x256xf32>
    %cst_216 = arith.constant 0.000000e+00 : f32
    %363 = vector.shape_cast %6 : vector<1x256xi1> to vector<1x256xi1>
    %364 = vector.broadcast %363 : vector<1x256xi1> to vector<32x256xi1>
    %365 = vector.broadcast %cst_216 : f32 to vector<32x256xf32>
    %366 = arith.select %364, %362, %365 : vector<32x256xi1>, vector<32x256xf32>
    %367 = tpu.concatenate %339, %340, %345, %350, %329, %355, %360, %361, %366 in 0 : vector<32x256xf32>, vector<32x256xf32>, vector<32x256xf32>, vector<32x256xf32>, vector<32x256xf32>, vector<32x256xf32>, vector<32x256xf32>, vector<32x256xf32>, vector<32x256xf32> -> vector<288x256xf32>
    %cst_217 = arith.constant dense<0.000000e+00> : vector<32x256xf32>
    %368 = tpu.matmul %331, %367, %cst_217 {dimension_numbers = #tpu.dot_dimension_numbers<[1], [0], [0], [1], [0, 0, 1, 1], [], []>} : vector<32x288xf32>, vector<288x256xf32>, vector<32x256xf32> -> vector<32x256xf32>
    %369 = vector.broadcast %333 : vector<32x1xf32> to vector<32x256xf32>
    %370 = arith.addf %368, %369 : vector<32x256xf32>
    %cst_218 = arith.constant 2.000000e-01 : f32
    %371 = vector.broadcast %cst_218 : f32 to vector<32x256xf32>
    %372 = arith.mulf %371, %370 : vector<32x256xf32>
    %373 = arith.maximumf %370, %372 : vector<32x256xf32>
    %c7 = arith.constant 7 : index
    %c0_219 = arith.constant 0 : index
    %c0_220 = arith.constant 0 : index
    %374 = vector.load %arg2[%c7, %c0_219, %c0_220] : memref<8x32x288xf32, #tpu.memory_space<vmem>>, vector<1x32x288xf32>
    %375 = vector.shape_cast %374 : vector<1x32x288xf32> to vector<32x288xf32>
    %c7_221 = arith.constant 7 : index
    %c0_222 = arith.constant 0 : index
    %c0_223 = arith.constant 0 : index
    %376 = vector.load %arg3[%c7_221, %c0_222, %c0_223] : memref<8x32x1xf32, #tpu.memory_space<vmem>>, vector<1x32x1xf32>
    %377 = vector.shape_cast %376 : vector<1x32x1xf32> to vector<32x1xf32>
    %c0_224 = arith.constant 0 : index
    %c68_225 = arith.constant 68 : index
    %378 = vector.load %arg13[%c0_224, %c68_225] : memref<64x392xf32, #tpu.memory_space<vmem>>, vector<32x256xf32>
    tpu.vector_store %arg13[%c0_224, %c68_225], %373 {strides = array<i32>} : memref<64x392xf32, #tpu.memory_space<vmem>>, vector<32x256xf32>,
    %c0_226 = arith.constant 0 : index
    %c51_227 = arith.constant 51 : index
    %379 = vector.load %arg13[%c0_226, %c51_227] : memref<64x392xf32, #tpu.memory_space<vmem>>, vector<32x256xf32>
    %cst_228 = arith.constant 0.000000e+00 : f32
    %380 = vector.shape_cast %8 : vector<1x256xi1> to vector<1x256xi1>
    %381 = vector.broadcast %380 : vector<1x256xi1> to vector<32x256xi1>
    %382 = vector.broadcast %cst_228 : f32 to vector<32x256xf32>
    %383 = arith.select %381, %379, %382 : vector<32x256xi1>, vector<32x256xf32>
    %c0_229 = arith.constant 0 : index
    %c52_230 = arith.constant 52 : index
    %384 = vector.load %arg13[%c0_229, %c52_230] : memref<64x392xf32, #tpu.memory_space<vmem>>, vector<32x256xf32>
    %c0_231 = arith.constant 0 : index
    %c53_232 = arith.constant 53 : index
    %385 = vector.load %arg13[%c0_231, %c53_232] : memref<64x392xf32, #tpu.memory_space<vmem>>, vector<32x256xf32>
    %cst_233 = arith.constant 0.000000e+00 : f32
    %386 = vector.shape_cast %6 : vector<1x256xi1> to vector<1x256xi1>
    %387 = vector.broadcast %386 : vector<1x256xi1> to vector<32x256xi1>
    %388 = vector.broadcast %cst_233 : f32 to vector<32x256xf32>
    %389 = arith.select %387, %385, %388 : vector<32x256xi1>, vector<32x256xf32>
    %c0_234 = arith.constant 0 : index
    %c67_235 = arith.constant 67 : index
    %390 = vector.load %arg13[%c0_234, %c67_235] : memref<64x392xf32, #tpu.memory_space<vmem>>, vector<32x256xf32>
    %cst_236 = arith.constant 0.000000e+00 : f32
    %391 = vector.shape_cast %8 : vector<1x256xi1> to vector<1x256xi1>
    %392 = vector.broadcast %391 : vector<1x256xi1> to vector<32x256xi1>
    %393 = vector.broadcast %cst_236 : f32 to vector<32x256xf32>
    %394 = arith.select %392, %390, %393 : vector<32x256xi1>, vector<32x256xf32>
    %c0_237 = arith.constant 0 : index
    %c69_238 = arith.constant 69 : index
    %395 = vector.load %arg13[%c0_237, %c69_238] : memref<64x392xf32, #tpu.memory_space<vmem>>, vector<32x256xf32>
    %cst_239 = arith.constant 0.000000e+00 : f32
    %396 = vector.shape_cast %6 : vector<1x256xi1> to vector<1x256xi1>
    %397 = vector.broadcast %396 : vector<1x256xi1> to vector<32x256xi1>
    %398 = vector.broadcast %cst_239 : f32 to vector<32x256xf32>
    %399 = arith.select %397, %395, %398 : vector<32x256xi1>, vector<32x256xf32>
    %c0_240 = arith.constant 0 : index
    %c83_241 = arith.constant 83 : index
    %400 = vector.load %arg13[%c0_240, %c83_241] : memref<64x392xf32, #tpu.memory_space<vmem>>, vector<32x256xf32>
    %cst_242 = arith.constant 0.000000e+00 : f32
    %401 = vector.shape_cast %8 : vector<1x256xi1> to vector<1x256xi1>
    %402 = vector.broadcast %401 : vector<1x256xi1> to vector<32x256xi1>
    %403 = vector.broadcast %cst_242 : f32 to vector<32x256xf32>
    %404 = arith.select %402, %400, %403 : vector<32x256xi1>, vector<32x256xf32>
    %c0_243 = arith.constant 0 : index
    %c84_244 = arith.constant 84 : index
    %405 = vector.load %arg13[%c0_243, %c84_244] : memref<64x392xf32, #tpu.memory_space<vmem>>, vector<32x256xf32>
    %c0_245 = arith.constant 0 : index
    %c85_246 = arith.constant 85 : index
    %406 = vector.load %arg13[%c0_245, %c85_246] : memref<64x392xf32, #tpu.memory_space<vmem>>, vector<32x256xf32>
    %cst_247 = arith.constant 0.000000e+00 : f32
    %407 = vector.shape_cast %6 : vector<1x256xi1> to vector<1x256xi1>
    %408 = vector.broadcast %407 : vector<1x256xi1> to vector<32x256xi1>
    %409 = vector.broadcast %cst_247 : f32 to vector<32x256xf32>
    %410 = arith.select %408, %406, %409 : vector<32x256xi1>, vector<32x256xf32>
    %411 = tpu.concatenate %383, %384, %389, %394, %373, %399, %404, %405, %410 in 0 : vector<32x256xf32>, vector<32x256xf32>, vector<32x256xf32>, vector<32x256xf32>, vector<32x256xf32>, vector<32x256xf32>, vector<32x256xf32>, vector<32x256xf32>, vector<32x256xf32> -> vector<288x256xf32>
    %cst_248 = arith.constant dense<0.000000e+00> : vector<32x256xf32>
    %412 = tpu.matmul %375, %411, %cst_248 {dimension_numbers = #tpu.dot_dimension_numbers<[1], [0], [0], [1], [0, 0, 1, 1], [], []>} : vector<32x288xf32>, vector<288x256xf32>, vector<32x256xf32> -> vector<32x256xf32>
    %413 = vector.broadcast %377 : vector<32x1xf32> to vector<32x256xf32>
    %414 = arith.addf %412, %413 : vector<32x256xf32>
    %cst_249 = arith.constant 2.000000e-01 : f32
    %415 = vector.broadcast %cst_249 : f32 to vector<32x256xf32>
    %416 = arith.mulf %415, %414 : vector<32x256xf32>
    %417 = arith.maximumf %414, %416 : vector<32x256xf32>
    %c0_250 = arith.constant 0 : index
    %c0_251 = arith.constant 0 : index
    %418 = vector.load %arg6[%c0_250, %c0_251] : memref<32x32xf32, #tpu.memory_space<vmem>>, vector<32x32xf32>
    %cst_252 = arith.constant dense<0.000000e+00> : vector<32x256xf32>
    %419 = tpu.matmul %418, %417, %cst_252 {dimension_numbers = #tpu.dot_dimension_numbers<[1], [0], [0], [1], [0, 0, 1, 1], [], []>} : vector<32x32xf32>, vector<32x256xf32>, vector<32x256xf32> -> vector<32x256xf32>
    %c0_253 = arith.constant 0 : index
    %c0_254 = arith.constant 0 : index
    %420 = vector.load %arg7[%c0_253, %c0_254] : memref<32x1xf32, #tpu.memory_space<vmem>>, vector<32x1xf32>
    %421 = vector.broadcast %420 : vector<32x1xf32> to vector<32x256xf32>
    %422 = arith.addf %419, %421 : vector<32x256xf32>
    %423 = arith.addf %422, %329 : vector<32x256xf32>
    %cst_255 = arith.constant 0.000000e+00 : f32
    %424 = vector.broadcast %cst_255 : f32 to vector<32x256xf32>
    %425 = arith.maximumf %423, %424 : vector<32x256xf32>
    %cst_256 = arith.constant dense<0.000000e+00> : vector<32xf32>
    %426 = vector.multi_reduction <add>, %425, %cst_256 [1] : vector<32x256xf32> to vector<32xf32>
    %427 = vector.shape_cast %426 : vector<32xf32> to vector<32x1xf32>
    %cst_257 = arith.constant 2.560000e+02 : f32
    %428 = vector.broadcast %cst_257 : f32 to vector<32x1xf32>
    %429 = arith.divf %427, %428 : vector<32x1xf32>
    %c0_258 = arith.constant 0 : index
    %c0_259 = arith.constant 0 : index
    %430 = vector.load %arg8[%c0_258, %c0_259] : memref<32x2xf32, #tpu.memory_space<vmem>>, vector<32x2xf32>
    %431 = vector.broadcast %429 : vector<32x1xf32> to vector<32x2xf32>
    %432 = arith.mulf %430, %431 : vector<32x2xf32>
    %cst_260 = arith.constant dense<0.000000e+00> : vector<2xf32>
    %433 = vector.multi_reduction <add>, %432, %cst_260 [0] : vector<32x2xf32> to vector<2xf32>
    %434 = vector.shape_cast %433 : vector<2xf32> to vector<1x2xf32>
    %c0_261 = arith.constant 0 : index
    %c0_262 = arith.constant 0 : index
    %435 = vector.load %arg9[%c0_261, %c0_262] : memref<1x2xf32, #tpu.memory_space<vmem>>, vector<1x2xf32>
    %436 = arith.addf %434, %435 : vector<1x2xf32>
    %cst_263 = arith.constant 2.000000e-01 : f32
    %437 = vector.broadcast %cst_263 : f32 to vector<1x2xf32>
    %438 = arith.mulf %437, %436 : vector<1x2xf32>
    %439 = arith.maximumf %436, %438 : vector<1x2xf32>
    %c0_264 = arith.constant 0 : index
    %c0_265 = arith.constant 0 : index
    %440 = vector.load %arg10[%c0_264, %c0_265] : memref<32x2xf32, #tpu.memory_space<vmem>>, vector<32x2xf32>
    %441 = vector.broadcast %439 : vector<1x2xf32> to vector<32x2xf32>
    %442 = arith.mulf %440, %441 : vector<32x2xf32>
    %cst_266 = arith.constant dense<0.000000e+00> : vector<32xf32>
    %443 = vector.multi_reduction <add>, %442, %cst_266 [1] : vector<32x2xf32> to vector<32xf32>
    %444 = vector.shape_cast %443 : vector<32xf32> to vector<32x1xf32>
    %c0_267 = arith.constant 0 : index
    %c0_268 = arith.constant 0 : index
    %445 = vector.load %arg11[%c0_267, %c0_268] : memref<32x1xf32, #tpu.memory_space<vmem>>, vector<32x1xf32>
    %446 = arith.addf %444, %445 : vector<32x1xf32>
    %447 = arith.negf %446 : vector<32x1xf32>
    %448 = math.exp %447 : vector<32x1xf32>
    %cst_269 = arith.constant 1.000000e+00 : f32
    %449 = vector.broadcast %cst_269 : f32 to vector<32x1xf32>
    %450 = arith.addf %449, %448 : vector<32x1xf32>
    %451 = arith.divf %449, %450 : vector<32x1xf32>
    %452 = vector.broadcast %451 : vector<32x1xf32> to vector<32x256xf32>
    %453 = arith.mulf %425, %452 : vector<32x256xf32>
    %c0_270 = arith.constant 0 : index
    %c0_271 = arith.constant 0 : index
    %c0_272 = arith.constant 0 : index
    %454 = vector.load %arg12[%c0_270, %c0_271, %c0_272] : memref<1x32x256xf32, #tpu.memory_space<vmem>>, vector<1x32x256xf32>
    %455 = vector.shape_cast %454 : vector<1x32x256xf32> to vector<32x256xf32>
    %456 = vector.shape_cast %453 : vector<32x256xf32> to vector<1x32x256xf32>
    tpu.vector_store %arg12[%c0_270, %c0_271, %c0_272], %456 {strides = array<i32>} : memref<1x32x256xf32, #tpu.memory_space<vmem>>, vector<1x32x256xf32>,
    return
  }
  func.func @transform_0(%arg0: i32) -> (i32, i32, i32) {
    %c0_i32 = arith.constant 0 : i32
    %c0_i32_0 = arith.constant 0 : i32
    %c0_i32_1 = arith.constant 0 : i32
    return %arg0, %c0_i32, %c0_i32_0 : i32, i32, i32
  }
  func.func @transform_1(%arg0: i32) -> (i32, i32, i32) {
    %c0_i32 = arith.constant 0 : i32
    %c0_i32_0 = arith.constant 0 : i32
    %c0_i32_1 = arith.constant 0 : i32
    %c0_i32_2 = arith.constant 0 : i32
    return %c0_i32, %c0_i32_0, %c0_i32_1 : i32, i32, i32
  }
  func.func @transform_2(%arg0: i32) -> (i32, i32, i32) {
    %c0_i32 = arith.constant 0 : i32
    %c0_i32_0 = arith.constant 0 : i32
    %c0_i32_1 = arith.constant 0 : i32
    %c0_i32_2 = arith.constant 0 : i32
    return %c0_i32, %c0_i32_0, %c0_i32_1 : i32, i32, i32
  }
  func.func @transform_3(%arg0: i32) -> (i32, i32) {
    %c0_i32 = arith.constant 0 : i32
    %c0_i32_0 = arith.constant 0 : i32
    %c0_i32_1 = arith.constant 0 : i32
    return %c0_i32, %c0_i32_0 : i32, i32
  }
  func.func @transform_4(%arg0: i32) -> (i32, i32) {
    %c0_i32 = arith.constant 0 : i32
    %c0_i32_0 = arith.constant 0 : i32
    %c0_i32_1 = arith.constant 0 : i32
    return %c0_i32, %c0_i32_0 : i32, i32
  }
  func.func @transform_5(%arg0: i32) -> (i32, i32) {
    %c0_i32 = arith.constant 0 : i32
    %c0_i32_0 = arith.constant 0 : i32
    %c0_i32_1 = arith.constant 0 : i32
    return %c0_i32, %c0_i32_0 : i32, i32
  }
  func.func @transform_6(%arg0: i32) -> (i32, i32) {
    %c0_i32 = arith.constant 0 : i32
    %c0_i32_0 = arith.constant 0 : i32
    %c0_i32_1 = arith.constant 0 : i32
    return %c0_i32, %c0_i32_0 : i32, i32
  }
  func.func @transform_7(%arg0: i32) -> (i32, i32) {
    %c0_i32 = arith.constant 0 : i32
    %c0_i32_0 = arith.constant 0 : i32
    %c0_i32_1 = arith.constant 0 : i32
    return %c0_i32, %c0_i32_0 : i32, i32
  }
  func.func @transform_8(%arg0: i32) -> (i32, i32) {
    %c0_i32 = arith.constant 0 : i32
    %c0_i32_0 = arith.constant 0 : i32
    %c0_i32_1 = arith.constant 0 : i32
    return %c0_i32, %c0_i32_0 : i32, i32
  }
  func.func @transform_9(%arg0: i32) -> (i32, i32) {
    %c0_i32 = arith.constant 0 : i32
    %c0_i32_0 = arith.constant 0 : i32
    %c0_i32_1 = arith.constant 0 : i32
    return %c0_i32, %c0_i32_0 : i32, i32
  }
  func.func @transform_10(%arg0: i32) -> (i32, i32) {
    %c0_i32 = arith.constant 0 : i32
    %c0_i32_0 = arith.constant 0 : i32
    %c0_i32_1 = arith.constant 0 : i32
    return %c0_i32, %c0_i32_0 : i32, i32
  }
  func.func @transform_11(%arg0: i32) -> (i32, i32, i32) {
    %c0_i32 = arith.constant 0 : i32
    %c0_i32_0 = arith.constant 0 : i32
    %c0_i32_1 = arith.constant 0 : i32
    return %arg0, %c0_i32, %c0_i32_0 : i32, i32, i32
  }
}

</mosaic_0001>

<bundles_post_ra>
// kernel: rablock_forward.1
= control target key start
LH: loop header
LB: loop body
LE: loop exit
PB: predicated region body
PF: predicated region fallthrough
CT: control target
= control target key end

     0   :  { %s8873_s17 = smov 0   ;;  %s15910_s0 = inlined_call_operand.vmem [shape: f32[2,32,256], index: 0, kind: input, shape index: {}]   ;;  %s15911_s1 = inlined_call_operand.vmem [shape: f32[8,32,288], index: 1, kind: input, shape index: {}]   ;;  %s15912_s2 = inlined_call_operand.vmem [shape: f32[8,32,1], index: 2, kind: input, shape index: {}]   ;;  %s15913_s3 = inlined_call_operand.vmem [shape: f32[32,576], index: 3, kind: input, shape index: {}]   ;;  %s15914_s4 = inlined_call_operand.vmem [shape: f32[32,1], index: 4, kind: input, shape index: {}]   ;;  %s15915_s5 = inlined_call_operand.vmem [shape: f32[32,32], index: 5, kind: input, shape index: {}]   ;;  %s15916_s6 = inlined_call_operand.vmem [shape: f32[32,1], index: 6, kind: input, shape index: {}]   ;;  %s15917_s7 = inlined_call_operand.vmem [shape: f32[32,2], index: 7, kind: input, shape index: {}]   ;;  %s15918_s8 = inlined_call_operand.vmem [shape: f32[1,2], index: 8, kind: input, shape index: {}]   ;;  %s15919_s9 = inlined_call_operand.vmem [shape: f32[32,2], index: 9, kind: input, shape index: {}]   ;;  %s15920_s10 = inlined_call_operand.vmem [shape: f32[32,1], index: 10, kind: input, shape index: {}]   ;;  %s15921_s11 = inlined_call_operand.vmem [shape: f32[2,32,256], index: 11, kind: output, shape index: {}]  }
   0x1 LB: > { %s7415_s18 = sadd.s32 4294967295, %s8779_s17   ;;  %p7419_p0 = scmp.ge.s32.totalorder %s8779_s17, 1  ;;  %s8779_s17 = sphi %s8873_s17, %s21_s17  }
   0x2   : > { %p337_p1 = scmp.lt.s32.totalorder %s8779_s17, 3 }
   0x4   : > { %p338_p2 = pnand %p7419_p0, %p337_p1 }
   0x6   : > { %341 = sbr.rel (%p338_p2) target bundleno = 5196 (0x144c), region = 64 }
   0xb   : > { %p377_p3 = scmp.lt.s32.totalorder %s7415_s18, 1  ;;  %v8781_v0 = vmov 0.0   ;;  %s8782_s23 = smov 68   ;;  %vm518_vm0 = vcmask 1048096   ;;  %vm501_vm1 = vcmask 556032   ;;  %v395_v62 = vlaneseq }
   0xc   : > { %433 = vst [vmem:[#allocation2 + $0x20] sm:$0xff] %v8781_v0  ;;  %s8783_s24 = smov 77   ;;  %s8784_s25 = smov 75   ;;  %v8789_v63 = vmov 0   ;;  %vm685_vm3 = vcmask 498688   ;;  %vm636_vm6 = vcmask 613376  }
   0xd   : > { %s16813_s18 = smov (!%p377_p3, %s7415_s18), 1  ;;  %428 = vst [vmem:[#allocation2] sm:$0xff] %v8781_v0  ;;  %s8785_s26 = smov 61   ;;  %8204 = vset.pattern.permute.xlu2 %v8789_v63  ;;  %8206 = vset.pattern.permute.xlu1 %v8789_v63  ;;  %vm15947_vm8 = vcmask 351232   ;;  %vm959_vm9 = vcmask 261120   ;;  %vm881_vm10 = vcmask 621568  }
   0xe   : > { %430 = vst [vmem:[#allocation2 + $0x10] sm:$0xff] %v8781_v0  ;;  %s15975_s19 = sshll.u32 %s16813_s18, 6  ;;  %s8786_s27 = smov 59   ;;  %8205 = vset.pattern.permute.xlu0 %v8789_v63  ;;  %vm583_vm11 = vcmask 629760   ;;  %vm15962_vm12 = vcmask 359424   ;;  %vm15948_vm13 = vcmask 367616  }
   0xf   : > { %435 = vst [vmem:[#allocation2 + $0x30] sm:$0xff] %v8781_v0  ;;  %s8889_s22 = scalar_lea.vmem %s15910_s0, %s15975_s19  ;;  %s8787_s28 = smov 45   ;;  %vm15949_vm14 = vcmask 482304  }
  0x10   : > { %437 = vst [vmem:[#allocation2 + $0x40] sm:$0xff] %v8781_v0  ;;  %v389_v1 = vld [vmem:[%s8889_s22 + $0x10] sm:$0xff]  ;;  %v387_v2 = vld [vmem:[%s8889_s22] sm:$0xff]  ;;  %v8901_v4 = vld [vmem:[%s8889_s22 + $0x18] sm:$0xff]  ;;  %s8788_s29 = smov 43   ;;  %s8790_s30 = smov 76  }
  0x11   : > { %439 = vst [vmem:[#allocation2 + $0x50] sm:$0xff] %v8781_v0  ;;  %489 = vrot.lane.b32.xlu1 %v389_v1, %s8782_s23  ;;  %485 = vrot.lane.b32.xlu0 %v387_v2, %s8782_s23  ;;  %v8896_v3 = vld [vmem:[%s8889_s22 + $0x20] sm:$0xff]  ;;  %v8904_v5 = vld [vmem:[%s8889_s22 + $0x8] sm:$0xff]  ;;  %s8791_s12 = smov 44   ;;  %s8792_s15 = smov 111  }
  0x12   : > { %441 = vst [vmem:[#allocation2 + $0x60] sm:$0xff] %v8781_v0  ;;  %493 = vrot.lane.b32.xlu2 %v8896_v3, %s8782_s23  ;;  %v8907_v6 = vld [vmem:[%s8889_s22 + $0x28] sm:$0xff]  ;;  %v8916_v7 = vld [vmem:[%s8889_s22 + $0x30] sm:$0xff]  ;;  %v8919_v8 = vld [vmem:[%s8889_s22 + $0x38] sm:$0xff]  ;;  %s8793_s16 = smov 105   ;;  %s8794_s20 = smov 63  }
  0x13   : > { %16101 = vst [vmem:[#allocation3_spill] sm:$0xff] %v8896_v3  ;;  %s8795_s13 = smov 57   ;;  %s8797_s14 = smov 9  }
  0x14   : > { %443 = vst [vmem:[#allocation2 + $0x70] sm:$0xff] %v8781_v0  ;;  %s8799_s21 = smov 12  }
  0x15   : > { %445 = vst [vmem:[#allocation2 + $0x80] sm:$0xff] %v8781_v0 }
  0x16   : > { %447 = vst [vmem:[#allocation2 + $0x90] sm:$0xff] %v8781_v0 }
  0x17   : > { %449 = vst [vmem:[#allocation2 + $0xa0] sm:$0xff] %v8781_v0 }
  0x18   : > { %16102 = vst [vmem:[#allocation4_spill] sm:$0xff] %v8901_v4 }
  0x19   : > { %16103 = vst [vmem:[#allocation5_spill] sm:$0xff] %v8904_v5  ;;  %491 = vrot.lane.b32.xlu1 %v8901_v4, %s8782_s23  ;;  %487 = vrot.lane.b32.xlu0 %v8904_v5, %s8782_s23 }
  0x1a   : > { %451 = vst [vmem:[#allocation2 + $0xb0] sm:$0xff] %v8781_v0  ;;  %495 = vrot.lane.b32.xlu2 %v8907_v6, %s8782_s23 }
  0x1b   : > { %453 = vst [vmem:[#allocation2 + $0xc0] sm:$0xff] %v8781_v0 }
  0x1c   : > { %16104 = vst [vmem:[#allocation6_spill] sm:$0xff] %v8907_v6 }
  0x1d   : > { %455 = vst [vmem:[#allocation2 + $0xd0] sm:$0xff] %v8781_v0 }
  0x1e   : > { %457 = vst [vmem:[#allocation2 + $0xe0] sm:$0xff] %v8781_v0 }
  0x1f   : > { %459 = vst [vmem:[#allocation2 + $0xf0] sm:$0xff] %v8781_v0 }
  0x20   : > { %16105 = vst [vmem:[#allocation7_spill] sm:$0xff] %v8916_v7 }
  0x21   : > { %16106 = vst [vmem:[#allocation8_spill] sm:$0xff] %v8919_v8  ;;  %497 = vrot.lane.b32.xlu0 %v8916_v7, %s8782_s23  ;;  %499 = vrot.lane.b32.xlu1 %v8919_v8, %s8782_s23 }
  0x6c   : > { %v494_v9 = vpop.permute.xlu2 %493 }
  0x6d   : > { %525 = vst.msk [vmem:[#allocation2 + $0x40] sm:$0xff] %vm518_vm0, %v494_v9 }
  0x74   : > { %v496_v10 = vpop.permute.xlu2 %495  ;;  %v8955_v22 = vld [vmem:[#allocation2 + $0x40] sm:$0xff] }
  0x75   : > { %527 = vst.msk [vmem:[#allocation2 + $0x50] sm:$0xff] %vm501_vm1, %v496_v10  ;;  %v8960_v24 = vsel %vm501_vm1, %v494_v9, %v496_v10  ;;  %v396_v9 = vand.u32 127, %v395_v62 }
  0x7c   : > { %v8968_v25 = vld [vmem:[#allocation2 + $0x50] sm:$0xff] }
  0x83   : > { %v490_v11 = vpop.permute.xlu1 %489  ;;  %v486_v12 = vpop.permute.xlu0 %485 }
  0x84   : > { %522 = vst.msk [vmem:[#allocation2 + $0x20] sm:$0xff] %vm518_vm0, %v490_v11 }
  0x85   : > { %519 = vst.msk [vmem:[#allocation2] sm:$0xff] %vm518_vm0, %v486_v12 }
  0x8b   : > { %v492_v13 = vpop.permute.xlu1 %491  ;;  %v488_v14 = vpop.permute.xlu0 %487  ;;  %v8940_v17 = vld [vmem:[#allocation2 + $0x20] sm:$0xff] }
  0x8c   : > { %v8929_v15 = vld [vmem:[#allocation2] sm:$0xff]  ;;  %524 = vst.msk [vmem:[#allocation2 + $0x30] sm:$0xff] %vm501_vm1, %v492_v13  ;;  %v8933_v16 = vsel %vm501_vm1, %v486_v12, %v488_v14  ;;  %v8946_v21 = vsel %vm501_vm1, %v490_v11, %v492_v13  ;;  %v9178_v12 = vpack.i.bf16 %v8960_v24, %v8955_v22  ;;  %v9180_v13 = vand.u32 15, %v396_v9 }
  0x8d   : > { %521 = vst.msk [vmem:[#allocation2 + $0x10] sm:$0xff] %vm501_vm1, %v488_v14  ;;  %559 = vrot.lane.b32.xlu2 %v8929_v15, %s8783_s24  ;;  %561 = vrot.lane.b32.xlu0 %v8933_v16, %s8783_s24  ;;  %v9161_v61 = vpack.i.bf16 %v8933_v16, %v8929_v15 }
  0x8e   : > { %16111 = vst [vmem:[#allocation13_spill] sm:$0xff] %v9178_v12  ;;  %vm414_vm2 = vcmp.ge.s32.totalorder %v9180_v13, 1  ;;  %vm412_vm5 = vcmp.lt.s32.totalorder %v9180_v13, 15 }
  0x8f   : > { %16108 = vst [vmem:[#allocation10_spill] sm:$0xff] %v9161_v61 }
  0x93   : > { %v498_v18 = vpop.permute.xlu0 %497  ;;  %v500_v19 = vpop.permute.xlu1 %499  ;;  %v8957_v23 = vld [vmem:[#allocation2 + $0x30] sm:$0xff] }
  0x94   : > { %v8942_v20 = vld [vmem:[#allocation2 + $0x10] sm:$0xff]  ;;  %528 = vst.msk [vmem:[#allocation2 + $0x60] sm:$0xff] %vm518_vm0, %v498_v18  ;;  %v8973_v27 = vsel %vm501_vm1, %v498_v18, %v500_v19  ;;  %v9174_v11 = vpack.i.bf16 %v8957_v23, %v8946_v21  ;;  %v397_v18 = vadd.s32 128, %v396_v9 }
  0x95   : > { %565 = vrot.lane.b32.xlu2 %v8940_v17, %s8783_s24  ;;  %563 = vrot.lane.b32.xlu1 %v8942_v20, %s8783_s24  ;;  %530 = vst.msk [vmem:[#allocation2 + $0x70] sm:$0xff] %vm501_vm1, %v500_v19  ;;  %v8149_v0 = vpack.i.bf16 %v8940_v17, %v8942_v20 }
  0x96   : > { %567 = vrot.lane.b32.xlu0 %v8946_v21, %s8783_s24  ;;  %16110 = vst [vmem:[#allocation12_spill] sm:$0xff] %v9174_v11  ;;  %v9195_v4 = vand.u32 15, %v397_v18 }
  0x98   : > { %16113 = vst [vmem:[#allocation15_spill] sm:$0xff] %v9195_v4  ;;  %vm15946_vm4 = vcmp.ge.s32.totalorder %v9195_v4, 1  ;;  %vm15945_vm7 = vcmp.lt.s32.totalorder %v9195_v4, 15  ;;  %vm423_vm15 = vcmp.ge.s32.totalorder %v9195_v4, 3 }
  0x9b   : > { %v8970_v26 = vld [vmem:[#allocation2 + $0x60] sm:$0xff] }
  0x9c   : > { %v8981_v28 = vld [vmem:[#allocation2 + $0x70] sm:$0xff]  ;;  %v8164_v14 = vpack.i.bf16 %v8970_v26, %v8968_v25 }
  0x9d   : > { %571 = vrot.lane.b32.xlu2 %v8955_v22, %s8783_s24  ;;  %569 = vrot.lane.b32.xlu1 %v8957_v23, %s8783_s24  ;;  %v9199_v3 = vpack.i.bf16 %v8981_v28, %v8973_v27 }
  0x9e   : > { %573 = vrot.lane.b32.xlu0 %v8960_v24, %s8783_s24 }
  0x9f   : > { %16114 = vst [vmem:[#allocation16_spill] sm:$0xff] %v9199_v3 }
  0xa5   : > { %575 = vrot.lane.b32.xlu1 %v8968_v25, %s8783_s24  ;;  %577 = vrot.lane.b32.xlu2 %v8970_v26, %s8783_s24 }
  0xa6   : > { %579 = vrot.lane.b32.xlu0 %v8973_v27, %s8783_s24 }
  0xad   : > { %581 = vrot.lane.b32.xlu1 %v8981_v28, %s8783_s24  ;;  %612 = vrot.lane.b32.xlu2 %v8929_v15, %s8784_s25 }
  0xae   : > { %614 = vrot.lane.b32.xlu0 %v8933_v16, %s8784_s25 }
  0xb5   : > { %616 = vrot.lane.b32.xlu1 %v8942_v20, %s8784_s25  ;;  %618 = vrot.lane.b32.xlu2 %v8940_v17, %s8784_s25 }
  0xb6   : > { %620 = vrot.lane.b32.xlu0 %v8946_v21, %s8784_s25 }
  0xbd   : > { %622 = vrot.lane.b32.xlu1 %v8957_v23, %s8784_s25  ;;  %624 = vrot.lane.b32.xlu2 %v8955_v22, %s8784_s25 }
  0xbe   : > { %626 = vrot.lane.b32.xlu0 %v8960_v24, %s8784_s25 }
  0xc5   : > { %628 = vrot.lane.b32.xlu1 %v8968_v25, %s8784_s25  ;;  %630 = vrot.lane.b32.xlu2 %v8970_v26, %s8784_s25 }
  0xc6   : > { %632 = vrot.lane.b32.xlu0 %v8973_v27, %s8784_s25 }
  0xcd   : > { %634 = vrot.lane.b32.xlu1 %v8981_v28, %s8784_s25  ;;  %661 = vrot.lane.b32.xlu2 %v8929_v15, %s8785_s26 }
  0xce   : > { %663 = vrot.lane.b32.xlu0 %v8933_v16, %s8785_s26 }
  0xd5   : > { %665 = vrot.lane.b32.xlu1 %v8942_v20, %s8785_s26  ;;  %667 = vrot.lane.b32.xlu2 %v8940_v17, %s8785_s26 }
  0xd6   : > { %669 = vrot.lane.b32.xlu0 %v8946_v21, %s8785_s26 }
  0xdd   : > { %671 = vrot.lane.b32.xlu1 %v8957_v23, %s8785_s26  ;;  %673 = vrot.lane.b32.xlu2 %v8955_v22, %s8785_s26 }
  0xde   : > { %675 = vrot.lane.b32.xlu0 %v8960_v24, %s8785_s26 }
  0xe5   : > { %677 = vrot.lane.b32.xlu1 %v8968_v25, %s8785_s26  ;;  %679 = vrot.lane.b32.xlu2 %v8970_v26, %s8785_s26 }
  0xe6   : > { %681 = vrot.lane.b32.xlu0 %v8973_v27, %s8785_s26 }
  0xe7   : > { %v9031_v29 = vpop.permute.xlu2 %559 }
  0xed   : > { %683 = vrot.lane.b32.xlu1 %v8981_v28, %s8785_s26  ;;  %710 = vrot.lane.b32.xlu2 %v8929_v15, %s8786_s27 }
  0xee   : > { %712 = vrot.lane.b32.xlu0 %v8933_v16, %s8786_s27 }
  0xef   : > { %v9039_v30 = vpop.permute.xlu2 %565 }
  0xf5   : > { %714 = vrot.lane.b32.xlu1 %v8942_v20, %s8786_s27  ;;  %716 = vrot.lane.b32.xlu2 %v8940_v17, %s8786_s27 }
  0xf6   : > { %718 = vrot.lane.b32.xlu0 %v8946_v21, %s8786_s27 }
  0xf7   : > { %v9047_v31 = vpop.permute.xlu2 %571 }
  0xfd   : > { %720 = vrot.lane.b32.xlu1 %v8957_v23, %s8786_s27  ;;  %722 = vrot.lane.b32.xlu2 %v8955_v22, %s8786_s27 }
  0xfe   : > { %724 = vrot.lane.b32.xlu0 %v8960_v24, %s8786_s27 }
  0xff   : > { %v9055_v32 = vpop.permute.xlu2 %577  ;;  %v9057_v33 = vpop.permute.xlu0 %561 }
 0x105   : > { %726 = vrot.lane.b32.xlu1 %v8968_v25, %s8786_s27  ;;  %728 = vrot.lane.b32.xlu2 %v8970_v26, %s8786_s27 }
 0x106   : > { %730 = vrot.lane.b32.xlu0 %v8973_v27, %s8786_s27 }
 0x107   : > { %v9065_v34 = vpop.permute.xlu1 %563  ;;  %v9067_v35 = vpop.permute.xlu2 %612 }
 0x108   : > { %v9069_v36 = vpop.permute.xlu0 %567 }
 0x10d   : > { %732 = vrot.lane.b32.xlu1 %v8981_v28, %s8786_s27  ;;  %759 = vrot.lane.b32.xlu2 %v8929_v15, %s8787_s28 }
 0x10e   : > { %761 = vrot.lane.b32.xlu0 %v8933_v16, %s8787_s28 }
 0x10f   : > { %v9077_v37 = vpop.permute.xlu1 %569  ;;  %v9079_v38 = vpop.permute.xlu2 %618 }
 0x110   : > { %v9081_v39 = vpop.permute.xlu0 %573 }
 0x115   : > { %763 = vrot.lane.b32.xlu1 %v8942_v20, %s8787_s28  ;;  %765 = vrot.lane.b32.xlu2 %v8940_v17, %s8787_s28 }
 0x116   : > { %767 = vrot.lane.b32.xlu0 %v8946_v21, %s8787_s28 }
 0x117   : > { %v9089_v40 = vpop.permute.xlu1 %575  ;;  %v9091_v41 = vpop.permute.xlu2 %624 }
 0x118   : > { %v9093_v42 = vpop.permute.xlu0 %579 }
 0x11d   : > { %769 = vrot.lane.b32.xlu1 %v8957_v23, %s8787_s28  ;;  %771 = vrot.lane.b32.xlu2 %v8955_v22, %s8787_s28 }
 0x11e   : > { %773 = vrot.lane.b32.xlu0 %v8960_v24, %s8787_s28 }
 0x11f   : > { %v9101_v43 = vpop.permute.xlu1 %581  ;;  %v9103_v44 = vpop.permute.xlu2 %630 }
 0x120   : > { %v9105_v45 = vpop.permute.xlu0 %614 }
 0x125   : > { %775 = vrot.lane.b32.xlu1 %v8968_v25, %s8787_s28  ;;  %777 = vrot.lane.b32.xlu2 %v8970_v26, %s8787_s28 }
 0x126   : > { %779 = vrot.lane.b32.xlu0 %v8973_v27, %s8787_s28 }
 0x127   : > { %v9113_v46 = vpop.permute.xlu1 %616  ;;  %v9115_v47 = vpop.permute.xlu2 %661 }
 0x128   : > { %v9117_v48 = vpop.permute.xlu0 %620 }
 0x12d   : > { %781 = vrot.lane.b32.xlu1 %v8981_v28, %s8787_s28  ;;  %808 = vrot.lane.b32.xlu2 %v8929_v15, %s8788_s29 }
 0x12e   : > { %810 = vrot.lane.b32.xlu0 %v8933_v16, %s8788_s29 }
 0x12f   : > { %v9125_v49 = vpop.permute.xlu1 %622  ;;  %v668_v50 = vpop.permute.xlu2 %667 }
 0x130   : > { %v9127_v51 = vpop.permute.xlu0 %626 }
 0x135   : > { %812 = vrot.lane.b32.xlu1 %v8942_v20, %s8788_s29  ;;  %814 = vrot.lane.b32.xlu2 %v8940_v17, %s8788_s29 }
 0x136   : > { %816 = vrot.lane.b32.xlu0 %v8946_v21, %s8788_s29 }
 0x137   : > { %v9135_v52 = vpop.permute.xlu1 %628  ;;  %v674_v53 = vpop.permute.xlu2 %673 }
 0x138   : > { %v9137_v54 = vpop.permute.xlu0 %632 }
 0x13d   : > { %818 = vrot.lane.b32.xlu1 %v8957_v23, %s8788_s29  ;;  %820 = vrot.lane.b32.xlu2 %v8955_v22, %s8788_s29 }
 0x13e   : > { %822 = vrot.lane.b32.xlu0 %v8960_v24, %s8788_s29 }
 0x13f   : > { %v9145_v55 = vpop.permute.xlu1 %634  ;;  %v680_v56 = vpop.permute.xlu2 %679 }
 0x140   : > { %v9147_v57 = vpop.permute.xlu0 %663 }
 0x141   : > { %v686_v18 = vsel %vm685_vm3, %v9115_v47, %v9147_v57  ;;  %v641_v47 = vsel %vm636_vm6, %v9091_v41, %v9127_v51  ;;  %v639_v41 = vsel %vm636_vm6, %v9079_v38, %v9117_v48  ;;  %v637_v38 = vsel %vm636_vm6, %v9067_v35, %v9105_v45 }
 0x142   : > { %v642_v35 = vsel %vm636_vm6, %v9127_v51, %v9135_v52 }
 0x145   : > { %824 = vrot.lane.b32.xlu1 %v8968_v25, %s8788_s29  ;;  %826 = vrot.lane.b32.xlu2 %v8970_v26, %s8788_s29 }
 0x146   : > { %828 = vrot.lane.b32.xlu0 %v8973_v27, %s8788_s29 }
 0x147   : > { %v9155_v58 = vpop.permute.xlu1 %665  ;;  %v9157_v59 = vpop.permute.xlu2 %710 }
 0x148   : > { %16107 = vst [vmem:[#allocation9_spill] sm:$0xff] %v9157_v59  ;;  %v670_v60 = vpop.permute.xlu0 %669 }
 0x14d   : > { %830 = vrot.lane.b32.xlu1 %v8981_v28, %s8788_s29  ;;  %8145 = vrot.lane.b32.xlu2 %v9161_v61, %s8790_s30 }
 0x14e   : > { %8150 = vrot.lane.b32.xlu0 %v8149_v0, %s8790_s30 }
 0x14f   : > { %v672_v1 = vpop.permute.xlu1 %671  ;;  %v9170_v2 = vpop.permute.xlu2 %716 }
 0x150   : > { %16109 = vst [vmem:[#allocation11_spill] sm:$0xff] %v9170_v2  ;;  %v676_v10 = vpop.permute.xlu0 %675  ;;  %v9425_v2 = vld [vmem:[%s15911_s1 + $0x28] sm:$0xff] }
 0x151   : > { %v690_v9 = vsel %vm685_vm3, %v674_v53, %v676_v10  ;;  %16129 = vst [vmem:[#allocation31_spill] sm:$0xff] %v9425_v2 }
 0x155   : > { %8155 = vrot.lane.b32.xlu1 %v9174_v11, %s8790_s30  ;;  %8160 = vrot.lane.b32.xlu2 %v9178_v12, %s8790_s30 }
 0x156   : > { %8165 = vrot.lane.b32.xlu0 %v8164_v14, %s8790_s30 }
 0x157   : > { %v678_v19 = vpop.permute.xlu1 %677  ;;  %v9189_v62 = vpop.permute.xlu2 %722 }
 0x158   : > { %16112 = vst [vmem:[#allocation14_spill] sm:$0xff] %v9189_v62  ;;  %v682_v63 = vpop.permute.xlu0 %681 }
 0x159   : > { %v692_v5 = vsel %vm685_vm3, %v680_v56, %v682_v63 }
 0x15a   : > { %7424 = vmatpush.msk.msra.mxu0 %vm414_vm2, %v692_v5  ;;  %v688_v5 = vsel %vm685_vm3, %v668_v50, %v670_v60 }
 0x15c   : > { %7425 = vmatpush.msk.msra.mxu0 %vm414_vm2, %v690_v9 }
 0x15d   : > { %8175 = vrot.lane.b32.xlu2 %v9161_v61, %s8791_s12  ;;  %8170 = vrot.lane.b32.xlu1 %v9199_v3, %s8790_s30 }
 0x15e   : > { %8180 = vrot.lane.b32.xlu0 %v8149_v0, %s8791_s12  ;;  %7426 = vmatpush.msk.msra.mxu0 %vm414_vm2, %v688_v5  ;;  %v643_v0 = vsel %vm636_vm6, %v9103_v44, %v9137_v54  ;;  %v691_v5 = vsel %vm685_vm3, %v676_v10, %v678_v19  ;;  %v689_v44 = vsel %vm685_vm3, %v670_v60, %v672_v1 }
 0x15f   : > { %v684_v53 = vpop.permute.xlu1 %683  ;;  %v9213_v56 = vpop.permute.xlu2 %728  ;;  %v644_v1 = vsel %vm636_vm6, %v9137_v54, %v9145_v55  ;;  %v640_v54 = vsel %vm636_vm6, %v9117_v48, %v9125_v49  ;;  %v638_v55 = vsel %vm636_vm6, %v9105_v45, %v9113_v46  ;;  %v476_v48 = vld [vmem:[%s15912_s2 + $0x18] sm:$0xff]  ;;  %v475_v49 = vld [vmem:[%s15912_s2 + $0x10] sm:$0xff] }
 0x160   : > { %16115 = vst [vmem:[#allocation17_spill] sm:$0xff] %v9213_v56  ;;  %v693_v9 = vsel %vm685_vm3, %v682_v63, %v684_v53  ;;  %7427 = vmatpush.msk.msra.mxu0 %vm414_vm2, %v686_v18  ;;  %v9222_v50 = vpop.permute.xlu0 %712  ;;  %v687_v63 = vsel %vm685_vm3, %v9147_v57, %v9155_v58  ;;  %v473_v57 = vld [vmem:[%s15912_s2] sm:$0xff]  ;;  %v474_v58 = vld [vmem:[%s15912_s2 + $0x8] sm:$0xff] }
 0x161   : > { %16116 = vst [vmem:[#allocation18_spill] sm:$0xff] %v9222_v50  ;;  %7452 = vmatpush.msk.msra.mxu3 %vm15946_vm4, %v693_v9 }
 0x162   : > { %7428 = vmatpush.msk.msra.mxu0 %vm412_vm5, %v643_v0 }
 0x163   : > { %7453 = vmatpush.msk.msra.mxu3 %vm15946_vm4, %v691_v5 }
 0x164   : > { %7429 = vmatpush.msk.msra.mxu0 %vm412_vm5, %v641_v47 }
 0x165   : > { %8190 = vrot.lane.b32.xlu2 %v9178_v12, %s8791_s12  ;;  %8185 = vrot.lane.b32.xlu1 %v9174_v11, %s8791_s12 }
 0x166   : > { %7454 = vmatpush.msk.msra.mxu3 %vm15946_vm4, %v689_v44  ;;  %8195 = vrot.lane.b32.xlu0 %v8164_v14, %s8791_s12 }
 0x167   : > { %v9250_v10 = vpop.permute.xlu1 %714  ;;  %v9252_v19 = vpop.permute.xlu2 %759  ;;  %7430 = vmatpush.msk.msra.mxu0 %vm412_vm5, %v639_v41 }
 0x168   : > { %16117 = vst [vmem:[#allocation19_spill] sm:$0xff] %v9250_v10  ;;  %7455 = vmatpush.msk.msra.mxu3 %vm15946_vm4, %v687_v63  ;;  %v9265_v60 = vpop.permute.xlu0 %718 }
 0x169   : > { %16118 = vst [vmem:[#allocation20_spill] sm:$0xff] %v9252_v19  ;;  %7431 = vmatpush.msk.msra.mxu0 %vm412_vm5, %v637_v38 }
 0x16a   : > { %16119 = vst [vmem:[#allocation21_spill] sm:$0xff] %v9265_v60  ;;  %7456 = vmatpush.msk.msra.mxu3 %vm15945_vm7, %v644_v1 }
 0x16c   : > { %7457 = vmatpush.msk.msra.mxu3 %vm15945_vm7, %v642_v35 }
 0x16d   : > { %941 = vperm.xlu2 %8204, %v473_v57   ;;  %8200 = vrot.lane.b32.xlu1 %v9199_v3, %s8791_s12 }
 0x16e   : > { %7458 = vmatpush.msk.msra.mxu3 %vm15945_vm7, %v640_v54  ;;  %946 = vperm.xlu0 %8205, %v474_v58  }
 0x16f   : > { %v9292_v51 = vpop.permute.xlu1 %720  ;;  %v9294_v52 = vpop.permute.xlu2 %765 }
 0x170   : > { %16120 = vst [vmem:[#allocation22_spill] sm:$0xff] %v9292_v51  ;;  %7459 = vmatpush.msk.msra.mxu3 %vm15945_vm7, %v638_v55  ;;  %v9301_v14 = vpop.permute.xlu0 %724 }
 0x171   : > { %16121 = vst [vmem:[#allocation23_spill] sm:$0xff] %v9301_v14 }
 0x175   : > { %956 = vperm.xlu2 %8204, %v476_v48   ;;  %951 = vperm.xlu1 %8206, %v475_v49  }
 0x176   : > { %1188 = vrot.lane.b32.xlu0 %v8942_v20, %s8792_s15 }
 0x177   : > { %v9310_v53 = vpop.permute.xlu1 %726  ;;  %v9312_v45 = vpop.permute.xlu2 %771 }
 0x178   : > { %16122 = vst [vmem:[#allocation24_spill] sm:$0xff] %v9310_v53  ;;  %v9314_v46 = vpop.permute.xlu0 %730 }
 0x179   : > { %16123 = vst [vmem:[#allocation25_spill] sm:$0xff] %v9314_v46 }
 0x17d   : > { %1186 = vrot.lane.b32.xlu2 %v8933_v16, %s8792_s15  ;;  %1184 = vrot.lane.b32.xlu1 %v8929_v15, %s8792_s15 }
 0x17e   : > { %1194 = vrot.lane.b32.xlu0 %v8957_v23, %s8792_s15 }
 0x17f   : > { %v9319_v18 = vpop.permute.xlu1 %732  ;;  %v9321_v9 = vpop.permute.xlu2 %777 }
 0x180   : > { %16124 = vst [vmem:[#allocation26_spill] sm:$0xff] %v9319_v18  ;;  %v9323_v0 = vpop.permute.xlu0 %761 }
 0x181   : > { %16125 = vst [vmem:[#allocation27_spill] sm:$0xff] %v9323_v0 }
 0x185   : > { %1192 = vrot.lane.b32.xlu2 %v8946_v21, %s8792_s15  ;;  %1190 = vrot.lane.b32.xlu1 %v8940_v17, %s8792_s15 }
 0x186   : > { %1200 = vrot.lane.b32.xlu0 %v8968_v25, %s8792_s15 }
 0x187   : > { %v9328_v5 = vpop.permute.xlu1 %763  ;;  %v809_v47 = vpop.permute.xlu2 %808 }
 0x188   : > { %16126 = vst [vmem:[#allocation28_spill] sm:$0xff] %v9328_v5  ;;  %v9330_v44 = vpop.permute.xlu0 %767 }
 0x18d   : > { %1198 = vrot.lane.b32.xlu2 %v8960_v24, %s8792_s15  ;;  %1196 = vrot.lane.b32.xlu1 %v8955_v22, %s8792_s15 }
 0x18e   : > { %1206 = vrot.lane.b32.xlu0 %v8981_v28, %s8792_s15 }
 0x18f   : > { %v9335_v41 = vpop.permute.xlu1 %769  ;;  %v815_v63 = vpop.permute.xlu2 %814 }
 0x190   : > { %v9337_v38 = vpop.permute.xlu0 %773 }
 0x195   : > { %1204 = vrot.lane.b32.xlu2 %v8973_v27, %s8792_s15  ;;  %1202 = vrot.lane.b32.xlu1 %v8970_v26, %s8792_s15  ;;  %s8800_s15 = smov 94  }
 0x196   : > { %1241 = vrot.lane.b32.xlu0 %v8942_v20, %s8793_s16 }
 0x197   : > { %v9342_v1 = vpop.permute.xlu1 %775  ;;  %v821_v57 = vpop.permute.xlu2 %820 }
 0x198   : > { %v9344_v35 = vpop.permute.xlu0 %779 }
 0x19d   : > { %1239 = vrot.lane.b32.xlu2 %v8933_v16, %s8793_s16  ;;  %1237 = vrot.lane.b32.xlu1 %v8929_v15, %s8793_s16 }
 0x19e   : > { %1247 = vrot.lane.b32.xlu0 %v8957_v23, %s8793_s16 }
 0x19f   : > { %v9349_v58 = vpop.permute.xlu1 %781  ;;  %v827_v54 = vpop.permute.xlu2 %826 }
 0x1a0   : > { %v9351_v55 = vpop.permute.xlu0 %810 }
 0x1a5   : > { %1245 = vrot.lane.b32.xlu2 %v8946_v21, %s8793_s16  ;;  %1243 = vrot.lane.b32.xlu1 %v8940_v17, %s8793_s16 }
 0x1a6   : > { %1253 = vrot.lane.b32.xlu0 %v8968_v25, %s8793_s16 }
 0x1a7   : > { %v9356_v48 = vpop.permute.xlu1 %812  ;;  %v9358_v49 = vpop.permute.xlu2 %8145 }
 0x1a8   : > { %v9360_v12 = vpop.permute.xlu0 %816  ;;  %v8147_v5 = vunpack.i.l.bf16 %v9358_v49 }
 0x1a9   : > { %v835_v10 = vsel %vm15947_vm8, %v815_v63, %v9360_v12  ;;  %v9410_v63 = vld [vmem:[%s15911_s1 + $0x10] sm:$0xff] }
 0x1aa   : > { %16127 = vst [vmem:[#allocation29_spill] sm:$0xff] %v9410_v63 }
 0x1ad   : > { %1251 = vrot.lane.b32.xlu2 %v8960_v24, %s8793_s16  ;;  %1249 = vrot.lane.b32.xlu1 %v8955_v22, %s8793_s16 }
 0x1ae   : > { %1259 = vrot.lane.b32.xlu0 %v8981_v28, %s8793_s16 }
 0x1af   : > { %v9365_v3 = vpop.permute.xlu1 %818  ;;  %v9367_v61 = vpop.permute.xlu2 %8160 }
 0x1b0   : > { %v9369_v11 = vpop.permute.xlu0 %822  ;;  %v8163_v53 = vunpack.i.h.bf16 %v9367_v61 }
 0x1b1   : > { %v837_v50 = vsel %vm15947_vm8, %v821_v57, %v9369_v11 }
 0x1b5   : > { %1257 = vrot.lane.b32.xlu2 %v8973_v27, %s8793_s16  ;;  %1255 = vrot.lane.b32.xlu1 %v8970_v26, %s8793_s16  ;;  %s8806_s16 = smov 92  }
 0x1b6   : > { %1290 = vrot.lane.b32.xlu0 %v8942_v20, %s8794_s20 }
 0x1b7   : > { %v9375_v6 = vpop.permute.xlu1 %824  ;;  %v9377_v7 = vpop.permute.xlu2 %8175 }
 0x1b8   : > { %v9379_v8 = vpop.permute.xlu0 %828 }
 0x1b9   : > { %v839_v59 = vsel %vm15947_vm8, %v827_v54, %v9379_v8 }
 0x1ba   : > { %7444 = vmatpush.msk.msra.mxu2 %vm412_vm5, %v839_v59 }
 0x1bc   : > { %7445 = vmatpush.msk.msra.mxu2 %vm412_vm5, %v837_v50  ;;  %v833_v50 = vsel %vm15947_vm8, %v809_v47, %v9351_v55 }
 0x1bd   : > { %1288 = vrot.lane.b32.xlu2 %v8933_v16, %s8794_s20  ;;  %1286 = vrot.lane.b32.xlu1 %v8929_v15, %s8794_s20 }
 0x1be   : > { %1296 = vrot.lane.b32.xlu0 %v8957_v23, %s8794_s20  ;;  %7446 = vmatpush.msk.msra.mxu2 %vm412_vm5, %v835_v10 }
 0x1bf   : > { %v9399_v59 = vpop.permute.xlu1 %830  ;;  %v9401_v57 = vpop.permute.xlu2 %8190 }
 0x1c0   : > { %7447 = vmatpush.msk.msra.mxu2 %vm412_vm5, %v833_v50  ;;  %v8151_v54 = vpop.permute.xlu0 %8150 }
 0x1c1   : > { %7448 = vmatmul.msk.f32.vlgmr.msra.gmra.mxu2 %vm959_vm9, %v9410_v63 }
 0x1c5   : > { %1294 = vrot.lane.b32.xlu2 %v8946_v21, %s8794_s20  ;;  %1292 = vrot.lane.b32.xlu1 %v8940_v17, %s8794_s20 }
 0x1c6   : > { %1302 = vrot.lane.b32.xlu0 %v8968_v25, %s8794_s20 }
 0x1c7   : > { %v8156_v10 = vpop.permute.xlu1 %8155  ;;  %v9420_v47 = vpop.permute.xlu2 %941 }
 0x1c8   : > { %16128 = vst [vmem:[#allocation30_spill] sm:$0xff] %v9420_v47  ;;  %v8166_v50 = vpop.permute.xlu0 %8165  ;;  %v8158_v19 = vunpack.i.h.bf16 %v8156_v10  ;;  %v8157_v0 = vunpack.i.l.bf16 %v8156_v10 }
 0x1c9   : > { %7449 = vmatmul.msk.f32.gmra.mxu2 %vm959_vm9, %v9425_v2  ;;  %v8168_v62 = vunpack.i.h.bf16 %v8166_v50  ;;  %v8162_v2 = vunpack.i.l.bf16 %v9367_v61  ;;  %v8167_v56 = vunpack.i.l.bf16 %v8166_v50  ;;  %v8153_v61 = vunpack.i.h.bf16 %v8151_v54 }
 0x1cd   : > { %1300 = vrot.lane.b32.xlu2 %v8960_v24, %s8794_s20  ;;  %1298 = vrot.lane.b32.xlu1 %v8955_v22, %s8794_s20 }
 0x1ce   : > { %1308 = vrot.lane.b32.xlu0 %v8981_v28, %s8794_s20 }
 0x1cf   : > { %v9435_v63 = vpop.permute.xlu2 %956  ;;  %v8171_v47 = vpop.permute.xlu1 %8170 }
 0x1d0   : > { %16130 = vst [vmem:[#allocation32_spill] sm:$0xff] %v9435_v63  ;;  %v8173_v60 = vunpack.i.h.bf16 %v8171_v47  ;;  %v8172_v51 = vunpack.i.l.bf16 %v8171_v47  ;;  %v9437_v14 = vpop.permute.xlu0 %8180  ;;  %v9446_v47 = vld [vmem:[%s15911_s1 + $0x40] sm:$0xff]  ;;  %v8148_v63 = vunpack.i.h.bf16 %v9358_v49  ;;  %v885_v49 = vsel %vm881_vm10, %v8157_v0, %v8158_v19 }
 0x1d1   : > { %7450 = vmatmul.msk.f32.gmra.mxu2 %vm959_vm9, %v9446_v47  ;;  %v591_v19 = vsel %vm583_vm11, %v9093_v42, %v9101_v43 }
 0x1d2   : > { %v889_v46 = vsel %vm881_vm10, %v8172_v51, %v8173_v60  ;;  %v888_v18 = vsel %vm881_vm10, %v8168_v62, %v8172_v51  ;;  %v8152_v60 = vunpack.i.l.bf16 %v8151_v54  ;;  %v887_v62 = vsel %vm881_vm10, %v8163_v53, %v8167_v56 }
 0x1d3   : > { %1067 = vmatpush.msra.mxu3 %v889_v46  ;;  %980 = vmatpush.msra.mxu0 %v888_v18  ;;  %v886_v51 = vsel %vm881_vm10, %v8162_v2, %v8163_v53  ;;  %v884_v54 = vsel %vm881_vm10, %v8153_v61, %v8157_v0  ;;  %v882_v2 = vsel %vm881_vm10, %v8147_v5, %v8148_v63  ;;  %v9481_v0 = vld [vmem:[%s15911_s1 + $0x58] sm:$0xff] }
 0x1d4   : > { %v883_v56 = vsel %vm881_vm10, %v8148_v63, %v8152_v60  ;;  %v590_v53 = vsel %vm583_vm11, %v9055_v32, %v9093_v42  ;;  %v589_v32 = vsel %vm583_vm11, %v9081_v39, %v9089_v40  ;;  %v588_v42 = vsel %vm583_vm11, %v9047_v31, %v9081_v39 }
 0x1d5   : > { %1306 = vrot.lane.b32.xlu2 %v8973_v27, %s8794_s20  ;;  %1304 = vrot.lane.b32.xlu1 %v8970_v26, %s8794_s20  ;;  %v587_v63 = vsel %vm583_vm11, %v9069_v36, %v9077_v37  ;;  %v586_v40 = vsel %vm583_vm11, %v9039_v30, %v9069_v36  ;;  %v461_v37 = vld [vmem:[%s15911_s1] sm:$0xff]  ;;  %v585_v61 = vsel %vm583_vm11, %v9057_v33, %v9065_v34  ;;  %s8802_s20 = smov 62  }
 0x1d6   : > { %1068 = vmatpush.msra.mxu3 %v887_v62  ;;  %981 = vmatpush.msra.mxu0 %v886_v51  ;;  %v584_v60 = vsel %vm583_vm11, %v9031_v29, %v9057_v33  ;;  %v8193_v62 = vunpack.i.h.bf16 %v9401_v57  ;;  %v8192_v51 = vunpack.i.l.bf16 %v9401_v57  ;;  %v840_v29 = vsel %vm15947_vm8, %v9379_v8, %v9399_v59 }
 0x1d7   : > { %v9458_v46 = vpop.permute.xlu2 %1186  ;;  %v9460_v18 = vpop.permute.xlu1 %8185  ;;  %1339 = vrot.lane.b32.xlu0 %v8942_v20, %s8795_s13  ;;  %v8178_v33 = vunpack.i.h.bf16 %v9377_v7  ;;  %v8182_v57 = vunpack.i.l.bf16 %v9437_v14  ;;  %v838_v8 = vsel %vm15947_vm8, %v9369_v11, %v9375_v6 }
 0x1d8   : > { %1069 = vmatpush.msra.mxu3 %v885_v49  ;;  %982 = vmatpush.msra.mxu0 %v884_v54  ;;  %v8196_v10 = vpop.permute.xlu0 %8195  ;;  %v8188_v34 = vunpack.i.h.bf16 %v9460_v18  ;;  %v927_v59 = vsel %vm15962_vm12, %v8192_v51, %v8193_v62 }
 0x1d9   : > { %7451 = vmatmul.msk.f32.gmra.mxu2 %vm959_vm9, %v9481_v0  ;;  %v8198_v50 = vunpack.i.h.bf16 %v8196_v10  ;;  %v8197_v36 = vunpack.i.l.bf16 %v8196_v10  ;;  %v8187_v10 = vunpack.i.l.bf16 %v9460_v18  ;;  %v924_v11 = vsel %vm15962_vm12, %v8178_v33, %v8182_v57 }
 0x1da   : > { %1070 = vmatpush.msra.mxu3 %v883_v56  ;;  %983 = vmatpush.msra.mxu0 %v882_v2  ;;  %v8177_v56 = vunpack.i.l.bf16 %v9377_v7  ;;  %v8183_v2 = vunpack.i.h.bf16 %v9437_v14  ;;  %v836_v14 = vsel %vm15947_vm8, %v9360_v12, %v9365_v3  ;;  %v834_v3 = vsel %vm15947_vm8, %v9351_v55, %v9356_v48 }
 0x1db   : > { %v928_v18 = vsel %vm15962_vm12, %v8193_v62, %v8197_v36  ;;  %v926_v7 = vsel %vm15962_vm12, %v8187_v10, %v8188_v34  ;;  %v787_v48 = vsel %vm15948_vm13, %v9330_v44, %v9335_v41  ;;  %v16131_v41 = vld [vmem:[#allocation28_spill] sm:$0xff]  ;;  %v16136_v36 = vld [vmem:[#allocation17_spill] sm:$0xff]  ;;  %v16138_v62 = vld [vmem:[#allocation23_spill] sm:$0xff]  ;;  %vm421_vm8 = vcmp.lt.s32.totalorder %v9195_v4, 13 }
 0x1dc   : > { %7460 = vmatpush.msk.msra.mxu3 %vm15946_vm4, %v591_v19  ;;  %7432 = vmatpush.msk.msra.mxu0 %vm414_vm2, %v590_v53  ;;  %v923_v12 = vsel %vm15962_vm12, %v8177_v56, %v8178_v33  ;;  %v16141_v33 = vld [vmem:[#allocation21_spill] sm:$0xff] }
 0x1dd   : > { %1337 = vrot.lane.b32.xlu2 %v8933_v16, %s8795_s13  ;;  %1335 = vrot.lane.b32.xlu1 %v8929_v15, %s8795_s13 }
 0x1de   : > { %7461 = vmatpush.msk.msra.mxu3 %vm15946_vm4, %v589_v32  ;;  %7433 = vmatpush.msk.msra.mxu0 %vm414_vm2, %v588_v42  ;;  %v925_v32 = vsel %vm15962_vm12, %v8183_v2, %v8187_v10  ;;  %v464_v42 = vld [vmem:[%s15911_s1 + $0x18] sm:$0xff] }
 0x1df   : > { %v9497_v43 = vpop.permute.xlu2 %1192  ;;  %v8201_v5 = vpop.permute.xlu1 %8200  ;;  %1345 = vrot.lane.b32.xlu0 %v8957_v23, %s8795_s13 }
 0x1e0   : > { %v8203_v31 = vunpack.i.h.bf16 %v8201_v5  ;;  %v8202_v39 = vunpack.i.l.bf16 %v8201_v5  ;;  %7462 = vmatpush.msk.msra.mxu3 %vm15946_vm4, %v587_v63  ;;  %7434 = vmatpush.msk.msra.mxu0 %vm414_vm2, %v586_v40  ;;  %v9516_v30 = vpop.permute.xlu0 %946  ;;  %v791_v5 = vsel %vm15948_vm13, %v9344_v35, %v9349_v58  ;;  %v790_v63 = vsel %vm15948_vm13, %v9321_v9, %v9344_v35  ;;  %v16132_v40 = vld [vmem:[#allocation27_spill] sm:$0xff] }
 0x1e1   : > { %v789_v58 = vsel %vm15948_vm13, %v9337_v38, %v9342_v1  ;;  %v788_v9 = vsel %vm15948_vm13, %v9312_v45, %v9337_v38  ;;  %v786_v1 = vsel %vm15948_vm13, %v9294_v52, %v9330_v44  ;;  %v467_v38 = vld [vmem:[%s15911_s1 + $0x30] sm:$0xff]  ;;  %v16133_v52 = vld [vmem:[#allocation20_spill] sm:$0xff] }
 0x1e2   : > { %7463 = vmatpush.msk.msra.mxu3 %vm15946_vm4, %v585_v61  ;;  %7435 = vmatpush.msk.msra.mxu0 %vm414_vm2, %v584_v60  ;;  %v930_v49 = vsel %vm15962_vm12, %v8202_v39, %v8203_v31  ;;  %v929_v54 = vsel %vm15962_vm12, %v8198_v50, %v8202_v39  ;;  %v785_v31 = vsel %vm15948_vm13, %v16132_v40, %v16131_v41  ;;  %v16134_v39 = vld [vmem:[#allocation26_spill] sm:$0xff]  ;;  %v16135_v50 = vld [vmem:[#allocation25_spill] sm:$0xff]  ;;  %v16137_v60 = vld [vmem:[#allocation24_spill] sm:$0xff]  ;;  %vm1208_vm12 = vcmask 908288  }
 0x1e3   : > { %1075 = vmatmul.f32.vlgmr.msra.gmra.mxu3 %v461_v37  ;;  %988 = vmatmul.f32.vlgmr.msra.gmra.mxu0 %v461_v37  ;;  %v784_v44 = vsel %vm15948_vm13, %v16133_v52, %v16132_v40  ;;  %v742_v37 = vsel %vm15949_vm14, %v16135_v50, %v16134_v39  ;;  %v741_v61 = vsel %vm15949_vm14, %v16136_v36, %v16135_v50  ;;  %v9715_v41 = vld [vmem:[%s8889_s22] sm:$0xff]  ;;  %v16154_v40 = vld [vmem:[#allocation29_spill] sm:$0xff]  ;;  %vm1261_vm13 = vcmask 859136  }
 0x1e4   : > { %1088 = vmatpush.msrb.mxu2 %v930_v49  ;;  %7472 = vmatpush.msk.msrb.mxu0 %vm15945_vm7, %v840_v29  ;;  %v740_v51 = vsel %vm15949_vm14, %v16138_v62, %v16137_v60  ;;  %v16139_v49 = vld [vmem:[#allocation14_spill] sm:$0xff]  ;;  %16153 = vst [vmem:[#allocation27_spill] sm:$0xff] %v9715_v41  ;;  %v465_v39 = vld [vmem:[%s15911_s1 + $0x20] sm:$0xff] }
 0x1e5   : > { %1001 = vmatpush.msra.mxu1 %v929_v54  ;;  %1343 = vrot.lane.b32.xlu2 %v8946_v21, %s8795_s13  ;;  %v739_v54 = vsel %vm15949_vm14, %v16139_v49, %v16138_v62  ;;  %v16140_v29 = vld [vmem:[#allocation22_spill] sm:$0xff]  ;;  %v16155_v50 = vld [vmem:[#allocation31_spill] sm:$0xff] }
 0x1e6   : > { %1341 = vrot.lane.b32.xlu1 %v8940_v17, %s8795_s13  ;;  %1089 = vmatpush.msrb.mxu2 %v928_v18  ;;  %v738_v57 = vsel %vm15949_vm14, %v16141_v33, %v16140_v29  ;;  %v16142_v18 = vld [vmem:[#allocation11_spill] sm:$0xff] }
 0x1e7   : > { %7473 = vmatpush.msk.msrb.mxu0 %vm15945_vm7, %v838_v8  ;;  %1002 = vmatpush.msra.mxu1 %v927_v59  ;;  %v9554_v19 = vpop.permute.xlu2 %1198  ;;  %v9556_v53 = vpop.permute.xlu1 %951  ;;  %v737_v56 = vsel %vm15949_vm14, %v16142_v18, %v16141_v33  ;;  %v470_v8 = vld [vmem:[%s15911_s1 + $0x48] sm:$0xff]  ;;  %v16143_v59 = vld [vmem:[#allocation19_spill] sm:$0xff] }
 0x1e8   : > { %1090 = vmatpush.msrb.mxu2 %v926_v7  ;;  %1351 = vrot.lane.b32.xlu0 %v8968_v25, %s8795_s13  ;;  %v9565_v6 = vpop.permute.xlu0 %1188  ;;  %v16144_v7 = vld [vmem:[#allocation18_spill] sm:$0xff] }
 0x1e9   : > { %7474 = vmatpush.msk.msrb.mxu0 %vm15945_vm7, %v836_v14  ;;  %1003 = vmatpush.msra.mxu1 %v925_v32  ;;  %v736_v14 = vsel %vm15949_vm14, %v16144_v7, %v16143_v59  ;;  %v16145_v32 = vld [vmem:[#allocation9_spill] sm:$0xff]  ;;  %v16157_v59 = vld [vmem:[#allocation12_spill] sm:$0xff] }
 0x1ea   : > { %1091 = vmatpush.msrb.mxu2 %v924_v11  ;;  %v735_v11 = vsel %vm15949_vm14, %v16145_v32, %v16144_v7  ;;  %v8751_v7 = vld [vmem:[#allocation2 + $0x10] sm:$0xff]  ;;  %vm420_vm14 = vcmp.lt.s32.totalorder %v9180_v13, 13 }
 0x1eb   : > { %7475 = vmatpush.msk.msrb.mxu0 %vm15945_vm7, %v834_v3  ;;  %1004 = vmatpush.msra.mxu1 %v923_v12  ;;  %v16147_v3 = vld [vmem:[#allocation7_spill] sm:$0xff]  ;;  %v16148_v12 = vld [vmem:[#allocation6_spill] sm:$0xff] }
 0x1ec   : > { %1078 = vmatmul.f32.gmra.mxu3 %v464_v42  ;;  %991 = vmatmul.f32.gmra.mxu0 %v464_v42  ;;  %v16146_v42 = vld [vmem:[#allocation8_spill] sm:$0xff] }
 0x1ed   : > { %7464 = vmatpush.msk.msrb.mxu2 %vm15946_vm4, %v791_v5  ;;  %7436 = vmatpush.msk.msra.mxu1 %vm414_vm2, %v790_v63  ;;  %v16149_v5 = vld [vmem:[#allocation3_spill] sm:$0xff] }
 0x1ee   : > { %1349 = vrot.lane.b32.xlu2 %v8960_v24, %s8795_s13  ;;  %1347 = vrot.lane.b32.xlu1 %v8955_v22, %s8795_s13 }
 0x1ef   : > { %7465 = vmatpush.msk.msrb.mxu2 %vm15946_vm4, %v789_v58  ;;  %7437 = vmatpush.msk.msra.mxu1 %vm414_vm2, %v788_v9  ;;  %v9603_v35 = vpop.permute.xlu2 %1204  ;;  %v9605_v55 = vpop.permute.xlu1 %1184 }
 0x1f0   : > { %1357 = vrot.lane.b32.xlu0 %v8981_v28, %s8795_s13  ;;  %v9615_v45 = vpop.permute.xlu0 %1194 }
 0x1f1   : > { %7466 = vmatpush.msk.msrb.mxu2 %vm15946_vm4, %v787_v48  ;;  %7438 = vmatpush.msk.msra.mxu1 %vm414_vm2, %v786_v1  ;;  %v16150_v48 = vld [vmem:[#allocation4_spill] sm:$0xff]  ;;  %v9707_v1 = vld [vmem:[%s8889_s22 + $0x10] sm:$0xff] }
 0x1f2   : > { %16151 = vst [vmem:[#allocation28_spill] sm:$0xff] %v9707_v1 }
 0x1f3   : > { %7467 = vmatpush.msk.msrb.mxu2 %vm15946_vm4, %v785_v31  ;;  %7439 = vmatpush.msk.msra.mxu1 %vm414_vm2, %v784_v44  ;;  %vm422_vm4 = vcmp.ge.s32.totalorder %v9180_v13, 3 }
 0x1f4   : > { %1081 = vmatmul.f32.gmra.mxu3 %v467_v38  ;;  %994 = vmatmul.f32.gmra.mxu0 %v467_v38  ;;  %v16152_v38 = vld [vmem:[#allocation5_spill] sm:$0xff] }
 0x1f5   : > { %7468 = vmatpush.msk.msrb.mxu2 %vm15945_vm7, %v742_v37  ;;  %7440 = vmatpush.msk.msra.mxu1 %vm412_vm5, %v741_v61  ;;  %v468_v61 = vld [vmem:[%s15911_s1 + $0x38] sm:$0xff] }
 0x1f6   : > { %1355 = vrot.lane.b32.xlu2 %v8973_v27, %s8795_s13  ;;  %1353 = vrot.lane.b32.xlu1 %v8970_v26, %s8795_s13  ;;  %s8796_s13 = smov 15  }
 0x1f7   : > { %7469 = vmatpush.msk.msrb.mxu2 %vm15945_vm7, %v740_v51  ;;  %7441 = vmatpush.msk.msra.mxu1 %vm412_vm5, %v739_v54  ;;  %v9658_v34 = vpop.permute.xlu2 %1239  ;;  %v9660_v10 = vpop.permute.xlu1 %1190  ;;  %v471_v51 = vld [vmem:[%s15911_s1 + $0x50] sm:$0xff]  ;;  %v8748_v54 = vld [vmem:[#allocation2 + $0x20] sm:$0xff] }
 0x1f8   : > { %1388 = vrot.lane.b32.xlu0 %v8942_v20, %s8796_s13  ;;  %v9670_v2 = vpop.permute.xlu0 %1200 }
 0x1f9   : > { %7470 = vmatpush.msk.msrb.mxu2 %vm15945_vm7, %v738_v57  ;;  %7442 = vmatpush.msk.msra.mxu1 %vm412_vm5, %v737_v56 }
 0x1fb   : > { %7471 = vmatpush.msk.msrb.mxu2 %vm15945_vm7, %v736_v14  ;;  %7443 = vmatpush.msk.msra.mxu1 %vm412_vm5, %v735_v11  ;;  %v16158_v14 = vld [vmem:[#allocation10_spill] sm:$0xff]  ;;  %vm1310_vm7 = vcmask 515072  }
 0x1fc   : > { %1084 = vmatmul.f32.gmra.mxu3 %v470_v8  ;;  %997 = vmatmul.f32.gmra.mxu0 %v470_v8 }
 0x1fd   : > { %1100 = vmatpush.msrb.mxu2 %v16146_v42  ;;  %1013 = vmatpush.msra.mxu1 %v16147_v3 }
 0x1fe   : > { %1386 = vrot.lane.b32.xlu2 %v8933_v16, %s8796_s13  ;;  %1384 = vrot.lane.b32.xlu1 %v8929_v15, %s8796_s13  ;;  %v462_v15 = vld [vmem:[%s15911_s1 + $0x8] sm:$0xff] }
 0x1ff   : > { %1101 = vmatpush.msrb.mxu2 %v16148_v12  ;;  %1014 = vmatpush.msra.mxu1 %v16149_v5  ;;  %v9697_v63 = vpop.permute.xlu2 %1245  ;;  %v9699_v58 = vpop.permute.xlu1 %1196  ;;  %v8752_v12 = vld [vmem:[#allocation2 + $0x50] sm:$0xff] }
 0x200   : > { %1394 = vrot.lane.b32.xlu0 %v8957_v23, %s8796_s13  ;;  %v9703_v9 = vpop.permute.xlu0 %1206 }
 0x201   : > { %1102 = vmatpush.msrb.mxu2 %v16150_v48  ;;  %1015 = vmatpush.msra.mxu1 %v9707_v1 }
 0x203   : > { %1103 = vmatpush.msrb.mxu2 %v16152_v38  ;;  %1016 = vmatpush.msra.mxu1 %v9715_v41 }
 0x204   : > { %1104 = vmatmul.f32.vlgmr.msrb.gmra.mxu2 %v462_v15  ;;  %1017 = vmatmul.f32.vlgmr.msra.gmra.mxu1 %v462_v15  ;;  %v16160_v15 = vld [vmem:[#allocation13_spill] sm:$0xff] }
 0x205   : > { %7476 = vmatmul.msk.f32.vlgmr.msrb.gmra.mxu0 %vm959_vm9, %v16154_v40 }
 0x206   : > { %1392 = vrot.lane.b32.xlu2 %v8946_v21, %s8796_s13  ;;  %1390 = vrot.lane.b32.xlu1 %v8940_v17, %s8796_s13 }
 0x207   : > { %v9724_v31 = vpop.permute.xlu2 %1251  ;;  %v9726_v52 = vpop.permute.xlu1 %1202 }
 0x208   : > { %1400 = vrot.lane.b32.xlu0 %v8968_v25, %s8796_s13  ;;  %v9730_v44 = vpop.permute.xlu0 %1241 }
 0x20c   : > { %1107 = vmatmul.f32.gmra.mxu2 %v465_v39  ;;  %1020 = vmatmul.f32.gmra.mxu1 %v465_v39 }
 0x20d   : > { %7477 = vmatmul.msk.f32.gmra.mxu0 %vm959_vm9, %v16155_v50 }
 0x20e   : > { %1398 = vrot.lane.b32.xlu2 %v8960_v24, %s8796_s13  ;;  %1396 = vrot.lane.b32.xlu1 %v8955_v22, %s8796_s13 }
 0x20f   : > { %v9741_v17 = vpop.permute.xlu2 %1257  ;;  %v9743_v37 = vpop.permute.xlu1 %1237 }
 0x210   : > { %1406 = vrot.lane.b32.xlu0 %v8981_v28, %s8796_s13  ;;  %v9747_v36 = vpop.permute.xlu0 %1247 }
 0x214   : > { %1110 = vmatmul.f32.gmra.mxu2 %v468_v61  ;;  %1023 = vmatmul.f32.gmra.mxu1 %v468_v61 }
 0x215   : > { %7478 = vmatmul.msk.f32.gmra.mxu0 %vm959_vm9, %v9446_v47 }
 0x216   : > { %1404 = vrot.lane.b32.xlu2 %v8973_v27, %s8796_s13  ;;  %1402 = vrot.lane.b32.xlu1 %v8970_v26, %s8796_s13  ;;  %v8747_v26 = vld [vmem:[#allocation2] sm:$0xff]  ;;  %s8798_s13 = smov 108  }
 0x217   : > { %v9758_v22 = vpop.permute.xlu2 %1288  ;;  %v9760_v60 = vpop.permute.xlu1 %1243 }
 0x218   : > { %1437 = vrot.lane.b32.xlu0 %v8942_v20, %s8797_s14  ;;  %v9763_v62 = vpop.permute.xlu0 %1253 }
 0x21c   : > { %1113 = vmatmul.f32.gmra.mxu2 %v471_v51  ;;  %1026 = vmatmul.f32.gmra.mxu1 %v471_v51 }
 0x21d   : > { %7479 = vmatmul.msk.f32.gmra.mxu0 %vm959_vm9, %v9481_v0 }
 0x21e   : > { %1435 = vrot.lane.b32.xlu2 %v8933_v16, %s8797_s14  ;;  %1433 = vrot.lane.b32.xlu1 %v8747_v26, %s8797_s14  ;;  %v8749_v16 = vld [vmem:[#allocation2 + $0x40] sm:$0xff] }
 0x21f   : > { %v9771_v47 = vpop.permute.xlu2 %1294  ;;  %v9773_v49 = vpop.permute.xlu1 %1249 }
 0x220   : > { %1443 = vrot.lane.b32.xlu0 %v8957_v23, %s8797_s14  ;;  %v1260_v20 = vpop.permute.xlu0 %1259 }
 0x221   : > { %v1269_v51 = vsel %vm1261_vm13, %v9741_v17, %v1260_v20  ;;  %v1265_v20 = vsel %vm1261_vm13, %v9697_v63, %v9747_v36  ;;  %v1263_v36 = vsel %vm1261_vm13, %v9658_v34, %v9730_v44  ;;  %v1266_v44 = vsel %vm1261_vm13, %v9773_v49, %v9724_v31 }
 0x226   : > { %1441 = vrot.lane.b32.xlu2 %v8946_v21, %s8797_s14  ;;  %1439 = vrot.lane.b32.xlu1 %v8748_v54, %s8797_s14  ;;  %v8750_v21 = vld [vmem:[#allocation2 + $0x60] sm:$0xff] }
 0x227   : > { %v1301_v29 = vpop.permute.xlu2 %1300  ;;  %v9777_v33 = vpop.permute.xlu1 %1255  ;;  %v8227_v5 = vpack.i.bf16 %v8750_v21, %v8752_v12 }
 0x228   : > { %1449 = vrot.lane.b32.xlu0 %v8968_v25, %s8797_s14  ;;  %v1291_v0 = vpop.permute.xlu0 %1290 }
 0x229   : > { %v1312_v40 = vsel %vm1310_vm7, %v9758_v22, %v1291_v0 }
 0x22e   : > { %1447 = vrot.lane.b32.xlu2 %v8960_v24, %s8797_s14  ;;  %1445 = vrot.lane.b32.xlu1 %v8749_v16, %s8797_s14  ;;  %v8212_v24 = vpack.i.bf16 %v8748_v54, %v8751_v7  ;;  %v1267_v54 = vsel %vm1261_vm13, %v9724_v31, %v9763_v62  ;;  %v1262_v31 = vsel %vm1261_vm13, %v9743_v37, %v9658_v34 }
 0x22f   : > { %v1307_v57 = vpop.permute.xlu2 %1306  ;;  %v1287_v18 = vpop.permute.xlu1 %1286 }
 0x230   : > { %1455 = vrot.lane.b32.xlu0 %v8981_v28, %s8797_s14  ;;  %v1297_v23 = vpop.permute.xlu0 %1296  ;;  %v1311_v62 = vsel %vm1310_vm7, %v1287_v18, %v9758_v22  ;;  %v1268_v22 = vsel %vm1261_vm13, %v9777_v33, %v9741_v17  ;;  %v1264_v17 = vsel %vm1261_vm13, %v9760_v60, %v9697_v63  ;;  %v7494_v33 = vld [vmem:[%s15912_s2 + $0x50] sm:$0xff]  ;;  %v7492_v18 = vld [vmem:[%s15912_s2 + $0x40] sm:$0xff]  ;;  %vm1506_vm13 = vcmask 883712  }
 0x231   : > { %v1314_v48 = vsel %vm1310_vm7, %v9771_v47, %v1297_v23 }
 0x236   : > { %1453 = vrot.lane.b32.xlu2 %v8973_v27, %s8797_s14  ;;  %1451 = vrot.lane.b32.xlu1 %v8750_v21, %s8797_s14  ;;  %v16159_v27 = vld [vmem:[#allocation16_spill] sm:$0xff]  ;;  %s8805_s14 = smov 26  }
 0x237   : > { %v9783_v56 = vpop.permute.xlu2 %1337  ;;  %v1293_v8 = vpop.permute.xlu1 %1292 }
 0x238   : > { %16156 = vst [vmem:[#allocation20_spill] sm:$0xff] %v9783_v56  ;;  %8218 = vrot.lane.b32.xlu0 %v16157_v59, %s8798_s13  ;;  %v1303_v25 = vpop.permute.xlu0 %1302  ;;  %v1313_v0 = vsel %vm1310_vm7, %v1293_v8, %v9771_v47 }
 0x239   : > { %v1316_v3 = vsel %vm1310_vm7, %v1301_v29, %v1303_v25 }
 0x23e   : > { %8213 = vrot.lane.b32.xlu2 %v8212_v24, %s8798_s13  ;;  %8208 = vrot.lane.b32.xlu1 %v16158_v14, %s8798_s13 }
 0x23f   : > { %v9787_v32 = vpop.permute.xlu2 %1343  ;;  %v1299_v28 = vpop.permute.xlu1 %1298 }
 0x240   : > { %8233 = vrot.lane.b32.xlu0 %v16159_v27, %s8798_s13  ;;  %v1309_v11 = vpop.permute.xlu0 %1308  ;;  %v1315_v26 = vsel %vm1310_vm7, %v1299_v28, %v1301_v29 }
 0x241   : > { %v1318_v42 = vsel %vm1310_vm7, %v1307_v57, %v1309_v11 }
 0x242   : > { %7524 = vmatpush.msk.msra.mxu0 %vm423_vm15, %v1318_v42 }
 0x244   : > { %7525 = vmatpush.msk.msra.mxu0 %vm423_vm15, %v1316_v3  ;;  %v1047_v34 = vpop.f32.mrf.mxu2 }
 0x246   : > { %8228 = vrot.lane.b32.xlu2 %v8227_v5, %s8798_s13  ;;  %8223 = vrot.lane.b32.xlu1 %v16160_v15, %s8798_s13  ;;  %s8807_s13 = smov 28  }
 0x247   : > { %v1305_v38 = vpop.permute.xlu1 %1304  ;;  %7526 = vmatpush.msk.msra.mxu0 %vm423_vm15, %v1314_v48 }
 0x248   : > { %v9805_v39 = vpop.permute.xlu2 %1349  ;;  %v1317_v50 = vsel %vm1310_vm7, %v1305_v38, %v1307_v57  ;;  %8248 = vrot.lane.b32.xlu0 %v16157_v59, %s8799_s21  ;;  %v7493_v57 = vld [vmem:[%s15912_s2 + $0x48] sm:$0xff]  ;;  %v7495_v59 = vld [vmem:[%s15912_s2 + $0x58] sm:$0xff]  ;;  %vm1457_vm7 = vcmask 72704  }
 0x249   : > { %7496 = vmatpush.msk.msrb.mxu1 %vm422_vm4, %v1317_v50  ;;  %v9813_v61 = vpop.permute.xlu0 %1339  ;;  %7527 = vmatpush.msk.msra.mxu0 %vm423_vm15, %v1312_v40 }
 0x24b   : > { %7497 = vmatpush.msk.msrb.mxu1 %vm422_vm4, %v1315_v26  ;;  %7528 = vmatpush.msk.msra.mxu0 %vm421_vm8, %v1269_v51  ;;  %v16163_v51 = vld [vmem:[#allocation30_spill] sm:$0xff] }
 0x24d   : > { %7498 = vmatpush.msk.msrb.mxu1 %vm422_vm4, %v1313_v0  ;;  %7529 = vmatpush.msk.msra.mxu0 %vm421_vm8, %v1267_v54 }
 0x24e   : > { %8243 = vrot.lane.b32.xlu2 %v8212_v24, %s8799_s21  ;;  %8238 = vrot.lane.b32.xlu1 %v16158_v14, %s8799_s21  ;;  %v1050_v14 = vpop.f32.mrf.mxu2 }
 0x24f   : > { %v9842_v47 = vpop.permute.xlu1 %1335  ;;  %7499 = vmatpush.msk.msrb.mxu1 %vm422_vm4, %v1311_v62  ;;  %7530 = vmatpush.msk.msra.mxu0 %vm421_vm8, %v1265_v20 }
 0x250   : > { %16161 = vst [vmem:[#allocation26_spill] sm:$0xff] %v9842_v47  ;;  %v9851_v29 = vpop.permute.xlu2 %1355  ;;  %8263 = vrot.lane.b32.xlu0 %v16159_v27, %s8799_s21 }
 0x251   : > { %7500 = vmatpush.msk.msrb.mxu1 %vm420_vm14, %v1268_v22  ;;  %v9860_v16 = vpop.permute.xlu0 %1345  ;;  %7531 = vmatpush.msk.msra.mxu0 %vm421_vm8, %v1263_v36 }
 0x253   : > { %7501 = vmatpush.msk.msrb.mxu1 %vm420_vm14, %v1266_v44 }
 0x255   : > { %7502 = vmatpush.msk.msrb.mxu1 %vm420_vm14, %v1264_v17 }
 0x256   : > { %8258 = vrot.lane.b32.xlu2 %v8227_v5, %s8799_s21  ;;  %8253 = vrot.lane.b32.xlu1 %v16160_v15, %s8799_s21  ;;  %v1053_v12 = vpop.f32.mrf.mxu2  ;;  %s8801_s21 = smov 90  }
 0x257   : > { %7503 = vmatpush.msk.msrb.mxu1 %vm420_vm14, %v1262_v31 }
 0x258   : > { %v9885_v63 = vpop.permute.xlu2 %1386  ;;  %v9887_v60 = vpop.permute.xlu1 %1341  ;;  %1576 = vperm.xlu0 %8205, %v7494_v33  }
 0x25a   : > { %v9889_v49 = vpop.permute.xlu0 %1351 }
 0x25e   : > { %1571 = vperm.xlu2 %8204, %v7493_v57   ;;  %1566 = vperm.xlu1 %8206, %v7492_v18   ;;  %v1056_v50 = vpop.f32.mrf.mxu2 }
 0x260   : > { %v9897_v37 = vpop.permute.xlu2 %1392  ;;  %v9899_v23 = vpop.permute.xlu1 %1347 }
 0x261   : > { %v989_v21 = vpop.f32.mrf.mxu0 }
 0x262   : > { %v9901_v8 = vpop.permute.xlu0 %1357  ;;  %v990_v26 = vadd.f32 %v989_v21, %v16163_v51 }
 0x266   : > { %1581 = vperm.xlu1 %8206, %v7495_v59   ;;  %v1076_v40 = vpop.f32.mrf.mxu3 }
 0x267   : > { %v1077_v17 = vadd.f32 %v1076_v40, %v16163_v51 }
 0x268   : > { %v9906_v25 = vpop.permute.xlu2 %1398  ;;  %v9908_v7 = vpop.permute.xlu1 %1353 }
 0x269   : > { %v992_v24 = vpop.f32.mrf.mxu0 }
 0x26a   : > { %v9910_v28 = vpop.permute.xlu0 %1388  ;;  %v993_v18 = vadd.f32 %v992_v24, %v9516_v30 }
 0x26f   : > { %v1079_v31 = vpop.f32.mrf.mxu3 }
 0x270   : > { %v9912_v27 = vpop.permute.xlu2 %1404  ;;  %v9914_v11 = vpop.permute.xlu1 %1384 }
 0x271   : > { %v995_v42 = vpop.f32.mrf.mxu0 }
 0x272   : > { %v9916_v3 = vpop.permute.xlu0 %1394 }
 0x278   : > { %v9918_v5 = vpop.permute.xlu1 %1390  ;;  %v9920_v48 = vpop.permute.xlu2 %1435 }
 0x279   : > { %16162 = vst [vmem:[#allocation25_spill] sm:$0xff] %v9920_v48  ;;  %v998_v15 = vpop.f32.mrf.mxu0 }
 0x27a   : > { %v9922_v38 = vpop.permute.xlu0 %1400 }
 0x280   : > { %v9925_v54 = vpop.permute.xlu1 %1396  ;;  %v9929_v22 = vpop.permute.xlu2 %1441 }
 0x281   : > { %v1018_v0 = vpop.f32.mrf.mxu1 }
 0x282   : > { %v1019_v20 = vadd.f32 %v1018_v0, %v990_v26  ;;  %v1134_v62 = vpop.f32.mrf.mxu0  ;;  %v9927_v36 = vpop.permute.xlu0 %1406 }
 0x284   : > { %v1048_v44 = vadd.f32 %v1047_v34, %v1019_v20  ;;  %v1080_v20 = vadd.f32 %v1079_v31, %v9516_v30 }
 0x286   : > { %v1146_v33 = vmul.f32 0.2, %v1048_v44 }
 0x287   : > { %v1105_v57 = vpop.f32.mrf.mxu2 }
 0x288   : > { %v9933_v59 = vmax.f32 %v1048_v44, %v1146_v33  ;;  %v1106_v21 = vadd.f32 %v1105_v57, %v1077_v17  ;;  %v9935_v41 = vpop.permute.xlu1 %1402  ;;  %v9942_v56 = vpop.permute.xlu2 %1447  ;;  %v996_v33 = vadd.f32 %v995_v42, %v9556_v53 }
 0x289   : > { %v1021_v1 = vpop.f32.mrf.mxu1 }
 0x28a   : > { %16164 = vst [vmem:[#allocation17_spill] sm:$0xff] %v9933_v59  ;;  %v1135_v26 = vadd.f32 %v1134_v62, %v1106_v21  ;;  %v1022_v0 = vadd.f32 %v1021_v1, %v993_v18  ;;  %1812 = vrot.lane.b32.xlu2 %v9933_v59, %s8782_s23  ;;  %v9939_v47 = vpop.permute.xlu0 %1437  ;;  %v1137_v34 = vpop.f32.mrf.mxu0 }
 0x28b   : > { %v1082_v18 = vpop.f32.mrf.mxu3 }
 0x28c   : > { %v1147_v40 = vmul.f32 0.2, %v1135_v26  ;;  %v1051_v51 = vadd.f32 %v1050_v14, %v1022_v0  ;;  %v1083_v42 = vadd.f32 %v1082_v18, %v9556_v53 }
 0x28e   : > { %v9944_v24 = vmax.f32 %v1135_v26, %v1147_v40  ;;  %v1148_v44 = vmul.f32 0.2, %v1051_v51 }
 0x28f   : > { %v1108_v17 = vpop.f32.mrf.mxu2 }
 0x290   : > { %16165 = vst [vmem:[#allocation24_spill] sm:$0xff] %v9944_v24  ;;  %v9947_v62 = vmax.f32 %v1051_v51, %v1148_v44  ;;  %v1109_v1 = vadd.f32 %v1108_v17, %v1080_v20  ;;  %1814 = vrot.lane.b32.xlu0 %v9944_v24, %s8782_s23  ;;  %v1434_v57 = vpop.permute.xlu1 %1433  ;;  %v16168_v17 = vld [vmem:[#allocation32_spill] sm:$0xff]  ;;  %v9959_v59 = vpop.permute.xlu2 %1453 }
 0x291   : > { %v1024_v21 = vpop.f32.mrf.mxu1  ;;  %v999_v24 = vadd.f32 %v998_v15, %v16168_v17 }
 0x292   : > { %16166 = vst [vmem:[#allocation23_spill] sm:$0xff] %v9947_v62  ;;  %v1138_v14 = vadd.f32 %v1137_v34, %v1109_v1  ;;  %v1025_v0 = vadd.f32 %v1024_v21, %v996_v33  ;;  %1816 = vrot.lane.b32.xlu1 %v9947_v62, %s8782_s23  ;;  %v9953_v30 = vpop.permute.xlu0 %1443  ;;  %v1140_v40 = vpop.f32.mrf.mxu0 }
 0x293   : > { %v1085_v18 = vpop.f32.mrf.mxu3 }
 0x294   : > { %v1149_v31 = vmul.f32 0.2, %v1138_v14  ;;  %v1054_v26 = vadd.f32 %v1053_v12, %v1025_v0 }
 0x296   : > { %v9956_v51 = vmax.f32 %v1138_v14, %v1149_v31  ;;  %v1150_v20 = vmul.f32 0.2, %v1054_v26  ;;  %v1086_v31 = vadd.f32 %v1085_v18, %v16168_v17 }
 0x297   : > { %v1111_v44 = vpop.f32.mrf.mxu2 }
 0x298   : > { %16167 = vst [vmem:[#allocation14_spill] sm:$0xff] %v9956_v51  ;;  %v9961_v34 = vmax.f32 %v1054_v26, %v1150_v20  ;;  %v1112_v33 = vadd.f32 %v1111_v44, %v1083_v42  ;;  %1818 = vrot.lane.b32.xlu2 %v9956_v51, %s8782_s23  ;;  %v1440_v1 = vpop.permute.xlu1 %1439 }
 0x299   : > { %v1027_v21 = vpop.f32.mrf.mxu1 }
 0x29a   : > { %16169 = vst [vmem:[#allocation22_spill] sm:$0xff] %v9961_v34  ;;  %v1141_v12 = vadd.f32 %v1140_v40, %v1112_v33  ;;  %v1028_v0 = vadd.f32 %v1027_v21, %v999_v24  ;;  %1820 = vrot.lane.b32.xlu0 %v9961_v34, %s8782_s23  ;;  %v9967_v53 = vpop.permute.xlu0 %1449  ;;  %v1143_v44 = vpop.f32.mrf.mxu0 }
 0x29b   : > { %v8214_v40 = vpop.permute.xlu2 %8213 }
 0x29c   : > { %v1151_v14 = vmul.f32 0.2, %v1141_v12  ;;  %v1057_v15 = vadd.f32 %v1056_v50, %v1028_v0 }
 0x29e   : > { %v9970_v26 = vmax.f32 %v1141_v12, %v1151_v14  ;;  %v1152_v42 = vmul.f32 0.2, %v1057_v15 }
 0x29f   : > { %v1114_v20 = vpop.f32.mrf.mxu2 }
 0x2a0   : > { %16170 = vst [vmem:[#allocation21_spill] sm:$0xff] %v9970_v26  ;;  %v9972_v51 = vmax.f32 %v1057_v15, %v1152_v42  ;;  %v1115_v62 = vadd.f32 %v1114_v20, %v1086_v31  ;;  %1822 = vrot.lane.b32.xlu1 %v9970_v26, %s8782_s23  ;;  %v1446_v24 = vpop.permute.xlu1 %1445  ;;  %v1460_v15 = vsel %vm1457_vm7, %v1440_v1, %v9929_v22 }
 0x2a1   : > { %v1462_v18 = vsel %vm1457_vm7, %v1446_v24, %v9942_v56  ;;  %v1458_v31 = vsel %vm1457_vm7, %v1434_v57, %v9920_v48 }
 0x2a2   : > { %16171 = vst [vmem:[#allocation11_spill] sm:$0xff] %v9972_v51  ;;  %v1144_v33 = vadd.f32 %v1143_v44, %v1115_v62  ;;  %1824 = vrot.lane.b32.xlu2 %v9972_v51, %s8782_s23  ;;  %v9978_v50 = vpop.permute.xlu0 %1455 }
 0x2a3   : > { %v8229_v14 = vpop.permute.xlu2 %8228 }
 0x2a4   : > { %v1153_v17 = vmul.f32 0.2, %v1144_v33  ;;  %v8231_v44 = vunpack.i.h.bf16 %v8229_v14 }
 0x2a6   : > { %v9980_v21 = vmax.f32 %v1144_v33, %v1153_v17 }
 0x2a8   : > { %16172 = vst [vmem:[#allocation19_spill] sm:$0xff] %v9980_v21  ;;  %1826 = vrot.lane.b32.xlu0 %v9980_v21, %s8782_s23  ;;  %v1452_v12 = vpop.permute.xlu1 %1451 }
 0x2a9   : > { %v1464_v0 = vsel %vm1457_vm7, %v1452_v12, %v9959_v59 }
 0x2aa   : > { %7516 = vmatpush.msk.msra.mxu2 %vm420_vm14, %v1464_v0  ;;  %v8219_v62 = vpop.permute.xlu0 %8218  ;;  %v8230_v0 = vunpack.i.l.bf16 %v8229_v14 }
 0x2ab   : > { %v10002_v1 = vpop.permute.xlu2 %8243  ;;  %v8221_v57 = vunpack.i.h.bf16 %v8219_v62 }
 0x2ac   : > { %7517 = vmatpush.msk.msra.mxu2 %vm420_vm14, %v1462_v18 }
 0x2ae   : > { %7518 = vmatpush.msk.msra.mxu2 %vm420_vm14, %v1460_v15  ;;  %v8220_v15 = vunpack.i.l.bf16 %v8219_v62 }
 0x2b0   : > { %v8209_v42 = vpop.permute.xlu1 %8208  ;;  %7519 = vmatpush.msk.msra.mxu2 %vm420_vm14, %v1458_v31  ;;  %v8216_v31 = vunpack.i.h.bf16 %v8214_v40  ;;  %v1510_v14 = vsel %vm1506_vm13, %v8220_v15, %v8221_v57 }
 0x2b1   : > { %v8211_v51 = vunpack.i.h.bf16 %v8209_v42 }
 0x2b2   : > { %v8234_v20 = vpop.permute.xlu0 %8233 }
 0x2b3   : > { %v8236_v24 = vunpack.i.h.bf16 %v8234_v20  ;;  %v8235_v33 = vunpack.i.l.bf16 %v8234_v20  ;;  %v8210_v20 = vunpack.i.l.bf16 %v8209_v42 }
 0x2b5   : > { %v1513_v17 = vsel %vm1506_vm13, %v8231_v44, %v8235_v33  ;;  %v1514_v12 = vsel %vm1506_vm13, %v8235_v33, %v8236_v24  ;;  %v8215_v24 = vunpack.i.l.bf16 %v8214_v40  ;;  %v1509_v33 = vsel %vm1506_vm13, %v8216_v31, %v8220_v15 }
 0x2b6   : > { %1604 = vmatpush.msrb.mxu1 %v1513_v17  ;;  %1691 = vmatpush.msra.mxu0 %v1514_v12  ;;  %v1507_v62 = vsel %vm1506_vm13, %v8210_v20, %v8211_v51  ;;  %v8259_v12 = vpop.permute.xlu2 %8258 }
 0x2b7   : > { %v1508_v17 = vsel %vm1506_vm13, %v8211_v51, %v8215_v24  ;;  %v8261_v40 = vunpack.i.h.bf16 %v8259_v12 }
 0x2b8   : > { %v8224_v18 = vpop.permute.xlu1 %8223 }
 0x2b9   : > { %v8226_v26 = vunpack.i.h.bf16 %v8224_v18  ;;  %v8225_v34 = vunpack.i.l.bf16 %v8224_v18 }
 0x2ba   : > { %v10004_v21 = vpop.permute.xlu0 %8248 }
 0x2bb   : > { %v1511_v48 = vsel %vm1506_vm13, %v8225_v34, %v8226_v26  ;;  %v1512_v44 = vsel %vm1506_vm13, %v8226_v26, %v8230_v0  ;;  %v1215_v34 = vsel %vm1208_vm12, %v9726_v52, %v9603_v35  ;;  %v1214_v26 = vsel %vm1208_vm12, %v9554_v19, %v9670_v2 }
 0x2bc   : > { %1605 = vmatpush.msrb.mxu1 %v1511_v48  ;;  %1692 = vmatpush.msra.mxu0 %v1512_v44  ;;  %v1216_v48 = vsel %vm1208_vm12, %v9603_v35, %v9703_v9  ;;  %v1213_v9 = vsel %vm1208_vm12, %v9699_v58, %v9554_v19  ;;  %vm1547_vm13 = vcmask 97280   ;;  %v1212_v35 = vsel %vm1208_vm12, %v9497_v43, %v9615_v45  ;;  %v7480_v19 = vld [vmem:[%s15911_s1 + $0xc0] sm:$0xff] }
 0x2bd   : > { %v1211_v2 = vsel %vm1208_vm12, %v9660_v10, %v9497_v43  ;;  %v1210_v45 = vsel %vm1208_vm12, %v9458_v46, %v9565_v6  ;;  %v1209_v43 = vsel %vm1208_vm12, %v9605_v55, %v9458_v46  ;;  %v8260_v10 = vunpack.i.l.bf16 %v8259_v12  ;;  %v7483_v12 = vld [vmem:[%s15911_s1 + $0xd8] sm:$0xff] }
 0x2be   : > { %1606 = vmatpush.msrb.mxu1 %v1509_v33  ;;  %1693 = vmatpush.msra.mxu0 %v1510_v14  ;;  %v8251_v58 = vunpack.i.h.bf16 %v10004_v21  ;;  %v8250_v15 = vunpack.i.l.bf16 %v10004_v21  ;;  %v8246_v46 = vunpack.i.h.bf16 %v10002_v1  ;;  %v10065_v21 = vld [vmem:[%s15911_s1 + $0xd0] sm:$0xff]  ;;  %v8245_v14 = vunpack.i.l.bf16 %v10002_v1 }
 0x2bf   : > { %7520 = vmatmul.msk.f32.vlgmr.msra.gmra.mxu2 %vm959_vm9, %v10065_v21  ;;  %vm1408_vm12 = vcmask 121856  }
 0x2c0   : > { %v8239_v42 = vpop.permute.xlu1 %8238  ;;  %1607 = vmatpush.msrb.mxu1 %v1507_v62  ;;  %1694 = vmatpush.msra.mxu0 %v1508_v17  ;;  %v1550_v62 = vsel %vm1547_vm13, %v8246_v46, %v8250_v15  ;;  %v1551_v17 = vsel %vm1547_vm13, %v8250_v15, %v8251_v58  ;;  %v1416_v1 = vsel %vm1408_vm12, %v9912_v27, %v9927_v36 }
 0x2c1   : > { %v8241_v55 = vunpack.i.h.bf16 %v8239_v42  ;;  %v8240_v44 = vunpack.i.l.bf16 %v8239_v42  ;;  %v1413_v36 = vsel %vm1408_vm12, %v9925_v54, %v9906_v25  ;;  %v8753_v54 = vld [vmem:[%s8889_s22 + $0x30] sm:$0xff]  ;;  %v1461_v58 = vsel %vm1457_vm7, %v9929_v22, %v9953_v30 }
 0x2c2   : > { %7504 = vmatpush.msk.msrb.mxu1 %vm422_vm4, %v1215_v34  ;;  %7532 = vmatpush.msk.msra.mxu0 %vm423_vm15, %v1216_v48  ;;  %v8264_v51 = vpop.permute.xlu0 %8263  ;;  %v1415_v34 = vsel %vm1408_vm12, %v9935_v41, %v9912_v27  ;;  %v10100_v41 = vld [vmem:[%s15911_s1 + $0xe8] sm:$0xff]  ;;  %v1412_v27 = vsel %vm1408_vm12, %v9897_v37, %v9916_v3  ;;  %v1410_v3 = vsel %vm1408_vm12, %v9885_v63, %v9910_v28 }
 0x2c3   : > { %v8265_v0 = vunpack.i.l.bf16 %v8264_v51  ;;  %v8266_v52 = vunpack.i.h.bf16 %v8264_v51  ;;  %v1548_v42 = vsel %vm1547_vm13, %v8240_v44, %v8241_v55  ;;  %v1549_v48 = vsel %vm1547_vm13, %v8241_v55, %v8245_v14 }
 0x2c4   : > { %7505 = vmatpush.msk.msrb.mxu1 %vm422_vm4, %v1213_v9  ;;  %7533 = vmatpush.msk.msra.mxu0 %vm423_vm15, %v1214_v26  ;;  %v1414_v51 = vsel %vm1408_vm12, %v9906_v25, %v9922_v38  ;;  %v1411_v38 = vsel %vm1408_vm12, %v9918_v5, %v9897_v37  ;;  %v7486_v25 = vld [vmem:[%s15911_s1 + $0xf0] sm:$0xff]  ;;  %v1409_v37 = vsel %vm1408_vm12, %v9914_v11, %v9885_v63  ;;  %v10143_v11 = vpop.permute.xlu2 %1571  ;;  %v8754_v26 = vld [vmem:[%s8889_s22 + $0x38] sm:$0xff]  ;;  %v8756_v9 = vld [vmem:[%s8889_s22 + $0x28] sm:$0xff]  ;;  %vm417_vm12 = vcmp.lt.s32.totalorder %v9195_v4, 14 }
 0x2c5   : > { %v1554_v18 = vsel %vm1547_vm13, %v8261_v40, %v8265_v0  ;;  %v1555_v6 = vsel %vm1547_vm13, %v8265_v0, %v8266_v52  ;;  %v10186_v0 = vld [vmem:[%s15911_s1 + $0x118] sm:$0xff] }
 0x2c6   : > { %7506 = vmatpush.msk.msrb.mxu1 %vm422_vm4, %v1211_v2  ;;  %7534 = vmatpush.msk.msra.mxu0 %vm423_vm15, %v1212_v35  ;;  %v16175_v35 = vld [vmem:[#allocation28_spill] sm:$0xff]  ;;  %v8757_v52 = vld [vmem:[%s8889_s22 + $0x18] sm:$0xff] }
 0x2c7   : > { %1625 = vmatpush.msrb.mxu3 %v1554_v18  ;;  %7521 = vmatmul.msk.f32.gmra.mxu2 %vm959_vm9, %v10100_v41  ;;  %v7481_v2 = vld [vmem:[%s15911_s1 + $0xc8] sm:$0xff]  ;;  %v16176_v18 = vld [vmem:[#allocation27_spill] sm:$0xff] }
 0x2c8   : > { %v8254_v57 = vpop.permute.xlu1 %8253  ;;  %7507 = vmatpush.msk.msrb.mxu1 %vm422_vm4, %v1209_v43  ;;  %7535 = vmatpush.msk.msra.mxu0 %vm423_vm15, %v1210_v45  ;;  %v1465_v45 = vsel %vm1457_vm7, %v9959_v59, %v9978_v50  ;;  %v1463_v43 = vsel %vm1457_vm7, %v9942_v56, %v9967_v53  ;;  %v7484_v56 = vld [vmem:[%s15911_s1 + $0xe0] sm:$0xff]  ;;  %v16177_v59 = vld [vmem:[#allocation25_spill] sm:$0xff]  ;;  %v7487_v50 = vld [vmem:[%s15911_s1 + $0xf8] sm:$0xff] }
 0x2c9   : > { %v8256_v31 = vunpack.i.h.bf16 %v8254_v57  ;;  %v8255_v20 = vunpack.i.l.bf16 %v8254_v57  ;;  %1612 = vmatmul.f32.vlgmr.msrb.gmra.mxu1 %v7480_v19  ;;  %1699 = vmatmul.f32.vlgmr.msra.gmra.mxu0 %v7480_v19  ;;  %v8758_v19 = vld [vmem:[%s8889_s22 + $0x8] sm:$0xff]  ;;  %v1459_v53 = vsel %vm1457_vm7, %v16177_v59, %v9939_v47  ;;  %vm419_vm7 = vcmp.ge.s32.totalorder %v9195_v4, 2 }
 0x2ca   : > { %1712 = vmatpush.msra.mxu1 %v1555_v6  ;;  %v10233_v47 = vpop.permute.xlu0 %1576 }
 0x2cb   : > { %v1552_v24 = vsel %vm1547_vm13, %v8255_v20, %v8256_v31  ;;  %v1553_v33 = vsel %vm1547_vm13, %v8256_v31, %v8260_v10  ;;  %vm1359_vm13 = vcmask 465920   ;;  %v7490_v31 = vld [vmem:[%s15911_s1 + $0x110] sm:$0xff] }
 0x2cc   : > { %1626 = vmatpush.msrb.mxu3 %v1552_v24  ;;  %1713 = vmatpush.msra.mxu1 %v1553_v33  ;;  %v1367_v5 = vsel %vm1359_vm13, %v9851_v29, %v9901_v8  ;;  %v1366_v28 = vsel %vm1359_vm13, %v9908_v7, %v9851_v29  ;;  %v1365_v63 = vsel %vm1359_vm13, %v9805_v39, %v9889_v49  ;;  %v10152_v29 = vld [vmem:[%s15911_s1 + $0x100] sm:$0xff] }
 0x2cd   : > { %v1364_v8 = vsel %vm1359_vm13, %v9899_v23, %v9805_v39  ;;  %v1363_v49 = vsel %vm1359_vm13, %v9787_v32, %v9860_v16  ;;  %v1362_v39 = vsel %vm1359_vm13, %v9887_v60, %v9787_v32  ;;  %v7489_v23 = vld [vmem:[%s15911_s1 + $0x108] sm:$0xff]  ;;  %v16174_v32 = vld [vmem:[#allocation26_spill] sm:$0xff] }
 0x2ce   : > { %1627 = vmatpush.msrb.mxu3 %v1550_v62  ;;  %1714 = vmatpush.msra.mxu1 %v1551_v17  ;;  %v16173_v16 = vld [vmem:[#allocation20_spill] sm:$0xff] }
 0x2cf   : > { %7522 = vmatmul.msk.f32.gmra.mxu2 %vm959_vm9, %v10152_v29  ;;  %v1361_v7 = vsel %vm1359_vm13, %v16173_v16, %v9813_v61  ;;  %v1360_v60 = vsel %vm1359_vm13, %v16174_v32, %v16173_v16  ;;  %v8755_v61 = vld [vmem:[%s8889_s22 + $0x20] sm:$0xff]  ;;  %vm2157_vm13 = vcmask 211968  }
 0x2d0   : > { %1628 = vmatpush.msrb.mxu3 %v1548_v42  ;;  %1715 = vmatpush.msra.mxu1 %v1549_v48  ;;  %v10225_v22 = vpop.permute.xlu1 %1566 }
 0x2d1   : > { %1615 = vmatmul.f32.gmra.mxu1 %v7483_v12  ;;  %1702 = vmatmul.f32.gmra.mxu0 %v7483_v12 }
 0x2d2   : > { %7508 = vmatpush.msk.msrb.mxu3 %vm422_vm4, %v1415_v34  ;;  %7536 = vmatpush.msk.msra.mxu1 %vm423_vm15, %v1416_v1 }
 0x2d4   : > { %7509 = vmatpush.msk.msrb.mxu3 %vm422_vm4, %v1413_v36  ;;  %7537 = vmatpush.msk.msra.mxu1 %vm423_vm15, %v1414_v51 }
 0x2d6   : > { %7510 = vmatpush.msk.msrb.mxu3 %vm422_vm4, %v1411_v38  ;;  %7538 = vmatpush.msk.msra.mxu1 %vm423_vm15, %v1412_v27 }
 0x2d7   : > { %7523 = vmatmul.msk.f32.gmra.mxu2 %vm959_vm9, %v10186_v0 }
 0x2d8   : > { %7511 = vmatpush.msk.msrb.mxu3 %vm422_vm4, %v1409_v37  ;;  %7539 = vmatpush.msk.msra.mxu1 %vm423_vm15, %v1410_v3  ;;  %v10235_v57 = vpop.permute.xlu1 %1581  ;;  %vm418_vm4 = vcmp.ge.s32.totalorder %v9180_v13, 2  ;;  %vm1961_vm15 = vcmask 736256  }
 0x2d9   : > { %1618 = vmatmul.f32.gmra.mxu1 %v7486_v25  ;;  %1705 = vmatmul.f32.gmra.mxu0 %v7486_v25 }
 0x2da   : > { %7512 = vmatpush.msk.msrb.mxu3 %vm420_vm14, %v1366_v28  ;;  %7540 = vmatpush.msk.msra.mxu1 %vm421_vm8, %v1367_v5 }
 0x2dc   : > { %7513 = vmatpush.msk.msrb.mxu3 %vm420_vm14, %v1364_v8  ;;  %7541 = vmatpush.msk.msra.mxu1 %vm421_vm8, %v1365_v63 }
 0x2de   : > { %7514 = vmatpush.msk.msrb.mxu3 %vm420_vm14, %v1362_v39  ;;  %7542 = vmatpush.msk.msra.mxu1 %vm421_vm8, %v1363_v49 }
 0x2e0   : > { %7515 = vmatpush.msk.msrb.mxu3 %vm420_vm14, %v1360_v60  ;;  %7543 = vmatpush.msk.msra.mxu1 %vm421_vm8, %v1361_v7  ;;  %vm416_vm14 = vcmp.lt.s32.totalorder %v9180_v13, 14 }
 0x2e1   : > { %1621 = vmatmul.f32.gmra.mxu1 %v7489_v23  ;;  %1708 = vmatmul.f32.gmra.mxu0 %v7489_v23 }
 0x2e2   : > { %1637 = vmatpush.msrb.mxu3 %v8753_v54  ;;  %1724 = vmatpush.msra.mxu1 %v8754_v26 }
 0x2e4   : > { %v1813_v40 = vpop.permute.xlu2 %1812  ;;  %1638 = vmatpush.msrb.mxu3 %v8755_v61  ;;  %1725 = vmatpush.msra.mxu1 %v8756_v9 }
 0x2e5   : > { %1844 = vst.msk [vmem:[#allocation2] sm:$0xff] %vm518_vm0, %v1813_v40 }
 0x2e6   : > { %1639 = vmatpush.msrb.mxu3 %v16175_v35  ;;  %1726 = vmatpush.msra.mxu1 %v8757_v52 }
 0x2e8   : > { %1640 = vmatpush.msrb.mxu3 %v16176_v18  ;;  %1727 = vmatpush.msra.mxu1 %v8758_v19 }
 0x2e9   : > { %1641 = vmatmul.f32.vlgmr.msrb.gmra.mxu3 %v7481_v2  ;;  %1728 = vmatmul.f32.vlgmr.msra.gmra.mxu1 %v7481_v2 }
 0x2ea   : > { %7544 = vmatpush.msk.msra.mxu3 %vm421_vm8, %v1465_v45 }
 0x2ec   : > { %v10206_v10 = vld [vmem:[#allocation2] sm:$0xff]  ;;  %7545 = vmatpush.msk.msra.mxu3 %vm421_vm8, %v1463_v43 }
 0x2ed   : > { %1884 = vrot.lane.b32.xlu1 %v10206_v10, %s8800_s15 }
 0x2ee   : > { %7546 = vmatpush.msk.msra.mxu3 %vm421_vm8, %v1461_v58 }
 0x2f0   : > { %7547 = vmatpush.msk.msra.mxu3 %vm421_vm8, %v1459_v53  ;;  %vm2010_vm8 = vcmask 506880  }
 0x2f1   : > { %1644 = vmatmul.f32.gmra.mxu3 %v7484_v56  ;;  %1731 = vmatmul.f32.gmra.mxu1 %v7484_v56 }
 0x2f2   : > { %v1819_v30 = vpop.permute.xlu2 %1818 }
 0x2f3   : > { %1849 = vst.msk [vmem:[#allocation2 + $0x30] sm:$0xff] %vm501_vm1, %v1819_v30 }
 0x2f5   : > { %1937 = vrot.lane.b32.xlu1 %v10206_v10, %s8801_s21 }
 0x2f9   : > { %1647 = vmatmul.f32.gmra.mxu3 %v7487_v50  ;;  %1734 = vmatmul.f32.gmra.mxu1 %v7487_v50 }
 0x2fa   : > { %v10286_v17 = vld [vmem:[#allocation2 + $0x30] sm:$0xff] }
 0x2fc   : > { %v1825_v15 = vpop.permute.xlu2 %1824 }
 0x2fd   : > { %1853 = vst.msk [vmem:[#allocation2 + $0x60] sm:$0xff] %vm518_vm0, %v1825_v15 }
 0x301   : > { %1737 = vmatmul.f32.gmra.mxu1 %v7490_v31  ;;  %1650 = vmatmul.f32.gmra.mxu3 %v7490_v31 }
 0x302   : > { %v1815_v20 = vpop.permute.xlu0 %1814 }
 0x303   : > { %v10242_v6 = vsel %vm501_vm1, %v1813_v40, %v1815_v20  ;;  %1846 = vst.msk [vmem:[#allocation2 + $0x10] sm:$0xff] %vm501_vm1, %v1815_v20 }
 0x304   : > { %v1817_v46 = vpop.permute.xlu1 %1816  ;;  %1886 = vrot.lane.b32.xlu2 %v10242_v6, %s8800_s15  ;;  %v10296_v12 = vld [vmem:[#allocation2 + $0x60] sm:$0xff]  ;;  %v8267_v56 = vpack.i.bf16 %v10242_v6, %v10206_v10 }
 0x305   : > { %1847 = vst.msk [vmem:[#allocation2 + $0x20] sm:$0xff] %vm518_vm0, %v1817_v46  ;;  %v10273_v14 = vsel %vm501_vm1, %v1817_v46, %v1819_v30 }
 0x309   : > { %7548 = vmatmul.msk.f32.vlgmr.msra.gmra.mxu3 %vm959_vm9, %v10065_v21 }
 0x30a   : > { %v10250_v55 = vld [vmem:[#allocation2 + $0x10] sm:$0xff] }
 0x30b   : > { %1888 = vrot.lane.b32.xlu0 %v10250_v55, %s8800_s15 }
 0x30c   : > { %v1821_v44 = vpop.permute.xlu0 %1820  ;;  %v10254_v24 = vld [vmem:[#allocation2 + $0x20] sm:$0xff]  ;;  %1939 = vrot.lane.b32.xlu2 %v10242_v6, %s8801_s21 }
 0x30d   : > { %1850 = vst.msk [vmem:[#allocation2 + $0x40] sm:$0xff] %vm518_vm0, %v1821_v44  ;;  %1890 = vrot.lane.b32.xlu1 %v10254_v24, %s8800_s15  ;;  %v8272_v31 = vpack.i.bf16 %v10254_v24, %v10250_v55 }
 0x311   : > { %7549 = vmatmul.msk.f32.gmra.mxu3 %vm959_vm9, %v10100_v41 }
 0x312   : > { %v1823_v33 = vpop.permute.xlu1 %1822 }
 0x313   : > { %1852 = vst.msk [vmem:[#allocation2 + $0x50] sm:$0xff] %vm501_vm1, %v1823_v33  ;;  %1941 = vrot.lane.b32.xlu0 %v10250_v55, %s8801_s21  ;;  %v10305_v48 = vsel %vm501_vm1, %v1821_v44, %v1823_v33 }
 0x314   : > { %1988 = vrot.lane.b32.xlu2 %v10242_v6, %s8802_s20  ;;  %v10278_v62 = vld [vmem:[#allocation2 + $0x40] sm:$0xff] }
 0x315   : > { %1943 = vrot.lane.b32.xlu1 %v10254_v24, %s8801_s21 }
 0x319   : > { %7550 = vmatmul.msk.f32.gmra.mxu3 %vm959_vm9, %v10152_v29 }
 0x31a   : > { %v1827_v21 = vpop.permute.xlu0 %1826  ;;  %v10302_v42 = vld [vmem:[#allocation2 + $0x50] sm:$0xff] }
 0x31b   : > { %1855 = vst.msk [vmem:[#allocation2 + $0x70] sm:$0xff] %vm501_vm1, %v1827_v21  ;;  %1990 = vrot.lane.b32.xlu0 %v10250_v55, %s8802_s20  ;;  %v10322_v34 = vsel %vm501_vm1, %v1825_v15, %v1827_v21 }
 0x31c   : > { %1892 = vrot.lane.b32.xlu2 %v10273_v14, %s8800_s15 }
 0x31d   : > { %1896 = vrot.lane.b32.xlu1 %v10278_v62, %s8800_s15 }
 0x321   : > { %7551 = vmatmul.msk.f32.gmra.mxu3 %vm959_vm9, %v10186_v0 }
 0x322   : > { %v10319_v1 = vld [vmem:[#allocation2 + $0x70] sm:$0xff] }
 0x323   : > { %1894 = vrot.lane.b32.xlu0 %v10286_v17, %s8800_s15 }
 0x324   : > { %1945 = vrot.lane.b32.xlu2 %v10273_v14, %s8801_s21 }
 0x325   : > { %1949 = vrot.lane.b32.xlu1 %v10278_v62, %s8801_s21 }
 0x32b   : > { %1947 = vrot.lane.b32.xlu0 %v10286_v17, %s8801_s21 }
 0x32c   : > { %1994 = vrot.lane.b32.xlu2 %v10273_v14, %s8802_s20 }
 0x32d   : > { %1902 = vrot.lane.b32.xlu1 %v10296_v12, %s8800_s15 }
 0x333   : > { %1900 = vrot.lane.b32.xlu0 %v10302_v42, %s8800_s15 }
 0x334   : > { %1898 = vrot.lane.b32.xlu2 %v10305_v48, %s8800_s15 }
 0x335   : > { %1955 = vrot.lane.b32.xlu1 %v10296_v12, %s8801_s21 }
 0x33b   : > { %1953 = vrot.lane.b32.xlu0 %v10302_v42, %s8801_s21 }
 0x33c   : > { %1951 = vrot.lane.b32.xlu2 %v10305_v48, %s8801_s21 }
 0x33d   : > { %1986 = vrot.lane.b32.xlu1 %v10206_v10, %s8802_s20 }
 0x343   : > { %1906 = vrot.lane.b32.xlu0 %v10319_v1, %s8800_s15 }
 0x344   : > { %1904 = vrot.lane.b32.xlu2 %v10322_v34, %s8800_s15  ;;  %s8803_s15 = smov 58  }
 0x345   : > { %1992 = vrot.lane.b32.xlu1 %v10254_v24, %s8802_s20 }
 0x346   : > { %v10424_v9 = vpop.f32.mrf.mxu1 }
 0x34b   : > { %1959 = vrot.lane.b32.xlu0 %v10319_v1, %s8801_s21 }
 0x34c   : > { %1957 = vrot.lane.b32.xlu2 %v10322_v34, %s8801_s21  ;;  %s8804_s21 = smov 30  }
 0x34d   : > { %1998 = vrot.lane.b32.xlu1 %v10278_v62, %s8802_s20 }
 0x34e   : > { %v10440_v18 = vpop.f32.mrf.mxu1 }
 0x353   : > { %1996 = vrot.lane.b32.xlu0 %v10286_v17, %s8802_s20 }
 0x354   : > { %2000 = vrot.lane.b32.xlu2 %v10305_v48, %s8802_s20 }
 0x355   : > { %2004 = vrot.lane.b32.xlu1 %v10296_v12, %s8802_s20 }
 0x356   : > { %v10459_v53 = vpop.f32.mrf.mxu1 }
 0x35b   : > { %2002 = vrot.lane.b32.xlu0 %v10302_v42, %s8802_s20 }
 0x35c   : > { %2006 = vrot.lane.b32.xlu2 %v10322_v34, %s8802_s20 }
 0x35d   : > { %2035 = vrot.lane.b32.xlu1 %v10206_v10, %s8803_s15 }
 0x35e   : > { %v10347_v51 = vpop.permute.xlu2 %1886  ;;  %v10476_v44 = vpop.f32.mrf.mxu1 }
 0x35f   : > { %v10357_v41 = vpop.permute.xlu1 %1884 }
 0x363   : > { %2008 = vrot.lane.b32.xlu0 %v10319_v1, %s8802_s20  ;;  %s8809_s20 = smov 64  }
 0x364   : > { %2037 = vrot.lane.b32.xlu2 %v10242_v6, %s8803_s15 }
 0x365   : > { %2041 = vrot.lane.b32.xlu1 %v10254_v24, %s8803_s15 }
 0x366   : > { %v10353_v36 = vpop.permute.xlu2 %1939 }
 0x367   : > { %v10365_v38 = vpop.permute.xlu1 %1937 }
 0x36b   : > { %2039 = vrot.lane.b32.xlu0 %v10250_v55, %s8803_s15 }
 0x36c   : > { %2043 = vrot.lane.b32.xlu2 %v10273_v14, %s8803_s15  ;;  %v10428_v0 = vpop.f32.mrf.mxu3 }
 0x36d   : > { %2047 = vrot.lane.b32.xlu1 %v10278_v62, %s8803_s15 }
 0x36e   : > { %v10360_v27 = vpop.permute.xlu2 %1988 }
 0x373   : > { %2045 = vrot.lane.b32.xlu0 %v10286_v17, %s8803_s15 }
 0x374   : > { %2049 = vrot.lane.b32.xlu2 %v10305_v48, %s8803_s15  ;;  %v10448_v45 = vpop.f32.mrf.mxu3 }
 0x375   : > { %2053 = vrot.lane.b32.xlu1 %v10296_v12, %s8803_s15 }
 0x376   : > { %v10367_v25 = vpop.permute.xlu2 %1892 }
 0x37b   : > { %2051 = vrot.lane.b32.xlu0 %v10302_v42, %s8803_s15 }
 0x37c   : > { %2055 = vrot.lane.b32.xlu2 %v10322_v34, %s8803_s15  ;;  %v10463_v15 = vpop.f32.mrf.mxu3 }
 0x37d   : > { %v10371_v3 = vpop.permute.xlu0 %1888  ;;  %2084 = vrot.lane.b32.xlu1 %v10206_v10, %s8804_s21 }
 0x37e   : > { %v10376_v5 = vpop.permute.xlu2 %1945 }
 0x37f   : > { %v10374_v37 = vpop.permute.xlu1 %1890 }
 0x383   : > { %2057 = vrot.lane.b32.xlu0 %v10319_v1, %s8803_s15 }
 0x384   : > { %2086 = vrot.lane.b32.xlu2 %v10242_v6, %s8804_s21  ;;  %v10483_v33 = vpop.f32.mrf.mxu3 }
 0x385   : > { %v10380_v28 = vpop.permute.xlu0 %1941  ;;  %2090 = vrot.lane.b32.xlu1 %v10254_v24, %s8804_s21 }
 0x386   : > { %v10385_v8 = vpop.permute.xlu2 %1994 }
 0x387   : > { %v10383_v63 = vpop.permute.xlu1 %1943 }
 0x38b   : > { %2088 = vrot.lane.b32.xlu0 %v10250_v55, %s8804_s21 }
 0x38c   : > { %2092 = vrot.lane.b32.xlu2 %v10273_v14, %s8804_s21 }
 0x38d   : > { %v10389_v29 = vpop.permute.xlu0 %1990  ;;  %2096 = vrot.lane.b32.xlu1 %v10278_v62, %s8804_s21 }
 0x38e   : > { %v10394_v39 = vpop.permute.xlu2 %1898 }
 0x38f   : > { %v10392_v49 = vpop.permute.xlu1 %1896 }
 0x393   : > { %2094 = vrot.lane.b32.xlu0 %v10286_v17, %s8804_s21 }
 0x394   : > { %2098 = vrot.lane.b32.xlu2 %v10305_v48, %s8804_s21 }
 0x395   : > { %v10398_v23 = vpop.permute.xlu0 %1894  ;;  %2102 = vrot.lane.b32.xlu1 %v10296_v12, %s8804_s21 }
 0x396   : > { %v10403_v7 = vpop.permute.xlu2 %1951 }
 0x397   : > { %v10401_v16 = vpop.permute.xlu1 %1949 }
 0x39b   : > { %2100 = vrot.lane.b32.xlu0 %v10302_v42, %s8804_s21 }
 0x39c   : > { %2104 = vrot.lane.b32.xlu2 %v10322_v34, %s8804_s21 }
 0x39d   : > { %v10407_v32 = vpop.permute.xlu0 %1947  ;;  %2133 = vrot.lane.b32.xlu1 %v10206_v10, %s8805_s14  ;;  %v8282_v10 = vpack.i.bf16 %v10305_v48, %v10278_v62 }
 0x39e   : > { %v10413_v54 = vpop.permute.xlu2 %1904 }
 0x39f   : > { %v10411_v60 = vpop.permute.xlu1 %1902 }
 0x3a3   : > { %2106 = vrot.lane.b32.xlu0 %v10319_v1, %s8804_s21  ;;  %s8808_s21 = smov 120  }
 0x3a4   : > { %2135 = vrot.lane.b32.xlu2 %v10242_v6, %s8805_s14 }
 0x3a5   : > { %v10418_v26 = vpop.permute.xlu0 %1900  ;;  %2139 = vrot.lane.b32.xlu1 %v10254_v24, %s8805_s14  ;;  %v8277_v24 = vpack.i.bf16 %v10286_v17, %v10273_v14 }
 0x3a6   : > { %v10422_v61 = vpop.permute.xlu2 %1957 }
 0x3a7   : > { %v1956_v40 = vpop.permute.xlu1 %1955 }
 0x3ab   : > { %2137 = vrot.lane.b32.xlu0 %v10250_v55, %s8805_s14 }
 0x3ac   : > { %2141 = vrot.lane.b32.xlu2 %v10273_v14, %s8805_s14 }
 0x3ad   : > { %v10432_v35 = vpop.permute.xlu0 %1953  ;;  %2145 = vrot.lane.b32.xlu1 %v10278_v62, %s8805_s14  ;;  %v8287_v62 = vpack.i.bf16 %v10296_v12, %v10302_v42 }
 0x3ae   : > { %v10436_v2 = vpop.permute.xlu2 %2000 }
 0x3af   : > { %v1987_v52 = vpop.permute.xlu1 %1986 }
 0x3b0   : > { %v2011_v14 = vsel %vm2010_vm8, %v1987_v52, %v10360_v27  ;;  %v8292_v52 = vpack.i.bf16 %v10319_v1, %v10322_v34 }
 0x3b3   : > { %2143 = vrot.lane.b32.xlu0 %v10286_v17, %s8805_s14 }
 0x3b4   : > { %2147 = vrot.lane.b32.xlu2 %v10305_v48, %s8805_s14 }
 0x3b5   : > { %v10444_v19 = vpop.permute.xlu0 %1906  ;;  %2151 = vrot.lane.b32.xlu1 %v10296_v12, %s8805_s14 }
 0x3b6   : > { %v2007_v58 = vpop.permute.xlu2 %2006 }
 0x3b7   : > { %v1993_v43 = vpop.permute.xlu1 %1992 }
 0x3b8   : > { %v2013_v48 = vsel %vm2010_vm8, %v1993_v43, %v10385_v8  ;;  %v1671_v43 = vpop.f32.mrf.mxu2 }
 0x3bb   : > { %2149 = vrot.lane.b32.xlu0 %v10302_v42, %s8805_s14  ;;  %v1700_v42 = vpop.f32.mrf.mxu0 }
 0x3bc   : > { %2153 = vrot.lane.b32.xlu2 %v10322_v34, %s8805_s14 }
 0x3bd   : > { %v10456_v59 = vpop.permute.xlu0 %1959  ;;  %8268 = vrot.lane.b32.xlu1 %v8267_v56, %s8806_s16 }
 0x3be   : > { %v10461_v50 = vpop.permute.xlu2 %2037 }
 0x3bf   : > { %v1999_v30 = vpop.permute.xlu1 %1998 }
 0x3c0   : > { %v2015_v21 = vsel %vm2010_vm8, %v1999_v30, %v10436_v2  ;;  %v1729_v30 = vpop.f32.mrf.mxu1 }
 0x3c3   : > { %2155 = vrot.lane.b32.xlu0 %v10319_v1, %s8805_s14  ;;  %s8810_s14 = smov 124  }
 0x3c4   : > { %8273 = vrot.lane.b32.xlu2 %v8272_v31, %s8806_s16 }
 0x3c5   : > { %v1997_v20 = vpop.permute.xlu0 %1996  ;;  %8283 = vrot.lane.b32.xlu1 %v8282_v10, %s8806_s16 }
 0x3c6   : > { %v10474_v46 = vpop.permute.xlu2 %2043 }
 0x3c7   : > { %v2005_v6 = vpop.permute.xlu1 %2004 }
 0x3c8   : > { %v2017_v55 = vsel %vm2010_vm8, %v2005_v6, %v2007_v58 }
 0x3c9   : > { %7568 = vmatpush.msk.msrb.mxu2 %vm418_vm4, %v2017_v55  ;;  %v1966_v55 = vsel %vm1961_vm15, %v10401_v16, %v10403_v7  ;;  %v1962_v16 = vsel %vm1961_vm15, %v10365_v38, %v10353_v36  ;;  %v2014_v38 = vsel %vm2010_vm8, %v10385_v8, %v1997_v20  ;;  %v1617_v8 = vadd.f32 %v10440_v18, %v10143_v11 }
 0x3cb   : > { %8278 = vrot.lane.b32.xlu0 %v8277_v24, %s8806_s16  ;;  %7569 = vmatpush.msk.msrb.mxu2 %vm418_vm4, %v2015_v21  ;;  %v10522_v21 = vpop.f32.mrf.mxu3 }
 0x3cc   : > { %8288 = vrot.lane.b32.xlu2 %v8287_v62, %s8806_s16 }
 0x3cd   : > { %v2003_v6 = vpop.permute.xlu0 %2002  ;;  %8298 = vrot.lane.b32.xlu1 %v8267_v56, %s8807_s13  ;;  %7570 = vmatpush.msk.msrb.mxu2 %vm418_vm4, %v2013_v48  ;;  %v1968_v56 = vsel %vm1961_vm15, %v1956_v40, %v10422_v61  ;;  %v1964_v40 = vsel %vm1961_vm15, %v10383_v63, %v10376_v5  ;;  %v1674_v48 = vpop.f32.mrf.mxu2 }
 0x3ce   : > { %v10505_v12 = vpop.permute.xlu2 %2049 }
 0x3cf   : > { %v10501_v17 = vpop.permute.xlu1 %2035  ;;  %7571 = vmatpush.msk.msrb.mxu2 %vm418_vm4, %v2011_v14  ;;  %v7564_v14 = vld [vmem:[%s15912_s2 + $0x20] sm:$0xff] }
 0x3d1   : > { %7572 = vmatpush.msk.msrb.mxu2 %vm416_vm14, %v1968_v56  ;;  %v2012_v56 = vsel %vm2010_vm8, %v10360_v27, %v10389_v29  ;;  %v1969_v27 = vsel %vm1961_vm15, %v10422_v61, %v10456_v59  ;;  %v1646_v29 = vadd.f32 %v10448_v45, %v1617_v8  ;;  %v7565_v61 = vld [vmem:[%s15912_s2 + $0x28] sm:$0xff]  ;;  %v1965_v45 = vsel %vm1961_vm15, %v10376_v5, %v10407_v32  ;;  %v7567_v59 = vld [vmem:[%s15912_s2 + $0x38] sm:$0xff] }
 0x3d3   : > { %8293 = vrot.lane.b32.xlu0 %v8292_v52, %s8806_s16  ;;  %7573 = vmatpush.msk.msrb.mxu2 %vm416_vm14, %v1966_v55  ;;  %v1967_v55 = vsel %vm1961_vm15, %v10403_v7, %v10432_v35  ;;  %s8811_s16 = smov 56  }
 0x3d4   : > { %8303 = vrot.lane.b32.xlu2 %v8272_v31, %s8807_s13 }
 0x3d5   : > { %v2009_v1 = vpop.permute.xlu0 %2008  ;;  %8313 = vrot.lane.b32.xlu1 %v8282_v10, %s8807_s13  ;;  %7574 = vmatpush.msk.msrb.mxu2 %vm416_vm14, %v1964_v40  ;;  %v2016_v10 = vsel %vm2010_vm8, %v10436_v2, %v2003_v6  ;;  %v1614_v2 = vadd.f32 %v10424_v9, %v10225_v22  ;;  %v1732_v6 = vpop.f32.mrf.mxu1  ;;  %v1675_v40 = vadd.f32 %v1674_v48, %v1646_v29 }
 0x3d6   : > { %v2018_v34 = vsel %vm2010_vm8, %v2007_v58, %v2009_v1  ;;  %v10539_v31 = vpop.permute.xlu2 %2055  ;;  %v1703_v58 = vpop.f32.mrf.mxu0  ;;  %v1701_v1 = vadd.f32 %v1700_v42, %v10225_v22  ;;  %v7566_v42 = vld [vmem:[%s15912_s2 + $0x30] sm:$0xff]  ;;  %vm2206_vm8 = vcmask 752640  }
 0x3d7   : > { %7596 = vmatpush.msk.msrb.mxu3 %vm419_vm7, %v2018_v34  ;;  %v10535_v63 = vpop.permute.xlu1 %2041  ;;  %7575 = vmatpush.msk.msrb.mxu2 %vm416_vm14, %v1962_v16  ;;  %v1643_v9 = vadd.f32 %v10428_v0, %v1614_v2  ;;  %v1677_v35 = vpop.f32.mrf.mxu2  ;;  %v1704_v32 = vadd.f32 %v1703_v58, %v10143_v11  ;;  %v1772_v48 = vmul.f32 0.2, %v1675_v40 }
 0x3d9   : > { %7597 = vmatpush.msk.msrb.mxu3 %vm419_vm7, %v2016_v10  ;;  %v1672_v0 = vadd.f32 %v1671_v43, %v1643_v9  ;;  %v1963_v43 = vsel %vm1961_vm15, %v10353_v36, %v10380_v28  ;;  %v1730_v10 = vadd.f32 %v1729_v30, %v1701_v1  ;;  %v1733_v28 = vadd.f32 %v1732_v6, %v1704_v32 }
 0x3da   : > { %v1620_v30 = vadd.f32 %v10459_v53, %v10233_v47  ;;  %v1623_v6 = vadd.f32 %v10476_v44, %v10235_v57  ;;  %vm1908_vm15 = vcmask 769024  }
 0x3db   : > { %8308 = vrot.lane.b32.xlu0 %v8277_v24, %s8807_s13  ;;  %7598 = vmatpush.msk.msrb.mxu3 %vm419_vm7, %v2014_v38  ;;  %v1761_v24 = vpop.f32.mrf.mxu3  ;;  %v1759_v2 = vadd.f32 %v10522_v21, %v1730_v10 }
 0x3dc   : > { %8318 = vrot.lane.b32.xlu2 %v8287_v62, %s8807_s13  ;;  %v1762_v58 = vadd.f32 %v1761_v24, %v1733_v28  ;;  %v1649_v9 = vadd.f32 %v10463_v15, %v1620_v30 }
 0x3dd   : > { %7599 = vmatpush.msk.msrb.mxu3 %vm419_vm7, %v2012_v56  ;;  %v10564_v20 = vpop.permute.xlu0 %2039  ;;  %2266 = vperm.xlu1 %8206, %v7564_v14   ;;  %v1735_v34 = vpop.f32.mrf.mxu1  ;;  %v10616_v56 = vmax.f32 %v1675_v40, %v1772_v48 }
 0x3de   : > { %v10575_v18 = vpop.permute.xlu2 %2086  ;;  %v1706_v7 = vpop.f32.mrf.mxu0  ;;  %v1773_v24 = vmul.f32 0.2, %v1762_v58  ;;  %v1678_v44 = vadd.f32 %v1677_v35, %v1649_v9 }
 0x3df   : > { %7600 = vmatpush.msk.msrb.mxu3 %vm417_vm12, %v1969_v27  ;;  %v10573_v62 = vpop.permute.xlu1 %2047  ;;  %v1707_v16 = vadd.f32 %v1706_v7, %v10233_v47  ;;  %16179 = vst [vmem:[#allocation9_spill] sm:$0xff] %v10616_v56  ;;  %v1771_v27 = vmul.f32 0.2, %v1759_v2  ;;  %v1652_v47 = vadd.f32 %v10483_v33, %v1623_v6  ;;  %v1680_v53 = vpop.f32.mrf.mxu2 }
 0x3e1   : > { %7601 = vmatpush.msk.msrb.mxu3 %vm417_vm12, %v1967_v55  ;;  %v1736_v14 = vadd.f32 %v1735_v34, %v1707_v16  ;;  %v1681_v15 = vadd.f32 %v1680_v53, %v1652_v47 }
 0x3e3   : > { %8323 = vrot.lane.b32.xlu0 %v8292_v52, %s8807_s13  ;;  %7602 = vmatpush.msk.msrb.mxu3 %vm417_vm12, %v1965_v45  ;;  %v1770_v52 = vmul.f32 0.2, %v1672_v0  ;;  %v1764_v22 = vpop.f32.mrf.mxu3  ;;  %v1776_v35 = vmul.f32 0.2, %v1681_v15 }
 0x3e4   : > { %2271 = vperm.xlu2 %8204, %v7565_v61   ;;  %v1765_v8 = vadd.f32 %v1764_v22, %v1736_v14 }
 0x3e5   : > { %7603 = vmatpush.msk.msrb.mxu3 %vm417_vm12, %v1963_v43  ;;  %v10600_v5 = vpop.permute.xlu0 %2045  ;;  %2281 = vperm.xlu1 %8206, %v7567_v59   ;;  %v10612_v11 = vmax.f32 %v1672_v0, %v1770_v52  ;;  %v10632_v0 = vmax.f32 %v1759_v2, %v1771_v27  ;;  %v10634_v59 = vmax.f32 %v1762_v58, %v1773_v24  ;;  %v1738_v33 = vpop.f32.mrf.mxu1  ;;  %v1774_v43 = vmul.f32 0.2, %v1678_v44 }
 0x3e6   : > { %v10606_v36 = vpop.permute.xlu2 %2092  ;;  %v1775_v29 = vmul.f32 0.2, %v1765_v8  ;;  %v1709_v45 = vpop.f32.mrf.mxu0  ;;  %v10653_v28 = vmax.f32 %v1681_v15, %v1776_v35 }
 0x3e7   : > { %v10604_v38 = vpop.permute.xlu1 %2053  ;;  %16178 = vst [vmem:[#allocation18_spill] sm:$0xff] %v10612_v11  ;;  %v1710_v7 = vadd.f32 %v1709_v45, %v10235_v57  ;;  %v10651_v10 = vmax.f32 %v1678_v44, %v1774_v43 }
 0x3e8   : > { %16180 = vst [vmem:[#allocation8_spill] sm:$0xff] %v10632_v0  ;;  %v10636_v40 = vmax.f32 %v1765_v8, %v1775_v29 }
 0x3e9   : > { %16181 = vst [vmem:[#allocation7_spill] sm:$0xff] %v10634_v59  ;;  %v1739_v52 = vadd.f32 %v1738_v33, %v1710_v7 }
 0x3ea   : > { %16182 = vst [vmem:[#allocation6_spill] sm:$0xff] %v10636_v40 }
 0x3eb   : > { %2276 = vperm.xlu0 %8205, %v7566_v42   ;;  %v1767_v32 = vpop.f32.mrf.mxu3  ;;  %16183 = vst [vmem:[#allocation3_spill] sm:$0xff] %v10651_v10 }
 0x3ec   : > { %2512 = vrot.lane.b32.xlu2 %v10612_v11, %s8782_s23  ;;  %v1768_v48 = vadd.f32 %v1767_v32, %v1739_v52  ;;  %16184 = vst [vmem:[#allocation4_spill] sm:$0xff] %v10653_v28 }
 0x3ed   : > { %v10623_v21 = vpop.permute.xlu0 %2051  ;;  %2516 = vrot.lane.b32.xlu1 %v10616_v56, %s8782_s23 }
 0x3ee   : > { %v10630_v61 = vpop.permute.xlu2 %2098  ;;  %v1777_v57 = vmul.f32 0.2, %v1768_v48 }
 0x3ef   : > { %v10628_v55 = vpop.permute.xlu1 %2084 }
 0x3f0   : > { %v10665_v2 = vmax.f32 %v1768_v48, %v1777_v57 }
 0x3f2   : > { %16186 = vst [vmem:[#allocation29_spill] sm:$0xff] %v10665_v2 }
 0x3f3   : > { %2514 = vrot.lane.b32.xlu0 %v10632_v0, %s8782_s23 }
 0x3f4   : > { %2518 = vrot.lane.b32.xlu2 %v10634_v59, %s8782_s23 }
 0x3f5   : > { %v10643_v1 = vpop.permute.xlu0 %2057  ;;  %2522 = vrot.lane.b32.xlu1 %v10636_v40, %s8782_s23 }
 0x3f6   : > { %v10649_v16 = vpop.permute.xlu2 %2104 }
 0x3f7   : > { %v10647_v34 = vpop.permute.xlu1 %2090 }
 0x3fb   : > { %2520 = vrot.lane.b32.xlu0 %v10651_v10, %s8782_s23 }
 0x3fc   : > { %2524 = vrot.lane.b32.xlu2 %v10653_v28, %s8782_s23 }
 0x3fd   : > { %v10659_v22 = vpop.permute.xlu0 %2088 }
 0x3fe   : > { %v10663_v14 = vpop.permute.xlu2 %2135 }
 0x3ff   : > { %v10661_v42 = vpop.permute.xlu1 %2096  ;;  %16185 = vst [vmem:[#allocation5_spill] sm:$0xff] %v10663_v14 }
 0x403   : > { %2526 = vrot.lane.b32.xlu0 %v10665_v2, %s8782_s23 }
 0x405   : > { %v10669_v58 = vpop.permute.xlu0 %2094 }
 0x406   : > { %v10673_v8 = vpop.permute.xlu2 %2141 }
 0x407   : > { %v10671_v30 = vpop.permute.xlu1 %2102  ;;  %16187 = vst [vmem:[#allocation31_spill] sm:$0xff] %v10673_v8 }
 0x40d   : > { %v10675_v6 = vpop.permute.xlu0 %2100 }
 0x40e   : > { %v10677_v27 = vpop.permute.xlu2 %2147 }
 0x40f   : > { %v2134_v9 = vpop.permute.xlu1 %2133  ;;  %16188 = vst [vmem:[#allocation12_spill] sm:$0xff] %v10677_v27 }
 0x410   : > { %v2158_v48 = vsel %vm2157_vm13, %v2134_v9, %v10663_v14 }
 0x415   : > { %v10679_v47 = vpop.permute.xlu0 %2106 }
 0x416   : > { %v10681_v24 = vpop.permute.xlu2 %2153 }
 0x417   : > { %v2140_v53 = vpop.permute.xlu1 %2139 }
 0x418   : > { %v2160_v32 = vsel %vm2157_vm13, %v2140_v53, %v10673_v8 }
 0x41d   : > { %v10683_v29 = vpop.permute.xlu0 %2137 }
 0x41e   : > { %16189 = vst [vmem:[#allocation10_spill] sm:$0xff] %v10683_v29  ;;  %v8274_v45 = vpop.permute.xlu2 %8273 }
 0x41f   : > { %v2146_v44 = vpop.permute.xlu1 %2145 }
 0x420   : > { %v2162_v35 = vsel %vm2157_vm13, %v2146_v44, %v10677_v27 }
 0x425   : > { %v10685_v15 = vpop.permute.xlu0 %2143 }
 0x426   : > { %16190 = vst [vmem:[#allocation16_spill] sm:$0xff] %v10685_v15  ;;  %v8289_v7 = vpop.permute.xlu2 %8288 }
 0x427   : > { %v2152_v33 = vpop.permute.xlu1 %2151  ;;  %v8290_v10 = vunpack.i.l.bf16 %v8289_v7 }
 0x428   : > { %v2164_v43 = vsel %vm2157_vm13, %v2152_v33, %v10681_v24 }
 0x429   : > { %7588 = vmatpush.msk.msrb.mxu1 %vm416_vm14, %v2164_v43 }
 0x42b   : > { %7589 = vmatpush.msk.msrb.mxu1 %vm416_vm14, %v2162_v35 }
 0x42d   : > { %v10697_v52 = vpop.permute.xlu0 %2149  ;;  %7590 = vmatpush.msk.msrb.mxu1 %vm416_vm14, %v2160_v32  ;;  %v8291_v32 = vunpack.i.h.bf16 %v8289_v7 }
 0x42e   : > { %16191 = vst [vmem:[#allocation13_spill] sm:$0xff] %v10697_v52  ;;  %v10705_v33 = vpop.permute.xlu2 %8303  ;;  %v8275_v52 = vunpack.i.l.bf16 %v8274_v45 }
 0x42f   : > { %v8269_v57 = vpop.permute.xlu1 %8268  ;;  %7591 = vmatpush.msk.msrb.mxu1 %vm416_vm14, %v2158_v48 }
 0x435   : > { %v10707_v44 = vpop.permute.xlu0 %2155 }
 0x436   : > { %v10709_v35 = vpop.permute.xlu2 %8318 }
 0x437   : > { %v8284_v43 = vpop.permute.xlu1 %8283 }
 0x438   : > { %v8286_v2 = vunpack.i.h.bf16 %v8284_v43  ;;  %v8285_v9 = vunpack.i.l.bf16 %v8284_v43  ;;  %v8271_v43 = vunpack.i.h.bf16 %v8269_v57 }
 0x43a   : > { %v2211_v7 = vsel %vm2206_vm8, %v8285_v9, %v8286_v2  ;;  %v2212_v27 = vsel %vm2206_vm8, %v8286_v2, %v8290_v10 }
 0x43d   : > { %v8279_v53 = vpop.permute.xlu0 %8278 }
 0x43e   : > { %v10713_v59 = vpop.permute.xlu2 %2271  ;;  %v8281_v14 = vunpack.i.h.bf16 %v8279_v53  ;;  %v8280_v29 = vunpack.i.l.bf16 %v8279_v53 }
 0x43f   : > { %v10711_v0 = vpop.permute.xlu1 %8298  ;;  %16192 = vst [vmem:[#allocation30_spill] sm:$0xff] %v10713_v59  ;;  %v8276_v59 = vunpack.i.h.bf16 %v8274_v45 }
 0x441   : > { %v2209_v53 = vsel %vm2206_vm8, %v8276_v59, %v8280_v29  ;;  %v1916_v59 = vsel %vm1908_vm15, %v10413_v54, %v10444_v19  ;;  %v1914_v19 = vsel %vm1908_vm15, %v10394_v39, %v10418_v26  ;;  %v1910_v26 = vsel %vm1908_vm15, %v10347_v51, %v10371_v3 }
 0x445   : > { %v8294_v40 = vpop.permute.xlu0 %8293 }
 0x446   : > { %v8296_v11 = vunpack.i.h.bf16 %v8294_v40  ;;  %v8295_v56 = vunpack.i.l.bf16 %v8294_v40  ;;  %v10717_v28 = vpop.permute.xlu2 %2512  ;;  %v8270_v40 = vunpack.i.l.bf16 %v8269_v57 }
 0x447   : > { %v10715_v48 = vpop.permute.xlu1 %8313  ;;  %2544 = vst.msk [vmem:[#allocation2] sm:$0xff] %vm518_vm0, %v10717_v28 }
 0x448   : > { %v2213_v8 = vsel %vm2206_vm8, %v8291_v32, %v8295_v56  ;;  %v2214_v15 = vsel %vm2206_vm8, %v8295_v56, %v8296_v11  ;;  %v2210_v32 = vsel %vm2206_vm8, %v8280_v29, %v8281_v14  ;;  %v2207_v56 = vsel %vm2206_vm8, %v8270_v40, %v8271_v43  ;;  %v10802_v40 = vld [vmem:[%s15911_s1 + $0x70] sm:$0xff] }
 0x449   : > { %2304 = vmatpush.msrb.mxu2 %v2213_v8  ;;  %2391 = vmatpush.msrb.mxu3 %v2214_v15  ;;  %v2208_v8 = vsel %vm2206_vm8, %v8271_v43, %v8275_v52  ;;  %v1915_v14 = vsel %vm1908_vm15, %v10411_v60, %v10413_v54  ;;  %v1913_v60 = vsel %vm1908_vm15, %v10392_v49, %v10394_v39  ;;  %v8321_v49 = vunpack.i.h.bf16 %v10709_v35 }
 0x44a   : > { %v1911_v54 = vsel %vm1908_vm15, %v10374_v37, %v10367_v25  ;;  %v1909_v37 = vsel %vm1908_vm15, %v10357_v41, %v10347_v51  ;;  %v8315_v3 = vunpack.i.l.bf16 %v10715_v48  ;;  %v8320_v52 = vunpack.i.l.bf16 %v10709_v35  ;;  %7592 = vmatmul.msk.f32.vlgmr.msrb.gmra.mxu1 %vm959_vm9, %v10802_v40 }
 0x44b   : > { %2305 = vmatpush.msrb.mxu2 %v2211_v7  ;;  %2392 = vmatpush.msrb.mxu3 %v2212_v27  ;;  %v1912_v27 = vsel %vm1908_vm15, %v10367_v25, %v10398_v23  ;;  %v7552_v25 = vld [vmem:[%s15911_s1 + $0x60] sm:$0xff]  ;;  %v8316_v23 = vunpack.i.h.bf16 %v10715_v48  ;;  %vm2247_vm8 = vcmask 228352   ;;  %v8306_v43 = vunpack.i.h.bf16 %v10705_v33 }
 0x44c   : > { %v8301_v7 = vunpack.i.h.bf16 %v10711_v0  ;;  %vm2108_vm15 = vcmask 244736  }
 0x44d   : > { %v10727_v11 = vpop.permute.xlu0 %8308  ;;  %2306 = vmatpush.msrb.mxu2 %v2209_v53  ;;  %2393 = vmatpush.msrb.mxu3 %v2210_v32  ;;  %v8300_v53 = vunpack.i.l.bf16 %v10711_v0  ;;  %v2252_v32 = vsel %vm2247_vm8, %v8315_v3, %v8316_v23  ;;  %v7555_v0 = vld [vmem:[%s15911_s1 + $0x78] sm:$0xff] }
 0x44e   : > { %v10733_v10 = vpop.permute.xlu2 %2518  ;;  %v10735_v2 = vld [vmem:[#allocation2] sm:$0xff]  ;;  %v8311_v41 = vunpack.i.h.bf16 %v10727_v11  ;;  %v8310_v9 = vunpack.i.l.bf16 %v10727_v11  ;;  %v2253_v11 = vsel %vm2247_vm8, %v8316_v23, %v8320_v52  ;;  %v16200_v52 = vld [vmem:[#allocation14_spill] sm:$0xff] }
 0x44f   : > { %2307 = vmatpush.msrb.mxu2 %v2207_v56  ;;  %2394 = vmatpush.msrb.mxu3 %v2208_v8  ;;  %v10731_v15 = vpop.permute.xlu1 %2266  ;;  %2549 = vst.msk [vmem:[#allocation2 + $0x30] sm:$0xff] %vm501_vm1, %v10733_v10  ;;  %v8305_v56 = vunpack.i.l.bf16 %v10705_v33  ;;  %v16198_v23 = vld [vmem:[#allocation23_spill] sm:$0xff] }
 0x450   : > { %2596 = vrot.lane.b32.xlu1 %v10735_v2, %s8808_s21  ;;  %v2250_v8 = vsel %vm2247_vm8, %v8306_v43, %v8310_v9  ;;  %v16203_v43 = vld [vmem:[#allocation13_spill] sm:$0xff] }
 0x451   : > { %7576 = vmatpush.msk.msrb.mxu2 %vm418_vm4, %v1915_v14  ;;  %7604 = vmatpush.msk.msrb.mxu3 %vm419_vm7, %v1916_v59  ;;  %v2251_v59 = vsel %vm2247_vm8, %v8310_v9, %v8311_v41  ;;  %v16201_v41 = vld [vmem:[#allocation17_spill] sm:$0xff]  ;;  %v2165_v9 = vsel %vm2157_vm13, %v10681_v24, %v10707_v44  ;;  %v16205_v24 = vld [vmem:[#allocation16_spill] sm:$0xff]  ;;  %v16206_v44 = vld [vmem:[#allocation31_spill] sm:$0xff] }
 0x453   : > { %7577 = vmatpush.msk.msrb.mxu2 %vm418_vm4, %v1913_v60  ;;  %7605 = vmatpush.msk.msrb.mxu3 %vm419_vm7, %v1914_v19  ;;  %v2248_v19 = vsel %vm2247_vm8, %v8300_v53, %v8301_v7  ;;  %v2249_v60 = vsel %vm2247_vm8, %v8301_v7, %v8305_v56  ;;  %v16204_v7 = vld [vmem:[#allocation12_spill] sm:$0xff]  ;;  %v7556_v56 = vld [vmem:[%s15911_s1 + $0x80] sm:$0xff] }
 0x454   : > { %v2163_v53 = vsel %vm2157_vm13, %v16204_v7, %v16203_v43 }
 0x455   : > { %v8324_v39 = vpop.permute.xlu0 %8323  ;;  %7578 = vmatpush.msk.msrb.mxu2 %vm418_vm4, %v1911_v54  ;;  %7606 = vmatpush.msk.msrb.mxu3 %vm419_vm7, %v1912_v27  ;;  %v2115_v54 = vsel %vm2108_vm15, %v10671_v30, %v10649_v16  ;;  %v2116_v27 = vsel %vm2108_vm15, %v10649_v16, %v10679_v47  ;;  %v2113_v30 = vsel %vm2108_vm15, %v10661_v42, %v10630_v61 }
 0x456   : > { %v8326_v29 = vunpack.i.h.bf16 %v8324_v39  ;;  %v8325_v45 = vunpack.i.l.bf16 %v8324_v39  ;;  %v10790_v51 = vpop.permute.xlu2 %2524  ;;  %v2114_v16 = vsel %vm2108_vm15, %v10630_v61, %v10675_v6  ;;  %v2111_v47 = vsel %vm2108_vm15, %v10647_v34, %v10606_v36  ;;  %v7558_v61 = vld [vmem:[%s15911_s1 + $0x90] sm:$0xff] }
 0x457   : > { %7579 = vmatpush.msk.msrb.mxu2 %vm418_vm4, %v1909_v37  ;;  %7607 = vmatpush.msk.msrb.mxu3 %vm419_vm7, %v1910_v26  ;;  %v10788_v57 = vpop.permute.xlu1 %2281  ;;  %2553 = vst.msk [vmem:[#allocation2 + $0x60] sm:$0xff] %vm518_vm0, %v10790_v51  ;;  %v10834_v26 = vld [vmem:[%s15911_s1 + $0x88] sm:$0xff]  ;;  %v2112_v42 = vsel %vm2108_vm15, %v10606_v36, %v10669_v58  ;;  %v2109_v6 = vsel %vm2108_vm15, %v10628_v55, %v10575_v18  ;;  %v10946_v37 = vld [vmem:[%s15911_s1 + $0xb8] sm:$0xff]  ;;  %v10956_v3 = vld [vmem:[#allocation2 + $0x30] sm:$0xff] }
 0x458   : > { %2312 = vmatmul.f32.vlgmr.msrb.gmra.mxu2 %v7552_v25  ;;  %2399 = vmatmul.f32.vlgmr.msrb.gmra.mxu3 %v7552_v25  ;;  %v2254_v48 = vsel %vm2247_vm8, %v8321_v49, %v8325_v45  ;;  %v2255_v35 = vsel %vm2247_vm8, %v8325_v45, %v8326_v29  ;;  %v2110_v34 = vsel %vm2108_vm15, %v10575_v18, %v10659_v22  ;;  %vm2059_vm8 = vcmask 474112   ;;  %v7553_v45 = vld [vmem:[%s15911_s1 + $0x68] sm:$0xff] }
 0x459   : > { %2325 = vmatpush.msrb.mxu0 %v2254_v48  ;;  %2412 = vmatpush.msra.mxu2 %v2255_v35  ;;  %v2066_v18 = vsel %vm2059_vm8, %v10604_v38, %v10539_v31  ;;  %v2067_v55 = vsel %vm2059_vm8, %v10539_v31, %v10643_v1  ;;  %v2064_v38 = vsel %vm2059_vm8, %v10573_v62, %v10505_v12  ;;  %v16202_v48 = vld [vmem:[#allocation24_spill] sm:$0xff]  ;;  %vm2669_vm15 = vcmask 523264  }
 0x45a   : > { %7593 = vmatmul.msk.f32.gmra.mxu1 %vm959_vm9, %v10834_v26  ;;  %v2065_v31 = vsel %vm2059_vm8, %v10505_v12, %v10623_v21  ;;  %v2062_v62 = vsel %vm2059_vm8, %v10535_v63, %v10474_v46  ;;  %v2063_v1 = vsel %vm2059_vm8, %v10474_v46, %v10600_v5  ;;  %v7561_v21 = vld [vmem:[%s15911_s1 + $0xa8] sm:$0xff]  ;;  %v2060_v63 = vsel %vm2059_vm8, %v10501_v17, %v10461_v50  ;;  %v16194_v5 = vld [vmem:[#allocation11_spill] sm:$0xff] }
 0x45b   : > { %2326 = vmatpush.msrb.mxu0 %v2252_v32  ;;  %2413 = vmatpush.msra.mxu2 %v2253_v11  ;;  %v2061_v46 = vsel %vm2059_vm8, %v10461_v50, %v10564_v20  ;;  %v16195_v50 = vld [vmem:[#allocation19_spill] sm:$0xff]  ;;  %v16196_v20 = vld [vmem:[#allocation22_spill] sm:$0xff]  ;;  %16199 = vst [vmem:[#allocation20_spill] sm:$0xff] %v10956_v3  ;;  %v2161_v32 = vsel %vm2157_vm13, %v16206_v44, %v16205_v24  ;;  %vm2718_vm8 = vcmask 457728  }
 0x45d   : > { %v10813_v14 = vpop.permute.xlu0 %2276  ;;  %2327 = vmatpush.msrb.mxu0 %v2250_v8  ;;  %2414 = vmatpush.msra.mxu2 %v2251_v59  ;;  %v16207_v8 = vld [vmem:[#allocation10_spill] sm:$0xff]  ;;  %v16208_v59 = vld [vmem:[#allocation5_spill] sm:$0xff] }
 0x45f   : > { %2328 = vmatpush.msrb.mxu0 %v2248_v19  ;;  %2415 = vmatpush.msra.mxu2 %v2249_v60  ;;  %v2517_v33 = vpop.permute.xlu1 %2516  ;;  %v11001_v19 = vld [vmem:[#allocation2 + $0x60] sm:$0xff] }
 0x460   : > { %2547 = vst.msk [vmem:[#allocation2 + $0x20] sm:$0xff] %vm518_vm0, %v2517_v33  ;;  %2315 = vmatmul.f32.gmra.mxu2 %v7555_v0  ;;  %2402 = vmatmul.f32.gmra.mxu3 %v7555_v0  ;;  %v10940_v17 = vsel %vm501_vm1, %v2517_v33, %v10733_v10  ;;  %v16197_v10 = vld [vmem:[#allocation21_spill] sm:$0xff]  ;;  %v2159_v0 = vsel %vm2157_vm13, %v16208_v59, %v16207_v8  ;;  %vm426_vm13 = vcmp.ge.s32.totalorder %v9180_v13, 4 }
 0x461   : > { %7580 = vmatpush.msk.msrb.mxu0 %vm418_vm4, %v2115_v54  ;;  %7608 = vmatpush.msk.msra.mxu2 %vm419_vm7, %v2116_v27  ;;  %v7559_v54 = vld [vmem:[%s15911_s1 + $0x98] sm:$0xff] }
 0x463   : > { %7581 = vmatpush.msk.msrb.mxu0 %vm418_vm4, %v2113_v30  ;;  %7609 = vmatpush.msk.msra.mxu2 %vm419_vm7, %v2114_v16  ;;  %v8337_v16 = vpack.i.bf16 %v10956_v3, %v10940_v17 }
 0x465   : > { %v2515_v49 = vpop.permute.xlu0 %2514  ;;  %7582 = vmatpush.msk.msrb.mxu0 %vm418_vm4, %v2111_v47  ;;  %7610 = vmatpush.msk.msra.mxu2 %vm419_vm7, %v2112_v42 }
 0x466   : > { %2546 = vst.msk [vmem:[#allocation2 + $0x10] sm:$0xff] %vm501_vm1, %v2515_v49  ;;  %v10870_v36 = vsel %vm501_vm1, %v10717_v28, %v2515_v49  ;;  %v10892_v28 = vld [vmem:[%s15911_s1 + $0xa0] sm:$0xff] }
 0x467   : > { %7583 = vmatpush.msk.msrb.mxu0 %vm418_vm4, %v2109_v6  ;;  %7611 = vmatpush.msk.msra.mxu2 %vm419_vm7, %v2110_v34  ;;  %v2523_v58 = vpop.permute.xlu1 %2522  ;;  %v10876_v39 = vld [vmem:[#allocation2 + $0x20] sm:$0xff]  ;;  %vm431_vm4 = vcmask 64512   ;;  %vm2620_vm7 = vcmask 982016  }
 0x468   : > { %2552 = vst.msk [vmem:[#allocation2 + $0x50] sm:$0xff] %vm501_vm1, %v2523_v58  ;;  %2318 = vmatmul.f32.gmra.mxu2 %v7558_v61  ;;  %2405 = vmatmul.f32.gmra.mxu3 %v7558_v61  ;;  %v8352_v42 = vpack.i.bf16 %v10735_v2, %v10876_v39 }
 0x469   : > { %2602 = vrot.lane.b32.xlu1 %v10876_v39, %s8808_s21  ;;  %7584 = vmatpush.msk.msrb.mxu0 %vm416_vm14, %v2066_v18 }
 0x46a   : > { %7612 = vmatpush.msk.msra.mxu2 %vm417_vm12, %v2067_v55  ;;  %2598 = vrot.lane.b32.xlu2 %v10870_v36, %s8808_s21 }
 0x46b   : > { %7585 = vmatpush.msk.msrb.mxu0 %vm416_vm14, %v2064_v38  ;;  %7594 = vmatmul.msk.f32.gmra.mxu1 %vm959_vm9, %v10892_v28 }
 0x46c   : > { %7613 = vmatpush.msk.msra.mxu2 %vm417_vm12, %v2065_v31 }
 0x46d   : > { %v2521_v22 = vpop.permute.xlu0 %2520  ;;  %7586 = vmatpush.msk.msrb.mxu0 %vm416_vm14, %v2062_v62  ;;  %v10918_v12 = vld [vmem:[#allocation2 + $0x10] sm:$0xff] }
 0x46e   : > { %16193 = vst [vmem:[#allocation32_spill] sm:$0xff] %v10918_v12  ;;  %7614 = vmatpush.msk.msra.mxu2 %vm417_vm12, %v2063_v1  ;;  %2600 = vrot.lane.b32.xlu0 %v10918_v12, %s8808_s21  ;;  %v10975_v35 = vsel %vm501_vm1, %v2521_v22, %v2523_v58 }
 0x46f   : > { %2550 = vst.msk [vmem:[#allocation2 + $0x40] sm:$0xff] %vm518_vm0, %v2521_v22  ;;  %7587 = vmatpush.msk.msrb.mxu0 %vm416_vm14, %v2060_v63  ;;  %v10991_v11 = vld [vmem:[#allocation2 + $0x50] sm:$0xff]  ;;  %v7636_v63 = vld [vmem:[%s15912_s2 + $0x60] sm:$0xff]  ;;  %vm424_vm14 = vcmp.lt.s32.totalorder %v9180_v13, 12 }
 0x470   : > { %7615 = vmatpush.msk.msra.mxu2 %vm417_vm12, %v2061_v46  ;;  %2408 = vmatmul.f32.gmra.mxu3 %v7561_v21  ;;  %v8332_v30 = vpack.i.bf16 %v10991_v11, %v10975_v35 }
 0x471   : > { %2321 = vmatmul.f32.gmra.mxu2 %v7561_v21  ;;  %2337 = vmatpush.msrb.mxu0 %v16194_v5  ;;  %v7637_v5 = vld [vmem:[%s15912_s2 + $0x68] sm:$0xff] }
 0x472   : > { %2424 = vmatpush.msra.mxu2 %v16195_v50  ;;  %2604 = vrot.lane.b32.xlu2 %v10940_v17, %s8808_s21 }
 0x473   : > { %2338 = vmatpush.msrb.mxu0 %v16196_v20  ;;  %7595 = vmatmul.msk.f32.gmra.mxu1 %vm959_vm9, %v10946_v37  ;;  %v7638_v20 = vld [vmem:[%s15912_s2 + $0x70] sm:$0xff] }
 0x474   : > { %2425 = vmatpush.msra.mxu2 %v16197_v10 }
 0x475   : > { %v2527_v25 = vpop.permute.xlu0 %2526  ;;  %2339 = vmatpush.msrb.mxu0 %v16198_v23 }
 0x476   : > { %v10958_v29 = vld [vmem:[#allocation2 + $0x40] sm:$0xff]  ;;  %2555 = vst.msk [vmem:[#allocation2 + $0x70] sm:$0xff] %vm501_vm1, %v2527_v25  ;;  %2426 = vmatpush.msra.mxu2 %v16200_v52  ;;  %2606 = vrot.lane.b32.xlu0 %v10956_v3, %s8808_s21  ;;  %v11009_v60 = vsel %vm501_vm1, %v10790_v51, %v2527_v25  ;;  %v7562_v51 = vld [vmem:[%s15911_s1 + $0xb0] sm:$0xff]  ;;  %v7639_v25 = vld [vmem:[%s15912_s2 + $0x78] sm:$0xff] }
 0x477   : > { %2608 = vrot.lane.b32.xlu1 %v10958_v29, %s8808_s21  ;;  %2340 = vmatpush.msrb.mxu0 %v16201_v41  ;;  %v8347_v47 = vpack.i.bf16 %v10958_v29, %v11001_v19 }
 0x478   : > { %2427 = vmatpush.msra.mxu2 %v16202_v48  ;;  %2341 = vmatmul.f32.vlgmr.msrb.gmra.mxu0 %v7553_v45 }
 0x479   : > { %2428 = vmatmul.f32.vlgmr.msra.gmra.mxu2 %v7553_v45  ;;  %7616 = vmatpush.msk.msra.mxu0 %vm417_vm12, %v2165_v9 }
 0x47a   : > { %2610 = vrot.lane.b32.xlu2 %v10975_v35, %s8808_s21 }
 0x47b   : > { %7617 = vmatpush.msk.msra.mxu0 %vm417_vm12, %v2163_v53 }
 0x47d   : > { %7618 = vmatpush.msk.msra.mxu0 %vm417_vm12, %v2161_v32  ;;  %v11013_v33 = vld [vmem:[#allocation2 + $0x70] sm:$0xff] }
 0x47e   : > { %2612 = vrot.lane.b32.xlu0 %v10991_v11, %s8808_s21  ;;  %v8327_v27 = vpack.i.bf16 %v11013_v33, %v11009_v60 }
 0x47f   : > { %2614 = vrot.lane.b32.xlu1 %v11001_v19, %s8808_s21  ;;  %7619 = vmatpush.msk.msra.mxu0 %vm417_vm12, %v2159_v0  ;;  %v16210_v0 = vld [vmem:[#allocation30_spill] sm:$0xff]  ;;  %vm2807_vm12 = vcmask 1014784  }
 0x480   : > { %2344 = vmatmul.f32.gmra.mxu0 %v7556_v56 }
 0x481   : > { %2431 = vmatmul.f32.gmra.mxu2 %v7556_v56 }
 0x482   : > { %2616 = vrot.lane.b32.xlu2 %v11009_v60, %s8808_s21 }
 0x486   : > { %2618 = vrot.lane.b32.xlu0 %v11013_v33, %s8808_s21 }
 0x487   : > { %2645 = vrot.lane.b32.xlu1 %v10735_v2, %s8809_s20 }
 0x488   : > { %2347 = vmatmul.f32.gmra.mxu0 %v7559_v54 }
 0x489   : > { %2434 = vmatmul.f32.gmra.mxu2 %v7559_v54 }
 0x48a   : > { %2647 = vrot.lane.b32.xlu2 %v10870_v36, %s8809_s20 }
 0x48e   : > { %2649 = vrot.lane.b32.xlu0 %v10918_v12, %s8809_s20 }
 0x48f   : > { %2651 = vrot.lane.b32.xlu1 %v10876_v39, %s8809_s20 }
 0x490   : > { %2350 = vmatmul.f32.gmra.mxu0 %v7562_v51 }
 0x491   : > { %2437 = vmatmul.f32.gmra.mxu2 %v7562_v51 }
 0x492   : > { %2653 = vrot.lane.b32.xlu2 %v10940_v17, %s8809_s20 }
 0x496   : > { %2655 = vrot.lane.b32.xlu0 %v10956_v3, %s8809_s20 }
 0x497   : > { %8328 = vrot.lane.b32.xlu1 %v8327_v27, %s8810_s14 }
 0x498   : > { %7620 = vmatmul.msk.f32.vlgmr.msra.gmra.mxu0 %vm959_vm9, %v10802_v40  ;;  %v8759_v40 = vld [vmem:[#allocation2 + $0x80] sm:$0xff] }
 0x499   : > { %440 = vst.msk [vmem:[#allocation2 + $0x58] sm:$0xff] %vm431_vm4, %v8759_v40 }
 0x49a   : > { %8333 = vrot.lane.b32.xlu2 %v8332_v30, %s8810_s14  ;;  %444 = vst.msk [vmem:[#allocation2 + $0x78] sm:$0xff] %vm431_vm4, %v8759_v40 }
 0x49b   : > { %432 = vst.msk [vmem:[#allocation2 + $0x18] sm:$0xff] %vm431_vm4, %v8759_v40 }
 0x49c   : > { %436 = vst.msk [vmem:[#allocation2 + $0x38] sm:$0xff] %vm431_vm4, %v8759_v40  ;;  %vm427_vm4 = vcmp.ge.s32.totalorder %v9195_v4, 4 }
 0x49e   : > { %2663 = vrot.lane.b32.xlu0 %v11001_v19, %s8809_s20 }
 0x49f   : > { %2665 = vrot.lane.b32.xlu1 %v11009_v60, %s8809_s20 }
 0x4a0   : > { %7621 = vmatmul.msk.f32.gmra.mxu0 %vm959_vm9, %v10834_v26  ;;  %v8342_v26 = vpack.i.bf16 %v10918_v12, %v10870_v36  ;;  %v2753_v61 = vld [vmem:[#allocation2 + $0x58] sm:$0xff] }
 0x4a1   : > { %v2754_v6 = vld [vmem:[#allocation2 + $0x78] sm:$0xff] }
 0x4a2   : > { %8338 = vrot.lane.b32.xlu2 %v8337_v16, %s8810_s14  ;;  %v2751_v34 = vld [vmem:[#allocation2 + $0x18] sm:$0xff]  ;;  %v8357_v18 = vpack.i.bf16 %v2753_v61, %v2754_v6 }
 0x4a3   : > { %v2752_v58 = vld [vmem:[#allocation2 + $0x38] sm:$0xff] }
 0x4a4   : > { %v8362_v55 = vpack.i.bf16 %v2751_v34, %v2752_v58 }
 0x4a6   : > { %2657 = vrot.lane.b32.xlu0 %v10958_v29, %s8809_s20 }
 0x4a7   : > { %2659 = vrot.lane.b32.xlu1 %v10975_v35, %s8809_s20 }
 0x4a8   : > { %7622 = vmatmul.msk.f32.gmra.mxu0 %vm959_vm9, %v10892_v28 }
 0x4aa   : > { %8343 = vrot.lane.b32.xlu2 %v8342_v26, %s8810_s14 }
 0x4ae   : > { %2712 = vrot.lane.b32.xlu0 %v11001_v19, %s8811_s16 }
 0x4af   : > { %2714 = vrot.lane.b32.xlu1 %v11009_v60, %s8811_s16 }
 0x4b0   : > { %7623 = vmatmul.msk.f32.gmra.mxu0 %vm959_vm9, %v10946_v37 }
 0x4b2   : > { %2706 = vrot.lane.b32.xlu2 %v10958_v29, %s8811_s16 }
 0x4b6   : > { %2708 = vrot.lane.b32.xlu0 %v10975_v35, %s8811_s16 }
 0x4b7   : > { %2700 = vrot.lane.b32.xlu1 %v10876_v39, %s8811_s16 }
 0x4ba   : > { %2702 = vrot.lane.b32.xlu2 %v10940_v17, %s8811_s16 }
 0x4be   : > { %8348 = vrot.lane.b32.xlu0 %v8347_v47, %s8810_s14 }
 0x4bf   : > { %2694 = vrot.lane.b32.xlu1 %v10735_v2, %s8811_s16 }
 0x4c2   : > { %2696 = vrot.lane.b32.xlu2 %v10870_v36, %s8811_s16  ;;  %v11103_v31 = vpop.permute.xlu1 %2596 }
 0x4c4   : > { %v11084_v49 = vpop.permute.xlu2 %2598 }
 0x4c6   : > { %8353 = vrot.lane.b32.xlu0 %v8352_v42, %s8810_s14 }
 0x4c7   : > { %2667 = vrot.lane.b32.xlu1 %v11013_v33, %s8809_s20  ;;  %v2371_v41 = vpop.f32.mrf.mxu1 }
 0x4ca   : > { %2661 = vrot.lane.b32.xlu2 %v10991_v11, %s8809_s20 }
 0x4cc   : > { %v11091_v28 = vpop.permute.xlu2 %2604 }
 0x4ce   : > { %8358 = vrot.lane.b32.xlu0 %v8357_v18, %s8810_s14 }
 0x4cf   : > { %8363 = vrot.lane.b32.xlu1 %v8362_v55, %s8810_s14 }
 0x4d2   : > { %2716 = vrot.lane.b32.xlu2 %v11013_v33, %s8811_s16 }
 0x4d4   : > { %v11097_v38 = vpop.permute.xlu2 %2610 }
 0x4d6   : > { %2710 = vrot.lane.b32.xlu0 %v10991_v11, %s8811_s16 }
 0x4d7   : > { %2704 = vrot.lane.b32.xlu1 %v10956_v3, %s8811_s16  ;;  %v2374_v27 = vpop.f32.mrf.mxu1 }
 0x4da   : > { %2765 = vrot.lane.b32.xlu2 %v2754_v6, %s8808_s21 }
 0x4db   : > { %v11113_v22 = vpop.permute.xlu1 %2602  ;;  %v2313_v21 = vpop.f32.mrf.mxu2 }
 0x4dc   : > { %v11106_v62 = vpop.permute.xlu2 %2616  ;;  %v2314_v9 = vadd.f32 %v2313_v21, %v10731_v15 }
 0x4de   : > { %2698 = vrot.lane.b32.xlu0 %v10918_v12, %s8811_s16 }
 0x4df   : > { %2763 = vrot.lane.b32.xlu1 %v2753_v61, %s8808_s21 }
 0x4e0   : > { %v11111_v1 = vpop.permute.xlu0 %2600 }
 0x4e1   : > { %16209 = vst [vmem:[#allocation26_spill] sm:$0xff] %v11111_v1  ;;  %v11185_v47 = vsel %vm2620_vm7, %v11084_v49, %v11111_v1 }
 0x4e2   : > { %2761 = vrot.lane.b32.xlu2 %v2752_v58, %s8808_s21 }
 0x4e3   : > { %v2316_v10 = vpop.f32.mrf.mxu2 }
 0x4e4   : > { %v11119_v46 = vpop.permute.xlu2 %2647  ;;  %v2317_v54 = vadd.f32 %v2316_v10, %v16210_v0 }
 0x4e6   : > { %2759 = vrot.lane.b32.xlu0 %v2751_v34, %s8808_s21 }
 0x4e7   : > { %2842 = vperm.xlu1 %8206, %v7636_v63   ;;  %v2400_v63 = vpop.f32.mrf.mxu3 }
 0x4e8   : > { %v11125_v37 = vpop.permute.xlu0 %2606 }
 0x4e9   : > { %v11127_v50 = vpop.permute.xlu1 %2608  ;;  %v11173_v16 = vsel %vm2620_vm7, %v11091_v28, %v11125_v37 }
 0x4ea   : > { %2847 = vperm.xlu2 %8204, %v7637_v5  }
 0x4eb   : > { %v11144_v7 = vpop.f32.mrf.mxu2 }
 0x4ec   : > { %v11135_v23 = vpop.permute.xlu2 %2653 }
 0x4ee   : > { %2852 = vperm.xlu0 %8205, %v7638_v20  }
 0x4ef   : > { %2857 = vperm.xlu1 %8206, %v7639_v25  }
 0x4f0   : > { %v11137_v45 = vpop.permute.xlu0 %2612 }
 0x4f1   : > { %v11139_v52 = vpop.permute.xlu1 %2614  ;;  %v11162_v59 = vsel %vm2620_vm7, %v11097_v38, %v11137_v45 }
 0x4f4   : > { %v11142_v43 = vpop.permute.xlu2 %8333  ;;  %v11187_v42 = vpop.f32.mrf.mxu2 }
 0x4f5   : > { %v2342_v48 = vpop.f32.mrf.mxu0  ;;  %v15978_v10 = vunpack.i.h.bf16 %v11142_v43  ;;  %v15979_v25 = vunpack.i.l.bf16 %v11142_v43 }
 0x4f6   : > { %v2343_v53 = vadd.f32 %v2342_v48, %v2314_v9 }
 0x4f8   : > { %v2372_v24 = vadd.f32 %v2371_v41, %v2343_v53  ;;  %v11147_v44 = vpop.permute.xlu0 %2618 }
 0x4f9   : > { %v11149_v32 = vpop.permute.xlu1 %2645  ;;  %v11154_v56 = vsel %vm2620_vm7, %v11106_v62, %v11147_v44 }
 0x4fa   : > { %v2470_v8 = vmul.f32 0.2, %v2372_v24  ;;  %7660 = vmatpush.msk.msrb.mxu2 %vm424_vm14, %v11154_v56 }
 0x4fc   : > { %v11165_v51 = vmax.f32 %v2372_v24, %v2470_v8  ;;  %7661 = vmatpush.msk.msrb.mxu2 %vm424_vm14, %v11162_v59  ;;  %v11175_v40 = vpop.permute.xlu2 %8338  ;;  %v2429_v41 = vpop.f32.mrf.mxu2 }
 0x4fd   : > { %v2345_v30 = vpop.f32.mrf.mxu0  ;;  %v15981_v53 = vunpack.i.h.bf16 %v11175_v40  ;;  %v15982_v24 = vunpack.i.l.bf16 %v11175_v40 }
 0x4fe   : > { %16211 = vst [vmem:[#allocation28_spill] sm:$0xff] %v11165_v51  ;;  %v2346_v26 = vadd.f32 %v2345_v30, %v2317_v54  ;;  %7662 = vmatpush.msk.msrb.mxu2 %vm424_vm14, %v11173_v16  ;;  %3102 = vrot.lane.b32.xlu2 %v11165_v51, %s8782_s23 }
 0x500   : > { %v2375_v61 = vadd.f32 %v2374_v27, %v2346_v26  ;;  %v11189_v6 = vpop.permute.xlu0 %2649  ;;  %7663 = vmatpush.msk.msrb.mxu2 %vm424_vm14, %v11185_v47 }
 0x501   : > { %v2652_v34 = vpop.permute.xlu1 %2651 }
 0x502   : > { %v2472_v58 = vmul.f32 0.2, %v2375_v61 }
 0x504   : > { %v11194_v18 = vmax.f32 %v2375_v61, %v2472_v58  ;;  %v11196_v21 = vpop.permute.xlu2 %8343  ;;  %v11227_v61 = vsel %vm2807_vm12, %v15979_v25, %v15978_v10  ;;  %v2401_v10 = vadd.f32 %v2400_v63, %v10731_v15  ;;  %v2403_v25 = vpop.f32.mrf.mxu3 }
 0x505   : > { %v2348_v55 = vpop.f32.mrf.mxu0  ;;  %v15985_v30 = vunpack.i.h.bf16 %v11196_v21  ;;  %v16213_v51 = vunpack.i.l.bf16 %v11196_v21  ;;  %v2432_v63 = vpop.f32.mrf.mxu2 }
 0x506   : > { %16212 = vst [vmem:[#allocation27_spill] sm:$0xff] %v11194_v18  ;;  %3106 = vrot.lane.b32.xlu1 %v11194_v18, %s8782_s23  ;;  %v2430_v15 = vadd.f32 %v2429_v41, %v2401_v10 }
 0x508   : > { %v11200_v5 = vpop.permute.xlu0 %2655 }
 0x509   : > { %v11202_v20 = vpop.permute.xlu1 %8328 }
 0x50a   : > { %v15976_v9 = vunpack.i.h.bf16 %v11202_v20  ;;  %v15977_v48 = vunpack.i.l.bf16 %v11202_v20 }
 0x50c   : > { %v11215_v8 = vsel %vm2807_vm12, %v15977_v48, %v15976_v9  ;;  %v11218_v27 = vpop.permute.xlu2 %2706  ;;  %v11235_v9 = vsel %vm2807_vm12, %v15982_v24, %v15981_v53  ;;  %v11249_v53 = vsel %vm2807_vm12, %v16213_v51, %v15985_v30  ;;  %v2320_v24 = vadd.f32 %v11144_v7, %v10813_v14  ;;  %v2377_v51 = vpop.f32.mrf.mxu1 }
 0x50d   : > { %2901 = vmatpush.msra.mxu3 %v11215_v8  ;;  %v2351_v54 = vpop.f32.mrf.mxu0  ;;  %v2404_v7 = vadd.f32 %v2403_v25, %v16210_v0  ;;  %v2670_v25 = vsel %vm2669_vm15, %v11149_v32, %v11119_v46 }
 0x50e   : > { %v2349_v1 = vadd.f32 %v2348_v55, %v2320_v24  ;;  %v2406_v24 = vpop.f32.mrf.mxu3 }
 0x50f   : > { %2902 = vmatpush.msra.mxu3 %v11227_v61 }
 0x510   : > { %v2664_v58 = vpop.permute.xlu0 %2663  ;;  %v2378_v10 = vadd.f32 %v2377_v51, %v2349_v1  ;;  %v2323_v1 = vadd.f32 %v11187_v42, %v10788_v57  ;;  %v2627_v42 = vsel %vm2620_vm7, %v11139_v52, %v11106_v62 }
 0x511   : > { %v11238_v48 = vpop.permute.xlu1 %2665  ;;  %2903 = vmatpush.msra.mxu3 %v11235_v9 }
 0x512   : > { %v2676_v26 = vsel %vm2669_vm15, %v2664_v58, %v11238_v48 }
 0x513   : > { %7640 = vmatpush.msk.msra.mxu1 %vm426_vm13, %v2676_v26  ;;  %2904 = vmatpush.msra.mxu3 %v11249_v53 }
 0x514   : > { %v11259_v18 = vpop.permute.xlu2 %2702 }
 0x515   : > { %7652 = vmatpush.msk.msra.mxu3 %vm426_vm13, %v11009_v60  ;;  %v2458_v58 = vpop.f32.mrf.mxu0 }
 0x516   : > { %v2459_v30 = vadd.f32 %v2458_v58, %v2430_v15  ;;  %v2672_v15 = vsel %vm2669_vm15, %v2652_v34, %v11135_v23  ;;  %v2433_v58 = vadd.f32 %v2432_v63, %v2404_v7  ;;  %v2435_v34 = vpop.f32.mrf.mxu2  ;;  %v2352_v63 = vadd.f32 %v2351_v54, %v2323_v1 }
 0x517   : > { %7653 = vmatpush.msk.msra.mxu3 %vm426_vm13, %v10975_v35  ;;  %v2407_v54 = vadd.f32 %v2406_v24, %v10813_v14  ;;  %v11327_v24 = vld [vmem:[%s15911_s1 + $0x130] sm:$0xff] }
 0x518   : > { %v2471_v26 = vmul.f32 0.2, %v2459_v30  ;;  %v2658_v12 = vpop.permute.xlu0 %2657  ;;  %7664 = vmatmul.msk.f32.vlgmr.msrb.gmra.mxu2 %vm959_vm9, %v11327_v24 }
 0x519   : > { %v11264_v3 = vpop.permute.xlu1 %2659  ;;  %7654 = vmatpush.msk.msra.mxu3 %vm426_vm13, %v10940_v17 }
 0x51a   : > { %v11270_v41 = vmax.f32 %v2459_v30, %v2471_v26  ;;  %v2674_v55 = vsel %vm2669_vm15, %v2658_v12, %v11264_v3  ;;  %v2474_v30 = vmul.f32 0.2, %v2378_v10  ;;  %v2380_v26 = vpop.f32.mrf.mxu1 }
 0x51b   : > { %7641 = vmatpush.msk.msra.mxu1 %vm426_vm13, %v2674_v55  ;;  %7655 = vmatpush.msk.msra.mxu3 %vm426_vm13, %v10870_v36  ;;  %v2381_v52 = vadd.f32 %v2380_v26, %v2352_v63 }
 0x51c   : > { %16214 = vst [vmem:[#allocation25_spill] sm:$0xff] %v11270_v41  ;;  %3104 = vrot.lane.b32.xlu0 %v11270_v41, %s8782_s23  ;;  %v11287_v0 = vpop.permute.xlu2 %2696 }
 0x51d   : > { %7642 = vmatpush.msk.msra.mxu1 %vm426_vm13, %v2672_v15  ;;  %v2461_v12 = vpop.f32.mrf.mxu0  ;;  %v2625_v15 = vsel %vm2620_vm7, %v11127_v50, %v11097_v38  ;;  %v2623_v38 = vsel %vm2620_vm7, %v11113_v22, %v11091_v28  ;;  %v2436_v50 = vadd.f32 %v2435_v34, %v2407_v54  ;;  %v2621_v28 = vsel %vm2620_vm7, %v11103_v31, %v11084_v49  ;;  %v2409_v22 = vpop.f32.mrf.mxu3 }
 0x51e   : > { %v2462_v51 = vadd.f32 %v2461_v12, %v2433_v58  ;;  %v11305_v58 = vmax.f32 %v2378_v10, %v2474_v30  ;;  %v2438_v34 = vpop.f32.mrf.mxu2  ;;  %v2410_v26 = vadd.f32 %v2409_v22, %v10788_v57  ;;  %v16220_v22 = vunpack.i.l.bf16 %v11202_v20 }
 0x51f   : > { %7643 = vmatpush.msk.msra.mxu1 %vm426_vm13, %v2670_v25  ;;  %v2476_v25 = vmul.f32 0.2, %v2381_v52 }
 0x520   : > { %v2473_v7 = vmul.f32 0.2, %v2462_v51  ;;  %v2713_v55 = vpop.permute.xlu0 %2712  ;;  %16215 = vst [vmem:[#allocation11_spill] sm:$0xff] %v11305_v58 }
 0x521   : > { %v11300_v32 = vpop.permute.xlu1 %2714  ;;  %7644 = vmatpush.msk.msra.mxu1 %vm424_vm14, %v2627_v42  ;;  %v11346_v31 = vmax.f32 %v2381_v52, %v2476_v25 }
 0x522   : > { %v11307_v1 = vmax.f32 %v2462_v51, %v2473_v7  ;;  %v2725_v62 = vsel %vm2718_vm8, %v2713_v55, %v11300_v32  ;;  %v2439_v55 = vadd.f32 %v2438_v34, %v2410_v26  ;;  %v16222_v34 = vunpack.i.l.bf16 %v11142_v43  ;;  %v16223_v26 = vld [vmem:[#allocation3_spill] sm:$0xff] }
 0x523   : > { %7645 = vmatpush.msk.msra.mxu1 %vm424_vm14, %v2625_v15  ;;  %7656 = vmatpush.msk.msra.mxu3 %vm424_vm14, %v2725_v62  ;;  %16218 = vst [vmem:[#allocation21_spill] sm:$0xff] %v11346_v31 }
 0x524   : > { %16216 = vst [vmem:[#allocation19_spill] sm:$0xff] %v11307_v1  ;;  %3110 = vrot.lane.b32.xlu0 %v11305_v58, %s8782_s23  ;;  %3108 = vrot.lane.b32.xlu2 %v11307_v1, %s8782_s23  ;;  %v2662_v10 = vpop.permute.xlu2 %2661 }
 0x525   : > { %7646 = vmatpush.msk.msra.mxu1 %vm424_vm14, %v2623_v38  ;;  %v2464_v14 = vpop.f32.mrf.mxu0 }
 0x526   : > { %v2465_v12 = vadd.f32 %v2464_v14, %v2436_v50 }
 0x527   : > { %7647 = vmatpush.msk.msra.mxu1 %vm424_vm14, %v2621_v28 }
 0x528   : > { %v2475_v30 = vmul.f32 0.2, %v2465_v12  ;;  %v11336_v51 = vpop.permute.xlu0 %2708 }
 0x529   : > { %v2701_v63 = vpop.permute.xlu1 %2700  ;;  %v2723_v42 = vsel %vm2718_vm8, %v11218_v27, %v11336_v51  ;;  %v11359_v27 = vld [vmem:[%s15911_s1 + $0x148] sm:$0xff] }
 0x52a   : > { %v11342_v49 = vmax.f32 %v2465_v12, %v2475_v30  ;;  %7657 = vmatpush.msk.msra.mxu3 %vm424_vm14, %v2723_v42  ;;  %v2721_v7 = vsel %vm2718_vm8, %v2701_v63, %v11259_v18  ;;  %7665 = vmatmul.msk.f32.gmra.mxu2 %vm959_vm9, %v11359_v27  ;;  %v16221_v30 = vld [vmem:[#allocation4_spill] sm:$0xff]  ;;  %v11383_v42 = vld [vmem:[%s15911_s1 + $0x160] sm:$0xff] }
 0x52c   : > { %16217 = vst [vmem:[#allocation22_spill] sm:$0xff] %v11342_v49  ;;  %7658 = vmatpush.msk.msra.mxu3 %vm424_vm14, %v2721_v7  ;;  %3112 = vrot.lane.b32.xlu1 %v11342_v49, %s8782_s23  ;;  %v11361_v54 = vpop.permute.xlu2 %2716 }
 0x52d   : > { %3114 = vrot.lane.b32.xlu2 %v11346_v31, %s8782_s23  ;;  %v2467_v57 = vpop.f32.mrf.mxu0 }
 0x52e   : > { %v2468_v15 = vadd.f32 %v2467_v57, %v2439_v55 }
 0x530   : > { %v2477_v62 = vmul.f32 0.2, %v2468_v15  ;;  %v8349_v52 = vpop.permute.xlu0 %8348 }
 0x531   : > { %v2695_v38 = vpop.permute.xlu1 %2694  ;;  %v8351_v50 = vunpack.i.h.bf16 %v8349_v52  ;;  %v8350_v14 = vunpack.i.l.bf16 %v8349_v52  ;;  %v16224_v52 = vld [vmem:[#allocation9_spill] sm:$0xff] }
 0x532   : > { %v11365_v12 = vmax.f32 %v2468_v15, %v2477_v62  ;;  %v2719_v28 = vsel %vm2718_vm8, %v2695_v38, %v11287_v0  ;;  %7666 = vmatmul.msk.f32.gmra.mxu2 %vm959_vm9, %v11383_v42 }
 0x533   : > { %7659 = vmatpush.msk.msra.mxu3 %vm424_vm14, %v2719_v28  ;;  %v2814_v25 = vsel %vm2807_vm12, %v8350_v14, %v16220_v22  ;;  %v2812_v63 = vsel %vm2807_vm12, %v8351_v50, %v16222_v34  ;;  %vm425_vm14 = vcmp.lt.s32.totalorder %v9195_v4, 12  ;;  %v11396_v50 = vld [vmem:[%s15911_s1 + $0x128] sm:$0xff]  ;;  %v16225_v28 = vld [vmem:[#allocation18_spill] sm:$0xff]  ;;  %v16226_v22 = vunpack.i.l.bf16 %v11175_v40 }
 0x534   : > { %16219 = vst [vmem:[#allocation23_spill] sm:$0xff] %v11365_v12  ;;  %2880 = vmatpush.msra.mxu1 %v2814_v25  ;;  %3116 = vrot.lane.b32.xlu0 %v11365_v12, %s8782_s23  ;;  %v2766_v55 = vpop.permute.xlu2 %2765 }
 0x535   : > { %2913 = vmatpush.msra.mxu3 %v16221_v30  ;;  %v2770_v14 = vsel %vm2620_vm7, %v11147_v44, %v2766_v55  ;;  %v11413_v44 = vld [vmem:[%s15911_s1 + $0x178] sm:$0xff]  ;;  %v16227_v30 = vunpack.i.l.bf16 %v11196_v21 }
 0x536   : > { %2881 = vmatpush.msra.mxu1 %v2812_v63 }
 0x537   : > { %2914 = vmatpush.msra.mxu3 %v16223_v26 }
 0x538   : > { %v8354_v7 = vpop.permute.xlu0 %8353 }
 0x539   : > { %v2668_v57 = vpop.permute.xlu1 %2667  ;;  %v8356_v15 = vunpack.i.h.bf16 %v8354_v7  ;;  %v8355_v62 = vunpack.i.l.bf16 %v8354_v7  ;;  %2915 = vmatpush.msra.mxu3 %v16224_v52 }
 0x53a   : > { %v2677_v38 = vsel %vm2669_vm15, %v11238_v48, %v2668_v57  ;;  %v2675_v48 = vsel %vm2669_vm15, %v11264_v3, %v2662_v10  ;;  %v2673_v3 = vsel %vm2669_vm15, %v11135_v23, %v11200_v5  ;;  %7667 = vmatmul.msk.f32.gmra.mxu2 %vm959_vm9, %v11413_v44  ;;  %v2671_v10 = vsel %vm2669_vm15, %v11119_v46, %v11189_v6  ;;  %v11442_v23 = vld [vmem:[%s15911_s1 + $0x140] sm:$0xff] }
 0x53b   : > { %2916 = vmatpush.msra.mxu3 %v16225_v28  ;;  %7668 = vmatpush.msk.msrb.mxu0 %vm427_vm4, %v2677_v38  ;;  %v2810_v25 = vsel %vm2807_vm12, %v8355_v62, %v16226_v22  ;;  %v2808_v34 = vsel %vm2807_vm12, %v8356_v15, %v16227_v30  ;;  %v16234_v38 = vld [vmem:[#allocation26_spill] sm:$0xff]  ;;  %v16238_v22 = vld [vmem:[#allocation8_spill] sm:$0xff] }
 0x53c   : > { %2882 = vmatpush.msra.mxu1 %v2810_v25  ;;  %2917 = vmatmul.f32.vlgmr.msra.gmra.mxu3 %v11396_v50 }
 0x53d   : > { %7688 = vmatpush.msk.msrb.mxu3 %vm425_vm14, %v2770_v14  ;;  %7669 = vmatpush.msk.msrb.mxu0 %vm427_vm4, %v2675_v48 }
 0x53e   : > { %2883 = vmatpush.msra.mxu1 %v2808_v34 }
 0x53f   : > { %7670 = vmatpush.msk.msrb.mxu0 %vm427_vm4, %v2673_v3 }
 0x540   : > { %v8359_v63 = vpop.permute.xlu0 %8358  ;;  %7648 = vmatpush.msk.msra.mxu1 %vm426_vm13, %v11001_v19  ;;  %v7624_v19 = vld [vmem:[%s15911_s1 + $0x120] sm:$0xff] }
 0x541   : > { %v8364_v26 = vpop.permute.xlu1 %8363  ;;  %7671 = vmatpush.msk.msrb.mxu0 %vm427_vm4, %v2671_v10  ;;  %v8360_v5 = vunpack.i.l.bf16 %v8359_v63  ;;  %v8361_v46 = vunpack.i.h.bf16 %v8359_v63 }
 0x542   : > { %7649 = vmatpush.msk.msra.mxu1 %vm426_vm13, %v10958_v29  ;;  %v2762_v29 = vpop.permute.xlu2 %2761 }
 0x543   : > { %7672 = vmatpush.msk.msrb.mxu0 %vm425_vm14, %v11154_v56  ;;  %v8365_v56 = vunpack.i.l.bf16 %v8364_v26 }
 0x544   : > { %7650 = vmatpush.msk.msra.mxu1 %vm426_vm13, %v10876_v39  ;;  %2920 = vmatmul.f32.gmra.mxu3 %v11442_v23  ;;  %v16228_v39 = vunpack.i.h.bf16 %v11202_v20  ;;  %v16230_v20 = vunpack.i.h.bf16 %v11175_v40 }
 0x545   : > { %7673 = vmatpush.msk.msrb.mxu0 %vm425_vm14, %v11162_v59  ;;  %v8366_v59 = vunpack.i.h.bf16 %v8364_v26 }
 0x546   : > { %7651 = vmatpush.msk.msra.mxu1 %vm426_vm13, %v10735_v2  ;;  %v2835_v6 = vsel %vm2807_vm12, %v16228_v39, %v8360_v5  ;;  %v16229_v2 = vunpack.i.h.bf16 %v11142_v43  ;;  %v2833_v15 = vsel %vm2807_vm12, %v16230_v20, %v8365_v56  ;;  %v16231_v43 = vunpack.i.h.bf16 %v11196_v21 }
 0x547   : > { %7674 = vmatpush.msk.msrb.mxu0 %vm425_vm14, %v11173_v16  ;;  %2888 = vmatmul.f32.vlgmr.msra.gmra.mxu1 %v7624_v19  ;;  %v7631_v16 = vld [vmem:[%s15911_s1 + $0x158] sm:$0xff] }
 0x548   : > { %2988 = vmatpush.msrb.mxu1 %v2835_v6  ;;  %v2711_v7 = vpop.permute.xlu0 %2710  ;;  %v2834_v57 = vsel %vm2807_vm12, %v16229_v2, %v8361_v46  ;;  %v2832_v62 = vsel %vm2807_vm12, %v16231_v43, %v8366_v59 }
 0x549   : > { %v2705_v55 = vpop.permute.xlu1 %2704  ;;  %7675 = vmatpush.msk.msrb.mxu0 %vm425_vm14, %v11185_v47  ;;  %v7627_v47 = vld [vmem:[%s15911_s1 + $0x138] sm:$0xff] }
 0x54a   : > { %2989 = vmatpush.msrb.mxu1 %v2834_v57 }
 0x54b   : > { %2967 = vmatpush.msrb.mxu0 %v11215_v8  ;;  %v11487_v8 = vpop.permute.xlu2 %2847 }
 0x54c   : > { %2990 = vmatpush.msrb.mxu1 %v2833_v15  ;;  %2923 = vmatmul.f32.gmra.mxu3 %v7631_v16 }
 0x54d   : > { %2968 = vmatpush.msrb.mxu0 %v11227_v61  ;;  %v2724_v61 = vsel %vm2718_vm8, %v11336_v51, %v2711_v7  ;;  %v16236_v51 = vld [vmem:[#allocation6_spill] sm:$0xff] }
 0x54e   : > { %2991 = vmatpush.msrb.mxu1 %v2832_v62 }
 0x54f   : > { %2969 = vmatpush.msrb.mxu0 %v11235_v9  ;;  %2891 = vmatmul.f32.gmra.mxu1 %v7627_v47  ;;  %v2768_v9 = vsel %vm2620_vm7, %v11125_v37, %v2762_v29  ;;  %v2726_v37 = vsel %vm2718_vm8, %v11300_v32, %v11361_v54  ;;  %v16237_v54 = vld [vmem:[#allocation7_spill] sm:$0xff] }
 0x550   : > { %7680 = vmatpush.msk.msrb.mxu1 %vm427_vm4, %v11013_v33  ;;  %v2699_v40 = vpop.permute.xlu0 %2698  ;;  %v7634_v33 = vld [vmem:[%s15911_s1 + $0x170] sm:$0xff] }
 0x551   : > { %v2764_v52 = vpop.permute.xlu1 %2763  ;;  %2970 = vmatpush.msrb.mxu0 %v11249_v53  ;;  %v16232_v53 = vld [vmem:[#allocation20_spill] sm:$0xff]  ;;  %v2720_v32 = vsel %vm2718_vm8, %v11287_v0, %v2699_v40 }
 0x552   : > { %v2769_v21 = vsel %vm2620_vm7, %v11137_v45, %v2764_v52  ;;  %7681 = vmatpush.msk.msrb.mxu1 %vm427_vm4, %v10991_v11  ;;  %v7630_v11 = vld [vmem:[%s15911_s1 + $0x150] sm:$0xff] }
 0x553   : > { %7676 = vmatpush.msk.msrb.mxu0 %vm427_vm4, %v11009_v60  ;;  %7689 = vmatpush.msk.msrb.mxu3 %vm425_vm14, %v2769_v21  ;;  %v16233_v60 = vld [vmem:[#allocation32_spill] sm:$0xff] }
 0x554   : > { %7682 = vmatpush.msk.msrb.mxu1 %vm427_vm4, %v16232_v53  ;;  %2926 = vmatmul.f32.gmra.mxu3 %v7634_v33 }
 0x555   : > { %7677 = vmatpush.msk.msrb.mxu0 %vm427_vm4, %v10975_v35  ;;  %7690 = vmatpush.msk.msrb.mxu3 %vm425_vm14, %v2768_v9 }
 0x556   : > { %7683 = vmatpush.msk.msrb.mxu1 %vm427_vm4, %v16233_v60 }
 0x557   : > { %7678 = vmatpush.msk.msrb.mxu0 %vm427_vm4, %v10940_v17  ;;  %2894 = vmatmul.f32.gmra.mxu1 %v7630_v11  ;;  %v2722_v17 = vsel %vm2718_vm8, %v11259_v18, %v2705_v55  ;;  %v16235_v18 = vld [vmem:[#allocation29_spill] sm:$0xff]  ;;  %vm16288_vm8 = vcmask 482304  }
 0x558   : > { %7684 = vmatpush.msk.msrb.mxu1 %vm425_vm14, %v2726_v37  ;;  %v2760_v35 = vpop.permute.xlu0 %2759  ;;  %v11530_v45 = vpop.permute.xlu2 %3102 }
 0x559   : > { %v2767_v14 = vsel %vm2620_vm7, %v16234_v38, %v2760_v35  ;;  %7679 = vmatpush.msk.msrb.mxu0 %vm427_vm4, %v10870_v36  ;;  %3166 = vst.msk [vmem:[#allocation2] sm:$0xff] %vm518_vm0, %v11530_v45  ;;  %v7633_v36 = vld [vmem:[%s15911_s1 + $0x168] sm:$0xff]  ;;  %v2843_v28 = vpop.permute.xlu1 %2842  ;;  %vm16282_vm7 = vcmask 359424  }
 0x55a   : > { %2975 = vmatmul.f32.vlgmr.msrb.gmra.mxu0 %v7624_v19  ;;  %7685 = vmatpush.msk.msrb.mxu1 %vm425_vm14, %v2724_v61  ;;  %vm16284_vm12 = vmmov %vm16282_vm7 }
 0x55b   : > { %7691 = vmatpush.msk.msrb.mxu3 %vm425_vm14, %v2767_v14  ;;  %vm16287_vm13 = vmmov %vm16282_vm7 }
 0x55c   : > { %7686 = vmatpush.msk.msrb.mxu1 %vm425_vm14, %v2722_v17  ;;  %7692 = vmatmul.msk.f32.vlgmr.msrb.gmra.mxu3 %vm959_vm9, %v11327_v24  ;;  %vm16289_vm4 = vmmov %vm16282_vm7 }
 0x55e   : > { %7687 = vmatpush.msk.msrb.mxu1 %vm425_vm14, %v2720_v32  ;;  %vm16291_vm14 = vmmov %vm16288_vm8 }
 0x55f   : > { %2897 = vmatmul.f32.gmra.mxu1 %v7633_v36 }
 0x560   : > { %3000 = vmatpush.msrb.mxu1 %v16235_v18 }
 0x561   : > { %v11568_v0 = vpop.permute.xlu1 %2857 }
 0x562   : > { %2978 = vmatmul.f32.gmra.mxu0 %v7627_v47  ;;  %3001 = vmatpush.msrb.mxu1 %v16236_v51 }
 0x564   : > { %3002 = vmatpush.msrb.mxu1 %v16237_v54  ;;  %7693 = vmatmul.msk.f32.gmra.mxu3 %vm959_vm9, %v11359_v27 }
 0x566   : > { %3003 = vmatpush.msrb.mxu1 %v16238_v22 }
 0x567   : > { %3004 = vmatmul.f32.vlgmr.msrb.gmra.mxu1 %v11396_v50 }
 0x56a   : > { %2981 = vmatmul.f32.gmra.mxu0 %v7630_v11 }
 0x56c   : > { %7694 = vmatmul.msk.f32.gmra.mxu3 %vm959_vm9, %v11383_v42  ;;  %v2853_v42 = vpop.permute.xlu0 %2852 }
 0x56f   : > { %3007 = vmatmul.f32.gmra.mxu1 %v11442_v23 }
 0x572   : > { %2984 = vmatmul.f32.gmra.mxu0 %v7633_v36 }
 0x574   : > { %7695 = vmatmul.msk.f32.gmra.mxu3 %vm959_vm9, %v11413_v44 }
 0x577   : > { %3010 = vmatmul.f32.gmra.mxu1 %v7631_v16 }
 0x578   : > { %v11572_v24 = vpop.permute.xlu1 %3106 }
 0x579   : > { %3169 = vst.msk [vmem:[#allocation2 + $0x20] sm:$0xff] %vm518_vm0, %v11572_v24 }
 0x57e   : > { %v11576_v27 = vpop.permute.xlu2 %3108 }
 0x57f   : > { %3171 = vst.msk [vmem:[#allocation2 + $0x30] sm:$0xff] %vm501_vm1, %v11576_v27  ;;  %3013 = vmatmul.f32.gmra.mxu1 %v7634_v33 }
 0x587   : > { %v11580_v50 = vpop.permute.xlu2 %3114 }
 0x588   : > { %3175 = vst.msk [vmem:[#allocation2 + $0x60] sm:$0xff] %vm518_vm0, %v11580_v50 }
 0x58e   : > { %v11584_v25 = vpop.permute.xlu0 %3104 }
 0x58f   : > { %3168 = vst.msk [vmem:[#allocation2 + $0x10] sm:$0xff] %vm501_vm1, %v11584_v25 }
 0x596   : > { %v11588_v48 = vpop.permute.xlu0 %3110 }
 0x597   : > { %3172 = vst.msk [vmem:[#allocation2 + $0x40] sm:$0xff] %vm518_vm0, %v11588_v48 }
 0x59b   : > { %v2947_v10 = vpop.f32.mrf.mxu2 }
 0x59e   : > { %v11592_v44 = vpop.permute.xlu1 %3112 }
 0x59f   : > { %3174 = vst.msk [vmem:[#allocation2 + $0x50] sm:$0xff] %vm501_vm1, %v11592_v44 }
 0x5a6   : > { %v11596_v30 = vpop.permute.xlu0 %3116 }
 0x5a7   : > { %3177 = vst.msk [vmem:[#allocation2 + $0x70] sm:$0xff] %vm501_vm1, %v11596_v30 }
 0x5ad   : > { %v2950_v39 = vpop.f32.mrf.mxu2 }
 0x5b5   : > { %v2953_v33 = vpop.f32.mrf.mxu2 }
 0x5bd   : > { %v2956_v54 = vpop.f32.mrf.mxu2 }
 0x5bf   : > { %v2918_v34 = vpop.f32.mrf.mxu3 }
 0x5c4   : > { %v2889_v3 = vpop.f32.mrf.mxu1 }
 0x5c5   : > { %v2890_v63 = vadd.f32 %v2889_v3, %v2843_v28 }
 0x5c7   : > { %v2919_v26 = vadd.f32 %v2918_v34, %v2890_v63  ;;  %v2921_v23 = vpop.f32.mrf.mxu3 }
 0x5c9   : > { %v2948_v5 = vadd.f32 %v2947_v10, %v2919_v26 }
 0x5cb   : > { %v3046_v19 = vmul.f32 0.2, %v2948_v5 }
 0x5cc   : > { %v2892_v46 = vpop.f32.mrf.mxu1 }
 0x5cd   : > { %v11600_v29 = vmax.f32 %v2948_v5, %v3046_v19  ;;  %v2893_v56 = vadd.f32 %v2892_v46, %v11487_v8 }
 0x5cf   : > { %16239 = vst [vmem:[#allocation14_spill] sm:$0xff] %v11600_v29  ;;  %v2922_v6 = vadd.f32 %v2921_v23, %v2893_v56  ;;  %3118 = vrot.lane.b32.xlu1 %v11600_v29, %s8782_s23  ;;  %v2924_v7 = vpop.f32.mrf.mxu3 }
 0x5d1   : > { %v2951_v59 = vadd.f32 %v2950_v39, %v2922_v6 }
 0x5d3   : > { %v3048_v55 = vmul.f32 0.2, %v2951_v59 }
 0x5d4   : > { %v2895_v2 = vpop.f32.mrf.mxu1 }
 0x5d5   : > { %v11605_v57 = vmax.f32 %v2951_v59, %v3048_v55  ;;  %v2896_v43 = vadd.f32 %v2895_v2, %v2853_v42 }
 0x5d7   : > { %16240 = vst [vmem:[#allocation17_spill] sm:$0xff] %v11605_v57  ;;  %3122 = vrot.lane.b32.xlu0 %v11605_v57, %s8782_s23  ;;  %v2927_v16 = vpop.f32.mrf.mxu3  ;;  %v2976_v20 = vpop.f32.mrf.mxu0  ;;  %v2925_v9 = vadd.f32 %v2924_v7, %v2896_v43  ;;  %v11689_v43 = vld [vmem:[#allocation2 + $0x50] sm:$0xff] }
 0x5d8   : > { %v2977_v62 = vadd.f32 %v2976_v20, %v2843_v28  ;;  %v11634_v20 = vld [vmem:[#allocation2] sm:$0xff] }
 0x5d9   : > { %v2954_v37 = vadd.f32 %v2953_v33, %v2925_v9 }
 0x5db   : > { %v3050_v32 = vmul.f32 0.2, %v2954_v37 }
 0x5dc   : > { %v2898_v15 = vpop.f32.mrf.mxu1 }
 0x5dd   : > { %v2899_v35 = vadd.f32 %v2898_v15, %v11568_v0  ;;  %v11615_v34 = vmax.f32 %v2954_v37, %v3050_v32  ;;  %v11647_v15 = vld [vmem:[#allocation2 + $0x10] sm:$0xff] }
 0x5df   : > { %v3034_v47 = vpop.f32.mrf.mxu3  ;;  %v2979_v40 = vpop.f32.mrf.mxu0  ;;  %v2928_v18 = vadd.f32 %v2927_v16, %v2899_v35  ;;  %16242 = vst [vmem:[#allocation13_spill] sm:$0xff] %v11615_v34 }
 0x5e0   : > { %v2980_v61 = vadd.f32 %v2979_v40, %v11487_v8 }
 0x5e1   : > { %v2957_v3 = vadd.f32 %v2956_v54, %v2928_v18 }
 0x5e3   : > { %v3052_v23 = vmul.f32 0.2, %v2957_v3 }
 0x5e4   : > { %v3005_v52 = vpop.f32.mrf.mxu1 }
 0x5e5   : > { %v3006_v21 = vadd.f32 %v3005_v52, %v2977_v62  ;;  %v11623_v56 = vmax.f32 %v2957_v3, %v3052_v23  ;;  %v11710_v62 = vld [vmem:[#allocation2 + $0x70] sm:$0xff] }
 0x5e7   : > { %v3035_v53 = vadd.f32 %v3034_v47, %v3006_v21  ;;  %v3037_v60 = vpop.f32.mrf.mxu3  ;;  %v2982_v36 = vpop.f32.mrf.mxu0  ;;  %16244 = vst [vmem:[#allocation16_spill] sm:$0xff] %v11623_v56  ;;  %v11668_v47 = vld [vmem:[#allocation2 + $0x30] sm:$0xff] }
 0x5e8   : > { %v2983_v10 = vadd.f32 %v2982_v36, %v2853_v42 }
 0x5e9   : > { %v3047_v11 = vmul.f32 0.2, %v3035_v53 }
 0x5eb   : > { %v11611_v38 = vmax.f32 %v3035_v53, %v3047_v11 }
 0x5ec   : > { %v3008_v14 = vpop.f32.mrf.mxu1 }
 0x5ed   : > { %16241 = vst [vmem:[#allocation24_spill] sm:$0xff] %v11611_v38  ;;  %v3009_v17 = vadd.f32 %v3008_v14, %v2980_v61  ;;  %3120 = vrot.lane.b32.xlu2 %v11611_v38, %s8782_s23 }
 0x5ef   : > { %v3038_v51 = vadd.f32 %v3037_v60, %v3009_v17  ;;  %v3040_v22 = vpop.f32.mrf.mxu3  ;;  %v2985_v19 = vpop.f32.mrf.mxu0 }
 0x5f0   : > { %v2986_v39 = vadd.f32 %v2985_v19, %v11568_v0  ;;  %v11639_v0 = vsel %vm501_vm1, %v11530_v45, %v11584_v25  ;;  %v11655_v45 = vld [vmem:[#allocation2 + $0x20] sm:$0xff]  ;;  %v11660_v25 = vsel %vm501_vm1, %v11572_v24, %v11576_v27  ;;  %v11681_v27 = vsel %vm501_vm1, %v11588_v48, %v11592_v44 }
 0x5f1   : > { %v3049_v28 = vmul.f32 0.2, %v3038_v51  ;;  %16247 = vst [vmem:[#allocation5_spill] sm:$0xff] %v11660_v25  ;;  %v11676_v24 = vld [vmem:[#allocation2 + $0x40] sm:$0xff]  ;;  %v11702_v44 = vsel %vm501_vm1, %v11580_v50, %v11596_v30 }
 0x5f2   : > { %16248 = vst [vmem:[#allocation30_spill] sm:$0xff] %v11676_v24  ;;  %v11697_v48 = vld [vmem:[#allocation2 + $0x60] sm:$0xff]  ;;  %v11721_v30 = vpack.i.bf16 %v11681_v27, %v11676_v24 }
 0x5f3   : > { %v11617_v63 = vmax.f32 %v3038_v51, %v3049_v28  ;;  %16249 = vst [vmem:[#allocation4_spill] sm:$0xff] %v11702_v44  ;;  %v11736_v33 = vpack.i.bf16 %v11702_v44, %v11697_v48 }
 0x5f4   : > { %v3011_v8 = vpop.f32.mrf.mxu1 }
 0x5f5   : > { %16243 = vst [vmem:[#allocation12_spill] sm:$0xff] %v11617_v63  ;;  %v3012_v26 = vadd.f32 %v3011_v8, %v2983_v10  ;;  %3124 = vrot.lane.b32.xlu1 %v11617_v63, %s8782_s23  ;;  %3126 = vrot.lane.b32.xlu2 %v11615_v34, %s8782_s23 }
 0x5f7   : > { %v3041_v5 = vadd.f32 %v3040_v22, %v3012_v26  ;;  %v3043_v7 = vpop.f32.mrf.mxu3 }
 0x5f9   : > { %v3051_v46 = vmul.f32 0.2, %v3041_v5 }
 0x5fb   : > { %v11626_v6 = vmax.f32 %v3041_v5, %v3051_v46 }
 0x5fc   : > { %v3014_v42 = vpop.f32.mrf.mxu1 }
 0x5fd   : > { %16245 = vst [vmem:[#allocation31_spill] sm:$0xff] %v11626_v6  ;;  %v3015_v59 = vadd.f32 %v3014_v42, %v2986_v39  ;;  %3128 = vrot.lane.b32.xlu0 %v11626_v6, %s8782_s23  ;;  %3130 = vrot.lane.b32.xlu1 %v11623_v56, %s8782_s23 }
 0x5ff   : > { %v3044_v55 = vadd.f32 %v3043_v7, %v3015_v59 }
 0x601   : > { %v3053_v2 = vmul.f32 0.2, %v3044_v55 }
 0x603   : > { %v11632_v16 = vmax.f32 %v3044_v55, %v3053_v2 }
 0x605   : > { %16246 = vst [vmem:[#allocation10_spill] sm:$0xff] %v11632_v16  ;;  %3132 = vrot.lane.b32.xlu2 %v11632_v16, %s8782_s23  ;;  %3238 = vrot.lane.b32.xlu0 %v11634_v20, %s8783_s24 }
 0x606   : > { %3240 = vrot.lane.b32.xlu1 %v11639_v0, %s8783_s24 }
 0x60d   : > { %3242 = vrot.lane.b32.xlu2 %v11647_v15, %s8783_s24  ;;  %3334 = vrot.lane.b32.xlu0 %v11634_v20, %s8784_s25 }
 0x60e   : > { %3336 = vrot.lane.b32.xlu1 %v11639_v0, %s8784_s25 }
 0x615   : > { %3338 = vrot.lane.b32.xlu2 %v11647_v15, %s8784_s25  ;;  %3244 = vrot.lane.b32.xlu0 %v11655_v45, %s8783_s24 }
 0x616   : > { %3246 = vrot.lane.b32.xlu1 %v11660_v25, %s8783_s24 }
 0x61d   : > { %3340 = vrot.lane.b32.xlu0 %v11655_v45, %s8784_s25  ;;  %3248 = vrot.lane.b32.xlu2 %v11668_v47, %s8783_s24 }
 0x61e   : > { %3342 = vrot.lane.b32.xlu1 %v11660_v25, %s8784_s25 }
 0x625   : > { %3250 = vrot.lane.b32.xlu0 %v11676_v24, %s8783_s24  ;;  %3344 = vrot.lane.b32.xlu2 %v11668_v47, %s8784_s25 }
 0x626   : > { %3252 = vrot.lane.b32.xlu1 %v11681_v27, %s8783_s24 }
 0x62d   : > { %3346 = vrot.lane.b32.xlu0 %v11676_v24, %s8784_s25  ;;  %3254 = vrot.lane.b32.xlu2 %v11689_v43, %s8783_s24 }
 0x62e   : > { %3348 = vrot.lane.b32.xlu1 %v11681_v27, %s8784_s25 }
 0x635   : > { %3350 = vrot.lane.b32.xlu2 %v11689_v43, %s8784_s25  ;;  %3256 = vrot.lane.b32.xlu0 %v11697_v48, %s8783_s24 }
 0x636   : > { %3258 = vrot.lane.b32.xlu1 %v11702_v44, %s8783_s24 }
 0x63d   : > { %3260 = vrot.lane.b32.xlu2 %v11710_v62, %s8783_s24  ;;  %3352 = vrot.lane.b32.xlu0 %v11697_v48, %s8784_s25 }
 0x63e   : > { %3354 = vrot.lane.b32.xlu1 %v11702_v44, %s8784_s25 }
 0x641   : > { %v3119_v50 = vpop.permute.xlu1 %3118 }
 0x642   : > { %3178 = vst.msk [vmem:[#allocation2 + $0x80] sm:$0xff] %vm518_vm0, %v3119_v50 }
 0x645   : > { %3356 = vrot.lane.b32.xlu2 %v11710_v62, %s8784_s25  ;;  %8368 = vrot.lane.b32.xlu0 %v11721_v30, %s8790_s30 }
 0x647   : > { %v3121_v40 = vpop.permute.xlu2 %3120 }
 0x648   : > { %v11728_v52 = vsel %vm501_vm1, %v3119_v50, %v3121_v40  ;;  %3180 = vst.msk [vmem:[#allocation2 + $0x90] sm:$0xff] %vm501_vm1, %v3121_v40 }
 0x649   : > { %v3123_v21 = vpop.permute.xlu0 %3122  ;;  %3264 = vrot.lane.b32.xlu1 %v11728_v52, %s8783_s24  ;;  %v11747_v11 = vld [vmem:[#allocation2 + $0x80] sm:$0xff] }
 0x64a   : > { %3181 = vst.msk [vmem:[#allocation2 + $0xa0] sm:$0xff] %vm518_vm0, %v3123_v21  ;;  %v11762_v35 = vpack.i.bf16 %v11728_v52, %v11747_v11 }
 0x64d   : > { %8373 = vrot.lane.b32.xlu0 %v11736_v33, %s8790_s30 }
 0x64f   : > { %v3127_v9 = vpop.permute.xlu2 %3126  ;;  %v11740_v53 = vld [vmem:[#allocation2 + $0x90] sm:$0xff] }
 0x650   : > { %16250 = vst [vmem:[#allocation3_spill] sm:$0xff] %v11740_v53  ;;  %3266 = vrot.lane.b32.xlu2 %v11740_v53, %s8783_s24 }
 0x651   : > { %3184 = vst.msk [vmem:[#allocation2 + $0xc0] sm:$0xff] %vm518_vm0, %v3127_v9  ;;  %3360 = vrot.lane.b32.xlu1 %v11728_v52, %s8784_s25  ;;  %v11753_v60 = vld [vmem:[#allocation2 + $0xa0] sm:$0xff] }
 0x655   : > { %3262 = vrot.lane.b32.xlu0 %v11747_v11, %s8783_s24 }
 0x658   : > { %3362 = vrot.lane.b32.xlu2 %v11740_v53, %s8784_s25  ;;  %v11800_v10 = vld [vmem:[#allocation2 + $0xc0] sm:$0xff] }
 0x659   : > { %3460 = vrot.lane.b32.xlu1 %v11753_v60, %s8785_s26 }
 0x65d   : > { %3358 = vrot.lane.b32.xlu0 %v11747_v11, %s8784_s25 }
 0x65f   : > { %v3133_v37 = vpop.permute.xlu2 %3132 }
 0x660   : > { %3189 = vst.msk [vmem:[#allocation2 + $0xf0] sm:$0xff] %vm501_vm1, %v3133_v37 }
 0x665   : > { %8378 = vrot.lane.b32.xlu0 %v11762_v35, %s8790_s30 }
 0x667   : > { %v3125_v61 = vpop.permute.xlu1 %3124  ;;  %v11772_v17 = vpop.permute.xlu2 %3242 }
 0x668   : > { %v11767_v14 = vsel %vm501_vm1, %v3123_v21, %v3125_v61  ;;  %3183 = vst.msk [vmem:[#allocation2 + $0xb0] sm:$0xff] %vm501_vm1, %v3125_v61  ;;  %v11855_v21 = vpack.i.bf16 %v11660_v25, %v11655_v45  ;;  %v11869_v61 = vpack.i.bf16 %v11639_v0, %v11634_v20 }
 0x669   : > { %3270 = vrot.lane.b32.xlu1 %v11767_v14, %s8783_s24  ;;  %16251 = vst [vmem:[#allocation9_spill] sm:$0xff] %v11772_v17  ;;  %v11810_v26 = vpack.i.bf16 %v11767_v14, %v11753_v60 }
 0x66d   : > { %3268 = vrot.lane.b32.xlu0 %v11753_v60, %s8783_s24 }
 0x66f   : > { %v3129_v36 = vpop.permute.xlu0 %3128  ;;  %v3131_v32 = vpop.permute.xlu1 %3130  ;;  %v11776_v18 = vld [vmem:[#allocation2 + $0xb0] sm:$0xff] }
 0x670   : > { %16252 = vst [vmem:[#allocation18_spill] sm:$0xff] %v11776_v18  ;;  %v11779_v51 = vsel %vm501_vm1, %v3127_v9, %v3129_v36  ;;  %v11783_v54 = vsel %vm501_vm1, %v3131_v32, %v3133_v37  ;;  %3272 = vrot.lane.b32.xlu2 %v11776_v18, %s8783_s24  ;;  %v11790_v28 = vpop.permute.xlu2 %3338 }
 0x671   : > { %3186 = vst.msk [vmem:[#allocation2 + $0xd0] sm:$0xff] %vm501_vm1, %v3129_v36  ;;  %3366 = vrot.lane.b32.xlu1 %v11767_v14, %s8784_s25  ;;  %v11828_v39 = vpack.i.bf16 %v11779_v51, %v11800_v10 }
 0x672   : > { %3187 = vst.msk [vmem:[#allocation2 + $0xe0] sm:$0xff] %vm518_vm0, %v3131_v32 }
 0x673   : > { %16253 = vst [vmem:[#allocation20_spill] sm:$0xff] %v11790_v28  ;;  %v11877_v28 = vld [vmem:[#allocation2 + $0xf0] sm:$0xff] }
 0x674   : > { %16263 = vst [vmem:[#allocation36_spill] sm:$0xff] %v11877_v28 }
 0x675   : > { %3364 = vrot.lane.b32.xlu0 %v11753_v60, %s8784_s25 }
 0x677   : > { %v11794_v22 = vpop.permute.xlu0 %3238 }
 0x678   : > { %v11796_v3 = vpop.permute.xlu1 %3240  ;;  %3368 = vrot.lane.b32.xlu2 %v11776_v18, %s8784_s25  ;;  %v11806_v8 = vpop.permute.xlu2 %3248  ;;  %v11843_v2 = vld [vmem:[#allocation2 + $0xd0] sm:$0xff] }
 0x679   : > { %3466 = vrot.lane.b32.xlu1 %v11800_v10, %s8785_s26  ;;  %16254 = vst [vmem:[#allocation32_spill] sm:$0xff] %v11806_v8  ;;  %v11820_v19 = vld [vmem:[#allocation2 + $0xe0] sm:$0xff] }
 0x67a   : > { %v8392_v59 = vpack.i.bf16 %v11783_v54, %v11820_v19  ;;  %16259 = vst [vmem:[#allocation8_spill] sm:$0xff] %v11843_v2 }
 0x67d   : > { %3274 = vrot.lane.b32.xlu0 %v11800_v10, %s8783_s24 }
 0x67f   : > { %v11812_v23 = vpop.permute.xlu0 %3334 }
 0x680   : > { %16255 = vst [vmem:[#allocation26_spill] sm:$0xff] %v11812_v23  ;;  %v11814_v5 = vpop.permute.xlu1 %3336  ;;  %8383 = vrot.lane.b32.xlu2 %v11810_v26, %s8790_s30  ;;  %v11830_v42 = vpop.permute.xlu2 %3344 }
 0x681   : > { %16256 = vst [vmem:[#allocation29_spill] sm:$0xff] %v11814_v5  ;;  %3276 = vrot.lane.b32.xlu1 %v11779_v51, %s8783_s24 }
 0x682   : > { %16257 = vst [vmem:[#allocation6_spill] sm:$0xff] %v11830_v42 }
 0x685   : > { %3280 = vrot.lane.b32.xlu0 %v11820_v19, %s8783_s24 }
 0x687   : > { %v11824_v46 = vpop.permute.xlu0 %3244 }
 0x688   : > { %v11832_v7 = vpop.permute.xlu1 %3246  ;;  %3462 = vrot.lane.b32.xlu2 %v11767_v14, %s8785_s26  ;;  %v11851_v40 = vpop.permute.xlu2 %3254 }
 0x689   : > { %8388 = vrot.lane.b32.xlu1 %v11828_v39, %s8790_s30  ;;  %16261 = vst [vmem:[#allocation34_spill] sm:$0xff] %v11851_v40 }
 0x68d   : > { %8393 = vrot.lane.b32.xlu0 %v8392_v59, %s8790_s30 }
 0x68f   : > { %v11841_v55 = vpop.permute.xlu0 %3340 }
 0x690   : > { %16258 = vst [vmem:[#allocation7_spill] sm:$0xff] %v11841_v55  ;;  %v11845_v50 = vpop.permute.xlu1 %3342  ;;  %3278 = vrot.lane.b32.xlu2 %v11843_v2, %s8783_s24  ;;  %v11871_v36 = vpop.permute.xlu2 %3350 }
 0x691   : > { %16260 = vst [vmem:[#allocation33_spill] sm:$0xff] %v11845_v50  ;;  %3472 = vrot.lane.b32.xlu1 %v11820_v19, %s8785_s26 }
 0x692   : > { %16262 = vst [vmem:[#allocation35_spill] sm:$0xff] %v11871_v36 }
 0x695   : > { %8398 = vrot.lane.b32.xlu0 %v11855_v21, %s8790_s30 }
 0x697   : > { %v11859_v9 = vpop.permute.xlu0 %3250 }
 0x698   : > { %3468 = vrot.lane.b32.xlu2 %v11779_v51, %s8785_s26  ;;  %v11863_v37 = vpop.permute.xlu1 %3252  ;;  %v11887_v41 = vpop.permute.xlu2 %3260 }
 0x699   : > { %3282 = vrot.lane.b32.xlu1 %v11783_v54, %s8783_s24  ;;  %16265 = vst [vmem:[#allocation38_spill] sm:$0xff] %v11887_v41 }
 0x69d   : > { %8403 = vrot.lane.b32.xlu0 %v11869_v61, %s8790_s30 }
 0x69f   : > { %v11875_v32 = vpop.permute.xlu0 %3346 }
 0x6a0   : > { %3284 = vrot.lane.b32.xlu2 %v11877_v28, %s8783_s24  ;;  %v11883_v42 = vpop.permute.xlu1 %3348  ;;  %v11901_v12 = vpop.permute.xlu2 %3356 }
 0x6a1   : > { %3454 = vrot.lane.b32.xlu1 %v11747_v11, %s8785_s26  ;;  %16264 = vst [vmem:[#allocation37_spill] sm:$0xff] %v11883_v42 }
 0x6a2   : > { %16266 = vst [vmem:[#allocation39_spill] sm:$0xff] %v11901_v12 }
 0x6a5   : > { %3442 = vrot.lane.b32.xlu0 %v11676_v24, %s8785_s26 }
 0x6a7   : > { %v11889_v36 = vpop.permute.xlu0 %3256 }
 0x6a8   : > { %3474 = vrot.lane.b32.xlu2 %v11783_v54, %s8785_s26  ;;  %v11895_v1 = vpop.permute.xlu1 %3258 }
 0x6a9   : > { %3448 = vrot.lane.b32.xlu1 %v11697_v48, %s8785_s26 }
 0x6aa   : > { %v11913_v6 = vpop.permute.xlu2 %3266 }
 0x6ab   : > { %16268 = vst [vmem:[#allocation41_spill] sm:$0xff] %v11913_v6 }
 0x6ad   : > { %3438 = vrot.lane.b32.xlu0 %v11660_v25, %s8785_s26 }
 0x6af   : > { %v11899_v49 = vpop.permute.xlu0 %3352 }
 0x6b0   : > { %3456 = vrot.lane.b32.xlu2 %v11728_v52, %s8785_s26  ;;  %v11909_v38 = vpop.permute.xlu1 %3354 }
 0x6b1   : > { %3444 = vrot.lane.b32.xlu1 %v11681_v27, %s8785_s26  ;;  %16267 = vst [vmem:[#allocation40_spill] sm:$0xff] %v11909_v38 }
 0x6b2   : > { %v11929_v17 = vpop.permute.xlu2 %3362 }
 0x6b3   : > { %16269 = vst [vmem:[#allocation42_spill] sm:$0xff] %v11929_v17 }
 0x6b5   : > { %3376 = vrot.lane.b32.xlu0 %v11820_v19, %s8784_s25 }
 0x6b7   : > { %v11911_v63 = vpop.permute.xlu0 %8368 }
 0x6b8   : > { %3450 = vrot.lane.b32.xlu2 %v11702_v44, %s8785_s26 }
 0x6b9   : > { %3430 = vrot.lane.b32.xlu1 %v11634_v20, %s8785_s26 }
 0x6bb   : > { %v11923_v16 = vpop.permute.xlu1 %3264 }
 0x6bd   : > { %3372 = vrot.lane.b32.xlu0 %v11779_v51, %s8784_s25 }
 0x6bf   : > { %v11921_v12 = vpop.permute.xlu0 %8373 }
 0x6c0   : > { %3436 = vrot.lane.b32.xlu2 %v11655_v45, %s8785_s26 }
 0x6c1   : > { %3378 = vrot.lane.b32.xlu1 %v11783_v54, %s8784_s25 }
 0x6c3   : > { %v11937_v40 = vpop.permute.xlu1 %3360 }
 0x6c4   : > { %16270 = vst [vmem:[#allocation43_spill] sm:$0xff] %v11937_v40 }
 0x6c5   : > { %3568 = vrot.lane.b32.xlu0 %v11820_v19, %s8786_s27 }
 0x6c7   : > { %v11933_v8 = vpop.permute.xlu0 %3262 }
 0x6c8   : > { %3432 = vrot.lane.b32.xlu2 %v11639_v0, %s8785_s26 }
 0x6c9   : > { %8408 = vrot.lane.b32.xlu1 %v8392_v59, %s8791_s12 }
 0x6ca   : > { %v11940_v41 = vpop.permute.xlu2 %3272 }
 0x6cb   : > { %16271 = vst [vmem:[#allocation44_spill] sm:$0xff] %v11940_v41  ;;  %v11952_v4 = vpop.permute.xlu1 %3460 }
 0x6cd   : > { %3562 = vrot.lane.b32.xlu0 %v11800_v10, %s8786_s27 }
 0x6cf   : > { %v11944_v6 = vpop.permute.xlu0 %3358 }
 0x6d0   : > { %3370 = vrot.lane.b32.xlu2 %v11800_v10, %s8784_s25 }
 0x6d1   : > { %3570 = vrot.lane.b32.xlu1 %v11783_v54, %s8786_s27 }
 0x6d2   : > { %v11950_v17 = vpop.permute.xlu2 %3368 }
 0x6d3   : > { %16272 = vst [vmem:[#allocation45_spill] sm:$0xff] %v11950_v17 }
 0x6d5   : > { %3556 = vrot.lane.b32.xlu0 %v11753_v60, %s8786_s27 }
 0x6d7   : > { %v11956_v59 = vpop.permute.xlu0 %8378 }
 0x6d8   : > { %8413 = vrot.lane.b32.xlu2 %v11828_v39, %s8791_s12 }
 0x6d9   : > { %3564 = vrot.lane.b32.xlu1 %v11779_v51, %s8786_s27 }
 0x6da   : > { %v11962_v41 = vpop.permute.xlu2 %8383 }
 0x6db   : > { %v11964_v58 = vpop.permute.xlu1 %3270 }
 0x6dd   : > { %3550 = vrot.lane.b32.xlu0 %v11747_v11, %s8786_s27 }
 0x6df   : > { %v11968_v17 = vpop.permute.xlu0 %3268 }
 0x6e0   : > { %8418 = vrot.lane.b32.xlu2 %v11810_v26, %s8791_s12 }
 0x6e1   : > { %3558 = vrot.lane.b32.xlu1 %v11767_v14, %s8786_s27 }
 0x6e2   : > { %v11974_v31 = vpop.permute.xlu2 %3462 }
 0x6e3   : > { %v11976_v39 = vpop.permute.xlu1 %3366 }
 0x6e4   : > { %16273 = vst [vmem:[#allocation46_spill] sm:$0xff] %v11976_v39 }
 0x6e5   : > { %8438 = vrot.lane.b32.xlu0 %v11721_v30, %s8791_s12 }
 0x6e7   : > { %v11980_v29 = vpop.permute.xlu0 %3364 }
 0x6e8   : > { %8423 = vrot.lane.b32.xlu2 %v11762_v35, %s8791_s12  ;;  %v12000_v35 = vpack.i.bf16 %v11740_v53, %v11776_v18 }
 0x6e9   : > { %3552 = vrot.lane.b32.xlu1 %v11728_v52, %s8786_s27 }
 0x6ea   : > { %v11986_v57 = vpop.permute.xlu2 %3278  ;;  %16275 = vst [vmem:[#allocation48_spill] sm:$0xff] %v12000_v35 }
 0x6eb   : > { %16274 = vst [vmem:[#allocation47_spill] sm:$0xff] %v11986_v57  ;;  %v3467_v26 = vpop.permute.xlu1 %3466 }
 0x6ed   : > { %8443 = vrot.lane.b32.xlu0 %v11855_v21, %s8791_s12  ;;  %v12008_v21 = vpack.i.bf16 %v11843_v2, %v11877_v28  ;;  %v8380_v2 = vunpack.i.l.bf16 %v11956_v59 }
 0x6ef   : > { %v11990_v34 = vpop.permute.xlu0 %3274  ;;  %16276 = vst [vmem:[#allocation49_spill] sm:$0xff] %v12008_v21 }
 0x6f0   : > { %8428 = vrot.lane.b32.xlu2 %v11736_v33, %s8791_s12 }
 0x6f1   : > { %3544 = vrot.lane.b32.xlu1 %v11697_v48, %s8786_s27 }
 0x6f2   : > { %v11996_v30 = vpop.permute.xlu2 %3468 }
 0x6f3   : > { %v12002_v56 = vpop.permute.xlu1 %3276 }
 0x6f5   : > { %8448 = vrot.lane.b32.xlu0 %v12000_v35, %s8790_s30 }
 0x6f7   : > { %v12010_v57 = vpop.permute.xlu0 %3280 }
 0x6f8   : > { %8433 = vrot.lane.b32.xlu2 %v12008_v21, %s8790_s30 }
 0x6f9   : > { %3538 = vrot.lane.b32.xlu1 %v11676_v24, %s8786_s27 }
 0x6fa   : > { %v12016_v33 = vpop.permute.xlu2 %3284 }
 0x6fb   : > { %16277 = vst [vmem:[#allocation50_spill] sm:$0xff] %v12016_v33  ;;  %v12018_v53 = vpop.permute.xlu1 %8388 }
 0x6fc   : > { %v8390_v21 = vunpack.i.l.bf16 %v12018_v53  ;;  %v16279_v55 = vunpack.i.h.bf16 %v12018_v53 }
 0x6fd   : > { %3534 = vrot.lane.b32.xlu0 %v11660_v25, %s8786_s27  ;;  %v8385_v25 = vunpack.i.l.bf16 %v11962_v41 }
 0x6ff   : > { %v12022_v35 = vpop.permute.xlu0 %8393 }
 0x700   : > { %16278 = vst [vmem:[#allocation51_spill] sm:$0xff] %v12022_v35  ;;  %v16022_v18 = vunpack.i.h.bf16 %v12022_v35  ;;  %v8395_v28 = vunpack.i.l.bf16 %v12022_v35  ;;  %3546 = vrot.lane.b32.xlu2 %v11702_v44, %s8786_s27  ;;  %v16023_v44 = vunpack.i.h.bf16 %v11956_v59  ;;  %v16032_v35 = vunpack.i.h.bf16 %v11921_v12 }
 0x701   : > { %8453 = vrot.lane.b32.xlu1 %v11869_v61, %s8791_s12  ;;  %v3874_v61 = vsel %vm881_vm10, %v8390_v21, %v16279_v55  ;;  %v3490_v55 = vsel %vm685_vm3, %v3467_v26, %v11996_v30 }
 0x702   : > { %v12034_v24 = vpop.permute.xlu2 %3474  ;;  %v3876_v23 = vsel %vm881_vm10, %v8395_v28, %v16022_v18  ;;  %v8375_v28 = vunpack.i.l.bf16 %v11921_v12 }
 0x703   : > { %4006 = vmatpush.msra.mxu2 %v3876_v23  ;;  %v3473_v5 = vpop.permute.xlu1 %3472  ;;  %v16280_v23 = vunpack.i.h.bf16 %v11962_v41 }
 0x704   : > { %v3492_v33 = vsel %vm685_vm3, %v3473_v5, %v12034_v24  ;;  %v16031_v5 = vunpack.i.h.bf16 %v11911_v63 }
 0x705   : > { %3526 = vrot.lane.b32.xlu0 %v11634_v20, %s8786_s27  ;;  %4007 = vmatpush.msra.mxu2 %v3874_v61  ;;  %v3872_v18 = vsel %vm881_vm10, %v8385_v25, %v16280_v23  ;;  %v8370_v61 = vunpack.i.l.bf16 %v11911_v63  ;;  %v3870_v25 = vsel %vm881_vm10, %v8380_v2, %v16023_v44  ;;  %v3868_v2 = vsel %vm881_vm10, %v8375_v28, %v16032_v35 }
 0x706   : > { %7704 = vmatpush.msk.msra.mxu0 %vm414_vm2, %v3492_v33 }
 0x707   : > { %v12057_v21 = vpop.permute.xlu0 %8398  ;;  %4008 = vmatpush.msra.mxu2 %v3872_v18  ;;  %v3488_v18 = vsel %vm685_vm3, %v11952_v4, %v11974_v31  ;;  %v3866_v4 = vsel %vm881_vm10, %v8370_v61, %v16031_v5 }
 0x708   : > { %3540 = vrot.lane.b32.xlu2 %v11681_v27, %s8786_s27  ;;  %7705 = vmatpush.msk.msra.mxu0 %vm414_vm2, %v3490_v55  ;;  %v16024_v26 = vunpack.i.h.bf16 %v12057_v21  ;;  %v8400_v33 = vunpack.i.l.bf16 %v12057_v21 }
 0x709   : > { %4009 = vmatpush.msra.mxu2 %v3870_v25  ;;  %3664 = vrot.lane.b32.xlu1 %v11820_v19, %s8787_s28 }
 0x70a   : > { %v12075_v23 = vpop.permute.xlu2 %3456  ;;  %7706 = vmatpush.msk.msra.mxu0 %vm414_vm2, %v3488_v18  ;;  %v3864_v25 = vsel %vm881_vm10, %v8400_v33, %v16024_v26  ;;  %v12107_v33 = vpack.i.bf16 %v11689_v43, %v11710_v62 }
 0x70b   : > { %4010 = vmatpush.msra.mxu2 %v3868_v2  ;;  %v12082_v55 = vpop.permute.xlu1 %3282 }
 0x70d   : > { %3660 = vrot.lane.b32.xlu0 %v11779_v51, %s8787_s28  ;;  %4011 = vmatpush.msra.mxu2 %v3866_v4 }
 0x70f   : > { %v12092_v44 = vpop.permute.xlu0 %8403  ;;  %4012 = vmatpush.msra.mxu2 %v3864_v25  ;;  %v3300_v25 = vsel %vm583_vm11, %v12010_v57, %v12082_v55  ;;  %v3296_v57 = vsel %vm583_vm11, %v11968_v17, %v11964_v58 }
 0x710   : > { %v16029_v28 = vunpack.i.h.bf16 %v12092_v44  ;;  %v8405_v18 = vunpack.i.l.bf16 %v12092_v44  ;;  %3532 = vrot.lane.b32.xlu2 %v11655_v45, %s8786_s27 }
 0x711   : > { %3528 = vrot.lane.b32.xlu1 %v11639_v0, %s8786_s27 }
 0x712   : > { %v12100_v61 = vpop.permute.xlu2 %3450  ;;  %v3862_v2 = vsel %vm881_vm10, %v8405_v18, %v16029_v28  ;;  %v3298_v18 = vsel %vm583_vm11, %v11990_v34, %v12002_v56  ;;  %v3294_v34 = vsel %vm583_vm11, %v11933_v8, %v11923_v16  ;;  %v3290_v8 = vsel %vm583_vm11, %v11859_v9, %v11863_v37 }
 0x713   : > { %4013 = vmatpush.msra.mxu2 %v3862_v2  ;;  %v3455_v4 = vpop.permute.xlu1 %3454 }
 0x714   : > { %v3486_v26 = vsel %vm685_vm3, %v3455_v4, %v12075_v23 }
 0x715   : > { %8458 = vrot.lane.b32.xlu0 %v12107_v33, %s8790_s30  ;;  %7696 = vmatpush.msk.msra.mxu2 %vm414_vm2, %v3300_v25  ;;  %v3292_v25 = vsel %vm583_vm11, %v11889_v36, %v11895_v1  ;;  %v3288_v36 = vsel %vm583_vm11, %v11824_v46, %v11832_v7 }
 0x716   : > { %7707 = vmatpush.msk.msra.mxu0 %vm414_vm2, %v3486_v26 }
 0x717   : > { %v3443_v2 = vpop.permute.xlu0 %3442  ;;  %7697 = vmatpush.msk.msra.mxu2 %vm414_vm2, %v3298_v18  ;;  %v3286_v18 = vsel %vm583_vm11, %v11794_v22, %v11796_v3 }
 0x718   : > { %3666 = vrot.lane.b32.xlu2 %v11783_v54, %s8787_s28 }
 0x719   : > { %7698 = vmatpush.msk.msra.mxu2 %vm414_vm2, %v3296_v57  ;;  %3760 = vrot.lane.b32.xlu1 %v11820_v19, %s8788_s29 }
 0x71a   : > { %v3437_v26 = vpop.permute.xlu2 %3436 }
 0x71b   : > { %7699 = vmatpush.msk.msra.mxu2 %vm414_vm2, %v3294_v34  ;;  %v3449_v4 = vpop.permute.xlu1 %3448 }
 0x71c   : > { %v3484_v17 = vsel %vm685_vm3, %v3449_v4, %v12100_v61 }
 0x71d   : > { %3754 = vrot.lane.b32.xlu0 %v11800_v10, %s8788_s29  ;;  %7700 = vmatpush.msk.msra.mxu2 %vm414_vm2, %v3292_v25 }
 0x71e   : > { %7708 = vmatpush.msk.msra.mxu0 %vm414_vm2, %v3484_v17 }
 0x71f   : > { %v12153_v19 = vpop.permute.xlu0 %3438  ;;  %7701 = vmatpush.msk.msra.mxu2 %vm414_vm2, %v3290_v8 }
 0x720   : > { %3658 = vrot.lane.b32.xlu2 %v11800_v10, %s8787_s28  ;;  %v3480_v57 = vsel %vm685_vm3, %v3437_v26, %v12153_v19 }
 0x721   : > { %7702 = vmatpush.msk.msra.mxu2 %vm414_vm2, %v3288_v36  ;;  %3652 = vrot.lane.b32.xlu1 %v11753_v60, %s8787_s28 }
 0x722   : > { %v12166_v9 = vpop.permute.xlu2 %3432 }
 0x723   : > { %7703 = vmatpush.msk.msra.mxu2 %vm414_vm2, %v3286_v18  ;;  %v12173_v10 = vpop.permute.xlu1 %3444  ;;  %v3390_v18 = vsel %vm636_vm6, %v11944_v6, %v11937_v40  ;;  %v3386_v6 = vsel %vm636_vm6, %v11875_v32, %v11883_v42  ;;  %v16318_v42 = vld [vmem:[#allocation48_spill] sm:$0xff]  ;;  %v16320_v40 = vunpack.i.h.bf16 %v11921_v12  ;;  %v12495_v12 = vld [vmem:[%s15913_s3 + $0x80] sm:$0xff] }
 0x724   : > { %v3482_v46 = vsel %vm685_vm3, %v3443_v2, %v12173_v10  ;;  %v12191_v2 = vpack.i.bf16 %v11647_v15, %v11668_v47 }
 0x725   : > { %3648 = vrot.lane.b32.xlu0 %v11728_v52, %s8787_s28  ;;  %7709 = vmatpush.msk.msra.mxu0 %vm414_vm2, %v3482_v46 }
 0x727   : > { %v3377_v34 = vpop.permute.xlu0 %3376  ;;  %7710 = vmatpush.msk.msra.mxu0 %vm414_vm2, %v3480_v57 }
 0x728   : > { %3762 = vrot.lane.b32.xlu2 %v11783_v54, %s8788_s29 }
 0x729   : > { %3756 = vrot.lane.b32.xlu1 %v11779_v51, %s8788_s29 }
 0x72a   : > { %v3371_v22 = vpop.permute.xlu2 %3370 }
 0x72b   : > { %v3431_v4 = vpop.permute.xlu1 %3430 }
 0x72c   : > { %v3478_v25 = vsel %vm685_vm3, %v3431_v4, %v12166_v9 }
 0x72d   : > { %8463 = vrot.lane.b32.xlu0 %v12191_v2, %s8790_s30  ;;  %7711 = vmatpush.msk.msra.mxu0 %vm414_vm2, %v3478_v25 }
 0x72f   : > { %v12199_v26 = vpop.permute.xlu0 %3372 }
 0x730   : > { %16281 = vst [vmem:[#allocation52_spill] sm:$0xff] %v12199_v26  ;;  %3654 = vrot.lane.b32.xlu2 %v11767_v14, %s8787_s28  ;;  %v3394_v8 = vsel %vm636_vm6, %v3371_v22, %v12199_v26  ;;  %v16321_v26 = vld [vmem:[#allocation17_spill] sm:$0xff] }
 0x731   : > { %3748 = vrot.lane.b32.xlu1 %v11753_v60, %s8788_s29  ;;  %v3392_v60 = vsel %vm636_vm6, %v11980_v29, %v11976_v39 }
 0x732   : > { %v12205_v51 = vpop.permute.xlu2 %8413 }
 0x733   : > { %v12207_v54 = vpop.permute.xlu1 %3378  ;;  %v16028_v22 = vunpack.i.h.bf16 %v12205_v51  ;;  %v8415_v4 = vunpack.i.l.bf16 %v12205_v51 }
 0x734   : > { %v3396_v17 = vsel %vm636_vm6, %v3377_v34, %v12207_v54  ;;  %v3388_v34 = vsel %vm636_vm6, %v11899_v49, %v11909_v38  ;;  %v16319_v38 = vld [vmem:[#allocation13_spill] sm:$0xff] }
 0x735   : > { %3742 = vrot.lane.b32.xlu0 %v11747_v11, %s8788_s29  ;;  %7712 = vmatpush.msk.msra.mxu0 %vm412_vm5, %v3396_v17 }
 0x737   : > { %v3569_v36 = vpop.permute.xlu0 %3568  ;;  %7713 = vmatpush.msk.msra.mxu0 %vm412_vm5, %v3394_v8 }
 0x738   : > { %3646 = vrot.lane.b32.xlu2 %v11747_v11, %s8787_s28 }
 0x739   : > { %3640 = vrot.lane.b32.xlu1 %v11697_v48, %s8787_s28  ;;  %7714 = vmatpush.msk.msra.mxu0 %vm412_vm5, %v3392_v60  ;;  %v16283_v60 = vld [vmem:[#allocation7_spill] sm:$0xff] }
 0x73a   : > { %v12231_v46 = vpop.permute.xlu2 %8418  ;;  %v3384_v32 = vsel %vm636_vm6, %v16283_v60, %v11845_v50 }
 0x73b   : > { %v12233_v57 = vpop.permute.xlu1 %8408  ;;  %7715 = vmatpush.msk.msra.mxu0 %vm412_vm5, %v3390_v18  ;;  %v16027_v49 = vunpack.i.h.bf16 %v12231_v46  ;;  %v8420_v17 = vunpack.i.l.bf16 %v12231_v46  ;;  %v3954_v18 = vsel %vm16284_vm12, %v8415_v4, %v16028_v22  ;;  %vm16295_vm12 = vmmov %vm16288_vm8 }
 0x73c   : > { %v16025_v11 = vunpack.i.h.bf16 %v12233_v57  ;;  %v8410_v29 = vunpack.i.l.bf16 %v12233_v57 }
 0x73d   : > { %3636 = vrot.lane.b32.xlu0 %v11681_v27, %s8787_s28  ;;  %7716 = vmatpush.msk.msra.mxu0 %vm412_vm5, %v3388_v34  ;;  %v16285_v34 = vld [vmem:[#allocation29_spill] sm:$0xff] }
 0x73e   : > { %v3956_v25 = vsel %vm16282_vm7, %v8410_v29, %v16025_v11  ;;  %vm16292_vm7 = vmmov %vm16289_vm4 }
 0x73f   : > { %v3563_v8 = vpop.permute.xlu0 %3562  ;;  %7717 = vmatpush.msk.msra.mxu0 %vm412_vm5, %v3386_v6  ;;  %4093 = vmatpush.msra.mxu3 %v3956_v25  ;;  %v16286_v6 = vld [vmem:[#allocation26_spill] sm:$0xff] }
 0x740   : > { %3750 = vrot.lane.b32.xlu2 %v11767_v14, %s8788_s29  ;;  %v3382_v14 = vsel %vm636_vm6, %v16286_v6, %v16285_v34  ;;  %v16290_v6 = vld [vmem:[#allocation4_spill] sm:$0xff] }
 0x741   : > { %3744 = vrot.lane.b32.xlu1 %v11728_v52, %s8788_s29  ;;  %7718 = vmatpush.msk.msra.mxu0 %vm412_vm5, %v3384_v32  ;;  %v3952_v52 = vsel %vm16287_vm13, %v8420_v17, %v16027_v49  ;;  %vm16299_vm13 = vmmov %vm16289_vm4  ;;  %v16317_v34 = vld [vmem:[#allocation16_spill] sm:$0xff] }
 0x742   : > { %v12270_v29 = vpop.permute.xlu2 %8423  ;;  %4094 = vmatpush.msra.mxu3 %v3954_v18 }
 0x743   : > { %v16026_v25 = vunpack.i.h.bf16 %v12270_v29  ;;  %v8425_v60 = vunpack.i.l.bf16 %v12270_v29  ;;  %v12277_v11 = vpop.permute.xlu1 %3570  ;;  %7719 = vmatpush.msk.msra.mxu0 %vm412_vm5, %v3382_v14 }
 0x744   : > { %v3588_v4 = vsel %vm16288_vm8, %v3569_v36, %v12277_v11  ;;  %4095 = vmatpush.msra.mxu3 %v3952_v52 }
 0x745   : > { %3628 = vrot.lane.b32.xlu0 %v11655_v45, %s8787_s28  ;;  %7720 = vmatpush.msk.msra.mxu1 %vm412_vm5, %v3588_v4  ;;  %v3950_v32 = vsel %vm16289_vm4, %v8425_v60, %v16026_v25  ;;  %v16294_v25 = vld [vmem:[#allocation5_spill] sm:$0xff] }
 0x746   : > { %4096 = vmatpush.msra.mxu3 %v3950_v32  ;;  %v16293_v32 = vld [vmem:[#allocation30_spill] sm:$0xff] }
 0x747   : > { %v3557_v18 = vpop.permute.xlu0 %3556  ;;  %16324 = vst [vmem:[#allocation30_spill] sm:$0xff] %v12495_v12 }
 0x748   : > { %3642 = vrot.lane.b32.xlu2 %v16290_v6, %s8787_s28 }
 0x749   : > { %3736 = vrot.lane.b32.xlu1 %v11697_v48, %s8788_s29 }
 0x74a   : > { %v12297_v36 = vpop.permute.xlu2 %8428 }
 0x74b   : > { %v16030_v17 = vunpack.i.h.bf16 %v12297_v36  ;;  %v8430_v14 = vunpack.i.l.bf16 %v12297_v36  ;;  %v12301_v52 = vpop.permute.xlu1 %3564 }
 0x74c   : > { %v3586_v4 = vsel %vm16291_vm14, %v3563_v8, %v12301_v52  ;;  %vm16300_vm14 = vmmov %vm16288_vm8 }
 0x74d   : > { %3732 = vrot.lane.b32.xlu0 %v11681_v27, %s8788_s29  ;;  %v3948_v60 = vsel %vm16292_vm7, %v8430_v14, %v16030_v17  ;;  %7721 = vmatpush.msk.msra.mxu1 %vm412_vm5, %v3586_v4  ;;  %v16296_v14 = vld [vmem:[#allocation51_spill] sm:$0xff]  ;;  %vm16304_vm7 = vmmov %vm16288_vm8 }
 0x74e   : > { %4097 = vmatpush.msra.mxu3 %v3948_v60  ;;  %v16297_v4 = vunpack.i.h.bf16 %v16296_v14 }
 0x74f   : > { %v3551_v48 = vpop.permute.xlu0 %3550 }
 0x750   : > { %3634 = vrot.lane.b32.xlu2 %v16293_v32, %s8787_s28 }
 0x751   : > { %3630 = vrot.lane.b32.xlu1 %v16294_v25, %s8787_s28 }
 0x752   : > { %v8434_v49 = vpop.permute.xlu2 %8433 }
 0x753   : > { %v8436_v8 = vunpack.i.h.bf16 %v8434_v49  ;;  %v8435_v22 = vunpack.i.l.bf16 %v8434_v49  ;;  %v12316_v28 = vpop.permute.xlu1 %3558  ;;  %v16298_v49 = vunpack.i.h.bf16 %v12018_v53 }
 0x754   : > { %v3584_v27 = vsel %vm16295_vm12, %v3557_v18, %v12316_v28  ;;  %vm16307_vm12 = vmmov %vm16304_vm7 }
 0x755   : > { %3724 = vrot.lane.b32.xlu0 %v11655_v45, %s8788_s29  ;;  %v3877_v60 = vsel %vm881_vm10, %v16297_v4, %v8435_v22  ;;  %7722 = vmatpush.msk.msra.mxu1 %vm412_vm5, %v3584_v27  ;;  %v3875_v5 = vsel %vm881_vm10, %v16298_v49, %v8436_v8 }
 0x756   : > { %4151 = vmatpush.msrb.mxu0 %v3877_v60  ;;  %v16301_v60 = vld [vmem:[#allocation49_spill] sm:$0xff] }
 0x757   : > { %v12327_v17 = vpop.permute.xlu0 %8438 }
 0x758   : > { %v16035_v35 = vunpack.i.h.bf16 %v12327_v17  ;;  %v8440_v18 = vunpack.i.l.bf16 %v12327_v17  ;;  %3738 = vrot.lane.b32.xlu2 %v16290_v6, %s8788_s29  ;;  %4152 = vmatpush.msrb.mxu0 %v3875_v5 }
 0x759   : > { %3622 = vrot.lane.b32.xlu1 %v11634_v20, %s8787_s28 }
 0x75a   : > { %v12338_v45 = vpop.permute.xlu2 %3546  ;;  %v3946_v22 = vsel %vm16299_vm13, %v8440_v18, %v16035_v35  ;;  %vm16310_vm13 = vmmov %vm16289_vm4 }
 0x75b   : > { %4098 = vmatpush.msra.mxu3 %v3946_v22  ;;  %v12343_v53 = vpop.permute.xlu1 %3552  ;;  %v16302_v22 = vunpack.i.h.bf16 %v11962_v41  ;;  %v16306_v41 = vld [vmem:[#allocation36_spill] sm:$0xff] }
 0x75c   : > { %v3582_v8 = vsel %vm16288_vm8, %v3551_v48, %v12343_v53  ;;  %vm16312_vm8 = vcmask 367616  }
 0x75d   : > { %3718 = vrot.lane.b32.xlu0 %v11634_v20, %s8788_s29  ;;  %7723 = vmatpush.msk.msra.mxu1 %vm412_vm5, %v3582_v8 }
 0x75f   : > { %v12351_v5 = vpop.permute.xlu0 %8443 }
 0x760   : > { %v16033_v6 = vunpack.i.h.bf16 %v12351_v5  ;;  %v8445_v27 = vunpack.i.l.bf16 %v12351_v5  ;;  %3730 = vrot.lane.b32.xlu2 %v16293_v32, %s8788_s29 }
 0x761   : > { %3726 = vrot.lane.b32.xlu1 %v16294_v25, %s8788_s29 }
 0x762   : > { %v12359_v14 = vpop.permute.xlu2 %3540  ;;  %v3944_v20 = vsel %vm16289_vm4, %v8445_v27, %v16033_v6  ;;  %vm16314_vm4 = vmmov %vm16312_vm8 }
 0x763   : > { %4099 = vmatpush.msra.mxu3 %v3944_v20  ;;  %v3545_v48 = vpop.permute.xlu1 %3544  ;;  %v16303_v20 = vunpack.i.h.bf16 %v11956_v59 }
 0x764   : > { %v3580_v4 = vsel %vm16300_vm14, %v3545_v48, %v12338_v45  ;;  %vm16315_vm14 = vmmov %vm16304_vm7 }
 0x765   : > { %8468 = vrot.lane.b32.xlu0 %v16301_v60, %s8791_s12  ;;  %7724 = vmatpush.msk.msra.mxu1 %vm412_vm5, %v3580_v4  ;;  %v16305_v60 = vld [vmem:[#allocation8_spill] sm:$0xff] }
 0x767   : > { %v8449_v32 = vpop.permute.xlu0 %8448 }
 0x768   : > { %v8451_v49 = vunpack.i.h.bf16 %v8449_v32  ;;  %v8450_v25 = vunpack.i.l.bf16 %v8449_v32  ;;  %3624 = vrot.lane.b32.xlu2 %v11639_v0, %s8787_s28 }
 0x769   : > { %3720 = vrot.lane.b32.xlu1 %v11639_v0, %s8788_s29 }
 0x76a   : > { %v3533_v18 = vpop.permute.xlu2 %3532  ;;  %v3873_v8 = vsel %vm881_vm10, %v16302_v22, %v8450_v25  ;;  %v3871_v48 = vsel %vm881_vm10, %v16303_v20, %v8451_v49 }
 0x76b   : > { %4153 = vmatpush.msrb.mxu0 %v3873_v8  ;;  %v3539_v27 = vpop.permute.xlu1 %3538  ;;  %v16308_v8 = vld [vmem:[#allocation18_spill] sm:$0xff] }
 0x76c   : > { %v3578_v4 = vsel %vm16304_vm7, %v3539_v27, %v12359_v14  ;;  %vm16323_vm7 = vcmask 351232  }
 0x76d   : > { %3470 = vrot.lane.b32.xlu0 %v16305_v60, %s8785_s26  ;;  %4154 = vmatpush.msrb.mxu0 %v3871_v48  ;;  %v16311_v48 = vld [vmem:[#allocation3_spill] sm:$0xff] }
 0x76e   : > { %7725 = vmatpush.msk.msra.mxu1 %vm412_vm5, %v3578_v4 }
 0x76f   : > { %v12386_v0 = vpop.permute.xlu0 %3534 }
 0x770   : > { %3572 = vrot.lane.b32.xlu2 %v16306_v41, %s8786_s27  ;;  %v3576_v59 = vsel %vm16307_vm12, %v3533_v18, %v12386_v0  ;;  %v12407_v18 = vld [vmem:[%s15913_s3 + $0x8] sm:$0xff]  ;;  %vm16328_vm12 = vmmov %vm16314_vm4 }
 0x771   : > { %7726 = vmatpush.msk.msra.mxu1 %vm412_vm5, %v3576_v59  ;;  %3476 = vrot.lane.b32.xlu1 %v16306_v41, %s8785_s26  ;;  %16309 = vst [vmem:[#allocation7_spill] sm:$0xff] %v12407_v18  ;;  %v12420_v59 = vld [vmem:[%s15913_s3] sm:$0xff] }
 0x772   : > { %v12396_v32 = vpop.permute.xlu2 %3666  ;;  %4051 = vmatmul.f32.vlgmr.msra.gmra.mxu0 %v12407_v18  ;;  %4022 = vmatmul.f32.vlgmr.msra.gmra.mxu2 %v12420_v59 }
 0x773   : > { %v12398_v49 = vpop.permute.xlu1 %8453 }
 0x774   : > { %v16034_v25 = vunpack.i.h.bf16 %v12398_v49  ;;  %v8455_v22 = vunpack.i.l.bf16 %v12398_v49 }
 0x775   : > { %3464 = vrot.lane.b32.xlu0 %v16308_v8, %s8785_s26 }
 0x776   : > { %v3942_v27 = vsel %vm16310_vm13, %v8455_v22, %v16034_v25  ;;  %vm16331_vm13 = vmmov %vm16314_vm4 }
 0x777   : > { %v3527_v20 = vpop.permute.xlu0 %3526  ;;  %4100 = vmatpush.msra.mxu3 %v3942_v27  ;;  %v12432_v27 = vld [vmem:[%s15913_s3 + $0x30] sm:$0xff] }
 0x778   : > { %3566 = vrot.lane.b32.xlu2 %v16305_v60, %s8786_s27  ;;  %16313 = vst [vmem:[#allocation26_spill] sm:$0xff] %v12432_v27 }
 0x779   : > { %3554 = vrot.lane.b32.xlu1 %v16311_v48, %s8786_s27 }
 0x77a   : > { %v3659_v4 = vpop.permute.xlu2 %3658  ;;  %4054 = vmatmul.f32.gmra.mxu0 %v12432_v27  ;;  %v12452_v27 = vld [vmem:[%s15913_s3 + $0x28] sm:$0xff] }
 0x77b   : > { %v3665_v6 = vpop.permute.xlu1 %3664  ;;  %4025 = vmatmul.f32.gmra.mxu2 %v12452_v27 }
 0x77c   : > { %v3684_v22 = vsel %vm16312_vm8, %v3665_v6, %v12396_v32  ;;  %vm16332_vm8 = vmmov %vm16323_vm7 }
 0x77d   : > { %3542 = vrot.lane.b32.xlu0 %v11689_v43, %s8786_s27  ;;  %7728 = vmatpush.msk.msra.mxu3 %vm414_vm2, %v3684_v22 }
 0x77f   : > { %v12435_v25 = vpop.permute.xlu0 %3660 }
 0x780   : > { %3560 = vrot.lane.b32.xlu2 %v16308_v8, %s8786_s27  ;;  %v3682_v6 = vsel %vm16314_vm4, %v3659_v4, %v12435_v25  ;;  %v12464_v4 = vld [vmem:[%s15913_s3 + $0x58] sm:$0xff]  ;;  %vm16335_vm4 = vmmov %vm16323_vm7 }
 0x781   : > { %7729 = vmatpush.msk.msra.mxu3 %vm414_vm2, %v3682_v6  ;;  %3548 = vrot.lane.b32.xlu1 %v11710_v62, %s8786_s27  ;;  %16316 = vst [vmem:[#allocation4_spill] sm:$0xff] %v12464_v4 }
 0x782   : > { %v12445_v22 = vpop.permute.xlu2 %3762  ;;  %4057 = vmatmul.f32.gmra.mxu0 %v12464_v4 }
 0x783   : > { %v12447_v35 = vpop.permute.xlu1 %3528 }
 0x784   : > { %v3574_v18 = vsel %vm16315_vm14, %v3527_v20, %v12447_v35 }
 0x785   : > { %3536 = vrot.lane.b32.xlu0 %v11668_v47, %s8786_s27  ;;  %7727 = vmatpush.msk.msra.mxu1 %vm412_vm5, %v3574_v18 }
 0x787   : > { %v8459_v6 = vpop.permute.xlu0 %8458  ;;  %4072 = vmatpush.msra.mxu1 %v16317_v34  ;;  %v12482_v34 = vld [vmem:[%s15913_s3 + $0x50] sm:$0xff] }
 0x788   : > { %v8461_v50 = vunpack.i.h.bf16 %v8459_v6  ;;  %v8460_v20 = vunpack.i.l.bf16 %v8459_v6  ;;  %8473 = vrot.lane.b32.xlu2 %v16318_v42, %s8791_s12  ;;  %v16322_v42 = vunpack.i.h.bf16 %v11911_v63  ;;  %4028 = vmatmul.f32.gmra.mxu2 %v12482_v34 }
 0x789   : > { %8478 = vrot.lane.b32.xlu1 %v12107_v33, %s8791_s12  ;;  %4073 = vmatpush.msra.mxu1 %v16319_v38 }
 0x78a   : > { %v12473_v18 = vpop.permute.xlu2 %3654  ;;  %v3869_v39 = vsel %vm881_vm10, %v16320_v40, %v8460_v20  ;;  %v3867_v33 = vsel %vm881_vm10, %v16322_v42, %v8461_v50  ;;  %v16325_v40 = vld [vmem:[#allocation14_spill] sm:$0xff]  ;;  %4060 = vmatmul.f32.gmra.mxu0 %v12495_v12  ;;  %v16326_v50 = vld [vmem:[#allocation21_spill] sm:$0xff]  ;;  %v16329_v20 = vld [vmem:[#allocation27_spill] sm:$0xff] }
 0x78b   : > { %4155 = vmatpush.msrb.mxu0 %v3869_v39  ;;  %v3761_v4 = vpop.permute.xlu1 %3760  ;;  %4074 = vmatpush.msra.mxu1 %v16321_v26  ;;  %v12518_v42 = vld [vmem:[%s15913_s3 + $0x10] sm:$0xff] }
 0x78c   : > { %v3780_v38 = vsel %vm16323_vm7, %v3761_v4, %v12445_v22  ;;  %v12510_v4 = vld [vmem:[%s15913_s3 + $0x78] sm:$0xff] }
 0x78d   : > { %8483 = vrot.lane.b32.xlu0 %v12191_v2, %s8791_s12  ;;  %4156 = vmatpush.msrb.mxu0 %v3867_v33  ;;  %v16327_v2 = vld [vmem:[#allocation11_spill] sm:$0xff] }
 0x78e   : > { %4075 = vmatpush.msra.mxu1 %v16325_v40  ;;  %7736 = vmatpush.msk.msrb.mxu2 %vm412_vm5, %v3780_v38 }
 0x78f   : > { %v3755_v63 = vpop.permute.xlu0 %3754 }
 0x790   : > { %3458 = vrot.lane.b32.xlu2 %v16311_v48, %s8785_s26  ;;  %4076 = vmatpush.msra.mxu1 %v16326_v50 }
 0x791   : > { %3446 = vrot.lane.b32.xlu1 %v11689_v43, %s8785_s26  ;;  %4031 = vmatmul.f32.gmra.mxu2 %v12510_v4  ;;  %v16330_v43 = vld [vmem:[#allocation28_spill] sm:$0xff] }
 0x792   : > { %v3647_v39 = vpop.permute.xlu2 %3646  ;;  %4077 = vmatpush.msra.mxu1 %v16327_v2 }
 0x793   : > { %v3653_v26 = vpop.permute.xlu1 %3652 }
 0x794   : > { %v3680_v6 = vsel %vm16328_vm12, %v3653_v26, %v12473_v18  ;;  %4078 = vmatpush.msra.mxu1 %v16329_v20  ;;  %v12546_v26 = vld [vmem:[%s15913_s3 + $0x38] sm:$0xff]  ;;  %v16333_v20 = vunpack.i.h.bf16 %v12057_v21 }
 0x795   : > { %3668 = vrot.lane.b32.xlu0 %v16306_v41, %s8787_s28  ;;  %7730 = vmatpush.msk.msra.mxu3 %vm414_vm2, %v3680_v6  ;;  %v16336_v21 = vld [vmem:[#allocation50_spill] sm:$0xff] }
 0x796   : > { %4079 = vmatpush.msra.mxu1 %v16330_v43 }
 0x797   : > { %v12526_v33 = vpop.permute.xlu0 %3648  ;;  %4080 = vmatmul.f32.vlgmr.msra.gmra.mxu1 %v12518_v42 }
 0x798   : > { %3452 = vrot.lane.b32.xlu2 %v11710_v62, %s8785_s26  ;;  %v3678_v38 = vsel %vm16331_vm13, %v3647_v39, %v12526_v33 }
 0x799   : > { %7731 = vmatpush.msk.msra.mxu3 %vm414_vm2, %v3678_v38  ;;  %3440 = vrot.lane.b32.xlu1 %v11668_v47, %s8785_s26 }
 0x79a   : > { %v12537_v40 = vpop.permute.xlu2 %3750 }
 0x79b   : > { %v12539_v50 = vpop.permute.xlu1 %3756 }
 0x79c   : > { %v3778_v2 = vsel %vm16332_vm8, %v3755_v63, %v12539_v50 }
 0x79d   : > { %3374 = vrot.lane.b32.xlu0 %v16305_v60, %s8784_s25  ;;  %7737 = vmatpush.msk.msrb.mxu2 %vm412_vm5, %v3778_v2  ;;  %v16334_v2 = vunpack.i.h.bf16 %v12092_v44 }
 0x79f   : > { %v8464_v39 = vpop.permute.xlu0 %8463  ;;  %4083 = vmatmul.f32.gmra.mxu1 %v12546_v26 }
 0x7a0   : > { %v8466_v47 = vunpack.i.h.bf16 %v8464_v39  ;;  %v8465_v6 = vunpack.i.l.bf16 %v8464_v39  ;;  %3530 = vrot.lane.b32.xlu2 %v11647_v15, %s8786_s27  ;;  %v12570_v15 = vld [vmem:[%s15913_s3 + $0x60] sm:$0xff] }
 0x7a1   : > { %3380 = vrot.lane.b32.xlu1 %v16306_v41, %s8784_s25 }
 0x7a2   : > { %v12557_v63 = vpop.permute.xlu2 %3642  ;;  %v3865_v43 = vsel %vm881_vm10, %v16333_v20, %v8465_v6  ;;  %v3863_v12 = vsel %vm881_vm10, %v16334_v2, %v8466_v47  ;;  %v3301_v6 = vsel %vm583_vm11, %v12082_v55, %v16336_v21  ;;  %v16337_v47 = vld [vmem:[#allocation15_spill] sm:$0xff]  ;;  %v12582_v20 = vld [vmem:[#allocation2 + $0x10] sm:$0xff] }
 0x7a3   : > { %4157 = vmatpush.msrb.mxu0 %v3865_v43  ;;  %v3749_v38 = vpop.permute.xlu1 %3748  ;;  %vm16338_vm14 = vcmp.ge.s32.totalorder %v16337_v47, 1  ;;  %v16341_v43 = vld [vmem:[#allocation44_spill] sm:$0xff] }
 0x7a4   : > { %v3776_v39 = vsel %vm16335_vm4, %v3749_v38, %v12537_v40  ;;  %vm16340_vm7 = vmmov %vm16338_vm14  ;;  %v3297_v38 = vsel %vm583_vm11, %v11964_v58, %v16341_v43  ;;  %v16345_v58 = vld [vmem:[#allocation38_spill] sm:$0xff] }
 0x7a5   : > { %3644 = vrot.lane.b32.xlu0 %v11710_v62, %s8787_s28  ;;  %4158 = vmatpush.msrb.mxu0 %v3863_v12  ;;  %v16339_v62 = vld [vmem:[#allocation47_spill] sm:$0xff]  ;;  %vm16342_vm12 = vmmov %vm16340_vm7 }
 0x7a6   : > { %7738 = vmatpush.msk.msrb.mxu2 %vm412_vm5, %v3776_v39  ;;  %v3299_v12 = vsel %vm583_vm11, %v12002_v56, %v16339_v62  ;;  %v16343_v39 = vld [vmem:[#allocation41_spill] sm:$0xff]  ;;  %vm16344_vm8 = vmmov %vm16340_vm7  ;;  %v3293_v62 = vsel %vm583_vm11, %v11895_v1, %v16345_v58 }
 0x7a7   : > { %v3743_v44 = vpop.permute.xlu0 %3742  ;;  %7748 = vmatpush.msk.msrb.mxu0 %vm16338_vm14, %v3301_v6  ;;  %4086 = vmatmul.f32.gmra.mxu1 %v12570_v15  ;;  %v3295_v21 = vsel %vm583_vm11, %v11923_v16, %v16343_v39  ;;  %v12606_v6 = vld [vmem:[%s15913_s3 + $0x88] sm:$0xff]  ;;  %vm16346_vm4 = vmmov %vm16340_vm7  ;;  %v8762_v58 = vld [vmem:[#allocation2 + $0x50] sm:$0xff] }
 0x7a8   : > { %3434 = vrot.lane.b32.xlu2 %v12582_v20, %s8785_s26  ;;  %vm16348_vm14 = vmmov %vm16331_vm13 }
 0x7a9   : > { %7749 = vmatpush.msk.msrb.mxu0 %vm16340_vm7, %v3299_v12  ;;  %3656 = vrot.lane.b32.xlu1 %v16308_v8, %s8787_s28  ;;  %v16347_v12 = vld [vmem:[#allocation34_spill] sm:$0xff]  ;;  %vm16349_vm7 = vmmov %vm16346_vm4 }
 0x7aa   : > { %v3635_v55 = vpop.permute.xlu2 %3634  ;;  %v3291_v43 = vsel %vm583_vm11, %v11863_v37, %v16347_v12  ;;  %v3085_v12 = vld [vmem:[%s15914_s4 + $0x18] sm:$0xff] }
 0x7ab   : > { %7750 = vmatpush.msk.msrb.mxu0 %vm16342_vm12, %v3297_v38  ;;  %v3641_v2 = vpop.permute.xlu1 %3640  ;;  %vm16351_vm12 = vmmov %vm16346_vm4 }
 0x7ac   : > { %v3676_v56 = vsel %vm16331_vm13, %v3641_v2, %v12557_v63  ;;  %v16350_v2 = vld [vmem:[#allocation32_spill] sm:$0xff]  ;;  %vm16353_vm13 = vcmask 351232  }
 0x7ad   : > { %3758 = vrot.lane.b32.xlu0 %v16305_v60, %s8788_s29  ;;  %7751 = vmatpush.msk.msrb.mxu0 %vm16344_vm8, %v3295_v21  ;;  %v3289_v39 = vsel %vm583_vm11, %v11832_v7, %v16350_v2  ;;  %vm16354_vm8 = vmmov %vm16346_vm4 }
 0x7ae   : > { %7732 = vmatpush.msk.msra.mxu3 %vm414_vm2, %v3676_v56 }
 0x7af   : > { %v12617_v16 = vpop.permute.xlu0 %3636  ;;  %7752 = vmatpush.msk.msrb.mxu0 %vm16346_vm4, %v3293_v62  ;;  %4089 = vmatmul.f32.gmra.mxu1 %v12606_v6  ;;  %vm16355_vm4 = vmmov %vm16353_vm13 }
 0x7b0   : > { %3662 = vrot.lane.b32.xlu2 %v16305_v60, %s8787_s28  ;;  %v3674_v1 = vsel %vm16348_vm14, %v3635_v55, %v12617_v16  ;;  %v16352_v60 = vld [vmem:[#allocation9_spill] sm:$0xff]  ;;  %vm16356_vm14 = vmmov %vm16355_vm4 }
 0x7b1   : > { %7753 = vmatpush.msk.msrb.mxu0 %vm16349_vm7, %v3291_v43  ;;  %7733 = vmatpush.msk.msra.mxu3 %vm414_vm2, %v3674_v1  ;;  %v3287_v55 = vsel %vm583_vm11, %v11796_v3, %v16352_v60  ;;  %v8761_v3 = vld [vmem:[#allocation2 + $0x30] sm:$0xff]  ;;  %vm16357_vm7 = vcmask 367616   ;;  %v3082_v60 = vld [vmem:[%s15914_s4] sm:$0xff] }
 0x7b2   : > { %v12633_v38 = vpop.permute.xlu2 %3738  ;;  %3764 = vrot.lane.b32.xlu1 %v16306_v41, %s8788_s29  ;;  %v8763_v43 = vld [vmem:[#allocation2 + $0x90] sm:$0xff] }
 0x7b3   : > { %7754 = vmatpush.msk.msrb.mxu0 %vm16351_vm12, %v3289_v39  ;;  %v12642_v37 = vpop.permute.xlu1 %3744  ;;  %vm16358_vm12 = vmmov %vm16357_vm7 }
 0x7b4   : > { %v3774_v21 = vsel %vm16353_vm13, %v3743_v44, %v12642_v37  ;;  %vm16359_vm13 = vcmask 482304  }
 0x7b5   : > { %3626 = vrot.lane.b32.xlu0 %v12582_v20, %s8787_s28  ;;  %7755 = vmatpush.msk.msrb.mxu0 %vm16354_vm8, %v3287_v55  ;;  %vm16360_vm8 = vcmp.lt.s32.totalorder %v16337_v47, 15 }
 0x7b6   : > { %4167 = vmatmul.f32.vlgmr.msrb.gmra.mxu0 %v12420_v59  ;;  %7739 = vmatpush.msk.msrb.mxu2 %vm412_vm5, %v3774_v21  ;;  %v12694_v21 = vld [vmem:[%s15913_s3 + $0x18] sm:$0xff] }
 0x7b7   : > { %v3629_v7 = vpop.permute.xlu0 %3628 }
 0x7b8   : > { %3650 = vrot.lane.b32.xlu2 %v16311_v48, %s8787_s28 }
 0x7ba   : > { %v3731_v41 = vpop.permute.xlu2 %3730  ;;  %3632 = vrot.lane.b32.xlu1 %v8761_v3, %s8787_s28 }
 0x7bb   : > { %v3737_v44 = vpop.permute.xlu1 %3736 }
 0x7bc   : > { %v3772_v56 = vsel %vm16355_vm4, %v3737_v44, %v12633_v38  ;;  %vm16361_vm4 = vmmov %vm16359_vm13 }
 0x7bd   : > { %3734 = vrot.lane.b32.xlu0 %v8762_v58, %s8788_s29  ;;  %7740 = vmatpush.msk.msrb.mxu2 %vm412_vm5, %v3772_v56 }
 0x7be   : > { %4170 = vmatmul.f32.gmra.mxu0 %v12452_v27 }
 0x7bf   : > { %v12665_v59 = vpop.permute.xlu0 %3732 }
 0x7c0   : > { %3638 = vrot.lane.b32.xlu2 %v8762_v58, %s8787_s28  ;;  %v3770_v48 = vsel %vm16356_vm14, %v3731_v41, %v12665_v59  ;;  %v3084_v41 = vld [vmem:[%s15914_s4 + $0x10] sm:$0xff]  ;;  %vm16362_vm14 = vmmov %vm16360_vm8 }
 0x7c1   : > { %7741 = vmatpush.msk.msrb.mxu2 %vm412_vm5, %v3770_v48 }
 0x7c2   : > { %v12672_v62 = vpop.permute.xlu2 %3624  ;;  %3746 = vrot.lane.b32.xlu1 %v8763_v43, %s8788_s29 }
 0x7c3   : > { %v12678_v27 = vpop.permute.xlu1 %3630 }
 0x7c4   : > { %v3672_v1 = vsel %vm16357_vm7, %v3629_v7, %v12678_v27  ;;  %vm16363_vm7 = vcmask 351232  }
 0x7c5   : > { %3991 = vperm.xlu0 %8205, %v3085_v12   ;;  %7734 = vmatpush.msk.msra.mxu3 %vm414_vm2, %v3672_v1 }
 0x7c6   : > { %4173 = vmatmul.f32.gmra.mxu0 %v12482_v34 }
 0x7c7   : > { %v3725_v2 = vpop.permute.xlu0 %3724 }
 0x7c8   : > { %3752 = vrot.lane.b32.xlu2 %v16308_v8, %s8788_s29 }
 0x7ca   : > { %v3573_v39 = vpop.permute.xlu2 %3572  ;;  %3728 = vrot.lane.b32.xlu1 %v8761_v3, %s8788_s29  ;;  %v8764_v3 = vld [vmem:[#allocation2 + $0x70] sm:$0xff] }
 0x7cb   : > { %v3623_v55 = vpop.permute.xlu1 %3622  ;;  %v3589_v8 = vsel %vm16359_vm13, %v12277_v11, %v3573_v39  ;;  %v12740_v39 = vld [vmem:[%s15913_s3 + $0x20] sm:$0xff]  ;;  %vm16365_vm13 = vmmov %vm16360_vm8 }
 0x7cc   : > { %v3670_v34 = vsel %vm16358_vm12, %v3623_v55, %v12672_v62  ;;  %vm16364_vm12 = vmmov %vm16361_vm4  ;;  %v16367_v55 = vunpack.i.h.bf16 %v12233_v57 }
 0x7cd   : > { %3976 = vperm.xlu0 %8205, %v3082_v60   ;;  %7735 = vmatpush.msk.msra.mxu3 %vm414_vm2, %v3670_v34 }
 0x7ce   : > { %4176 = vmatmul.f32.gmra.mxu0 %v12510_v4  ;;  %4109 = vmatmul.f32.vlgmr.msra.gmra.mxu3 %v12694_v21  ;;  %v12717_v4 = vld [vmem:[%s15913_s3 + $0x40] sm:$0xff] }
 0x7cf   : > { %v3719_v7 = vpop.permute.xlu0 %3718  ;;  %7772 = vmatpush.msk.msrb.mxu3 %vm16360_vm8, %v3589_v8  ;;  %vm16366_vm8 = vmmov %vm16363_vm7 }
 0x7d0   : > { %3740 = vrot.lane.b32.xlu2 %v8764_v3, %s8788_s29 }
 0x7d2   : > { %v3567_v44 = vpop.permute.xlu2 %3566  ;;  %3986 = vperm.xlu1 %8206, %v3084_v41  }
 0x7d3   : > { %v3587_v11 = vsel %vm16361_vm4, %v12301_v52, %v3567_v44  ;;  %v12712_v56 = vpop.permute.xlu1 %3726  ;;  %vm16368_vm4 = vcmask 359424  }
 0x7d4   : > { %7773 = vmatpush.msk.msrb.mxu3 %vm16362_vm14, %v3587_v11  ;;  %v3768_v58 = vsel %vm16363_vm7, %v3725_v2, %v12712_v56  ;;  %v12735_v2 = vld [vmem:[%s15913_s3 + $0x68] sm:$0xff]  ;;  %vm16370_vm14 = vmmov %vm16368_vm4 }
 0x7d5   : > { %7742 = vmatpush.msk.msrb.mxu2 %vm412_vm5, %v3768_v58  ;;  %vm16372_vm7 = vmmov %vm16368_vm4 }
 0x7d6   : > { %4112 = vmatmul.f32.gmra.mxu3 %v12717_v4 }
 0x7d7   : > { %v8469_v48 = vpop.permute.xlu0 %8468 }
 0x7d8   : > { %3722 = vrot.lane.b32.xlu2 %v12582_v20, %s8788_s29  ;;  %v8470_v52 = vunpack.i.l.bf16 %v8469_v48  ;;  %v8471_v60 = vunpack.i.h.bf16 %v8469_v48  ;;  %v12763_v48 = vld [vmem:[%s15913_s3 + $0x90] sm:$0xff] }
 0x7da   : > { %v3561_v12 = vpop.permute.xlu2 %3560  ;;  %v3957_v34 = vsel %vm16368_vm4, %v16367_v55, %v8470_v52  ;;  %v12770_v52 = vld [vmem:[%s15913_s3 + $0x48] sm:$0xff] }
 0x7db   : > { %v3585_v43 = vsel %vm16364_vm12, %v12316_v28, %v3561_v12  ;;  %v12730_v1 = vpop.permute.xlu1 %3720  ;;  %v3083_v28 = vld [vmem:[%s15914_s4 + $0x8] sm:$0xff]  ;;  %vm16373_vm12 = vcmp.ge.s32.totalorder %v16337_v47, 1 }
 0x7dc   : > { %7774 = vmatpush.msk.msrb.mxu3 %vm16365_vm13, %v3585_v43  ;;  %v3766_v20 = vsel %vm16366_vm8, %v3719_v7, %v12730_v1  ;;  %v16369_v7 = vunpack.i.h.bf16 %v12205_v51  ;;  %v16371_v51 = vunpack.i.h.bf16 %v12231_v46  ;;  %vm16375_vm13 = vmmov %vm16368_vm4 }
 0x7dd   : > { %7743 = vmatpush.msk.msrb.mxu2 %vm412_vm5, %v3766_v20  ;;  %vm16376_vm8 = vmmov %vm16373_vm12 }
 0x7de   : > { %4115 = vmatmul.f32.gmra.mxu3 %v12735_v2  ;;  %7744 = vmatmul.msk.f32.vlgmr.msrb.gmra.mxu2 %vm2669_vm15, %v12740_v39  ;;  %v3955_v41 = vsel %vm16370_vm14, %v16369_v7, %v8471_v60  ;;  %vm16377_vm4 = vmmov %vm16376_vm8  ;;  %vm16378_vm14 = vcmask 482304  }
 0x7df   : > { %v3471_v8 = vpop.permute.xlu0 %3470  ;;  %4238 = vmatpush.msra.mxu2 %v3957_v34  ;;  %v12800_v34 = vld [vmem:[%s15913_s3 + $0x70] sm:$0xff] }
 0x7e0   : > { %3981 = vperm.xlu2 %8204, %v3083_v28   ;;  %v3491_v43 = vsel %vm685_vm3, %v11996_v30, %v3471_v8 }
 0x7e1   : > { %4239 = vmatpush.msra.mxu2 %v3955_v41  ;;  %v12815_v41 = vld [vmem:[%s15913_s3 + $0x98] sm:$0xff] }
 0x7e2   : > { %v8474_v3 = vpop.permute.xlu2 %8473 }
 0x7e3   : > { %v8476_v44 = vunpack.i.h.bf16 %v8474_v3  ;;  %v8475_v11 = vunpack.i.l.bf16 %v8474_v3  ;;  %v3477_v58 = vpop.permute.xlu1 %3476 }
 0x7e4   : > { %v3493_v57 = vsel %vm685_vm3, %v12034_v24, %v3477_v58  ;;  %v16374_v24 = vunpack.i.h.bf16 %v12270_v29 }
 0x7e5   : > { %v3953_v12 = vsel %vm16372_vm7, %v16371_v51, %v8475_v11  ;;  %7756 = vmatpush.msk.msrb.mxu1 %vm16373_vm12, %v3493_v57  ;;  %vm16379_vm7 = vmmov %vm16377_vm4  ;;  %vm16380_vm12 = vcmp.lt.s32.totalorder %v16337_v47, 15  ;;  %v16388_v51 = vld [vmem:[#allocation10_spill] sm:$0xff] }
 0x7e6   : > { %4240 = vmatpush.msra.mxu2 %v3953_v12  ;;  %4118 = vmatmul.f32.gmra.mxu3 %v12763_v48  ;;  %v3951_v20 = vsel %vm16375_vm13, %v16374_v24, %v8476_v44  ;;  %vm16381_vm13 = vmmov %vm16377_vm4  ;;  %v16389_v12 = vunpack.i.h.bf16 %v12297_v36 }
 0x7e7   : > { %v3465_v60 = vpop.permute.xlu0 %3464  ;;  %7745 = vmatmul.msk.f32.gmra.mxu2 %vm2669_vm15, %v12770_v52  ;;  %7757 = vmatpush.msk.msrb.mxu1 %vm16376_vm8, %v3491_v43  ;;  %vm16382_vm8 = vmmov %vm16378_vm14 }
 0x7e8   : > { %v3489_v46 = vsel %vm685_vm3, %v11974_v31, %v3465_v60  ;;  %4241 = vmatpush.msra.mxu2 %v3951_v20  ;;  %v16391_v20 = vld [vmem:[#allocation31_spill] sm:$0xff] }
 0x7e9   : > { %7758 = vmatpush.msk.msrb.mxu1 %vm16377_vm4, %v3489_v46  ;;  %vm16383_vm4 = vmmov %vm16380_vm12 }
 0x7ea   : > { %v3459_v30 = vpop.permute.xlu2 %3458 }
 0x7eb   : > { %v3487_v28 = vsel %vm685_vm3, %v12075_v23, %v3459_v30  ;;  %v3555_v29 = vpop.permute.xlu1 %3554 }
 0x7ec   : > { %v3583_v55 = vsel %vm16378_vm14, %v12343_v53, %v3555_v29  ;;  %7759 = vmatpush.msk.msrb.mxu1 %vm16379_vm7, %v3487_v28  ;;  %vm16384_vm14 = vmmov %vm16382_vm8  ;;  %v16394_v28 = vld [vmem:[#allocation12_spill] sm:$0xff]  ;;  %v16395_v29 = vunpack.i.h.bf16 %v12351_v5 }
 0x7ed   : > { %7775 = vmatpush.msk.msrb.mxu3 %vm16380_vm12, %v3583_v55  ;;  %vm16385_vm7 = vmmov %vm16383_vm4 }
 0x7ee   : > { %vm16386_vm12 = vmmov %vm16382_vm8 }
 0x7ef   : > { %v3543_v31 = vpop.permute.xlu0 %3542  ;;  %7746 = vmatmul.msk.f32.gmra.mxu2 %vm2669_vm15, %v12800_v34 }
 0x7f0   : > { %v3579_v3 = vsel %vm16384_vm14, %v12359_v14, %v3543_v31  ;;  %vm16390_vm14 = vcmask 359424  }
 0x7f2   : > { %v3453_v23 = vpop.permute.xlu2 %3452 }
 0x7f3   : > { %v3485_v8 = vsel %vm685_vm3, %v12100_v61, %v3453_v23  ;;  %v3549_v53 = vpop.permute.xlu1 %3548  ;;  %v16397_v23 = vld [vmem:[#allocation24_spill] sm:$0xff] }
 0x7f4   : > { %7760 = vmatpush.msk.msrb.mxu1 %vm16381_vm13, %v3485_v8  ;;  %v3581_v7 = vsel %vm16382_vm8, %v12338_v45, %v3549_v53  ;;  %vm16387_vm13 = vmmov %vm16383_vm4  ;;  %v16398_v8 = vunpack.i.h.bf16 %v12398_v49  ;;  %v16401_v53 = vld [vmem:[#allocation23_spill] sm:$0xff] }
 0x7f5   : > { %7776 = vmatpush.msk.msrb.mxu3 %vm16383_vm4, %v3581_v7 }
 0x7f7   : > { %v3537_v44 = vpop.permute.xlu0 %3536  ;;  %7747 = vmatmul.msk.f32.gmra.mxu2 %vm2669_vm15, %v12815_v41  ;;  %7777 = vmatpush.msk.msrb.mxu3 %vm16385_vm7, %v3579_v3  ;;  %vm16393_vm7 = vmmov %vm16390_vm14  ;;  %v16403_v3 = vld [vmem:[#allocation22_spill] sm:$0xff] }
 0x7f8   : > { %v3577_v61 = vsel %vm16386_vm12, %v12386_v0, %v3537_v44  ;;  %vm16396_vm12 = vmmov %vm16393_vm7  ;;  %v16405_v44 = vld [vmem:[#allocation19_spill] sm:$0xff] }
 0x7f9   : > { %7778 = vmatpush.msk.msrb.mxu3 %vm16387_vm13, %v3577_v61  ;;  %vm16399_vm13 = vmmov %vm16393_vm7 }
 0x7fa   : > { %v3531_v45 = vpop.permute.xlu2 %3530 }
 0x7fb   : > { %v3575_v11 = vsel %vm16382_vm8, %v12447_v35, %v3531_v45  ;;  %v8479_v58 = vpop.permute.xlu1 %8478  ;;  %v16392_v35 = vunpack.i.h.bf16 %v12327_v17  ;;  %vm16400_vm8 = vcmp.ge.s32.totalorder %v16337_v47, 1 }
 0x7fc   : > { %v8481_v57 = vunpack.i.h.bf16 %v8479_v58  ;;  %v8480_v14 = vunpack.i.l.bf16 %v8479_v58  ;;  %7779 = vmatpush.msk.msrb.mxu3 %vm16383_vm4, %v3575_v11  ;;  %vm16402_vm4 = vcmask 367616   ;;  %v16408_v11 = vld [vmem:[#allocation25_spill] sm:$0xff] }
 0x7fe   : > { %4217 = vmatpush.msrb.mxu3 %v16388_v51  ;;  %v3949_v43 = vsel %vm16390_vm14, %v16389_v12, %v8480_v14  ;;  %v3947_v46 = vsel %vm16393_vm7, %v16392_v35, %v8481_v57  ;;  %vm16404_vm14 = vmmov %vm16400_vm8  ;;  %v16413_v51 = vld [vmem:[#allocation45_spill] sm:$0xff]  ;;  %v16414_v12 = vld [vmem:[#allocation46_spill] sm:$0xff] }
 0x7ff   : > { %v8484_v0 = vpop.permute.xlu0 %8483  ;;  %4242 = vmatpush.msra.mxu2 %v3949_v43  ;;  %vm16406_vm7 = vmmov %vm16402_vm4  ;;  %v3393_v43 = vsel %vm636_vm6, %v16414_v12, %v16413_v51  ;;  %v16420_v35 = vld [vmem:[#allocation39_spill] sm:$0xff] }
 0x800   : > { %v8486_v60 = vunpack.i.h.bf16 %v8484_v0  ;;  %v8485_v24 = vunpack.i.l.bf16 %v8484_v0  ;;  %4218 = vmatpush.msrb.mxu3 %v16391_v20  ;;  %v16417_v0 = vld [vmem:[#allocation43_spill] sm:$0xff] }
 0x801   : > { %4243 = vmatpush.msra.mxu2 %v3947_v46  ;;  %v16421_v46 = vld [vmem:[#allocation40_spill] sm:$0xff] }
 0x802   : > { %v3435_v30 = vpop.permute.xlu2 %3434  ;;  %4219 = vmatpush.msrb.mxu3 %v16394_v28  ;;  %v3945_v36 = vsel %vm16396_vm12, %v16395_v29, %v8485_v24  ;;  %v3943_v17 = vsel %vm16399_vm13, %v16398_v8, %v8486_v60  ;;  %vm16407_vm12 = vmmov %vm16400_vm8  ;;  %v16425_v29 = vld [vmem:[#allocation35_spill] sm:$0xff] }
 0x803   : > { %v3447_v55 = vpop.permute.xlu1 %3446  ;;  %4244 = vmatpush.msra.mxu2 %v3945_v36  ;;  %vm16409_vm13 = vmmov %vm16400_vm8  ;;  %v16426_v36 = vld [vmem:[#allocation37_spill] sm:$0xff] }
 0x804   : > { %v3483_v31 = vsel %vm685_vm3, %v12173_v10, %v3447_v55  ;;  %4220 = vmatpush.msrb.mxu3 %v16397_v23  ;;  %v3387_v55 = vsel %vm636_vm6, %v16426_v36, %v16425_v29  ;;  %v16429_v23 = vld [vmem:[#allocation33_spill] sm:$0xff]  ;;  %v8765_v29 = vld [vmem:[%s8889_s22] sm:$0xff] }
 0x805   : > { %7761 = vmatpush.msk.msrb.mxu1 %vm16400_vm8, %v3483_v31  ;;  %4245 = vmatpush.msra.mxu2 %v3943_v17  ;;  %v16428_v31 = vld [vmem:[#allocation6_spill] sm:$0xff]  ;;  %v16432_v17 = vld [vmem:[#allocation20_spill] sm:$0xff] }
 0x806   : > { %4221 = vmatpush.msrb.mxu3 %v16401_v53  ;;  %v3385_v8 = vsel %vm636_vm6, %v16429_v23, %v16428_v31  ;;  %v16433_v53 = vld [vmem:[#allocation29_spill] sm:$0xff] }
 0x807   : > { %v3669_v5 = vpop.permute.xlu0 %3668 }
 0x808   : > { %v3685_v7 = vsel %vm16402_vm4, %v12396_v32, %v3669_v5  ;;  %4222 = vmatpush.msrb.mxu3 %v16403_v3  ;;  %v3479_v32 = vsel %vm685_vm3, %v12166_v9, %v3435_v30  ;;  %vm16410_vm4 = vcmp.lt.s32.totalorder %v16337_v47, 15  ;;  %v3389_v30 = vsel %vm636_vm6, %v16421_v46, %v16420_v35 }
 0x809   : > { %7780 = vmatpush.msk.msra.mxu2 %vm16404_vm14, %v3685_v7  ;;  %vm16412_vm14 = vmmov %vm16410_vm4  ;;  %v3383_v5 = vsel %vm636_vm6, %v16433_v53, %v16432_v17  ;;  %v16435_v7 = vld [vmem:[#allocation7_spill] sm:$0xff] }
 0x80a   : > { %v3663_v10 = vpop.permute.xlu2 %3662  ;;  %4223 = vmatpush.msrb.mxu3 %v16405_v44 }
 0x80b   : > { %v3683_v49 = vsel %vm16406_vm7, %v12435_v25, %v3663_v10  ;;  %v3441_v61 = vpop.permute.xlu1 %3440  ;;  %vm16415_vm7 = vmmov %vm16410_vm4 }
 0x80c   : > { %7781 = vmatpush.msk.msra.mxu2 %vm16407_vm12, %v3683_v49  ;;  %v3481_v45 = vsel %vm685_vm3, %v12153_v19, %v3441_v61  ;;  %4224 = vmatpush.msrb.mxu3 %v16408_v11  ;;  %v16411_v19 = vld [vmem:[#allocation52_spill] sm:$0xff]  ;;  %vm16418_vm12 = vmmov %vm16410_vm4  ;;  %v16442_v61 = vld [vmem:[#allocation26_spill] sm:$0xff] }
 0x80d   : > { %7762 = vmatpush.msk.msrb.mxu1 %vm16409_vm13, %v3481_v45  ;;  %4225 = vmatmul.f32.vlgmr.msrb.gmra.mxu3 %v12518_v42  ;;  %vm16419_vm13 = vcmask 367616   ;;  %v16447_v11 = vld [vmem:[#allocation4_spill] sm:$0xff] }
 0x80f   : > { %v3375_v58 = vpop.permute.xlu0 %3374  ;;  %7763 = vmatpush.msk.msrb.mxu1 %vm16400_vm8, %v3479_v32  ;;  %vm16422_vm8 = vmmov %vm16410_vm4 }
 0x810   : > { %v3395_v42 = vsel %vm636_vm6, %v16411_v19, %v3375_v58  ;;  %v4052_v19 = vpop.f32.mrf.mxu0 }
 0x812   : > { %v3651_v25 = vpop.permute.xlu2 %3650 }
 0x813   : > { %v3381_v57 = vpop.permute.xlu1 %3380 }
 0x814   : > { %v3397_v14 = vsel %vm636_vm6, %v12207_v54, %v3381_v57  ;;  %v16416_v54 = vld [vmem:[#allocation42_spill] sm:$0xff] }
 0x815   : > { %7764 = vmatpush.msk.msrb.mxu1 %vm16410_vm4, %v3397_v14  ;;  %4228 = vmatmul.f32.gmra.mxu3 %v12546_v26  ;;  %v3391_v60 = vsel %vm636_vm6, %v16417_v0, %v16416_v54  ;;  %vm16423_vm4 = vcmp.ge.s32.totalorder %v16337_v47, 1  ;;  %v16452_v57 = vld [vmem:[#allocation30_spill] sm:$0xff] }
 0x817   : > { %7765 = vmatpush.msk.msrb.mxu1 %vm16412_vm14, %v3395_v42  ;;  %v3645_v9 = vpop.permute.xlu0 %3644  ;;  %vm16424_vm14 = vmmov %vm16419_vm13  ;;  %v4081_v42 = vpop.f32.mrf.mxu1 }
 0x818   : > { %v3679_v28 = vsel %vm16424_vm14, %v12526_v33, %v3651_v25  ;;  %vm16431_vm14 = vmmov %vm16419_vm13 }
 0x819   : > { %7766 = vmatpush.msk.msrb.mxu1 %vm16415_vm7, %v3393_v43 }
 0x81a   : > { %v3639_v26 = vpop.permute.xlu2 %3638 }
 0x81b   : > { %v3657_v24 = vpop.permute.xlu1 %3656  ;;  %7767 = vmatpush.msk.msrb.mxu1 %vm16418_vm12, %v3391_v60  ;;  %vm16427_vm12 = vmmov %vm16423_vm4  ;;  %v3675_v33 = vsel %vm16431_vm14, %v12617_v16, %v3639_v26 }
 0x81c   : > { %v3681_v20 = vsel %vm16419_vm13, %v12473_v18, %v3657_v24  ;;  %v3677_v18 = vsel %vm16419_vm13, %v12557_v63, %v3645_v9  ;;  %vm16436_vm13 = vcmask 351232   ;;  %vm16439_vm14 = vmmov %vm16415_vm7 }
 0x81d   : > { %7768 = vmatpush.msk.msrb.mxu1 %vm16422_vm8, %v3389_v30  ;;  %7782 = vmatpush.msk.msra.mxu2 %vm16423_vm4, %v3681_v20  ;;  %vm16430_vm8 = vmmov %vm16415_vm7 }
 0x81e   : > { %4231 = vmatmul.f32.gmra.mxu3 %v12570_v15 }
 0x81f   : > { %7769 = vmatpush.msk.msrb.mxu1 %vm16415_vm7, %v3387_v55  ;;  %7783 = vmatpush.msk.msra.mxu2 %vm16427_vm12, %v3679_v28  ;;  %v3759_v15 = vpop.permute.xlu0 %3758  ;;  %vm16434_vm12 = vmmov %vm16423_vm4 }
 0x821   : > { %7770 = vmatpush.msk.msrb.mxu1 %vm16430_vm8, %v3385_v8  ;;  %7784 = vmatpush.msk.msra.mxu2 %vm16423_vm4, %v3677_v18  ;;  %vm16437_vm8 = vmmov %vm16415_vm7 }
 0x822   : > { %v3753_v10 = vpop.permute.xlu2 %3752  ;;  %vm16438_vm4 = vmmov %vm16436_vm13 }
 0x823   : > { %7771 = vmatpush.msk.msrb.mxu1 %vm16415_vm7, %v3383_v5  ;;  %7785 = vmatpush.msk.msra.mxu2 %vm16434_vm12, %v3675_v33  ;;  %v3779_v16 = vsel %vm16438_vm4, %v12539_v50, %v3759_v15  ;;  %vm16440_vm7 = vmmov %vm16438_vm4 }
 0x824   : > { %v3765_v63 = vpop.permute.xlu1 %3764  ;;  %4196 = vmatmul.f32.vlgmr.msrb.gmra.mxu1 %v16435_v7  ;;  %v3777_v44 = vsel %vm16440_vm7, %v12537_v40, %v3753_v10  ;;  %vm16441_vm12 = vmmov %vm16437_vm8  ;;  %v8766_v7 = vld [vmem:[%s8889_s22 + $0x10] sm:$0xff] }
 0x825   : > { %v3781_v3 = vsel %vm16436_vm13, %v12445_v22, %v3765_v63  ;;  %vm16443_vm13 = vcmask 367616  }
 0x826   : > { %7788 = vmatpush.msk.msra.mxu0 %vm16437_vm8, %v3781_v3  ;;  %4234 = vmatmul.f32.gmra.mxu3 %v12606_v6  ;;  %vm16444_vm8 = vcmp.ge.s32.totalorder %v16337_v47, 1  ;;  %vm16445_vm4 = vmmov %vm16443_vm13 }
 0x827   : > { %v3627_v49 = vpop.permute.xlu0 %3626 }
 0x828   : > { %7789 = vmatpush.msk.msra.mxu0 %vm16439_vm14, %v3779_v16  ;;  %v3671_v50 = vsel %vm16445_vm4, %v12672_v62, %v3627_v49  ;;  %vm16446_vm14 = vmmov %vm16444_vm8 }
 0x829   : > { %vm16450_vm4 = vmmov %vm16440_vm7 }
 0x82a   : > { %7790 = vmatpush.msk.msra.mxu0 %vm16441_vm12, %v3777_v44  ;;  %v3741_v40 = vpop.permute.xlu2 %3740 }
 0x82c   : > { %v3633_v22 = vpop.permute.xlu1 %3632  ;;  %4199 = vmatmul.f32.gmra.mxu1 %v16442_v61 }
 0x82d   : > { %v3673_v45 = vsel %vm16443_vm13, %v12678_v27, %v3633_v22  ;;  %vm16448_vm13 = vmmov %vm16440_vm7 }
 0x82e   : > { %7786 = vmatpush.msk.msra.mxu2 %vm16444_vm8, %v3673_v45  ;;  %v3773_v27 = vsel %vm16448_vm13, %v12633_v38, %v3741_v40  ;;  %vm16449_vm8 = vmmov %vm16441_vm12 }
 0x82f   : > { %v3735_v58 = vpop.permute.xlu0 %3734  ;;  %vm16455_vm13 = vmmov %vm16450_vm4 }
 0x830   : > { %7787 = vmatpush.msk.msra.mxu2 %vm16446_vm14, %v3671_v50  ;;  %v3771_v62 = vsel %vm16450_vm4, %v12665_v59, %v3735_v58  ;;  %vm16451_vm14 = vmmov %vm16449_vm8 }
 0x831   : > { %4254 = vmatmul.f32.vlgmr.msra.gmra.mxu2 %v12694_v21  ;;  %v4023_v21 = vpop.f32.mrf.mxu2 }
 0x834   : > { %v3747_v6 = vpop.permute.xlu1 %3746  ;;  %4202 = vmatmul.f32.gmra.mxu1 %v16447_v11  ;;  %v8767_v11 = vld [vmem:[%s8889_s22 + $0x20] sm:$0xff] }
 0x835   : > { %v3775_v32 = vsel %vm16440_vm7, %v12642_v37, %v3747_v6  ;;  %v3723_v37 = vpop.permute.xlu2 %3722  ;;  %vm16453_vm7 = vmmov %vm16450_vm4 }
 0x836   : > { %7791 = vmatpush.msk.msra.mxu0 %vm16441_vm12, %v3775_v32  ;;  %vm16454_vm12 = vmmov %vm16449_vm8  ;;  %v3767_v38 = vsel %vm16455_vm13, %v12730_v1, %v3723_v37  ;;  %v8768_v37 = vld [vmem:[%s8889_s22 + $0x30] sm:$0xff] }
 0x838   : > { %7792 = vmatpush.msk.msra.mxu0 %vm16449_vm8, %v3773_v27 }
 0x839   : > { %4257 = vmatmul.f32.gmra.mxu2 %v12717_v4  ;;  %v4026_v59 = vpop.f32.mrf.mxu2  ;;  %v12980_v4 = vpop.permute.xlu0 %3991 }
 0x83a   : > { %7793 = vmatpush.msk.msra.mxu0 %vm16451_vm14, %v3771_v62 }
 0x83c   : > { %v3729_v25 = vpop.permute.xlu1 %3728  ;;  %4205 = vmatmul.f32.gmra.mxu1 %v16452_v57 }
 0x83d   : > { %v3769_v14 = vsel %vm16453_vm7, %v12712_v56, %v3729_v25 }
 0x83e   : > { %7794 = vmatpush.msk.msra.mxu0 %vm16454_vm12, %v3769_v14  ;;  %vm16484_vm12 = vmmov %vm16455_vm13  ;;  %vm16485_vm13 = vcmp.ge.s32.totalorder %v16337_v47, 1 }
 0x840   : > { %7795 = vmatpush.msk.msra.mxu0 %vm16449_vm8, %v3767_v38  ;;  %vm16486_vm8 = vcmask 367616  }
 0x841   : > { %4260 = vmatmul.f32.gmra.mxu2 %v12735_v2  ;;  %7796 = vmatmul.msk.f32.vlgmr.msra.gmra.mxu0 %vm2669_vm15, %v12740_v39  ;;  %v4029_v56 = vpop.f32.mrf.mxu2  ;;  %v12987_v1 = vpop.permute.xlu0 %3976 }
 0x842   : > { %v4024_v2 = vadd.f32 %v4023_v21, %v12987_v1 }
 0x844   : > { %v4053_v51 = vadd.f32 %v4052_v19, %v4024_v2  ;;  %v12995_v20 = vpop.permute.xlu1 %3986 }
 0x846   : > { %v4082_v12 = vadd.f32 %v4081_v42, %v4053_v51 }
 0x849   : > { %4263 = vmatmul.f32.gmra.mxu2 %v12763_v48  ;;  %7797 = vmatmul.msk.f32.gmra.mxu0 %vm2669_vm15, %v12770_v52  ;;  %v4032_v39 = vpop.f32.mrf.mxu2  ;;  %v12992_v48 = vpop.permute.xlu2 %3981 }
 0x84a   : > { %v4055_v52 = vpop.f32.mrf.mxu0  ;;  %v4027_v43 = vadd.f32 %v4026_v59, %v12992_v48  ;;  %v4033_v17 = vadd.f32 %v4032_v39, %v12980_v4 }
 0x84c   : > { %v4056_v26 = vadd.f32 %v4055_v52, %v4027_v43 }
 0x851   : > { %7798 = vmatmul.msk.f32.gmra.mxu0 %vm2669_vm15, %v12800_v34  ;;  %v4110_v9 = vpop.f32.mrf.mxu3  ;;  %v4084_v34 = vpop.f32.mrf.mxu1 }
 0x852   : > { %v4111_v54 = vadd.f32 %v4110_v9, %v4082_v12  ;;  %v4085_v30 = vadd.f32 %v4084_v34, %v4056_v26  ;;  %v4058_v28 = vpop.f32.mrf.mxu0 }
 0x859   : > { %7799 = vmatmul.msk.f32.gmra.mxu0 %vm2669_vm15, %v12815_v41  ;;  %v4113_v60 = vpop.f32.mrf.mxu3  ;;  %v4030_v41 = vadd.f32 %v4029_v56, %v12995_v20  ;;  %v4087_v18 = vpop.f32.mrf.mxu1  ;;  %vm16480_vm15 = vcmask 359424  }
 0x85a   : > { %v4114_v55 = vadd.f32 %v4113_v60, %v4085_v30  ;;  %v4061_v10 = vpop.f32.mrf.mxu0  ;;  %v8769_v30 = vld [vmem:[%s8889_s22 + $0x8] sm:$0xff]  ;;  %vm16481_vm4 = vmmov %vm16480_vm15 }
 0x85b   : > { %v4059_v23 = vadd.f32 %v4058_v28, %v4030_v41  ;;  %v4062_v44 = vadd.f32 %v4061_v10, %v4033_v17  ;;  %vm16482_vm14 = vmmov %vm16481_vm4 }
 0x85c   : > { %vm16483_vm7 = vmmov %vm16481_vm4 }
 0x85d   : > { %v4088_v53 = vadd.f32 %v4087_v18, %v4059_v23 }
 0x861   : > { %v4139_v0 = vpop.f32.mrf.mxu2  ;;  %v4116_v33 = vpop.f32.mrf.mxu3 }
 0x862   : > { %v4140_v24 = vadd.f32 %v4139_v0, %v4111_v54  ;;  %v4117_v63 = vadd.f32 %v4116_v33, %v4088_v53  ;;  %v4090_v22 = vpop.f32.mrf.mxu1  ;;  %v4168_v57 = vpop.f32.mrf.mxu0  ;;  %v8770_v53 = vld [vmem:[%s8889_s22 + $0x18] sm:$0xff] }
 0x863   : > { %v4091_v50 = vadd.f32 %v4090_v22, %v4062_v44  ;;  %v4169_v42 = vadd.f32 %v4168_v57, %v12987_v1 }
 0x864   : > { %v4296_v35 = vmul.f32 0.2, %v4140_v24 }
 0x866   : > { %v4304_v46 = vmax.f32 %v4140_v24, %v4296_v35 }
 0x868   : > { %v12999_v36 = vadd.f32 %v8765_v29, %v4304_v46 }
 0x869   : > { %v4119_v45 = vpop.f32.mrf.mxu3 }
 0x86a   : > { %16456 = vst [vmem:[#allocation5_spill] sm:$0xff] %v12999_v36  ;;  %v4142_v31 = vpop.f32.mrf.mxu2  ;;  %4346 = vrot.lane.b32.xlu1 %v12999_v36, %s8782_s23  ;;  %v4120_v6 = vadd.f32 %v4119_v45, %v4091_v50  ;;  %v4171_v14 = vpop.f32.mrf.mxu0  ;;  %v8771_v50 = vld [vmem:[%s8889_s22 + $0x28] sm:$0xff] }
 0x86b   : > { %v4143_v8 = vadd.f32 %v4142_v31, %v4114_v55  ;;  %v4172_v12 = vadd.f32 %v4171_v14, %v12992_v48 }
 0x86d   : > { %v4298_v15 = vmul.f32 0.2, %v4143_v8 }
 0x86f   : > { %v4306_v5 = vmax.f32 %v4143_v8, %v4298_v15 }
 0x871   : > { %v13005_v3 = vadd.f32 %v8766_v7, %v4306_v5 }
 0x872   : > { %v4145_v16 = vpop.f32.mrf.mxu2  ;;  %v4174_v38 = vpop.f32.mrf.mxu0 }
 0x873   : > { %16457 = vst [vmem:[#allocation51_spill] sm:$0xff] %v13005_v3  ;;  %v4146_v49 = vadd.f32 %v4145_v16, %v4117_v63  ;;  %4350 = vrot.lane.b32.xlu2 %v13005_v3, %s8782_s23  ;;  %v4175_v41 = vadd.f32 %v4174_v38, %v12995_v20 }
 0x875   : > { %v4300_v61 = vmul.f32 0.2, %v4146_v49 }
 0x877   : > { %v4308_v40 = vmax.f32 %v4146_v49, %v4300_v61 }
 0x879   : > { %v13010_v32 = vadd.f32 %v8767_v11, %v4308_v40 }
 0x87a   : > { %v4148_v58 = vpop.f32.mrf.mxu2  ;;  %v4177_v2 = vpop.f32.mrf.mxu0 }
 0x87b   : > { %16458 = vst [vmem:[#allocation49_spill] sm:$0xff] %v13010_v32  ;;  %v4149_v27 = vadd.f32 %v4148_v58, %v4120_v6  ;;  %4354 = vrot.lane.b32.xlu0 %v13010_v32, %s8782_s23  ;;  %v4178_v17 = vadd.f32 %v4177_v2, %v12980_v4 }
 0x87d   : > { %v4302_v62 = vmul.f32 0.2, %v4149_v27 }
 0x87f   : > { %v4310_v21 = vmax.f32 %v4149_v27, %v4302_v62 }
 0x881   : > { %v13015_v25 = vadd.f32 %v8768_v37, %v4310_v21  ;;  %v8772_v21 = vld [vmem:[%s8889_s22 + $0x38] sm:$0xff] }
 0x883   : > { %16459 = vst [vmem:[#allocation8_spill] sm:$0xff] %v13015_v25  ;;  %4358 = vrot.lane.b32.xlu1 %v13015_v25, %s8782_s23 }
 0x890   : > { %v4226_v56 = vpop.f32.mrf.mxu3 }
 0x898   : > { %v4229_v52 = vpop.f32.mrf.mxu3 }
 0x8a1   : > { %v4197_v59 = vpop.f32.mrf.mxu1  ;;  %v4232_v29 = vpop.f32.mrf.mxu3 }
 0x8a2   : > { %v4198_v9 = vadd.f32 %v4197_v59, %v4169_v42 }
 0x8a4   : > { %v4227_v51 = vadd.f32 %v4226_v56, %v4198_v9 }
 0x8a9   : > { %v4200_v39 = vpop.f32.mrf.mxu1  ;;  %v4235_v44 = vpop.f32.mrf.mxu3 }
 0x8aa   : > { %v4201_v0 = vadd.f32 %v4200_v39, %v4172_v12 }
 0x8ac   : > { %v4230_v35 = vadd.f32 %v4229_v52, %v4201_v0 }
 0x8b1   : > { %v4203_v26 = vpop.f32.mrf.mxu1 }
 0x8b2   : > { %v4204_v18 = vadd.f32 %v4203_v26, %v4175_v41 }
 0x8b4   : > { %v4255_v19 = vpop.f32.mrf.mxu2  ;;  %v4233_v8 = vadd.f32 %v4232_v29, %v4204_v18 }
 0x8b5   : > { %v4256_v43 = vadd.f32 %v4255_v19, %v4227_v51 }
 0x8b9   : > { %v4206_v15 = vpop.f32.mrf.mxu1 }
 0x8ba   : > { %v4207_v10 = vadd.f32 %v4206_v15, %v4178_v17 }
 0x8bc   : > { %v4258_v34 = vpop.f32.mrf.mxu2  ;;  %v4236_v22 = vadd.f32 %v4235_v44, %v4207_v10 }
 0x8bd   : > { %v4259_v1 = vadd.f32 %v4258_v34, %v4230_v35 }
 0x8be   : > { %v4284_v54 = vpop.f32.mrf.mxu0 }
 0x8bf   : > { %v4285_v60 = vadd.f32 %v4284_v54, %v4256_v43 }
 0x8c1   : > { %v4297_v24 = vmul.f32 0.2, %v4285_v60 }
 0x8c3   : > { %v4305_v46 = vmax.f32 %v4285_v60, %v4297_v24 }
 0x8c4   : > { %v4261_v31 = vpop.f32.mrf.mxu2 }
 0x8c5   : > { %v13023_v28 = vadd.f32 %v8769_v30, %v4305_v46  ;;  %v4262_v20 = vadd.f32 %v4261_v31, %v4233_v8 }
 0x8c6   : > { %v4287_v55 = vpop.f32.mrf.mxu0 }
 0x8c7   : > { %16460 = vst [vmem:[#allocation36_spill] sm:$0xff] %v13023_v28  ;;  %v4288_v48 = vadd.f32 %v4287_v55, %v4259_v1  ;;  %4348 = vrot.lane.b32.xlu2 %v13023_v28, %s8782_s23  ;;  %v7812_v28 = vld [vmem:[%s15912_s2 + $0x80] sm:$0xff] }
 0x8c9   : > { %v4299_v23 = vmul.f32 0.2, %v4288_v48 }
 0x8cb   : > { %v4307_v33 = vmax.f32 %v4288_v48, %v4299_v23 }
 0x8cc   : > { %v4264_v4 = vpop.f32.mrf.mxu2 }
 0x8cd   : > { %v13029_v5 = vadd.f32 %v8770_v53, %v4307_v33  ;;  %v13031_v63 = vpop.permute.xlu2 %4350  ;;  %v4265_v45 = vadd.f32 %v4264_v4, %v4236_v22 }
 0x8ce   : > { %4381 = vst.msk [vmem:[#allocation2 + $0x20] sm:$0xff] %vm518_vm0, %v13031_v63  ;;  %v4290_v7 = vpop.f32.mrf.mxu0 }
 0x8cf   : > { %16461 = vst [vmem:[#allocation18_spill] sm:$0xff] %v13029_v5  ;;  %v4291_v16 = vadd.f32 %v4290_v7, %v4262_v20  ;;  %4352 = vrot.lane.b32.xlu0 %v13029_v5, %s8782_s23 }
 0x8d1   : > { %v4301_v49 = vmul.f32 0.2, %v4291_v16 }
 0x8d3   : > { %v4309_v61 = vmax.f32 %v4291_v16, %v4301_v49 }
 0x8d5   : > { %v13038_v40 = vadd.f32 %v8771_v50, %v4309_v61  ;;  %v13056_v14 = vld [vmem:[#allocation2 + $0x20] sm:$0xff] }
 0x8d6   : > { %v4293_v6 = vpop.f32.mrf.mxu0 }
 0x8d7   : > { %16462 = vst [vmem:[#allocation3_spill] sm:$0xff] %v13038_v40  ;;  %v4294_v11 = vadd.f32 %v4293_v6, %v4265_v45  ;;  %4356 = vrot.lane.b32.xlu1 %v13038_v40, %s8782_s23 }
 0x8d9   : > { %v4303_v58 = vmul.f32 0.2, %v4294_v11 }
 0x8db   : > { %v4311_v27 = vmax.f32 %v4294_v11, %v4303_v58 }
 0x8dc   : > { %v4347_v62 = vpop.permute.xlu1 %4346 }
 0x8dd   : > { %v13043_v37 = vadd.f32 %v8772_v21, %v4311_v27  ;;  %4378 = vst.msk [vmem:[#allocation2] sm:$0xff] %vm518_vm0, %v4347_v62 }
 0x8df   : > { %16463 = vst [vmem:[#allocation16_spill] sm:$0xff] %v13043_v37  ;;  %4360 = vrot.lane.b32.xlu2 %v13043_v37, %s8782_s23 }
 0x8e4   : > { %v13048_v57 = vld [vmem:[#allocation2] sm:$0xff] }
 0x8e5   : > { %4606 = vrot.lane.b32.xlu1 %v13048_v57, %s8787_s28  ;;  %4510 = vrot.lane.b32.xlu0 %v13048_v57, %s8785_s26 }
 0x8e7   : > { %4558 = vrot.lane.b32.xlu2 %v13048_v57, %s8786_s27 }
 0x8ed   : > { %v13058_v38 = vpop.permute.xlu0 %4354  ;;  %4462 = vrot.lane.b32.xlu1 %v13048_v57, %s8784_s25  ;;  %4612 = vrot.lane.b32.xlu0 %v13056_v14, %s8787_s28 }
 0x8ee   : > { %4384 = vst.msk [vmem:[#allocation2 + $0x40] sm:$0xff] %vm518_vm0, %v13058_v38 }
 0x8ef   : > { %4516 = vrot.lane.b32.xlu2 %v13056_v14, %s8785_s26 }
 0x8f5   : > { %v13068_v59 = vpop.permute.xlu1 %4358  ;;  %4414 = vrot.lane.b32.xlu1 %v13048_v57, %s8783_s24  ;;  %4468 = vrot.lane.b32.xlu0 %v13056_v14, %s8784_s25  ;;  %v13078_v56 = vld [vmem:[#allocation2 + $0x40] sm:$0xff] }
 0x8f6   : > { %4387 = vst.msk [vmem:[#allocation2 + $0x60] sm:$0xff] %vm518_vm0, %v13068_v59 }
 0x8f7   : > { %4564 = vrot.lane.b32.xlu2 %v13056_v14, %s8786_s27 }
 0x8fd   : > { %4570 = vrot.lane.b32.xlu0 %v13078_v56, %s8786_s27  ;;  %v13082_v19 = vld [vmem:[#allocation2 + $0x60] sm:$0xff] }
 0x8fe   : > { %4624 = vrot.lane.b32.xlu1 %v13082_v19, %s8787_s28 }
 0x8ff   : > { %4420 = vrot.lane.b32.xlu2 %v13056_v14, %s8783_s24 }
 0x905   : > { %4426 = vrot.lane.b32.xlu0 %v13078_v56, %s8783_s24 }
 0x906   : > { %4480 = vrot.lane.b32.xlu1 %v13082_v19, %s8784_s25 }
 0x907   : > { %4522 = vrot.lane.b32.xlu2 %v13078_v56, %s8785_s26 }
 0x90e   : > { %4432 = vrot.lane.b32.xlu1 %v13082_v19, %s8783_s24 }
 0x90f   : > { %4618 = vrot.lane.b32.xlu2 %v13078_v56, %s8787_s28 }
 0x917   : > { %4474 = vrot.lane.b32.xlu2 %v13078_v56, %s8784_s25 }
 0x91f   : > { %4528 = vrot.lane.b32.xlu2 %v13082_v19, %s8785_s26 }
 0x921   : > { %v4349_v42 = vpop.permute.xlu2 %4348 }
 0x922   : > { %v13103_v2 = vsel %vm501_vm1, %v4347_v62, %v4349_v42  ;;  %4380 = vst.msk [vmem:[#allocation2 + $0x10] sm:$0xff] %vm501_vm1, %v4349_v42  ;;  %v7813_v42 = vld [vmem:[%s15912_s2 + $0x88] sm:$0xff] }
 0x923   : > { %4560 = vrot.lane.b32.xlu0 %v13103_v2, %s8786_s27  ;;  %v8492_v39 = vpack.i.bf16 %v13103_v2, %v13048_v57 }
 0x927   : > { %4576 = vrot.lane.b32.xlu2 %v13082_v19, %s8786_s27 }
 0x929   : > { %v13110_v9 = vld [vmem:[#allocation2 + $0x10] sm:$0xff] }
 0x92a   : > { %4514 = vrot.lane.b32.xlu1 %v13110_v9, %s8785_s26 }
 0x92b   : > { %8493 = vrot.lane.b32.xlu0 %v8492_v39, %s8790_s30 }
 0x92f   : > { %4466 = vrot.lane.b32.xlu2 %v13110_v9, %s8784_s25 }
 0x932   : > { %4610 = vrot.lane.b32.xlu1 %v13110_v9, %s8787_s28 }
 0x937   : > { %4608 = vrot.lane.b32.xlu2 %v13103_v2, %s8787_s28 }
 0x939   : > { %v4361_v51 = vpop.permute.xlu2 %4360 }
 0x93a   : > { %4389 = vst.msk [vmem:[#allocation2 + $0x70] sm:$0xff] %vm501_vm1, %v4361_v51  ;;  %8488 = vrot.lane.b32.xlu1 %v8492_v39, %s8791_s12  ;;  %v4365_v31 = vsel %vm501_vm1, %v13068_v59, %v4361_v51 }
 0x93b   : > { %v8537_v49 = vpack.i.bf16 %v4365_v31, %v13082_v19 }
 0x93f   : > { %4464 = vrot.lane.b32.xlu2 %v13103_v2, %s8784_s25 }
 0x941   : > { %v4353_v52 = vpop.permute.xlu0 %4352  ;;  %v13127_v12 = vpop.permute.xlu2 %4558  ;;  %v13164_v46 = vld [vmem:[#allocation2 + $0x70] sm:$0xff] }
 0x942   : > { %4383 = vst.msk [vmem:[#allocation2 + $0x30] sm:$0xff] %vm501_vm1, %v4353_v52  ;;  %4512 = vrot.lane.b32.xlu1 %v13103_v2, %s8785_s26  ;;  %v13134_v43 = vsel %vm501_vm1, %v13031_v63, %v4353_v52 }
 0x943   : > { %v8502_v34 = vpack.i.bf16 %v13134_v43, %v13056_v14 }
 0x947   : > { %4416 = vrot.lane.b32.xlu2 %v13103_v2, %s8783_s24 }
 0x949   : > { %v13140_v54 = vpop.permute.xlu2 %4516  ;;  %v4357_v0 = vpop.permute.xlu1 %4356  ;;  %v13142_v60 = vld [vmem:[#allocation2 + $0x30] sm:$0xff] }
 0x94a   : > { %4386 = vst.msk [vmem:[#allocation2 + $0x50] sm:$0xff] %vm501_vm1, %v4357_v0  ;;  %4520 = vrot.lane.b32.xlu0 %v13142_v60, %s8785_s26  ;;  %8503 = vrot.lane.b32.xlu1 %v8502_v34, %s8791_s12  ;;  %v8497_v24 = vpack.i.bf16 %v13110_v9, %v13142_v60  ;;  %v4364_v48 = vsel %vm501_vm1, %v13058_v38, %v4357_v0 }
 0x94b   : > { %v8512_v8 = vpack.i.bf16 %v4364_v48, %v13078_v56 }
 0x94f   : > { %8498 = vrot.lane.b32.xlu2 %v8497_v24, %s8791_s12 }
 0x951   : > { %v13155_v26 = vpop.permute.xlu2 %4564  ;;  %v13162_v35 = vld [vmem:[#allocation2 + $0x50] sm:$0xff] }
 0x952   : > { %4472 = vrot.lane.b32.xlu0 %v13142_v60, %s8784_s25  ;;  %4614 = vrot.lane.b32.xlu1 %v13134_v43, %s8787_s28  ;;  %v8522_v1 = vpack.i.bf16 %v13162_v35, %v13164_v46 }
 0x957   : > { %8508 = vrot.lane.b32.xlu2 %v8502_v34, %s8790_s30  ;;  %v13171_v30 = vpop.permute.xlu1 %4606  ;;  %v13202_v33 = vpop.permute.xlu0 %4510 }
 0x959   : > { %v13166_v41 = vpop.permute.xlu2 %4420 }
 0x95a   : > { %4616 = vrot.lane.b32.xlu0 %v13142_v60, %s8787_s28  ;;  %4470 = vrot.lane.b32.xlu1 %v13134_v43, %s8784_s25  ;;  %16464 = vst [vmem:[#allocation48_spill] sm:$0xff] %v13166_v41 }
 0x95f   : > { %8523 = vrot.lane.b32.xlu2 %v8522_v1, %s8791_s12  ;;  %v13185_v55 = vpop.permute.xlu1 %4462  ;;  %v13213_v20 = vpop.permute.xlu0 %4612 }
 0x961   : > { %v13177_v29 = vpop.permute.xlu2 %4522 }
 0x962   : > { %4518 = vrot.lane.b32.xlu0 %v13134_v43, %s8785_s26  ;;  %4526 = vrot.lane.b32.xlu1 %v13162_v35, %s8785_s26 }
 0x967   : > { %4628 = vrot.lane.b32.xlu2 %v13164_v46, %s8787_s28  ;;  %v13198_v23 = vpop.permute.xlu1 %4414  ;;  %v13222_v7 = vpop.permute.xlu0 %4468 }
 0x968   : > { %16465 = vst [vmem:[#allocation13_spill] sm:$0xff] %v13198_v23 }
 0x969   : > { %v13188_v18 = vpop.permute.xlu2 %4618 }
 0x96a   : > { %4566 = vrot.lane.b32.xlu0 %v13134_v43, %s8786_s27  ;;  %4478 = vrot.lane.b32.xlu1 %v13162_v35, %s8784_s25 }
 0x96f   : > { %8528 = vrot.lane.b32.xlu2 %v8522_v1, %s8790_s30  ;;  %v13233_v44 = vpop.permute.xlu0 %4570 }
 0x970   : > { %v13209_v17 = vpop.permute.xlu1 %4624 }
 0x971   : > { %v13206_v15 = vpop.permute.xlu2 %4474 }
 0x972   : > { %4422 = vrot.lane.b32.xlu0 %v13134_v43, %s8783_s24  ;;  %4622 = vrot.lane.b32.xlu1 %v13162_v35, %s8787_s28 }
 0x977   : > { %4626 = vrot.lane.b32.xlu2 %v4365_v31, %s8787_s28  ;;  %v13245_v61 = vpop.permute.xlu0 %4426 }
 0x978   : > { %v13218_v63 = vpop.permute.xlu1 %4480  ;;  %16467 = vst [vmem:[#allocation14_spill] sm:$0xff] %v13245_v61 }
 0x979   : > { %v13215_v53 = vpop.permute.xlu2 %4528 }
 0x97a   : > { %4524 = vrot.lane.b32.xlu0 %v4364_v48, %s8785_s26  ;;  %8513 = vrot.lane.b32.xlu1 %v8512_v8, %s8791_s12 }
 0x97f   : > { %4482 = vrot.lane.b32.xlu2 %v4365_v31, %s8784_s25 }
 0x980   : > { %v13230_v16 = vpop.permute.xlu1 %4432 }
 0x981   : > { %v13224_v10 = vpop.permute.xlu2 %4576  ;;  %16466 = vst [vmem:[#allocation17_spill] sm:$0xff] %v13230_v16 }
 0x982   : > { %4620 = vrot.lane.b32.xlu0 %v4364_v48, %s8787_s28  ;;  %4572 = vrot.lane.b32.xlu1 %v4364_v48, %s8786_s27 }
 0x987   : > { %4434 = vrot.lane.b32.xlu2 %v4365_v31, %s8783_s24 }
 0x989   : > { %v13236_v4 = vpop.permute.xlu2 %4466 }
 0x98a   : > { %4476 = vrot.lane.b32.xlu0 %v4364_v48, %s8784_s25  ;;  %8518 = vrot.lane.b32.xlu1 %v8512_v8, %s8790_s30 }
 0x98f   : > { %8543 = vrot.lane.b32.xlu2 %v8497_v24, %s8790_s30  ;;  %v7814_v24 = vld [vmem:[%s15912_s2 + $0x90] sm:$0xff] }
 0x991   : > { %v13250_v45 = vpop.permute.xlu2 %4608 }
 0x992   : > { %4532 = vrot.lane.b32.xlu0 %v13164_v46, %s8785_s26  ;;  %4428 = vrot.lane.b32.xlu1 %v4364_v48, %s8783_s24 }
 0x995   : > { %v13256_v6 = vpop.permute.xlu0 %4560 }
 0x997   : > { %4674 = vrot.lane.b32.xlu2 %v4365_v31, %s8788_s29 }
 0x999   : > { %v13263_v58 = vpop.permute.xlu2 %4464 }
 0x99a   : > { %4484 = vrot.lane.b32.xlu0 %v13164_v46, %s8784_s25  ;;  %8538 = vrot.lane.b32.xlu1 %v8537_v49, %s8790_s30 }
 0x99c   : > { %v13241_v22 = vpop.permute.xlu1 %4514 }
 0x99d   : > { %v13270_v27 = vpop.permute.xlu0 %8493 }
 0x99f   : > { %4562 = vrot.lane.b32.xlu2 %v13110_v9, %s8786_s27 }
 0x9a1   : > { %v13274_v21 = vpop.permute.xlu2 %4416 }
 0x9a2   : > { %8533 = vrot.lane.b32.xlu0 %v8537_v49, %s8791_s12  ;;  %4574 = vrot.lane.b32.xlu1 %v13162_v35, %s8786_s27  ;;  %16469 = vst [vmem:[#allocation11_spill] sm:$0xff] %v13274_v21  ;;  %v7815_v49 = vld [vmem:[%s15912_s2 + $0x98] sm:$0xff] }
 0x9a4   : > { %v13252_v50 = vpop.permute.xlu1 %4610 }
 0x9a5   : > { %16468 = vst [vmem:[#allocation21_spill] sm:$0xff] %v13252_v50 }
 0x9a7   : > { %4670 = vrot.lane.b32.xlu2 %v13162_v35, %s8788_s29 }
 0x9aa   : > { %4530 = vrot.lane.b32.xlu0 %v4365_v31, %s8785_s26  ;;  %4672 = vrot.lane.b32.xlu1 %v13082_v19, %s8788_s29  ;;  %v13287_v19 = vpop.permute.xlu2 %8498 }
 0x9ab   : > { %16470 = vst [vmem:[#allocation27_spill] sm:$0xff] %v13287_v19 }
 0x9ac   : > { %v13261_v11 = vpop.permute.xlu1 %8488 }
 0x9ad   : > { %v8491_v36 = vunpack.i.h.bf16 %v13261_v11 }
 0x9af   : > { %4662 = vrot.lane.b32.xlu2 %v13134_v43, %s8788_s29 }
 0x9b2   : > { %4578 = vrot.lane.b32.xlu0 %v4365_v31, %s8786_s27  ;;  %4436 = vrot.lane.b32.xlu1 %v13164_v46, %s8783_s24  ;;  %v13304_v51 = vpop.permute.xlu2 %8508 }
 0x9b4   : > { %v13272_v62 = vpop.permute.xlu1 %4512 }
 0x9b7   : > { %4654 = vrot.lane.b32.xlu2 %v13048_v57, %s8788_s29 }
 0x9ba   : > { %4580 = vrot.lane.b32.xlu0 %v13164_v46, %s8786_s27  ;;  %4668 = vrot.lane.b32.xlu1 %v4364_v48, %s8788_s29  ;;  %v13318_v0 = vpop.permute.xlu2 %8523 }
 0x9bb   : > { %16472 = vst [vmem:[#allocation50_spill] sm:$0xff] %v13318_v0 }
 0x9bc   : > { %v13281_v38 = vpop.permute.xlu0 %4520  ;;  %v13283_v59 = vpop.permute.xlu1 %8503 }
 0x9bd   : > { %v8505_v61 = vunpack.i.l.bf16 %v13283_v59 }
 0x9bf   : > { %4418 = vrot.lane.b32.xlu2 %v13110_v9, %s8783_s24 }
 0x9c2   : > { %4568 = vrot.lane.b32.xlu0 %v13142_v60, %s8786_s27  ;;  %4660 = vrot.lane.b32.xlu1 %v13056_v14, %s8788_s29  ;;  %v13329_v1 = vpop.permute.xlu2 %4628 }
 0x9c3   : > { %16473 = vst [vmem:[#allocation15_spill] sm:$0xff] %v13329_v1 }
 0x9c4   : > { %v13293_v57 = vpop.permute.xlu0 %4472  ;;  %v13298_v39 = vpop.permute.xlu1 %4614 }
 0x9c7   : > { %4789 = vperm.xlu2 %8204, %v7813_v42  }
 0x9ca   : > { %4676 = vrot.lane.b32.xlu0 %v13164_v46, %s8788_s29  ;;  %4424 = vrot.lane.b32.xlu1 %v13142_v60, %s8783_s24  ;;  %v13337_v31 = vpop.permute.xlu2 %8528 }
 0x9cc   : > { %v13306_v52 = vpop.permute.xlu0 %4616  ;;  %v13308_v14 = vpop.permute.xlu1 %4470 }
 0x9cd   : > { %16471 = vst [vmem:[#allocation28_spill] sm:$0xff] %v13306_v52 }
 0x9d2   : > { %4666 = vrot.lane.b32.xlu0 %v13078_v56, %s8788_s29  ;;  %4658 = vrot.lane.b32.xlu1 %v13110_v9, %s8788_s29  ;;  %v13346_v42 = vpop.permute.xlu2 %4626 }
 0x9d4   : > { %v13314_v43 = vpop.permute.xlu0 %4518  ;;  %v13316_v34 = vpop.permute.xlu1 %4526 }
 0x9da   : > { %4430 = vrot.lane.b32.xlu0 %v13162_v35, %s8783_s24  ;;  %4794 = vperm.xlu1 %8206, %v7814_v24   ;;  %v4483_v40 = vpop.permute.xlu2 %4482 }
 0x9dc   : > { %v13325_v46 = vpop.permute.xlu0 %4566  ;;  %v13327_v56 = vpop.permute.xlu1 %4478 }
 0x9e2   : > { %4664 = vrot.lane.b32.xlu0 %v13142_v60, %s8788_s29 }
 0x9e4   : > { %v13333_v9 = vpop.permute.xlu0 %4422  ;;  %v13335_v48 = vpop.permute.xlu1 %4622 }
 0x9e5   : > { %16474 = vst [vmem:[#allocation47_spill] sm:$0xff] %v13333_v9  ;;  %v8506_v9 = vunpack.i.h.bf16 %v13283_v59 }
 0x9e6   : > { %16475 = vst [vmem:[#allocation44_spill] sm:$0xff] %v13335_v48 }
 0x9e7   : > { %v4768_v3 = vsel %vm16482_vm14, %v8505_v61, %v8506_v9  ;;  %vm16489_vm14 = vmmov %vm16485_vm13  ;;  %v4535_v61 = vsel %vm685_vm3, %v13272_v62, %v13241_v22 }
 0x9ea   : > { %4656 = vrot.lane.b32.xlu0 %v13103_v2, %s8788_s29 }
 0x9ec   : > { %v4525_v35 = vpop.permute.xlu0 %4524  ;;  %v13341_v8 = vpop.permute.xlu1 %8513 }
 0x9ed   : > { %v8515_v21 = vunpack.i.l.bf16 %v13341_v8 }
 0x9f2   : > { %4799 = vperm.xlu0 %8205, %v7815_v49   ;;  %v13361_v49 = vpop.permute.xlu2 %4434 }
 0x9f3   : > { %16477 = vst [vmem:[#allocation38_spill] sm:$0xff] %v13361_v49 }
 0x9f4   : > { %v13348_v60 = vpop.permute.xlu0 %4620  ;;  %v13350_v24 = vpop.permute.xlu1 %4572 }
 0x9fa   : > { %4784 = vperm.xlu0 %8205, %v7812_v28   ;;  %v13365_v1 = vpop.permute.xlu2 %8543  ;;  %v8516_v28 = vunpack.i.h.bf16 %v13341_v8  ;;  %v7803_v8 = vld [vmem:[%s15911_s1 + $0x198] sm:$0xff] }
 0x9fc   : > { %v13355_v2 = vpop.permute.xlu0 %4476  ;;  %v13357_v5 = vpop.permute.xlu1 %8518  ;;  %v4770_v16 = vsel %vm16481_vm4, %v8515_v21, %v8516_v28  ;;  %vm16488_vm4 = vmmov %vm16486_vm8 }
 0xa02   : > { %v13385_v49 = vpop.permute.xlu2 %4674 }
 0xa04   : > { %v4533_v37 = vpop.permute.xlu0 %4532  ;;  %v13359_v50 = vpop.permute.xlu1 %4428 }
 0xa05   : > { %16476 = vst [vmem:[#allocation41_spill] sm:$0xff] %v13359_v50 }
 0xa0a   : > { %v13454_v21 = vpop.permute.xlu2 %4562 }
 0xa0c   : > { %v4485_v52 = vpop.permute.xlu0 %4484  ;;  %v13363_v48 = vpop.permute.xlu1 %8538 }
 0xa0d   : > { %v8541_v22 = vunpack.i.h.bf16 %v13363_v48 }
 0xa14   : > { %v13367_v19 = vpop.permute.xlu0 %8533  ;;  %v13369_v23 = vpop.permute.xlu1 %4574 }
 0xa15   : > { %16478 = vst [vmem:[#allocation34_spill] sm:$0xff] %v13367_v19  ;;  %v16067_v0 = vunpack.i.h.bf16 %v13367_v19  ;;  %v8535_v41 = vunpack.i.l.bf16 %v13367_v19 }
 0xa16   : > { %16479 = vst [vmem:[#allocation32_spill] sm:$0xff] %v13369_v23  ;;  %v8490_v23 = vunpack.i.l.bf16 %v13261_v11  ;;  %v16528_v11 = vld [vmem:[#allocation44_spill] sm:$0xff] }
 0xa17   : > { %v4772_v50 = vsel %vm16480_vm15, %v8535_v41, %v16067_v0  ;;  %vm16487_vm15 = vmmov %vm16485_vm13 }
 0xa18   : > { %4843 = vmatpush.msra.mxu3 %v4772_v50  ;;  %v4766_v0 = vsel %vm16483_vm7, %v8490_v23, %v8491_v36  ;;  %v4634_v23 = vsel %vm16488_vm4, %v13188_v18, %v13348_v60  ;;  %vm16490_vm7 = vmmov %vm16488_vm4 }
 0xa19   : > { %v4632_v18 = vsel %vm16490_vm7, %v13213_v20, %v13298_v39 }
 0xa1a   : > { %4844 = vmatpush.msra.mxu3 %v4770_v16 }
 0xa1c   : > { %v4531_v32 = vpop.permute.xlu0 %4530  ;;  %4845 = vmatpush.msra.mxu3 %v4768_v3  ;;  %v4673_v19 = vpop.permute.xlu1 %4672  ;;  %v4538_v3 = vsel %vm685_vm3, %v13177_v29, %v4525_v35  ;;  %v4536_v29 = vsel %vm685_vm3, %v13140_v54, %v13314_v43  ;;  %v4534_v54 = vsel %vm685_vm3, %v13202_v33, %v13272_v62  ;;  %v4492_v33 = vsel %vm636_vm6, %v13218_v63, %v4483_v40 }
 0xa1d   : > { %v4540_v41 = vsel %vm685_vm3, %v13215_v53, %v4531_v32  ;;  %v4541_v50 = vsel %vm685_vm3, %v4531_v32, %v4533_v37  ;;  %v4684_v16 = vsel %vm16484_vm12, %v4673_v19, %v13385_v49  ;;  %v4636_v32 = vsel %vm16486_vm8, %v13209_v17, %v13346_v42  ;;  %vm16491_vm12 = vmmov %vm16485_vm13 }
 0xa1e   : > { %7816 = vmatpush.msk.msra.mxu1 %vm414_vm2, %v4540_v41  ;;  %4846 = vmatpush.msra.mxu3 %v4766_v0  ;;  %v4539_v37 = vsel %vm685_vm3, %v4525_v35, %v13316_v34  ;;  %v4537_v17 = vsel %vm685_vm3, %v13314_v43, %v13281_v38  ;;  %v4493_v38 = vsel %vm636_vm6, %v4483_v40, %v4485_v52  ;;  %vm16493_vm8 = vcmp.lt.s32.totalorder %v16337_v47, 15  ;;  %v4671_v41 = vpop.permute.xlu2 %4670 }
 0xa1f   : > { %7844 = vmatpush.msk.msrb.mxu0 %vm16485_vm13, %v4541_v50  ;;  %7836 = vmatpush.msk.msrb.mxu2 %vm412_vm5, %v4684_v16  ;;  %vm16492_vm13 = vmmov %vm16488_vm4  ;;  %v4490_v63 = vsel %vm636_vm6, %v13206_v15, %v13355_v2  ;;  %v4491_v40 = vsel %vm636_vm6, %v13355_v2, %v13327_v56  ;;  %v8540_v62 = vunpack.i.l.bf16 %v13363_v48  ;;  %v4488_v15 = vsel %vm636_vm6, %v13222_v7, %v13308_v14  ;;  %v16501_v16 = vld [vmem:[#allocation49_spill] sm:$0xff] }
 0xa20   : > { %7817 = vmatpush.msk.msra.mxu1 %vm414_vm2, %v4538_v3  ;;  %7828 = vmatpush.msk.msra.mxu3 %vm414_vm2, %v4636_v32  ;;  %v4630_v20 = vsel %vm16492_vm13, %v13171_v30, %v13250_v45  ;;  %vm16495_vm4 = vmmov %vm16493_vm8  ;;  %v4489_v19 = vsel %vm636_vm6, %v13308_v14, %v13293_v57  ;;  %v8521_v52 = vunpack.i.h.bf16 %v13357_v5  ;;  %v8520_v43 = vunpack.i.l.bf16 %v13357_v5 }
 0xa21   : > { %7845 = vmatpush.msk.msrb.mxu0 %vm16487_vm15, %v4539_v37  ;;  %vm16494_vm15 = vcmask 482304   ;;  %vm16497_vm7 = vmmov %vm16495_vm4  ;;  %v4486_v7 = vsel %vm636_vm6, %v13185_v55, %v13263_v58  ;;  %v8530_v34 = vunpack.i.l.bf16 %v13337_v31  ;;  %v4487_v5 = vsel %vm636_vm6, %v13263_v58, %v13236_v4 }
 0xa22   : > { %7818 = vmatpush.msk.msra.mxu1 %vm414_vm2, %v4536_v29  ;;  %7829 = vmatpush.msk.msra.mxu3 %vm414_vm2, %v4634_v23  ;;  %v8511_v55 = vunpack.i.h.bf16 %v13304_v51  ;;  %v8510_v57 = vunpack.i.l.bf16 %v13304_v51  ;;  %vm16499_vm13 = vmmov %vm16495_vm4  ;;  %v8531_v56 = vunpack.i.h.bf16 %v13337_v31  ;;  %v8545_v48 = vunpack.i.l.bf16 %v13365_v1  ;;  %v13543_v29 = vld [vmem:[%s15911_s1 + $0x188] sm:$0xff]  ;;  %v16503_v23 = vld [vmem:[#allocation38_spill] sm:$0xff] }
 0xa23   : > { %7846 = vmatpush.msk.msrb.mxu0 %vm16489_vm14, %v4537_v17  ;;  %vm16496_vm14 = vmmov %vm16494_vm15  ;;  %v4733_v4 = vsel %vm881_vm10, %v8541_v22, %v8530_v34  ;;  %v8496_v58 = vunpack.i.h.bf16 %v13270_v27  ;;  %v8495_v51 = vunpack.i.l.bf16 %v13270_v27  ;;  %v4730_v2 = vsel %vm881_vm10, %v8520_v43, %v8521_v52  ;;  %v16504_v17 = vld [vmem:[#allocation17_spill] sm:$0xff]  ;;  %v13582_v34 = vld [vmem:[%s15911_s1 + $0x1a0] sm:$0xff] }
 0xa24   : > { %v13438_v53 = vpop.permute.xlu0 %4578  ;;  %7819 = vmatpush.msk.msra.mxu1 %vm414_vm2, %v4534_v54  ;;  %7830 = vmatpush.msk.msra.mxu3 %vm414_vm2, %v4632_v18  ;;  %v4437_v35 = vpop.permute.xlu1 %4436  ;;  %v4731_v31 = vsel %vm881_vm10, %v8521_v52, %v8531_v56  ;;  %v4728_v50 = vsel %vm881_vm10, %v8510_v57, %v8511_v55  ;;  %v4729_v3 = vsel %vm881_vm10, %v8511_v55, %v8545_v48  ;;  %v16512_v52 = vld [vmem:[#allocation11_spill] sm:$0xff]  ;;  %v16513_v43 = vld [vmem:[#allocation13_spill] sm:$0xff]  ;;  %v16515_v57 = vld [vmem:[#allocation34_spill] sm:$0xff] }
 0xa25   : > { %7847 = vmatpush.msk.msrb.mxu0 %vm16491_vm12, %v4535_v61  ;;  %v4588_v30 = vsel %vm16494_vm15, %v13224_v10, %v13438_v53  ;;  %v4586_v10 = vsel %vm16496_vm14, %v13233_v44, %v13350_v24  ;;  %vm16498_vm12 = vmmov %vm16496_vm14  ;;  %v4726_v27 = vsel %vm881_vm10, %v8495_v51, %v8496_v58  ;;  %v4444_v54 = vsel %vm583_vm11, %v16504_v17, %v16503_v23  ;;  %v16505_v61 = vld [vmem:[#allocation5_spill] sm:$0xff]  ;;  %v16518_v56 = vld [vmem:[#allocation27_spill] sm:$0xff] }
 0xa26   : > { %7820 = vmatpush.msk.msra.mxu1 %vm412_vm5, %v4492_v33  ;;  %7831 = vmatpush.msk.msra.mxu3 %vm414_vm2, %v4630_v20  ;;  %v4584_v44 = vsel %vm16498_vm12, %v13155_v26, %v13325_v46  ;;  %v4732_v26 = vsel %vm881_vm10, %v8540_v62, %v8541_v22  ;;  %v4445_v18 = vsel %vm583_vm11, %v16503_v23, %v4437_v35  ;;  %vm16506_vm15 = vcmp.ge.s32.totalorder %v16337_v47, 1  ;;  %v16507_v33 = vld [vmem:[#allocation41_spill] sm:$0xff]  ;;  %v16508_v20 = vld [vmem:[#allocation14_spill] sm:$0xff]  ;;  %v13564_v62 = vpop.permute.xlu2 %4662 }
 0xa27   : > { %7848 = vmatpush.msk.msrb.mxu0 %vm16493_vm8, %v4493_v38  ;;  %vm16500_vm8 = vmmov %vm16498_vm12  ;;  %v4442_v38 = vsel %vm583_vm11, %v16508_v20, %v16507_v33  ;;  %vm16517_vm14 = vcmask 359424   ;;  %v8500_v48 = vunpack.i.l.bf16 %v16518_v56 }
 0xa28   : > { %7821 = vmatpush.msk.msra.mxu1 %vm412_vm5, %v4490_v63  ;;  %7832 = vmatpush.msk.msra.mxu3 %vm412_vm5, %v4588_v30  ;;  %v4582_v14 = vsel %vm16500_vm8, %v13127_v12, %v13256_v6  ;;  %v8546_v12 = vunpack.i.h.bf16 %v13365_v1  ;;  %v16502_v1 = vld [vmem:[#allocation51_spill] sm:$0xff]  ;;  %vm16519_vm12 = vmmov %vm16517_vm14 }
 0xa29   : > { %7849 = vmatpush.msk.msrb.mxu0 %vm16495_vm4, %v4491_v40  ;;  %v16509_v30 = vld [vmem:[#allocation47_spill] sm:$0xff]  ;;  %v16510_v40 = vld [vmem:[#allocation48_spill] sm:$0xff]  ;;  %vm16514_vm4 = vcmask 351232   ;;  %vm16521_vm8 = vmmov %vm16497_vm7 }
 0xa2a   : > { %7822 = vmatpush.msk.msra.mxu1 %vm412_vm5, %v4488_v15  ;;  %7833 = vmatpush.msk.msra.mxu3 %vm412_vm5, %v4586_v10  ;;  %v4727_v37 = vsel %vm881_vm10, %v8496_v58, %v8546_v12  ;;  %v4440_v22 = vsel %vm583_vm11, %v16510_v40, %v16509_v30  ;;  %v13571_v15 = vld [vmem:[%s15911_s1 + $0x180] sm:$0xff]  ;;  %v16511_v10 = vld [vmem:[#allocation50_spill] sm:$0xff] }
 0xa2b   : > { %7850 = vmatpush.msk.msrb.mxu0 %vm16497_vm7, %v4489_v19  ;;  %v8525_v19 = vunpack.i.l.bf16 %v16511_v10  ;;  %v16551_v40 = vld [vmem:[#allocation3_spill] sm:$0xff] }
 0xa2c   : > { %v13504_v0 = vpop.permute.xlu0 %4580  ;;  %7823 = vmatpush.msk.msra.mxu1 %vm412_vm5, %v4486_v7  ;;  %7834 = vmatpush.msk.msra.mxu3 %vm412_vm5, %v4584_v44  ;;  %v4669_v63 = vpop.permute.xlu1 %4668  ;;  %v4438_v7 = vsel %vm583_vm11, %v16513_v43, %v16512_v52  ;;  %v7811_v43 = vld [vmem:[%s15911_s1 + $0x1d8] sm:$0xff] }
 0xa2d   : > { %7851 = vmatpush.msk.msrb.mxu0 %vm16499_vm13, %v4487_v5  ;;  %v8526_v5 = vunpack.i.h.bf16 %v16511_v10  ;;  %vm16520_vm13 = vmmov %vm16514_vm4  ;;  %v7802_v10 = vld [vmem:[%s15911_s1 + $0x190] sm:$0xff] }
 0xa2e   : > { %4822 = vmatpush.msra.mxu1 %v4732_v26  ;;  %7835 = vmatpush.msk.msra.mxu3 %vm412_vm5, %v4582_v14  ;;  %v16516_v26 = vunpack.i.h.bf16 %v16515_v57 }
 0xa2f   : > { %4909 = vmatpush.msrb.mxu0 %v4733_v4  ;;  %v4771_v35 = vsel %vm16519_vm12, %v8516_v28, %v8526_v5  ;;  %v4683_v4 = vsel %vm16520_vm13, %v4669_v63, %v4671_v41  ;;  %v13614_v41 = vld [vmem:[%s15911_s1 + $0x1b8] sm:$0xff] }
 0xa30   : > { %4823 = vmatpush.msra.mxu1 %v4730_v2  ;;  %4855 = vmatpush.msra.mxu3 %v13015_v25  ;;  %v4773_v14 = vsel %vm16517_vm14, %v16516_v26, %v8525_v19  ;;  %v4655_v2 = vpop.permute.xlu2 %4654  ;;  %vm16524_vm14 = vmmov %vm16520_vm13 }
 0xa31   : > { %4910 = vmatpush.msrb.mxu0 %v4731_v31 }
 0xa32   : > { %4824 = vmatpush.msra.mxu1 %v4728_v50  ;;  %4856 = vmatpush.msra.mxu3 %v16501_v16  ;;  %v7884_v16 = vld [vmem:[%s15912_s2 + $0xa0] sm:$0xff] }
 0xa33   : > { %4911 = vmatpush.msrb.mxu0 %v4729_v3 }
 0xa34   : > { %v13536_v32 = vpop.permute.xlu0 %4568  ;;  %4825 = vmatpush.msra.mxu1 %v4726_v27  ;;  %4857 = vmatpush.msra.mxu3 %v16502_v1  ;;  %v4661_v51 = vpop.permute.xlu1 %4660  ;;  %v7806_v27 = vld [vmem:[%s15911_s1 + $0x1b0] sm:$0xff] }
 0xa35   : > { %4912 = vmatpush.msrb.mxu0 %v4727_v37 }
 0xa36   : > { %7824 = vmatpush.msk.msra.mxu1 %vm414_vm2, %v4444_v54  ;;  %4858 = vmatpush.msra.mxu3 %v16505_v61 }
 0xa37   : > { %7852 = vmatpush.msk.msrb.mxu0 %vm16506_vm15, %v4445_v18  ;;  %4859 = vmatmul.f32.vlgmr.msra.gmra.mxu3 %v13543_v29  ;;  %vm16522_vm15 = vmmov %vm16519_vm12 }
 0xa38   : > { %7825 = vmatpush.msk.msra.mxu1 %vm414_vm2, %v4442_v38  ;;  %v4769_v58 = vsel %vm16522_vm15, %v8506_v9, %v8500_v48  ;;  %v16525_v9 = vld [vmem:[#allocation15_spill] sm:$0xff]  ;;  %v4419_v20 = vpop.permute.xlu2 %4418 }
 0xa3a   : > { %7826 = vmatpush.msk.msra.mxu1 %vm414_vm2, %v4440_v22  ;;  %v16552_v22 = vld [vmem:[#allocation18_spill] sm:$0xff] }
 0xa3c   : > { %v4677_v44 = vpop.permute.xlu0 %4676  ;;  %7827 = vmatpush.msk.msra.mxu1 %vm414_vm2, %v4438_v7  ;;  %v4425_v23 = vpop.permute.xlu1 %4424 }
 0xa3d   : > { %v4685_v55 = vsel %vm16514_vm4, %v13385_v49, %v4677_v44  ;;  %4830 = vmatmul.f32.vlgmr.msra.gmra.mxu1 %v13571_v15  ;;  %v8501_v49 = vunpack.i.h.bf16 %v16518_v56  ;;  %vm16523_vm4 = vmmov %vm16519_vm12  ;;  %vm16527_vm12 = vcmp.ge.s32.totalorder %v16337_v47, 1 }
 0xa3e   : > { %4930 = vmatpush.msrb.mxu1 %v4773_v14  ;;  %7864 = vmatpush.msk.msrb.mxu3 %vm16497_vm7, %v4685_v55  ;;  %vm16526_vm7 = vcmask 367616   ;;  %vm16530_vm15 = vmmov %vm16527_vm12 }
 0xa3f   : > { %4862 = vmatmul.f32.gmra.mxu3 %v13582_v34  ;;  %v4767_v28 = vsel %vm16523_vm4, %v8491_v36, %v8501_v49  ;;  %v4637_v31 = vsel %vm16526_vm7, %v13346_v42, %v16525_v9  ;;  %v4680_v36 = vsel %vm16520_vm13, %v4661_v51, %v13564_v62  ;;  %v16531_v42 = vld [vmem:[#allocation28_spill] sm:$0xff]  ;;  %vm16532_vm4 = vmmov %vm16526_vm7  ;;  %vm16536_vm13 = vcmask 482304  }
 0xa40   : > { %4931 = vmatpush.msrb.mxu1 %v4771_v35  ;;  %7865 = vmatpush.msk.msrb.mxu3 %vm16521_vm8, %v4683_v4  ;;  %vm16529_vm8 = vmmov %vm16526_vm7  ;;  %v4633_v3 = vsel %vm16532_vm4, %v13298_v39, %v16531_v42  ;;  %v7810_v39 = vld [vmem:[%s15911_s1 + $0x1d0] sm:$0xff]  ;;  %v4589_v54 = vsel %vm16536_vm13, %v13438_v53, %v13504_v0  ;;  %v4439_v53 = vsel %vm583_vm11, %v16512_v52, %v4419_v20  ;;  %v7805_v52 = vld [vmem:[%s15911_s1 + $0x1a8] sm:$0xff] }
 0xa41   : > { %v4635_v50 = vsel %vm16529_vm8, %v13348_v60, %v16528_v11  ;;  %v16534_v60 = vld [vmem:[#allocation21_spill] sm:$0xff]  ;;  %vm16535_vm7 = vmmov %vm16532_vm4  ;;  %vm16537_vm8 = vcmp.lt.s32.totalorder %v16337_v47, 15 }
 0xa42   : > { %4932 = vmatpush.msrb.mxu1 %v4769_v58  ;;  %v4631_v37 = vsel %vm16535_vm7, %v13250_v45, %v16534_v60  ;;  %v16539_v45 = vld [vmem:[#allocation32_spill] sm:$0xff]  ;;  %vm16540_vm4 = vmmov %vm16536_vm13 }
 0xa43   : > { %v4587_v38 = vsel %vm16540_vm4, %v13350_v24, %v16539_v45  ;;  %vm16542_vm7 = vmmov %vm16527_vm12  ;;  %v7809_v24 = vld [vmem:[%s15911_s1 + $0x1c8] sm:$0xff] }
 0xa44   : > { %4933 = vmatpush.msrb.mxu1 %v4767_v28  ;;  %v4667_v12 = vpop.permute.xlu0 %4666  ;;  %vm16544_vm13 = vmmov %vm16537_vm8 }
 0xa45   : > { %v4682_v59 = vsel %vm16524_vm14, %v4667_v12, %v4669_v63  ;;  %4833 = vmatmul.f32.gmra.mxu1 %v7803_v8  ;;  %vm16533_vm14 = vmmov %vm16527_vm12  ;;  %v4441_v63 = vsel %vm583_vm11, %v16509_v30, %v4425_v23  ;;  %v16549_v30 = vld [vmem:[#allocation16_spill] sm:$0xff] }
 0xa46   : > { %7856 = vmatpush.msk.msrb.mxu1 %vm16527_vm12, %v4637_v31  ;;  %7837 = vmatpush.msk.msrb.mxu2 %vm412_vm5, %v4682_v59 }
 0xa47   : > { %4865 = vmatmul.f32.gmra.mxu3 %v13614_v41 }
 0xa48   : > { %7857 = vmatpush.msk.msrb.mxu1 %vm16530_vm15, %v4635_v50  ;;  %7838 = vmatpush.msk.msrb.mxu2 %vm412_vm5, %v4680_v36  ;;  %vm16538_vm15 = vmmov %vm16527_vm12 }
 0xa4a   : > { %7858 = vmatpush.msk.msrb.mxu1 %vm16533_vm14, %v4633_v3  ;;  %vm16541_vm14 = vmmov %vm16537_vm8 }
 0xa4c   : > { %7859 = vmatpush.msk.msrb.mxu1 %vm16527_vm12, %v4631_v37  ;;  %v4431_v17 = vpop.permute.xlu0 %4430  ;;  %vm16543_vm12 = vmmov %vm16540_vm4 }
 0xa4d   : > { %v4443_v18 = vsel %vm583_vm11, %v16507_v33, %v4431_v17  ;;  %4836 = vmatmul.f32.gmra.mxu1 %v7806_v27  ;;  %v4585_v0 = vsel %vm16543_vm12, %v13325_v46, %v13536_v32 }
 0xa4e   : > { %7860 = vmatpush.msk.msrb.mxu1 %vm16537_vm8, %v4589_v54  ;;  %7853 = vmatpush.msk.msrb.mxu0 %vm16538_vm15, %v4443_v18  ;;  %vm16545_vm8 = vmmov %vm16542_vm7 }
 0xa4f   : > { %4868 = vmatmul.f32.gmra.mxu3 %v7810_v39  ;;  %vm16546_vm15 = vmmov %vm16540_vm4 }
 0xa50   : > { %7861 = vmatpush.msk.msrb.mxu1 %vm16541_vm14, %v4587_v38  ;;  %7854 = vmatpush.msk.msrb.mxu0 %vm16542_vm7, %v4441_v63  ;;  %v4583_v33 = vsel %vm16546_vm15, %v13256_v6, %v13454_v21  ;;  %vm16547_vm4 = vmmov %vm16544_vm13  ;;  %vm16548_vm14 = vcmask 351232   ;;  %v4659_v6 = vpop.permute.xlu1 %4658  ;;  %v16553_v21 = vld [vmem:[#allocation36_spill] sm:$0xff]  ;;  %vm16567_vm15 = vcmp.ge.s32.totalorder %v16337_v47, 1 }
 0xa51   : > { %vm16550_vm7 = vmmov %vm16547_vm4 }
 0xa52   : > { %7862 = vmatpush.msk.msrb.mxu1 %vm16544_vm13, %v4585_v0  ;;  %7855 = vmatpush.msk.msrb.mxu0 %vm16545_vm8, %v4439_v53  ;;  %vm16554_vm12 = vmmov %vm16548_vm14 }
 0xa53   : > { %4917 = vmatmul.f32.vlgmr.msrb.gmra.mxu0 %v13571_v15  ;;  %vm16555_vm13 = vmmov %vm16554_vm12 }
 0xa54   : > { %7863 = vmatpush.msk.msrb.mxu1 %vm16547_vm4, %v4583_v33  ;;  %v4665_v46 = vpop.permute.xlu0 %4664  ;;  %vm16556_vm8 = vmmov %vm16547_vm4 }
 0xa55   : > { %v4681_v32 = vsel %vm16548_vm14, %v13564_v62, %v4665_v46  ;;  %4839 = vmatmul.f32.gmra.mxu1 %v7809_v24  ;;  %vm16568_vm4 = vmmov %vm16567_vm15 }
 0xa56   : > { %4942 = vmatpush.msrb.mxu1 %v16549_v30  ;;  %7866 = vmatpush.msk.msrb.mxu3 %vm16550_vm7, %v4681_v32  ;;  %vm16569_vm14 = vmmov %vm16568_vm4 }
 0xa57   : > { %vm16570_vm7 = vmmov %vm16568_vm4 }
 0xa58   : > { %4943 = vmatpush.msrb.mxu1 %v16551_v40  ;;  %v4795_v60 = vpop.permute.xlu1 %4794 }
 0xa5a   : > { %4944 = vmatpush.msrb.mxu1 %v16552_v22  ;;  %v7886_v22 = vld [vmem:[%s15912_s2 + $0xb0] sm:$0xff] }
 0xa5b   : > { %4920 = vmatmul.f32.gmra.mxu0 %v7803_v8 }
 0xa5c   : > { %4945 = vmatpush.msrb.mxu1 %v16553_v21  ;;  %v4657_v15 = vpop.permute.xlu0 %4656 }
 0xa5d   : > { %4946 = vmatmul.f32.vlgmr.msrb.gmra.mxu1 %v13543_v29  ;;  %v4678_v62 = vsel %vm16554_vm12, %v4655_v2, %v4657_v15  ;;  %v4679_v19 = vsel %vm16555_vm13, %v4657_v15, %v4659_v6  ;;  %v7808_v29 = vld [vmem:[%s15911_s1 + $0x1c0] sm:$0xff]  ;;  %vm16571_vm12 = vmmov %vm16556_vm8  ;;  %vm16572_vm13 = vcmask 359424  }
 0xa5e   : > { %7839 = vmatpush.msk.msrb.mxu2 %vm412_vm5, %v4678_v62  ;;  %7867 = vmatpush.msk.msrb.mxu3 %vm16556_vm8, %v4679_v19 }
 0xa5f   : > { %7840 = vmatmul.msk.f32.vlgmr.msrb.gmra.mxu2 %vm959_vm9, %v7802_v10  ;;  %7868 = vmatmul.msk.f32.vlgmr.msrb.gmra.mxu3 %vm959_vm9, %v7802_v10 }
 0xa63   : > { %4923 = vmatmul.f32.gmra.mxu0 %v7806_v27 }
 0xa64   : > { %v4800_v26 = vpop.permute.xlu0 %4799 }
 0xa65   : > { %4949 = vmatmul.f32.gmra.mxu1 %v13582_v34 }
 0xa67   : > { %7841 = vmatmul.msk.f32.gmra.mxu2 %vm959_vm9, %v7805_v52  ;;  %7869 = vmatmul.msk.f32.gmra.mxu3 %vm959_vm9, %v7805_v52 }
 0xa6b   : > { %4926 = vmatmul.f32.gmra.mxu0 %v7809_v24 }
 0xa6c   : > { %v4785_v4 = vpop.permute.xlu0 %4784 }
 0xa6d   : > { %4952 = vmatmul.f32.gmra.mxu1 %v13614_v41  ;;  %v4790_v41 = vpop.permute.xlu2 %4789 }
 0xa6f   : > { %7842 = vmatmul.msk.f32.gmra.mxu2 %vm959_vm9, %v7808_v29  ;;  %7870 = vmatmul.msk.f32.gmra.mxu3 %vm959_vm9, %v7808_v29 }
 0xa75   : > { %4955 = vmatmul.f32.gmra.mxu1 %v7810_v39 }
 0xa77   : > { %7843 = vmatmul.msk.f32.gmra.mxu2 %vm959_vm9, %v7811_v43  ;;  %7871 = vmatmul.msk.f32.gmra.mxu3 %vm959_vm9, %v7811_v43 }
 0xaba   : > { %v4831_v7 = vpop.f32.mrf.mxu1  ;;  %v4860_v44 = vpop.f32.mrf.mxu3 }
 0xabb   : > { %v4832_v49 = vadd.f32 %v4831_v7, %v4785_v4 }
 0xabd   : > { %v4861_v58 = vadd.f32 %v4860_v44, %v4832_v49 }
 0xac2   : > { %v4834_v34 = vpop.f32.mrf.mxu1  ;;  %v4863_v5 = vpop.f32.mrf.mxu3 }
 0xac3   : > { %v4835_v59 = vadd.f32 %v4834_v34, %v4790_v41 }
 0xac5   : > { %v4864_v36 = vadd.f32 %v4863_v5, %v4835_v59 }
 0xaca   : > { %v4837_v55 = vpop.f32.mrf.mxu1  ;;  %v4866_v57 = vpop.f32.mrf.mxu3 }
 0xacb   : > { %v4838_v37 = vadd.f32 %v4837_v55, %v4795_v60 }
 0xacd   : > { %v4867_v20 = vadd.f32 %v4866_v57, %v4838_v37 }
 0xad0   : > { %v4918_v56 = vpop.f32.mrf.mxu0 }
 0xad1   : > { %v4919_v50 = vadd.f32 %v4918_v56, %v4785_v4 }
 0xad2   : > { %v4840_v14 = vpop.f32.mrf.mxu1  ;;  %v4869_v35 = vpop.f32.mrf.mxu3 }
 0xad3   : > { %v4841_v24 = vadd.f32 %v4840_v14, %v4800_v26 }
 0xad5   : > { %v4870_v52 = vadd.f32 %v4869_v35, %v4841_v24 }
 0xad8   : > { %v4921_v51 = vpop.f32.mrf.mxu0 }
 0xad9   : > { %v4922_v38 = vadd.f32 %v4921_v51, %v4790_v41 }
 0xada   : > { %v4947_v48 = vpop.f32.mrf.mxu1 }
 0xadb   : > { %v4948_v23 = vadd.f32 %v4947_v48, %v4919_v50 }
 0xae0   : > { %v4924_v42 = vpop.f32.mrf.mxu0 }
 0xae1   : > { %v4925_v7 = vadd.f32 %v4924_v42, %v4795_v60 }
 0xae2   : > { %v4889_v8 = vpop.f32.mrf.mxu2  ;;  %v4950_v2 = vpop.f32.mrf.mxu1 }
 0xae3   : > { %v4890_v28 = vadd.f32 %v4889_v8, %v4861_v58  ;;  %v4976_v12 = vpop.f32.mrf.mxu3  ;;  %v4951_v33 = vadd.f32 %v4950_v2, %v4922_v38 }
 0xae4   : > { %v4977_v54 = vadd.f32 %v4976_v12, %v4948_v23 }
 0xae5   : > { %v4988_v9 = vmul.f32 0.2, %v4890_v28 }
 0xae6   : > { %v4989_v63 = vmul.f32 0.2, %v4977_v54 }
 0xae7   : > { %v13723_v31 = vmax.f32 %v4890_v28, %v4988_v9 }
 0xae8   : > { %v4927_v46 = vpop.f32.mrf.mxu0  ;;  %v13731_v6 = vmax.f32 %v4977_v54, %v4989_v63 }
 0xae9   : > { %16557 = vst [vmem:[#allocation9_spill] sm:$0xff] %v13723_v31  ;;  %5030 = vrot.lane.b32.xlu1 %v13723_v31, %s8782_s23  ;;  %v4928_v19 = vadd.f32 %v4927_v46, %v4800_v26 }
 0xaea   : > { %v4892_v11 = vpop.f32.mrf.mxu2  ;;  %v4953_v39 = vpop.f32.mrf.mxu1  ;;  %16558 = vst [vmem:[#allocation10_spill] sm:$0xff] %v13731_v6 }
 0xaeb   : > { %v4893_v3 = vadd.f32 %v4892_v11, %v4864_v36  ;;  %v4979_v27 = vpop.f32.mrf.mxu3  ;;  %v4954_v57 = vadd.f32 %v4953_v39, %v4925_v7 }
 0xaec   : > { %v4980_v15 = vadd.f32 %v4979_v27, %v4951_v33 }
 0xaed   : > { %v4990_v17 = vmul.f32 0.2, %v4893_v3 }
 0xaee   : > { %v4991_v44 = vmul.f32 0.2, %v4980_v15 }
 0xaef   : > { %v13727_v18 = vmax.f32 %v4893_v3, %v4990_v17 }
 0xaf0   : > { %v13739_v48 = vmax.f32 %v4980_v15, %v4991_v44 }
 0xaf1   : > { %5034 = vrot.lane.b32.xlu2 %v13727_v18, %s8782_s23 }
 0xaf2   : > { %v4895_v45 = vpop.f32.mrf.mxu2  ;;  %v4956_v62 = vpop.f32.mrf.mxu1  ;;  %16559 = vst [vmem:[#allocation31_spill] sm:$0xff] %v13739_v48 }
 0xaf3   : > { %v4896_v53 = vadd.f32 %v4895_v45, %v4867_v20  ;;  %v4982_v0 = vpop.f32.mrf.mxu3  ;;  %v4957_v29 = vadd.f32 %v4956_v62, %v4928_v19 }
 0xaf4   : > { %v4983_v26 = vadd.f32 %v4982_v0, %v4954_v57 }
 0xaf5   : > { %v4992_v32 = vmul.f32 0.2, %v4896_v53 }
 0xaf6   : > { %v4993_v49 = vmul.f32 0.2, %v4983_v26 }
 0xaf7   : > { %v13733_v10 = vmax.f32 %v4896_v53, %v4992_v32 }
 0xaf8   : > { %v13751_v58 = vmax.f32 %v4983_v26, %v4993_v49 }
 0xaf9   : > { %5038 = vrot.lane.b32.xlu0 %v13733_v10, %s8782_s23  ;;  %5032 = vrot.lane.b32.xlu2 %v13731_v6, %s8782_s23 }
 0xafa   : > { %v4898_v43 = vpop.f32.mrf.mxu2  ;;  %16561 = vst [vmem:[#allocation24_spill] sm:$0xff] %v13751_v58 }
 0xafb   : > { %v4899_v34 = vadd.f32 %v4898_v43, %v4870_v52  ;;  %v4985_v5 = vpop.f32.mrf.mxu3 }
 0xafc   : > { %v4986_v55 = vadd.f32 %v4985_v5, %v4957_v29 }
 0xafd   : > { %v4994_v14 = vmul.f32 0.2, %v4899_v34 }
 0xafe   : > { %v4995_v56 = vmul.f32 0.2, %v4986_v55 }
 0xaff   : > { %v13741_v35 = vmax.f32 %v4899_v34, %v4994_v14 }
 0xb00   : > { %v13743_v4 = vmax.f32 %v4986_v55, %v4995_v56 }
 0xb01   : > { %5036 = vrot.lane.b32.xlu0 %v13739_v48, %s8782_s23  ;;  %5042 = vrot.lane.b32.xlu1 %v13741_v35, %s8782_s23 }
 0xb02   : > { %16560 = vst [vmem:[#allocation12_spill] sm:$0xff] %v13743_v4  ;;  %5044 = vrot.lane.b32.xlu2 %v13743_v4, %s8782_s23 }
 0xb09   : > { %5040 = vrot.lane.b32.xlu1 %v13751_v58, %s8782_s23 }
 0xb4b   : > { %v5035_v51 = vpop.permute.xlu2 %5034 }
 0xb4c   : > { %5065 = vst.msk [vmem:[#allocation2 + $0x20] sm:$0xff] %vm518_vm0, %v5035_v51 }
 0xb53   : > { %v5033_v8 = vpop.permute.xlu2 %5032  ;;  %v13756_v28 = vld [vmem:[#allocation2 + $0x20] sm:$0xff] }
 0xb54   : > { %5064 = vst.msk [vmem:[#allocation2 + $0x10] sm:$0xff] %vm501_vm1, %v5033_v8  ;;  %5200 = vrot.lane.b32.xlu1 %v13756_v28, %s8785_s26 }
 0xb5b   : > { %v5031_v2 = vpop.permute.xlu1 %5030  ;;  %v13804_v27 = vld [vmem:[#allocation2 + $0x10] sm:$0xff] }
 0xb5c   : > { %v13761_v12 = vpop.permute.xlu2 %5044  ;;  %5062 = vst.msk [vmem:[#allocation2] sm:$0xff] %vm518_vm0, %v5031_v2  ;;  %5104 = vrot.lane.b32.xlu1 %v13756_v28, %s8783_s24  ;;  %v13800_v3 = vsel %vm501_vm1, %v5031_v2, %v5033_v8 }
 0xb5d   : > { %5073 = vst.msk [vmem:[#allocation2 + $0x70] sm:$0xff] %vm501_vm1, %v13761_v12 }
 0xb63   : > { %v13768_v41 = vld [vmem:[#allocation2] sm:$0xff] }
 0xb64   : > { %5146 = vrot.lane.b32.xlu2 %v13768_v41, %s8784_s25  ;;  %5194 = vrot.lane.b32.xlu0 %v13768_v41, %s8785_s26  ;;  %v8547_v60 = vpack.i.bf16 %v13800_v3, %v13768_v41  ;;  %v5085_v52 = vld [vmem:[#allocation2 + $0x70] sm:$0xff] }
 0xb6b   : > { %v5039_v59 = vpop.permute.xlu0 %5038 }
 0xb6c   : > { %5068 = vst.msk [vmem:[#allocation2 + $0x40] sm:$0xff] %vm518_vm0, %v5039_v59  ;;  %5290 = vrot.lane.b32.xlu2 %v13768_v41, %s8787_s28  ;;  %5248 = vrot.lane.b32.xlu0 %v13756_v28, %s8786_s27 }
 0xb73   : > { %v5037_v9 = vpop.permute.xlu0 %5036  ;;  %v13779_v36 = vpop.permute.xlu1 %5042  ;;  %v13781_v11 = vld [vmem:[#allocation2 + $0x40] sm:$0xff] }
 0xb74   : > { %5067 = vst.msk [vmem:[#allocation2 + $0x30] sm:$0xff] %vm501_vm1, %v5037_v9  ;;  %5098 = vrot.lane.b32.xlu2 %v13768_v41, %s8783_s24  ;;  %5110 = vrot.lane.b32.xlu0 %v13781_v11, %s8783_s24  ;;  %v13837_v23 = vsel %vm501_vm1, %v5035_v51, %v5037_v9  ;;  %v5049_v57 = vsel %vm501_vm1, %v13779_v36, %v13761_v12 }
 0xb75   : > { %5071 = vst.msk [vmem:[#allocation2 + $0x60] sm:$0xff] %vm518_vm0, %v13779_v36  ;;  %v8562_v17 = vpack.i.bf16 %v13837_v23, %v13756_v28 }
 0xb7b   : > { %v5041_v50 = vpop.permute.xlu1 %5040  ;;  %v13831_v37 = vld [vmem:[#allocation2 + $0x30] sm:$0xff] }
 0xb7c   : > { %5070 = vst.msk [vmem:[#allocation2 + $0x50] sm:$0xff] %vm501_vm1, %v5041_v50  ;;  %5242 = vrot.lane.b32.xlu2 %v13768_v41, %s8786_s27  ;;  %v13793_v42 = vld [vmem:[#allocation2 + $0x60] sm:$0xff]  ;;  %v13870_v45 = vsel %vm501_vm1, %v5039_v59, %v5041_v50  ;;  %v8557_v63 = vpack.i.bf16 %v13804_v27, %v13831_v37 }
 0xb7d   : > { %5260 = vrot.lane.b32.xlu1 %v13793_v42, %s8786_s27  ;;  %5212 = vrot.lane.b32.xlu0 %v13793_v42, %s8785_s26  ;;  %v8572_v24 = vpack.i.bf16 %v13870_v45, %v13781_v11  ;;  %v8592_v49 = vpack.i.bf16 %v5049_v57, %v13793_v42 }
 0xb83   : > { %v13861_v54 = vld [vmem:[#allocation2 + $0x50] sm:$0xff] }
 0xb84   : > { %5152 = vrot.lane.b32.xlu2 %v13756_v28, %s8784_s25  ;;  %v8582_v29 = vpack.i.bf16 %v13861_v54, %v5085_v52 }
 0xb85   : > { %5198 = vrot.lane.b32.xlu1 %v13804_v27, %s8785_s26  ;;  %5148 = vrot.lane.b32.xlu0 %v13800_v3, %s8784_s25 }
 0xb8c   : > { %5296 = vrot.lane.b32.xlu2 %v13756_v28, %s8787_s28 }
 0xb8d   : > { %5294 = vrot.lane.b32.xlu1 %v13804_v27, %s8787_s28  ;;  %5292 = vrot.lane.b32.xlu0 %v13800_v3, %s8787_s28 }
 0xb94   : > { %5206 = vrot.lane.b32.xlu2 %v13781_v11, %s8785_s26 }
 0xb95   : > { %5196 = vrot.lane.b32.xlu1 %v13800_v3, %s8785_s26  ;;  %5100 = vrot.lane.b32.xlu0 %v13800_v3, %s8783_s24 }
 0xb9c   : > { %5158 = vrot.lane.b32.xlu2 %v13781_v11, %s8784_s25 }
 0xb9d   : > { %8548 = vrot.lane.b32.xlu1 %v8547_v60, %s8791_s12  ;;  %5244 = vrot.lane.b32.xlu0 %v13800_v3, %s8786_s27 }
 0xba4   : > { %5302 = vrot.lane.b32.xlu2 %v13781_v11, %s8787_s28 }
 0xba5   : > { %8553 = vrot.lane.b32.xlu1 %v8547_v60, %s8790_s30  ;;  %5204 = vrot.lane.b32.xlu0 %v13831_v37, %s8785_s26 }
 0xbac   : > { %5254 = vrot.lane.b32.xlu2 %v13781_v11, %s8786_s27 }
 0xbad   : > { %8563 = vrot.lane.b32.xlu1 %v8562_v17, %s8791_s12  ;;  %5156 = vrot.lane.b32.xlu0 %v13831_v37, %s8784_s25 }
 0xbb4   : > { %5164 = vrot.lane.b32.xlu2 %v13793_v42, %s8784_s25 }
 0xbb5   : > { %8568 = vrot.lane.b32.xlu1 %v8562_v17, %s8790_s30  ;;  %5300 = vrot.lane.b32.xlu0 %v13831_v37, %s8787_s28 }
 0xbbc   : > { %5308 = vrot.lane.b32.xlu2 %v13793_v42, %s8787_s28 }
 0xbbd   : > { %5250 = vrot.lane.b32.xlu1 %v13837_v23, %s8786_s27  ;;  %5154 = vrot.lane.b32.xlu0 %v13837_v23, %s8784_s25 }
 0xbbe   : > { %v13857_v39 = vpop.permute.xlu2 %5146 }
 0xbc4   : > { %5116 = vrot.lane.b32.xlu2 %v13793_v42, %s8783_s24 }
 0xbc5   : > { %5298 = vrot.lane.b32.xlu0 %v13837_v23, %s8787_s28  ;;  %5210 = vrot.lane.b32.xlu1 %v13861_v54, %s8785_s26 }
 0xbc6   : > { %v13867_v20 = vpop.permute.xlu2 %5290  ;;  %v13895_v33 = vpop.permute.xlu1 %5200 }
 0xbcc   : > { %5150 = vrot.lane.b32.xlu2 %v13804_v27, %s8784_s25 }
 0xbcd   : > { %5162 = vrot.lane.b32.xlu1 %v13861_v54, %s8784_s25  ;;  %5208 = vrot.lane.b32.xlu0 %v13870_v45, %s8785_s26 }
 0xbce   : > { %v13878_v38 = vpop.permute.xlu2 %5098  ;;  %v13913_v19 = vpop.permute.xlu1 %5104 }
 0xbd4   : > { %8558 = vrot.lane.b32.xlu2 %v8557_v63, %s8791_s12 }
 0xbd5   : > { %5306 = vrot.lane.b32.xlu1 %v13861_v54, %s8787_s28  ;;  %5160 = vrot.lane.b32.xlu0 %v13870_v45, %s8784_s25 }
 0xbd6   : > { %v13887_v53 = vpop.permute.xlu2 %5242  ;;  %v13889_v0 = vpop.permute.xlu0 %5194 }
 0xbdc   : > { %5202 = vrot.lane.b32.xlu2 %v13837_v23, %s8785_s26 }
 0xbdd   : > { %8573 = vrot.lane.b32.xlu1 %v8572_v24, %s8791_s12  ;;  %5304 = vrot.lane.b32.xlu0 %v13870_v45, %s8787_s28 }
 0xbde   : > { %v13900_v46 = vpop.permute.xlu2 %5152  ;;  %v13902_v32 = vpop.permute.xlu0 %5248 }
 0xbe4   : > { %5106 = vrot.lane.b32.xlu2 %v13837_v23, %s8783_s24 }
 0xbe5   : > { %8578 = vrot.lane.b32.xlu1 %v8572_v24, %s8790_s30  ;;  %5256 = vrot.lane.b32.xlu0 %v13870_v45, %s8786_s27 }
 0xbe6   : > { %v13909_v15 = vpop.permute.xlu2 %5296  ;;  %v13911_v62 = vpop.permute.xlu0 %5110 }
 0xbec   : > { %8583 = vrot.lane.b32.xlu2 %v8582_v29, %s8791_s12 }
 0xbed   : > { %5112 = vrot.lane.b32.xlu1 %v13870_v45, %s8783_s24  ;;  %5168 = vrot.lane.b32.xlu0 %v5085_v52, %s8784_s25 }
 0xbee   : > { %v13920_v43 = vpop.permute.xlu2 %5206 }
 0xbef   : > { %v13922_v7 = vpop.permute.xlu0 %5212  ;;  %v13924_v44 = vpop.permute.xlu1 %5260 }
 0xbf4   : > { %5312 = vrot.lane.b32.xlu2 %v5085_v52, %s8787_s28 }
 0xbf5   : > { %5216 = vrot.lane.b32.xlu1 %v5085_v52, %s8785_s26  ;;  %5264 = vrot.lane.b32.xlu0 %v5085_v52, %s8786_s27 }
 0xbf6   : > { %v13929_v34 = vpop.permute.xlu2 %5158 }
 0xbf7   : > { %v13931_v5 = vpop.permute.xlu0 %5148  ;;  %v13933_v55 = vpop.permute.xlu1 %5198 }
 0xbfc   : > { %8588 = vrot.lane.b32.xlu2 %v8582_v29, %s8790_s30 }
 0xbfd   : > { %5214 = vrot.lane.b32.xlu1 %v5049_v57, %s8785_s26  ;;  %5166 = vrot.lane.b32.xlu0 %v5049_v57, %s8784_s25 }
 0xbfe   : > { %v13941_v14 = vpop.permute.xlu2 %5302 }
 0xbff   : > { %v13943_v56 = vpop.permute.xlu0 %5292  ;;  %v13945_v26 = vpop.permute.xlu1 %5294 }
 0xc00   : > { %16562 = vst [vmem:[#allocation23_spill] sm:$0xff] %v13945_v26 }
 0xc04   : > { %8603 = vrot.lane.b32.xlu2 %v8557_v63, %s8790_s30 }
 0xc05   : > { %8593 = vrot.lane.b32.xlu1 %v8592_v49, %s8791_s12  ;;  %5310 = vrot.lane.b32.xlu0 %v5049_v57, %s8787_s28 }
 0xc06   : > { %v13951_v51 = vpop.permute.xlu2 %5254 }
 0xc07   : > { %v13953_v8 = vpop.permute.xlu0 %5100  ;;  %v13955_v2 = vpop.permute.xlu1 %5196 }
 0xc0c   : > { %5262 = vrot.lane.b32.xlu2 %v5049_v57, %s8786_s27 }
 0xc0d   : > { %8598 = vrot.lane.b32.xlu1 %v8592_v49, %s8790_s30  ;;  %5118 = vrot.lane.b32.xlu0 %v5049_v57, %s8783_s24 }
 0xc0e   : > { %v13960_v12 = vpop.permute.xlu2 %5164 }
 0xc0f   : > { %v13962_v59 = vpop.permute.xlu0 %5244  ;;  %v13964_v9 = vpop.permute.xlu1 %8548 }
 0xc14   : > { %5246 = vrot.lane.b32.xlu2 %v13804_v27, %s8786_s27 }
 0xc15   : > { %5258 = vrot.lane.b32.xlu1 %v13861_v54, %s8786_s27  ;;  %5252 = vrot.lane.b32.xlu0 %v13831_v37, %s8786_s27 }
 0xc16   : > { %v13972_v36 = vpop.permute.xlu2 %5308 }
 0xc17   : > { %v13974_v50 = vpop.permute.xlu0 %5204  ;;  %v13976_v60 = vpop.permute.xlu1 %8553 }
 0xc1c   : > { %5102 = vrot.lane.b32.xlu2 %v13804_v27, %s8783_s24 }
 0xc1d   : > { %5120 = vrot.lane.b32.xlu1 %v5085_v52, %s8783_s24  ;;  %5114 = vrot.lane.b32.xlu0 %v13861_v54, %s8783_s24 }
 0xc1e   : > { %v13987_v24 = vpop.permute.xlu2 %5116 }
 0xc1f   : > { %v13983_v17 = vpop.permute.xlu0 %5156  ;;  %v13985_v63 = vpop.permute.xlu1 %8563 }
 0xc24   : > { %5360 = vrot.lane.b32.xlu2 %v5085_v52, %s8788_s29 }
 0xc25   : > { %5108 = vrot.lane.b32.xlu1 %v13831_v37, %s8783_s24  ;;  %5356 = vrot.lane.b32.xlu0 %v13793_v42, %s8788_s29 }
 0xc26   : > { %v13998_v40 = vpop.permute.xlu2 %5150 }
 0xc27   : > { %v13994_v29 = vpop.permute.xlu0 %5300  ;;  %v13996_v49 = vpop.permute.xlu1 %8568 }
 0xc28   : > { %16563 = vst [vmem:[#allocation22_spill] sm:$0xff] %v13994_v29 }
 0xc2c   : > { %5354 = vrot.lane.b32.xlu2 %v13861_v54, %s8788_s29 }
 0xc2d   : > { %5352 = vrot.lane.b32.xlu1 %v13870_v45, %s8788_s29  ;;  %5350 = vrot.lane.b32.xlu0 %v13781_v11, %s8788_s29 }
 0xc2e   : > { %v14010_v42 = vpop.permute.xlu2 %8558 }
 0xc2f   : > { %v14006_v52 = vpop.permute.xlu0 %5154  ;;  %v14008_v30 = vpop.permute.xlu1 %5250 }
 0xc34   : > { %5348 = vrot.lane.b32.xlu2 %v13831_v37, %s8788_s29 }
 0xc35   : > { %5346 = vrot.lane.b32.xlu1 %v13837_v23, %s8788_s29  ;;  %5344 = vrot.lane.b32.xlu0 %v13756_v28, %s8788_s29  ;;  %v7885_v23 = vld [vmem:[%s15912_s2 + $0xa8] sm:$0xff]  ;;  %v7887_v28 = vld [vmem:[%s15912_s2 + $0xb8] sm:$0xff] }
 0xc36   : > { %v5203_v11 = vpop.permute.xlu2 %5202 }
 0xc37   : > { %v14018_v54 = vpop.permute.xlu0 %5298  ;;  %v5211_v45 = vpop.permute.xlu1 %5210 }
 0xc3c   : > { %5342 = vrot.lane.b32.xlu2 %v13804_v27, %s8788_s29 }
 0xc3d   : > { %5358 = vrot.lane.b32.xlu1 %v5049_v57, %s8788_s29  ;;  %5338 = vrot.lane.b32.xlu0 %v13768_v41, %s8788_s29 }
 0xc3e   : > { %v14037_v41 = vpop.permute.xlu2 %5106 }
 0xc3f   : > { %v5209_v25 = vpop.permute.xlu0 %5208  ;;  %v14025_v37 = vpop.permute.xlu1 %5162 }
 0xc44   : > { %5473 = vperm.xlu2 %8204, %v7885_v23  }
 0xc45   : > { %5340 = vrot.lane.b32.xlu1 %v13800_v3, %s8788_s29  ;;  %5483 = vperm.xlu0 %8205, %v7887_v28  }
 0xc46   : > { %v14049_v3 = vpop.permute.xlu2 %8583 }
 0xc47   : > { %v5161_v27 = vpop.permute.xlu0 %5160  ;;  %v14035_v57 = vpop.permute.xlu1 %5306 }
 0xc48   : > { %16564 = vst [vmem:[#allocation19_spill] sm:$0xff] %v14035_v57 }
 0xc4d   : > { %5478 = vperm.xlu1 %8206, %v7886_v22   ;;  %5468 = vperm.xlu0 %8205, %v7884_v16  }
 0xc4e   : > { %v14055_v61 = vpop.permute.xlu2 %5312 }
 0xc4f   : > { %v14045_v23 = vpop.permute.xlu0 %5304  ;;  %v14047_v21 = vpop.permute.xlu1 %8573  ;;  %16565 = vst [vmem:[#allocation25_spill] sm:$0xff] %v14055_v61  ;;  %v5222_v61 = vsel %vm685_vm3, %v13920_v43, %v5209_v25 }
 0xc56   : > { %v14059_v58 = vpop.permute.xlu2 %8588 }
 0xc57   : > { %v14051_v28 = vpop.permute.xlu0 %5256  ;;  %v14053_v1 = vpop.permute.xlu1 %8578 }
 0xc5e   : > { %v14063_v29 = vpop.permute.xlu2 %8603 }
 0xc5f   : > { %v5169_v6 = vpop.permute.xlu0 %5168  ;;  %v14057_v48 = vpop.permute.xlu1 %5112 }
 0xc67   : > { %v14061_v4 = vpop.permute.xlu0 %5264  ;;  %v5217_v16 = vpop.permute.xlu1 %5216 }
 0xc68   : > { %16566 = vst [vmem:[#allocation52_spill] sm:$0xff] %v14061_v4  ;;  %v5223_v4 = vsel %vm685_vm3, %v5209_v25, %v5211_v45  ;;  %v5218_v25 = vsel %vm685_vm3, %v13889_v0, %v13955_v2  ;;  %v8566_v45 = vunpack.i.h.bf16 %v13985_v63 }
 0xc6f   : > { %v5167_v22 = vpop.permute.xlu0 %5166  ;;  %v5215_v26 = vpop.permute.xlu1 %5214 }
 0xc70   : > { %v5224_v57 = vsel %vm685_vm3, %v13922_v7, %v5215_v26  ;;  %v5225_v31 = vsel %vm685_vm3, %v5215_v26, %v5217_v16  ;;  %v5220_v7 = vsel %vm685_vm3, %v13895_v33, %v5203_v11  ;;  %v5221_v26 = vsel %vm685_vm3, %v5203_v11, %v13974_v50 }
 0xc71   : > { %7888 = vmatpush.msk.msra.mxu2 %vm414_vm2, %v5224_v57  ;;  %7916 = vmatpush.msk.msra.mxu3 %vm16567_vm15, %v5225_v31  ;;  %v8576_v31 = vunpack.i.h.bf16 %v14047_v21  ;;  %v8565_v11 = vunpack.i.l.bf16 %v13985_v63  ;;  %v14114_v57 = vpop.permute.xlu2 %5262  ;;  %v5174_v16 = vsel %vm636_vm6, %v13929_v34, %v5161_v27  ;;  %v5172_v34 = vsel %vm636_vm6, %v13900_v46, %v14006_v52  ;;  %vm16573_vm15 = vmmov %vm16572_vm13  ;;  %v7873_v63 = vld [vmem:[%s15911_s1 + $0x1e8] sm:$0xff] }
 0xc73   : > { %7889 = vmatpush.msk.msra.mxu2 %vm414_vm2, %v5222_v61  ;;  %7917 = vmatpush.msk.msra.mxu3 %vm16568_vm4, %v5223_v4  ;;  %v5219_v61 = vsel %vm685_vm3, %v13955_v2, %v13933_v55  ;;  %v8575_v4 = vunpack.i.l.bf16 %v14047_v21  ;;  %v5176_v55 = vsel %vm636_vm6, %v13960_v12, %v5167_v22  ;;  %v5177_v2 = vsel %vm636_vm6, %v5167_v22, %v5169_v6  ;;  %vm16574_vm4 = vmmov %vm16556_vm8 }
 0xc74   : > { %v8551_v6 = vunpack.i.h.bf16 %v13964_v9  ;;  %v8550_v22 = vunpack.i.l.bf16 %v13964_v9 }
 0xc75   : > { %7890 = vmatpush.msk.msra.mxu2 %vm414_vm2, %v5220_v7  ;;  %7918 = vmatpush.msk.msra.mxu3 %vm16569_vm14, %v5221_v26  ;;  %v5175_v7 = vsel %vm636_vm6, %v5161_v27, %v14025_v37  ;;  %v5454_v26 = vsel %vm16573_vm15, %v8575_v4, %v8576_v31  ;;  %v5170_v37 = vsel %vm636_vm6, %v13857_v39, %v13931_v5  ;;  %vm16575_vm14 = vmmov %vm16572_vm13 }
 0xc76   : > { %v5452_v46 = vsel %vm16575_vm14, %v8565_v11, %v8566_v45  ;;  %v5171_v27 = vsel %vm636_vm6, %v13931_v5, %v13998_v40  ;;  %v8570_v11 = vunpack.i.l.bf16 %v13996_v49  ;;  %vm16582_vm14 = vcmask 482304  }
 0xc77   : > { %v14095_v33 = vpop.permute.xlu0 %5310  ;;  %7891 = vmatpush.msk.msra.mxu2 %vm414_vm2, %v5218_v25  ;;  %7919 = vmatpush.msk.msra.mxu3 %vm16570_vm7, %v5219_v61  ;;  %v14101_v43 = vpop.permute.xlu1 %8593  ;;  %v5173_v25 = vsel %vm636_vm6, %v14006_v52, %v13983_v17  ;;  %v8590_v61 = vunpack.i.l.bf16 %v14059_v58  ;;  %vm16576_vm7 = vmmov %vm16572_vm13  ;;  %v8581_v52 = vunpack.i.h.bf16 %v14053_v1 }
 0xc78   : > { %v8596_v0 = vunpack.i.h.bf16 %v14101_v43  ;;  %v8595_v50 = vunpack.i.l.bf16 %v14101_v43  ;;  %v5450_v39 = vsel %vm16576_vm7, %v8550_v22, %v8551_v6  ;;  %v8605_v22 = vunpack.i.l.bf16 %v14063_v29  ;;  %vm16583_vm7 = vmmov %vm16582_vm14 }
 0xc79   : > { %7892 = vmatpush.msk.msra.mxu2 %vm412_vm5, %v5176_v55  ;;  %7920 = vmatpush.msk.msra.mxu3 %vm16571_vm12, %v5177_v2  ;;  %vm16577_vm12 = vmmov %vm16574_vm4  ;;  %v8571_v55 = vunpack.i.h.bf16 %v13996_v49  ;;  %v8591_v2 = vunpack.i.h.bf16 %v14059_v58  ;;  %v8555_v58 = vunpack.i.l.bf16 %v13976_v60 }
 0xc7a   : > { %v5456_v12 = vsel %vm16572_vm13, %v8595_v50, %v8596_v0  ;;  %v8580_v50 = vunpack.i.l.bf16 %v14053_v1  ;;  %vm16578_vm13 = vcmask 367616  }
 0xc7b   : > { %7893 = vmatpush.msk.msra.mxu2 %vm412_vm5, %v5174_v16  ;;  %5527 = vmatpush.msra.mxu0 %v5456_v12  ;;  %v5320_v12 = vsel %vm16578_vm13, %v13972_v36, %v14095_v33 }
 0xc7c   : > { %7921 = vmatpush.msk.msra.mxu3 %vm16556_vm8, %v5175_v7  ;;  %v8556_v7 = vunpack.i.h.bf16 %v13976_v60  ;;  %v5414_v49 = vsel %vm881_vm10, %v8580_v50, %v8581_v52  ;;  %vm16579_vm8 = vmmov %vm16578_vm13  ;;  %v5412_v60 = vsel %vm881_vm10, %v8570_v11, %v8571_v55  ;;  %v8586_v11 = vunpack.i.h.bf16 %v14049_v3 }
 0xc7d   : > { %7894 = vmatpush.msk.msra.mxu2 %vm412_vm5, %v5172_v34  ;;  %5528 = vmatpush.msra.mxu0 %v5454_v26  ;;  %v14176_v34 = vpop.permute.xlu2 %5246  ;;  %v5318_v36 = vsel %vm16579_vm8, %v13941_v14, %v14045_v23  ;;  %v8606_v26 = vunpack.i.h.bf16 %v14063_v29  ;;  %vm16580_vm15 = vmmov %vm16579_vm8  ;;  %v5413_v14 = vsel %vm881_vm10, %v8571_v55, %v8605_v22  ;;  %v7876_v22 = vld [vmem:[%s15911_s1 + $0x200] sm:$0xff] }
 0xc7e   : > { %7922 = vmatpush.msk.msra.mxu3 %vm16574_vm4, %v5173_v25  ;;  %v5415_v25 = vsel %vm881_vm10, %v8581_v52, %v8591_v2  ;;  %v5410_v29 = vsel %vm881_vm10, %v8555_v58, %v8556_v7  ;;  %vm16581_vm4 = vmmov %vm16579_vm8  ;;  %v5270_v52 = vsel %vm16583_vm7, %v13951_v51, %v14051_v28  ;;  %v7872_v51 = vld [vmem:[%s15911_s1 + $0x1e0] sm:$0xff]  ;;  %v8560_v2 = vunpack.i.l.bf16 %v14010_v42 }
 0xc7f   : > { %v14152_v4 = vpop.permute.xlu0 %5118  ;;  %7895 = vmatpush.msk.msra.mxu2 %vm412_vm5, %v5170_v37  ;;  %v8599_v17 = vpop.permute.xlu1 %8598  ;;  %5529 = vmatpush.msra.mxu0 %v5452_v46  ;;  %v5316_v37 = vsel %vm16580_vm15, %v13909_v15, %v14018_v54  ;;  %v5411_v15 = vsel %vm881_vm10, %v8556_v7, %v8606_v26  ;;  %vm16585_vm13 = vmmov %vm16583_vm7  ;;  %vm16586_vm8 = vcmp.ge.s32.totalorder %v16337_v47, 1  ;;  %vm16587_vm15 = vcmask 359424   ;;  %v7881_v26 = vld [vmem:[%s15911_s1 + $0x228] sm:$0xff] }
 0xc80   : > { %7923 = vmatpush.msk.msra.mxu3 %vm16577_vm12, %v5171_v27  ;;  %v8601_v40 = vunpack.i.h.bf16 %v8599_v17  ;;  %v8600_v5 = vunpack.i.l.bf16 %v8599_v17  ;;  %v5128_v17 = vsel %vm583_vm11, %v13987_v24, %v14152_v4  ;;  %v5124_v24 = vsel %vm583_vm11, %v13913_v19, %v14037_v41  ;;  %vm16584_vm12 = vmmov %vm16583_vm7 }
 0xc81   : > { %5530 = vmatpush.msra.mxu0 %v5450_v39  ;;  %v5272_v39 = vsel %vm16582_vm14, %v13924_v44, %v14114_v57  ;;  %v5268_v50 = vsel %vm16584_vm12, %v13902_v32, %v14008_v30  ;;  %v5122_v32 = vsel %vm583_vm11, %v13878_v38, %v13953_v8  ;;  %v5266_v55 = vsel %vm16585_vm13, %v13887_v53, %v13962_v59  ;;  %vm16589_vm14 = vmmov %vm16587_vm15 }
 0xc82   : > { %v5416_v16 = vsel %vm881_vm10, %v8600_v5, %v8601_v40  ;;  %v5417_v1 = vsel %vm881_vm10, %v8601_v40, %v8590_v61  ;;  %v5314_v61 = vsel %vm16581_vm4, %v13867_v20, %v13943_v56  ;;  %v5126_v20 = vsel %vm583_vm11, %v13911_v62, %v14057_v48  ;;  %vm16588_vm4 = vmmov %vm16586_vm8 }
 0xc83   : > { %5506 = vmatpush.msra.mxu2 %v5416_v16  ;;  %7900 = vmatpush.msk.msra.mxu0 %vm414_vm2, %v5320_v12  ;;  %v8585_v5 = vunpack.i.l.bf16 %v14049_v3  ;;  %v5455_v3 = vsel %vm16589_vm14, %v8576_v31, %v8586_v11  ;;  %vm16590_vm7 = vmmov %vm16589_vm14  ;;  %v16600_v16 = vld [vmem:[#allocation22_spill] sm:$0xff]  ;;  %v7878_v12 = vld [vmem:[%s15911_s1 + $0x210] sm:$0xff] }
 0xc84   : > { %5593 = vmatpush.msra.mxu3 %v5417_v1  ;;  %v5453_v43 = vsel %vm16590_vm7, %v8566_v45, %v8560_v2  ;;  %vm16591_vm12 = vmmov %vm16590_vm7  ;;  %v16597_v45 = vld [vmem:[#allocation19_spill] sm:$0xff] }
 0xc85   : > { %5507 = vmatpush.msra.mxu2 %v5414_v49  ;;  %7901 = vmatpush.msk.msra.mxu0 %vm414_vm2, %v5318_v36  ;;  %v5103_v44 = vpop.permute.xlu2 %5102  ;;  %v5457_v38 = vsel %vm16587_vm15, %v8596_v0, %v8585_v5  ;;  %v16592_v0 = vld [vmem:[#allocation9_spill] sm:$0xff]  ;;  %vm16593_vm13 = vmmov %vm16588_vm4  ;;  %v16603_v1 = vld [vmem:[#allocation23_spill] sm:$0xff] }
 0xc86   : > { %5594 = vmatpush.msra.mxu3 %v5415_v25  ;;  %v5123_v9 = vsel %vm583_vm11, %v13953_v8, %v5103_v44  ;;  %vm16596_vm15 = vmmov %vm16588_vm4  ;;  %v7879_v25 = vld [vmem:[%s15911_s1 + $0x218] sm:$0xff]  ;;  %v7880_v5 = vld [vmem:[%s15911_s1 + $0x220] sm:$0xff] }
 0xc87   : > { %v14190_v46 = vpop.permute.xlu0 %5252  ;;  %v14192_v27 = vpop.permute.xlu1 %5258  ;;  %5508 = vmatpush.msra.mxu2 %v5412_v60  ;;  %7902 = vmatpush.msk.msra.mxu0 %vm414_vm2, %v5316_v37  ;;  %vm16599_vm7 = vmmov %vm16588_vm4 }
 0xc88   : > { %5595 = vmatpush.msra.mxu3 %v5413_v14 }
 0xc89   : > { %5509 = vmatpush.msra.mxu2 %v5410_v29  ;;  %7903 = vmatpush.msk.msra.mxu0 %vm414_vm2, %v5314_v61  ;;  %v7882_v29 = vld [vmem:[%s15911_s1 + $0x230] sm:$0xff]  ;;  %v16619_v61 = vld [vmem:[#allocation10_spill] sm:$0xff] }
 0xc8a   : > { %5596 = vmatpush.msra.mxu3 %v5411_v15 }
 0xc8b   : > { %7896 = vmatpush.msk.msra.mxu2 %vm414_vm2, %v5128_v17  ;;  %7904 = vmatpush.msk.msra.mxu0 %vm412_vm5, %v5272_v39 }
 0xc8d   : > { %7897 = vmatpush.msk.msra.mxu2 %vm414_vm2, %v5126_v20  ;;  %7905 = vmatpush.msk.msra.mxu0 %vm412_vm5, %v5270_v52 }
 0xc8f   : > { %v5115_v62 = vpop.permute.xlu0 %5114  ;;  %v5121_v40 = vpop.permute.xlu1 %5120  ;;  %7898 = vmatpush.msk.msra.mxu2 %vm414_vm2, %v5124_v24  ;;  %7906 = vmatpush.msk.msra.mxu0 %vm412_vm5, %v5268_v50  ;;  %v7874_v50 = vld [vmem:[%s15911_s1 + $0x1f0] sm:$0xff] }
 0xc90   : > { %v5129_v19 = vsel %vm583_vm11, %v14152_v4, %v5121_v40  ;;  %v5127_v53 = vsel %vm583_vm11, %v14057_v48, %v5115_v62  ;;  %v8561_v4 = vunpack.i.h.bf16 %v14010_v42  ;;  %v5361_v42 = vpop.permute.xlu2 %5360 }
 0xc91   : > { %7899 = vmatpush.msk.msra.mxu2 %vm414_vm2, %v5122_v32  ;;  %7907 = vmatpush.msk.msra.mxu0 %vm412_vm5, %v5266_v55 }
 0xc92   : > { %7924 = vmatpush.msk.msra.mxu3 %vm16586_vm8, %v5129_v19  ;;  %5514 = vmatmul.f32.vlgmr.msra.gmra.mxu2 %v7872_v51  ;;  %vm16595_vm8 = vcmask 367616   ;;  %v7883_v19 = vld [vmem:[%s15911_s1 + $0x238] sm:$0xff] }
 0xc93   : > { %5614 = vmatpush.msrb.mxu2 %v5457_v38  ;;  %5539 = vmatpush.msra.mxu0 %v13741_v35  ;;  %v7875_v35 = vld [vmem:[%s15911_s1 + $0x1f8] sm:$0xff]  ;;  %vm16598_vm14 = vmmov %vm16595_vm8 }
 0xc94   : > { %7925 = vmatpush.msk.msra.mxu3 %vm16588_vm4, %v5127_v53 }
 0xc95   : > { %5615 = vmatpush.msrb.mxu2 %v5455_v3  ;;  %5540 = vmatpush.msra.mxu0 %v13733_v10  ;;  %v5451_v10 = vsel %vm16591_vm12, %v8551_v6, %v8561_v4  ;;  %v5319_v6 = vsel %vm16598_vm14, %v14045_v23, %v16597_v45  ;;  %vm16601_vm12 = vmmov %vm16595_vm8  ;;  %v5315_v23 = vsel %vm16595_vm8, %v13943_v56, %v16603_v1  ;;  %vm16607_vm14 = vcmp.lt.s32.totalorder %v16337_v47, 15  ;;  %v16630_v45 = vld [vmem:[#allocation5_spill] sm:$0xff] }
 0xc97   : > { %5616 = vmatpush.msrb.mxu2 %v5453_v43  ;;  %v5109_v48 = vpop.permute.xlu1 %5108  ;;  %5541 = vmatpush.msra.mxu0 %v13727_v18  ;;  %v5357_v31 = vpop.permute.xlu0 %5356  ;;  %v16594_v18 = vld [vmem:[#allocation25_spill] sm:$0xff] }
 0xc98   : > { %v5125_v21 = vsel %vm583_vm11, %v14037_v41, %v5109_v48  ;;  %v5321_v41 = vsel %vm16595_vm8, %v14095_v33, %v16594_v18  ;;  %v5317_v33 = vsel %vm16601_vm12, %v14018_v54, %v16600_v16  ;;  %v16605_v54 = vld [vmem:[#allocation52_spill] sm:$0xff]  ;;  %v5355_v58 = vpop.permute.xlu2 %5354  ;;  %vm16609_vm12 = vmmov %vm16607_vm14 }
 0xc99   : > { %5617 = vmatpush.msrb.mxu2 %v5451_v10  ;;  %5542 = vmatpush.msra.mxu0 %v16592_v0  ;;  %vm16611_vm8 = vmmov %vm16609_vm12 }
 0xc9a   : > { %7926 = vmatpush.msk.msra.mxu3 %vm16593_vm13, %v5125_v21  ;;  %5517 = vmatmul.f32.gmra.mxu2 %v7875_v35  ;;  %vm16602_vm13 = vmmov %vm16588_vm4 }
 0xc9b   : > { %5543 = vmatmul.f32.vlgmr.msra.gmra.mxu0 %v7873_v63  ;;  %7928 = vmatpush.msk.msrb.mxu2 %vm16596_vm15, %v5321_v41  ;;  %vm16604_vm15 = vmmov %vm16588_vm4 }
 0xc9c   : > { %7927 = vmatpush.msk.msra.mxu3 %vm16588_vm4, %v5123_v9  ;;  %vm16606_vm4 = vcmask 482304  }
 0xc9d   : > { %5601 = vmatmul.f32.vlgmr.msra.gmra.mxu3 %v7872_v51  ;;  %7929 = vmatpush.msk.msrb.mxu2 %vm16599_vm7, %v5319_v6  ;;  %v5273_v7 = vsel %vm16606_vm4, %v14114_v57, %v16605_v54  ;;  %vm16608_vm7 = vmmov %vm16606_vm4  ;;  %v7877_v51 = vld [vmem:[%s15911_s1 + $0x208] sm:$0xff] }
 0xc9e   : > { %v5271_v56 = vsel %vm16608_vm7, %v14051_v28, %v14192_v27  ;;  %v16616_v27 = vld [vmem:[#allocation31_spill] sm:$0xff] }
 0xc9f   : > { %7930 = vmatpush.msk.msrb.mxu2 %vm16602_vm13, %v5317_v33  ;;  %v5353_v8 = vpop.permute.xlu1 %5352  ;;  %v5351_v49 = vpop.permute.xlu0 %5350  ;;  %vm16610_vm13 = vmmov %vm16606_vm4 }
 0xca0   : > { %v5269_v36 = vsel %vm16610_vm13, %v14008_v30, %v14190_v46  ;;  %v16614_v30 = vld [vmem:[#allocation12_spill] sm:$0xff]  ;;  %v5349_v60 = vpop.permute.xlu2 %5348 }
 0xca1   : > { %7931 = vmatpush.msk.msrb.mxu2 %vm16604_vm15, %v5315_v23  ;;  %vm16612_vm15 = vmmov %vm16606_vm4  ;;  %v16615_v46 = vld [vmem:[#allocation24_spill] sm:$0xff] }
 0xca2   : > { %5520 = vmatmul.f32.gmra.mxu2 %v7878_v12  ;;  %v5267_v28 = vsel %vm16612_vm15, %v13962_v59, %v14176_v34  ;;  %vm16613_vm4 = vmmov %vm16611_vm8 }
 0xca3   : > { %5546 = vmatmul.f32.gmra.mxu0 %v7876_v22  ;;  %7932 = vmatpush.msk.msrb.mxu2 %vm16607_vm14, %v5273_v7  ;;  %vm16617_vm14 = vcmask 351232   ;;  %vm16623_vm15 = vmmov %vm16613_vm4 }
 0xca4   : > { %vm16618_vm7 = vmmov %vm16617_vm14 }
 0xca5   : > { %5604 = vmatmul.f32.gmra.mxu3 %v7875_v35  ;;  %7933 = vmatpush.msk.msrb.mxu2 %vm16609_vm12, %v5271_v56  ;;  %vm16620_vm12 = vmmov %vm16613_vm4  ;;  %v16632_v56 = vld [vmem:[#allocation51_spill] sm:$0xff] }
 0xca6   : > { %vm16621_vm13 = vmmov %vm16618_vm7 }
 0xca7   : > { %7934 = vmatpush.msk.msrb.mxu2 %vm16611_vm8, %v5269_v36  ;;  %v5347_v57 = vpop.permute.xlu1 %5346  ;;  %v5345_v37 = vpop.permute.xlu0 %5344  ;;  %v5366_v15 = vsel %vm16621_vm13, %v5351_v49, %v5353_v8  ;;  %vm16622_vm8 = vmmov %vm16618_vm7 }
 0xca8   : > { %v5367_v17 = vsel %vm16622_vm8, %v5353_v8, %v5355_v58  ;;  %v5343_v52 = vpop.permute.xlu2 %5342 }
 0xca9   : > { %7935 = vmatpush.msk.msrb.mxu2 %vm16613_vm4, %v5267_v28  ;;  %vm16624_vm4 = vmmov %vm16618_vm7 }
 0xcaa   : > { %5523 = vmatmul.f32.gmra.mxu2 %v7881_v26  ;;  %v5364_v39 = vsel %vm16624_vm4, %v5345_v37, %v5347_v57  ;;  %vm16628_vm13 = vmmov %vm16624_vm4  ;;  %v16634_v37 = vld [vmem:[#allocation36_spill] sm:$0xff] }
 0xcab   : > { %5549 = vmatmul.f32.gmra.mxu0 %v7879_v25  ;;  %5626 = vmatpush.msrb.mxu2 %v16614_v30 }
 0xcad   : > { %5607 = vmatmul.f32.gmra.mxu3 %v7878_v12  ;;  %5627 = vmatpush.msrb.mxu2 %v16615_v46 }
 0xcaf   : > { %5628 = vmatpush.msrb.mxu2 %v16616_v27  ;;  %v5359_v14 = vpop.permute.xlu1 %5358  ;;  %v5339_v44 = vpop.permute.xlu0 %5338 }
 0xcb0   : > { %v5368_v59 = vsel %vm16617_vm14, %v5357_v31, %v5359_v14  ;;  %v5369_v34 = vsel %vm16618_vm7, %v5359_v14, %v5361_v42  ;;  %vm16625_vm14 = vmmov %vm16624_vm4  ;;  %v5474_v41 = vpop.permute.xlu2 %5473 }
 0xcb1   : > { %5629 = vmatpush.msrb.mxu2 %v16619_v61  ;;  %7908 = vmatpush.msk.msra.mxu1 %vm412_vm5, %v5368_v59  ;;  %v5365_v20 = vsel %vm16625_vm14, %v5347_v57, %v5349_v60  ;;  %vm16626_vm7 = vmmov %vm16620_vm12  ;;  %v16635_v61 = vld [vmem:[#allocation49_spill] sm:$0xff] }
 0xcb2   : > { %7936 = vmatpush.msk.msrb.mxu0 %vm16620_vm12, %v5369_v34  ;;  %5630 = vmatmul.f32.vlgmr.msrb.gmra.mxu2 %v7873_v63  ;;  %vm16627_vm12 = vmmov %vm16624_vm4 }
 0xcb3   : > { %5552 = vmatmul.f32.gmra.mxu0 %v7882_v29  ;;  %7909 = vmatpush.msk.msra.mxu1 %vm412_vm5, %v5366_v15  ;;  %vm16629_vm8 = vmmov %vm16626_vm7 }
 0xcb4   : > { %7937 = vmatpush.msk.msrb.mxu0 %vm16623_vm15, %v5367_v17  ;;  %vm16659_vm15 = vcmask 359424  }
 0xcb5   : > { %5610 = vmatmul.f32.gmra.mxu3 %v7881_v26  ;;  %7910 = vmatpush.msk.msra.mxu1 %vm412_vm5, %v5364_v39  ;;  %vm16660_vm4 = vmmov %vm16659_vm15 }
 0xcb6   : > { %7938 = vmatpush.msk.msrb.mxu0 %vm16626_vm7, %v5365_v20  ;;  %vm16661_vm14 = vmmov %vm16660_vm4 }
 0xcb7   : > { %v5341_v24 = vpop.permute.xlu1 %5340  ;;  %v5484_v53 = vpop.permute.xlu0 %5483  ;;  %vm16662_vm7 = vmmov %vm16660_vm4 }
 0xcb8   : > { %v5362_v62 = vsel %vm16627_vm12, %v5339_v44, %v5341_v24  ;;  %v5363_v40 = vsel %vm16628_vm13, %v5341_v24, %v5343_v52  ;;  %vm16663_vm12 = vcmask 367616   ;;  %vm16664_vm13 = vcmp.ge.s32.totalorder %v16337_v47, 1 }
 0xcb9   : > { %7911 = vmatpush.msk.msra.mxu1 %vm412_vm5, %v5362_v62  ;;  %7939 = vmatpush.msk.msrb.mxu0 %vm16629_vm8, %v5363_v40  ;;  %vm16665_vm8 = vmmov %vm16664_vm13 }
 0xcba   : > { %7912 = vmatmul.msk.f32.vlgmr.msra.gmra.mxu1 %vm959_vm9, %v7874_v50  ;;  %5633 = vmatmul.f32.gmra.mxu2 %v7876_v22 }
 0xcbb   : > { %7940 = vmatmul.msk.f32.vlgmr.msrb.gmra.mxu0 %vm959_vm9, %v7874_v50 }
 0xcbf   : > { %v5469_v35 = vpop.permute.xlu0 %5468  ;;  %v5479_v58 = vpop.permute.xlu1 %5478 }
 0xcc2   : > { %7913 = vmatmul.msk.f32.gmra.mxu1 %vm959_vm9, %v7877_v51  ;;  %5636 = vmatmul.f32.gmra.mxu2 %v7879_v25 }
 0xcc3   : > { %7941 = vmatmul.msk.f32.gmra.mxu0 %vm959_vm9, %v7877_v51  ;;  %v16638_v51 = vld [vmem:[#allocation18_spill] sm:$0xff] }
 0xcca   : > { %7914 = vmatmul.msk.f32.gmra.mxu1 %vm959_vm9, %v7880_v5  ;;  %5639 = vmatmul.f32.gmra.mxu2 %v7882_v29 }
 0xccb   : > { %7942 = vmatmul.msk.f32.gmra.mxu0 %vm959_vm9, %v7880_v5 }
 0xcd2   : > { %7915 = vmatmul.msk.f32.gmra.mxu1 %vm959_vm9, %v7883_v19 }
 0xcd3   : > { %7943 = vmatmul.msk.f32.gmra.mxu0 %vm959_vm9, %v7883_v19 }
 0xd15   : > { %v5515_v32 = vpop.f32.mrf.mxu2 }
 0xd16   : > { %v5516_v42 = vadd.f32 %v5515_v32, %v5469_v35 }
 0xd18   : > { %v5544_v55 = vpop.f32.mrf.mxu0 }
 0xd19   : > { %v5545_v63 = vadd.f32 %v5544_v55, %v5516_v42  ;;  %v16644_v42 = vld [vmem:[#allocation3_spill] sm:$0xff] }
 0xd1d   : > { %v5518_v2 = vpop.f32.mrf.mxu2 }
 0xd1e   : > { %v5519_v9 = vadd.f32 %v5518_v2, %v5474_v41 }
 0xd20   : > { %v5547_v11 = vpop.f32.mrf.mxu0  ;;  %v5602_v3 = vpop.f32.mrf.mxu3 }
 0xd21   : > { %v5548_v8 = vadd.f32 %v5547_v11, %v5519_v9  ;;  %v5603_v12 = vadd.f32 %v5602_v3, %v5469_v35  ;;  %v16639_v11 = vld [vmem:[#allocation8_spill] sm:$0xff] }
 0xd25   : > { %v5521_v38 = vpop.f32.mrf.mxu2 }
 0xd26   : > { %v5522_v49 = vadd.f32 %v5521_v38, %v5479_v58 }
 0xd28   : > { %v5550_v4 = vpop.f32.mrf.mxu0  ;;  %v5605_v21 = vpop.f32.mrf.mxu3 }
 0xd29   : > { %v5551_v25 = vadd.f32 %v5550_v4, %v5522_v49  ;;  %v5606_v30 = vadd.f32 %v5605_v21, %v5474_v41 }
 0xd2d   : > { %v5524_v43 = vpop.f32.mrf.mxu2 }
 0xd2e   : > { %v5525_v29 = vadd.f32 %v5524_v43, %v5484_v53 }
 0xd30   : > { %v5553_v48 = vpop.f32.mrf.mxu0  ;;  %v5608_v1 = vpop.f32.mrf.mxu3 }
 0xd31   : > { %v5554_v24 = vadd.f32 %v5553_v48, %v5525_v29  ;;  %v5609_v50 = vadd.f32 %v5608_v1, %v5479_v58 }
 0xd35   : > { %v5631_v10 = vpop.f32.mrf.mxu2 }
 0xd36   : > { %v5632_v22 = vadd.f32 %v5631_v10, %v5603_v12 }
 0xd37   : > { %v5573_v31 = vpop.f32.mrf.mxu1 }
 0xd38   : > { %v5574_v0 = vadd.f32 %v5573_v31, %v5545_v63  ;;  %v5660_v18 = vpop.f32.mrf.mxu0  ;;  %v5611_v34 = vpop.f32.mrf.mxu3 }
 0xd39   : > { %v5661_v57 = vadd.f32 %v5660_v18, %v5632_v22  ;;  %v5612_v17 = vadd.f32 %v5611_v34, %v5484_v53  ;;  %v16640_v53 = vld [vmem:[#allocation16_spill] sm:$0xff] }
 0xd3a   : > { %v5672_v6 = vadd.f32 %v5574_v0, %v16630_v45 }
 0xd3b   : > { %v5673_v46 = vadd.f32 %v5661_v57, %v16634_v37 }
 0xd3c   : > { %v14393_v16 = vmax.f32 %v5672_v6, 0.0 }
 0xd3d   : > { %v5634_v33 = vpop.f32.mrf.mxu2  ;;  %v14404_v39 = vmax.f32 %v5673_v46, 0.0 }
 0xd3e   : > { %16631 = vst [vmem:[#allocation45_spill] sm:$0xff] %v14393_v16  ;;  %5714 = vrot.lane.b32.xlu1 %v14393_v16, %s8782_s23  ;;  %v5635_v27 = vadd.f32 %v5634_v33, %v5606_v30 }
 0xd3f   : > { %v5576_v23 = vpop.f32.mrf.mxu1  ;;  %16636 = vst [vmem:[#allocation42_spill] sm:$0xff] %v14404_v39 }
 0xd40   : > { %v5577_v54 = vadd.f32 %v5576_v23, %v5548_v8  ;;  %v5663_v7 = vpop.f32.mrf.mxu0 }
 0xd41   : > { %v5664_v20 = vadd.f32 %v5663_v7, %v5635_v27 }
 0xd42   : > { %v5674_v36 = vadd.f32 %v5577_v54, %v16632_v56 }
 0xd43   : > { %v5675_v5 = vadd.f32 %v5664_v20, %v16638_v51 }
 0xd44   : > { %v14398_v26 = vmax.f32 %v5674_v36, 0.0 }
 0xd45   : > { %v5637_v28 = vpop.f32.mrf.mxu2  ;;  %v14415_v3 = vmax.f32 %v5675_v5, 0.0 }
 0xd46   : > { %16633 = vst [vmem:[#allocation46_spill] sm:$0xff] %v14398_v26  ;;  %5718 = vrot.lane.b32.xlu2 %v14398_v26, %s8782_s23  ;;  %v5638_v19 = vadd.f32 %v5637_v28, %v5609_v50 }
 0xd47   : > { %v5579_v60 = vpop.f32.mrf.mxu1  ;;  %16641 = vst [vmem:[#allocation39_spill] sm:$0xff] %v14415_v3 }
 0xd48   : > { %v5580_v14 = vadd.f32 %v5579_v60, %v5551_v25  ;;  %v5666_v59 = vpop.f32.mrf.mxu0 }
 0xd49   : > { %v5667_v43 = vadd.f32 %v5666_v59, %v5638_v19 }
 0xd4a   : > { %v5676_v15 = vadd.f32 %v5580_v14, %v16635_v61 }
 0xd4b   : > { %v5677_v21 = vadd.f32 %v5667_v43, %v16644_v42 }
 0xd4c   : > { %v14406_v52 = vmax.f32 %v5676_v15, 0.0 }
 0xd4d   : > { %v5640_v44 = vpop.f32.mrf.mxu2  ;;  %v14428_v10 = vmax.f32 %v5677_v21, 0.0 }
 0xd4e   : > { %16637 = vst [vmem:[#allocation43_spill] sm:$0xff] %v14406_v52  ;;  %v5641_v62 = vadd.f32 %v5640_v44, %v5612_v17  ;;  %5722 = vrot.lane.b32.xlu0 %v14406_v52, %s8782_s23  ;;  %5716 = vrot.lane.b32.xlu2 %v14404_v39, %s8782_s23 }
 0xd4f   : > { %v5582_v40 = vpop.f32.mrf.mxu1  ;;  %16645 = vst [vmem:[#allocation37_spill] sm:$0xff] %v14428_v10 }
 0xd50   : > { %v5583_v32 = vadd.f32 %v5582_v40, %v5554_v24  ;;  %v5669_v55 = vpop.f32.mrf.mxu0 }
 0xd51   : > { %v5670_v2 = vadd.f32 %v5669_v55, %v5641_v62 }
 0xd52   : > { %v5678_v38 = vadd.f32 %v5583_v32, %v16639_v11 }
 0xd53   : > { %v5679_v4 = vadd.f32 %v5670_v2, %v16640_v53 }
 0xd54   : > { %v14417_v48 = vmax.f32 %v5678_v38, 0.0 }
 0xd55   : > { %v14419_v35 = vmax.f32 %v5679_v4, 0.0 }
 0xd56   : > { %16642 = vst [vmem:[#allocation40_spill] sm:$0xff] %v14417_v48  ;;  %5720 = vrot.lane.b32.xlu0 %v14415_v3, %s8782_s23  ;;  %5726 = vrot.lane.b32.xlu1 %v14417_v48, %s8782_s23 }
 0xd57   : > { %16643 = vst [vmem:[#allocation35_spill] sm:$0xff] %v14419_v35  ;;  %5728 = vrot.lane.b32.xlu2 %v14419_v35, %s8782_s23 }
 0xd5e   : > { %5724 = vrot.lane.b32.xlu1 %v14428_v10, %s8782_s23 }
 0xda0   : > { %v5719_v63 = vpop.permute.xlu2 %5718 }
 0xda1   : > { %5749 = vst.msk [vmem:[#allocation2 + $0x20] sm:$0xff] %vm518_vm0, %v5719_v63 }
 0xda8   : > { %v5717_v31 = vpop.permute.xlu2 %5716  ;;  %v14447_v45 = vld [vmem:[#allocation2 + $0x20] sm:$0xff] }
 0xda9   : > { %5748 = vst.msk [vmem:[#allocation2 + $0x10] sm:$0xff] %vm501_vm1, %v5717_v31 }
 0xdb0   : > { %v5715_v0 = vpop.permute.xlu1 %5714  ;;  %v14497_v54 = vld [vmem:[#allocation2 + $0x10] sm:$0xff] }
 0xdb1   : > { %v14434_v18 = vpop.permute.xlu2 %5728  ;;  %5746 = vst.msk [vmem:[#allocation2] sm:$0xff] %vm518_vm0, %v5715_v0  ;;  %v14485_v23 = vsel %vm501_vm1, %v5715_v0, %v5717_v31 }
 0xdb2   : > { %5757 = vst.msk [vmem:[#allocation2 + $0x70] sm:$0xff] %vm501_vm1, %v14434_v18 }
 0xdb8   : > { %v14439_v41 = vld [vmem:[#allocation2] sm:$0xff] }
 0xdb9   : > { %5926 = vrot.lane.b32.xlu2 %v14439_v41, %s8786_s27  ;;  %5974 = vrot.lane.b32.xlu1 %v14439_v41, %s8787_s28  ;;  %v8612_v22 = vpack.i.bf16 %v14485_v23, %v14439_v41  ;;  %v5769_v27 = vld [vmem:[#allocation2 + $0x70] sm:$0xff] }
 0xdba   : > { %5878 = vrot.lane.b32.xlu0 %v14439_v41, %s8785_s26 }
 0xdc0   : > { %v5723_v9 = vpop.permute.xlu0 %5722 }
 0xdc1   : > { %5752 = vst.msk [vmem:[#allocation2 + $0x40] sm:$0xff] %vm518_vm0, %v5723_v9  ;;  %5884 = vrot.lane.b32.xlu2 %v14447_v45, %s8785_s26  ;;  %5830 = vrot.lane.b32.xlu1 %v14439_v41, %s8784_s25 }
 0xdc2   : > { %5980 = vrot.lane.b32.xlu0 %v14447_v45, %s8787_s28 }
 0xdc8   : > { %v5721_v6 = vpop.permute.xlu0 %5720  ;;  %v14456_v33 = vpop.permute.xlu1 %5726  ;;  %v14470_v12 = vld [vmem:[#allocation2 + $0x40] sm:$0xff] }
 0xdc9   : > { %5751 = vst.msk [vmem:[#allocation2 + $0x30] sm:$0xff] %vm501_vm1, %v5721_v6  ;;  %5932 = vrot.lane.b32.xlu2 %v14447_v45, %s8786_s27  ;;  %5782 = vrot.lane.b32.xlu1 %v14439_v41, %s8783_s24  ;;  %v14522_v58 = vsel %vm501_vm1, %v5719_v63, %v5721_v6  ;;  %v5733_v62 = vsel %vm501_vm1, %v14456_v33, %v14434_v18 }
 0xdca   : > { %5755 = vst.msk [vmem:[#allocation2 + $0x60] sm:$0xff] %vm518_vm0, %v14456_v33  ;;  %5836 = vrot.lane.b32.xlu0 %v14447_v45, %s8784_s25  ;;  %v8622_v49 = vpack.i.bf16 %v14522_v58, %v14447_v45 }
 0xdd0   : > { %v5725_v8 = vpop.permute.xlu1 %5724  ;;  %v14502_v7 = vld [vmem:[#allocation2 + $0x30] sm:$0xff] }
 0xdd1   : > { %5754 = vst.msk [vmem:[#allocation2 + $0x50] sm:$0xff] %vm501_vm1, %v5725_v8  ;;  %5788 = vrot.lane.b32.xlu2 %v14447_v45, %s8783_s24  ;;  %v14472_v1 = vld [vmem:[#allocation2 + $0x60] sm:$0xff]  ;;  %v8617_v57 = vpack.i.bf16 %v14497_v54, %v14502_v7  ;;  %v14550_v28 = vsel %vm501_vm1, %v5723_v9, %v5725_v8 }
 0xdd2   : > { %5938 = vrot.lane.b32.xlu0 %v14470_v12, %s8786_s27  ;;  %5992 = vrot.lane.b32.xlu1 %v14472_v1, %s8787_s28  ;;  %v8632_v61 = vpack.i.bf16 %v14550_v28, %v14470_v12  ;;  %v8652_v40 = vpack.i.bf16 %v5733_v62, %v14472_v1 }
 0xdd8   : > { %v14553_v25 = vld [vmem:[#allocation2 + $0x50] sm:$0xff] }
 0xdd9   : > { %5890 = vrot.lane.b32.xlu2 %v14470_v12, %s8785_s26  ;;  %v8642_v14 = vpack.i.bf16 %v14553_v25, %v5769_v27 }
 0xdda   : > { %5794 = vrot.lane.b32.xlu0 %v14470_v12, %s8783_s24  ;;  %5848 = vrot.lane.b32.xlu1 %v14472_v1, %s8784_s25 }
 0xde1   : > { %5986 = vrot.lane.b32.xlu2 %v14470_v12, %s8787_s28 }
 0xde2   : > { %5928 = vrot.lane.b32.xlu0 %v14485_v23, %s8786_s27  ;;  %5800 = vrot.lane.b32.xlu1 %v14472_v1, %s8783_s24 }
 0xde9   : > { %5842 = vrot.lane.b32.xlu2 %v14470_v12, %s8784_s25 }
 0xdea   : > { %8613 = vrot.lane.b32.xlu0 %v8612_v22, %s8790_s30  ;;  %5882 = vrot.lane.b32.xlu1 %v14497_v54, %s8785_s26 }
 0xdf1   : > { %5896 = vrot.lane.b32.xlu2 %v14472_v1, %s8785_s26 }
 0xdf2   : > { %5888 = vrot.lane.b32.xlu0 %v14502_v7, %s8785_s26  ;;  %5978 = vrot.lane.b32.xlu1 %v14497_v54, %s8787_s28 }
 0xdf9   : > { %5944 = vrot.lane.b32.xlu2 %v14472_v1, %s8786_s27 }
 0xdfa   : > { %5840 = vrot.lane.b32.xlu0 %v14502_v7, %s8784_s25  ;;  %8608 = vrot.lane.b32.xlu1 %v8612_v22, %s8791_s12 }
 0xe01   : > { %5834 = vrot.lane.b32.xlu2 %v14497_v54, %s8784_s25 }
 0xe02   : > { %5984 = vrot.lane.b32.xlu0 %v14502_v7, %s8787_s28  ;;  %5880 = vrot.lane.b32.xlu1 %v14485_v23, %s8785_s26 }
 0xe09   : > { %5976 = vrot.lane.b32.xlu2 %v14485_v23, %s8787_s28 }
 0xe0a   : > { %5886 = vrot.lane.b32.xlu0 %v14522_v58, %s8785_s26  ;;  %8623 = vrot.lane.b32.xlu1 %v8622_v49, %s8791_s12 }
 0xe11   : > { %5832 = vrot.lane.b32.xlu2 %v14485_v23, %s8784_s25 }
 0xe12   : > { %5934 = vrot.lane.b32.xlu0 %v14522_v58, %s8786_s27  ;;  %5982 = vrot.lane.b32.xlu1 %v14522_v58, %s8787_s28 }
 0xe13   : > { %v14537_v56 = vpop.permute.xlu2 %5926 }
 0xe19   : > { %5784 = vrot.lane.b32.xlu2 %v14485_v23, %s8783_s24 }
 0xe1a   : > { %5790 = vrot.lane.b32.xlu0 %v14522_v58, %s8783_s24  ;;  %5838 = vrot.lane.b32.xlu1 %v14522_v58, %s8784_s25 }
 0xe1b   : > { %v14545_v36 = vpop.permute.xlu2 %5884 }
 0xe21   : > { %8618 = vrot.lane.b32.xlu2 %v8617_v57, %s8791_s12 }
 0xe22   : > { %5894 = vrot.lane.b32.xlu1 %v14553_v25, %s8785_s26  ;;  %5892 = vrot.lane.b32.xlu0 %v14550_v28, %s8785_s26 }
 0xe23   : > { %v14559_v30 = vpop.permute.xlu2 %5932 }
 0xe29   : > { %8628 = vrot.lane.b32.xlu2 %v8622_v49, %s8790_s30 }
 0xe2a   : > { %5846 = vrot.lane.b32.xlu1 %v14553_v25, %s8784_s25  ;;  %5988 = vrot.lane.b32.xlu0 %v14550_v28, %s8787_s28 }
 0xe2b   : > { %v14566_v60 = vpop.permute.xlu2 %5788  ;;  %v14568_v37 = vpop.permute.xlu1 %5974 }
 0xe2c   : > { %16646 = vst [vmem:[#allocation6_spill] sm:$0xff] %v14566_v60  ;;  %v14570_v46 = vpop.permute.xlu0 %5878 }
 0xe31   : > { %8643 = vrot.lane.b32.xlu2 %v8642_v14, %s8791_s12 }
 0xe32   : > { %5990 = vrot.lane.b32.xlu1 %v14553_v25, %s8787_s28  ;;  %5844 = vrot.lane.b32.xlu0 %v14550_v28, %s8784_s25 }
 0xe33   : > { %v14578_v59 = vpop.permute.xlu2 %5890  ;;  %v14580_v34 = vpop.permute.xlu1 %5830 }
 0xe34   : > { %v14582_v29 = vpop.permute.xlu0 %5980 }
 0xe39   : > { %5996 = vrot.lane.b32.xlu2 %v5769_v27, %s8787_s28 }
 0xe3a   : > { %5900 = vrot.lane.b32.xlu0 %v5769_v27, %s8785_s26  ;;  %8633 = vrot.lane.b32.xlu1 %v8632_v61, %s8791_s12 }
 0xe3b   : > { %v14589_v15 = vpop.permute.xlu2 %5986  ;;  %v14591_v17 = vpop.permute.xlu1 %5782 }
 0xe3c   : > { %16647 = vst [vmem:[#allocation33_spill] sm:$0xff] %v14591_v17  ;;  %v14593_v20 = vpop.permute.xlu0 %5836 }
 0xe41   : > { %8648 = vrot.lane.b32.xlu2 %v8642_v14, %s8790_s30 }
 0xe42   : > { %5852 = vrot.lane.b32.xlu0 %v5769_v27, %s8784_s25  ;;  %5940 = vrot.lane.b32.xlu1 %v14550_v28, %s8786_s27 }
 0xe43   : > { %v14599_v44 = vpop.permute.xlu2 %5842 }
 0xe44   : > { %v14601_v24 = vpop.permute.xlu0 %5938  ;;  %v14603_v50 = vpop.permute.xlu1 %5992 }
 0xe49   : > { %8658 = vrot.lane.b32.xlu2 %v8617_v57, %s8790_s30 }
 0xe4a   : > { %8653 = vrot.lane.b32.xlu0 %v8652_v40, %s8791_s12  ;;  %8638 = vrot.lane.b32.xlu1 %v8632_v61, %s8790_s30  ;;  %v7956_v61 = vld [vmem:[%s15912_s2 + $0xc0] sm:$0xff] }
 0xe4b   : > { %v14612_v51 = vpop.permute.xlu2 %5896 }
 0xe4c   : > { %v14614_v5 = vpop.permute.xlu0 %5794  ;;  %v14616_v19 = vpop.permute.xlu1 %5848 }
 0xe4d   : > { %16648 = vst [vmem:[#allocation20_spill] sm:$0xff] %v14614_v5 }
 0xe51   : > { %5994 = vrot.lane.b32.xlu2 %v5733_v62, %s8787_s28 }
 0xe52   : > { %5898 = vrot.lane.b32.xlu0 %v5733_v62, %s8785_s26  ;;  %5796 = vrot.lane.b32.xlu1 %v14550_v28, %s8783_s24 }
 0xe53   : > { %v14622_v32 = vpop.permute.xlu2 %5944 }
 0xe54   : > { %v14624_v55 = vpop.permute.xlu0 %5928  ;;  %v14626_v2 = vpop.permute.xlu1 %5800 }
 0xe59   : > { %5850 = vrot.lane.b32.xlu2 %v5733_v62, %s8784_s25 }
 0xe5a   : > { %5948 = vrot.lane.b32.xlu0 %v5769_v27, %s8786_s27  ;;  %5942 = vrot.lane.b32.xlu1 %v14553_v25, %s8786_s27 }
 0xe5b   : > { %v14632_v11 = vpop.permute.xlu2 %5834 }
 0xe5c   : > { %v14634_v38 = vpop.permute.xlu0 %8613  ;;  %v14636_v53 = vpop.permute.xlu1 %5882 }
 0xe61   : > { %5930 = vrot.lane.b32.xlu2 %v14497_v54, %s8786_s27 }
 0xe62   : > { %5946 = vrot.lane.b32.xlu0 %v5733_v62, %s8786_s27  ;;  %8663 = vrot.lane.b32.xlu1 %v8652_v40, %s8790_s30 }
 0xe63   : > { %v14642_v4 = vpop.permute.xlu2 %5976 }
 0xe64   : > { %v14644_v43 = vpop.permute.xlu0 %5888  ;;  %v14646_v42 = vpop.permute.xlu1 %5978 }
 0xe65   : > { %16649 = vst [vmem:[#allocation29_spill] sm:$0xff] %v14646_v42 }
 0xe69   : > { %5802 = vrot.lane.b32.xlu2 %v5733_v62, %s8783_s24 }
 0xe6a   : > { %5936 = vrot.lane.b32.xlu0 %v14502_v7, %s8786_s27  ;;  %6040 = vrot.lane.b32.xlu1 %v14472_v1, %s8788_s29 }
 0xe6b   : > { %v14653_v21 = vpop.permute.xlu2 %5832 }
 0xe6c   : > { %v14655_v63 = vpop.permute.xlu0 %5840  ;;  %v14657_v31 = vpop.permute.xlu1 %8608 }
 0xe6d   : > { %v8611_v16 = vunpack.i.h.bf16 %v14657_v31  ;;  %v8610_v60 = vunpack.i.l.bf16 %v14657_v31  ;;  %v7951_v31 = vld [vmem:[%s15911_s1 + $0x278] sm:$0xff] }
 0xe71   : > { %6038 = vrot.lane.b32.xlu2 %v14553_v25, %s8788_s29 }
 0xe72   : > { %6044 = vrot.lane.b32.xlu0 %v5769_v27, %s8788_s29  ;;  %5804 = vrot.lane.b32.xlu1 %v5769_v27, %s8783_s24  ;;  %v7958_v27 = vld [vmem:[%s15912_s2 + $0xd0] sm:$0xff] }
 0xe73   : > { %v14663_v0 = vpop.permute.xlu2 %5784 }
 0xe74   : > { %16650 = vst [vmem:[#allocation7_spill] sm:$0xff] %v14663_v0  ;;  %v14665_v18 = vpop.permute.xlu0 %5984  ;;  %v14667_v9 = vpop.permute.xlu1 %5880 }
 0xe75   : > { %16651 = vst [vmem:[#allocation26_spill] sm:$0xff] %v14665_v18 }
 0xe79   : > { %6030 = vrot.lane.b32.xlu2 %v14522_v58, %s8788_s29 }
 0xe7a   : > { %6034 = vrot.lane.b32.xlu0 %v14470_v12, %s8788_s29  ;;  %6036 = vrot.lane.b32.xlu1 %v14550_v28, %s8788_s29 }
 0xe7b   : > { %v14675_v6 = vpop.permute.xlu2 %8618 }
 0xe7c   : > { %16652 = vst [vmem:[#allocation4_spill] sm:$0xff] %v14675_v6  ;;  %v14677_v33 = vpop.permute.xlu0 %5886  ;;  %v14679_v8 = vpop.permute.xlu1 %8623 }
 0xe7d   : > { %v8626_v0 = vunpack.i.h.bf16 %v14679_v8 }
 0xe81   : > { %6022 = vrot.lane.b32.xlu2 %v14439_v41, %s8788_s29 }
 0xe82   : > { %5798 = vrot.lane.b32.xlu0 %v14553_v25, %s8783_s24  ;;  %6028 = vrot.lane.b32.xlu1 %v14447_v45, %s8788_s29  ;;  %v7959_v25 = vld [vmem:[%s15912_s2 + $0xd8] sm:$0xff] }
 0xe83   : > { %v14687_v1 = vpop.permute.xlu2 %8628 }
 0xe84   : > { %v14689_v12 = vpop.permute.xlu0 %5934  ;;  %v14691_v22 = vpop.permute.xlu1 %5982 }
 0xe89   : > { %6042 = vrot.lane.b32.xlu2 %v5733_v62, %s8788_s29 }
 0xe8a   : > { %6032 = vrot.lane.b32.xlu0 %v14502_v7, %s8788_s29  ;;  %5792 = vrot.lane.b32.xlu1 %v14502_v7, %s8783_s24  ;;  %v7957_v7 = vld [vmem:[%s15912_s2 + $0xc8] sm:$0xff] }
 0xe8b   : > { %v14698_v41 = vpop.permute.xlu2 %8643 }
 0xe8c   : > { %16653 = vst [vmem:[#allocation30_spill] sm:$0xff] %v14698_v41  ;;  %v14700_v58 = vpop.permute.xlu0 %5790  ;;  %v14702_v49 = vpop.permute.xlu1 %5838  ;;  %v8625_v41 = vunpack.i.l.bf16 %v14679_v8 }
 0xe8d   : > { %16654 = vst [vmem:[#allocation38_spill] sm:$0xff] %v14700_v58 }
 0xe8e   : > { %v6136_v5 = vsel %vm16661_vm14, %v8625_v41, %v8626_v0  ;;  %vm16668_vm14 = vmmov %vm16663_vm12 }
 0xe91   : > { %5786 = vrot.lane.b32.xlu2 %v14497_v54, %s8783_s24 }
 0xe92   : > { %6024 = vrot.lane.b32.xlu0 %v14485_v23, %s8788_s29  ;;  %6026 = vrot.lane.b32.xlu1 %v14497_v54, %s8788_s29 }
 0xe93   : > { %v14710_v45 = vpop.permute.xlu2 %5996 }
 0xe94   : > { %16655 = vst [vmem:[#allocation17_spill] sm:$0xff] %v14710_v45  ;;  %v5893_v57 = vpop.permute.xlu0 %5892  ;;  %v5895_v28 = vpop.permute.xlu1 %5894 }
 0xe99   : > { %6157 = vperm.xlu2 %8204, %v7957_v7  }
 0xe9a   : > { %6167 = vperm.xlu0 %8205, %v7959_v25   ;;  %6162 = vperm.xlu1 %8206, %v7958_v27  }
 0xe9b   : > { %v14721_v23 = vpop.permute.xlu2 %8648 }
 0xe9c   : > { %v14723_v54 = vpop.permute.xlu0 %5988  ;;  %v14725_v14 = vpop.permute.xlu1 %5846 }
 0xea2   : > { %6152 = vperm.xlu0 %8205, %v7956_v61  }
 0xea3   : > { %v14730_v62 = vpop.permute.xlu2 %8658 }
 0xea4   : > { %v14732_v40 = vpop.permute.xlu0 %5844  ;;  %v14734_v39 = vpop.permute.xlu1 %5990 }
 0xea5   : > { %16656 = vst [vmem:[#allocation41_spill] sm:$0xff] %v14734_v39 }
 0xeab   : > { %v14736_v7 = vpop.permute.xlu2 %5994 }
 0xeac   : > { %v5901_v25 = vpop.permute.xlu0 %5900  ;;  %v14738_v27 = vpop.permute.xlu1 %8633  ;;  %v6004_v41 = vsel %vm16663_vm12, %v14603_v50, %v14736_v7 }
 0xead   : > { %v8636_v45 = vunpack.i.h.bf16 %v14738_v27  ;;  %v8635_v6 = vunpack.i.l.bf16 %v14738_v27 }
 0xeaf   : > { %v6138_v58 = vsel %vm16660_vm4, %v8635_v6, %v8636_v45  ;;  %v6134_v6 = vsel %vm16662_vm7, %v8610_v60, %v8611_v16  ;;  %v5904_v60 = vsel %vm685_vm3, %v14545_v36, %v14677_v33  ;;  %vm16667_vm4 = vmmov %vm16665_vm8  ;;  %v5902_v36 = vsel %vm685_vm3, %v14570_v46, %v14667_v9 }
 0xeb0   : > { %vm16669_vm7 = vmmov %vm16667_vm4 }
 0xeb3   : > { %v5851_v3 = vpop.permute.xlu2 %5850 }
 0xeb4   : > { %v5853_v10 = vpop.permute.xlu0 %5852  ;;  %v14740_v35 = vpop.permute.xlu1 %5940  ;;  %v5860_v46 = vsel %vm636_vm6, %v14616_v19, %v5851_v3  ;;  %v5858_v19 = vsel %vm636_vm6, %v14599_v44, %v14732_v40 }
 0xebb   : > { %v14742_v42 = vpop.permute.xlu2 %5930 }
 0xebc   : > { %16657 = vst [vmem:[#allocation14_spill] sm:$0xff] %v14742_v42  ;;  %v14744_v18 = vpop.permute.xlu0 %8653  ;;  %v14746_v61 = vpop.permute.xlu1 %8638 }
 0xebd   : > { %16658 = vst [vmem:[#allocation47_spill] sm:$0xff] %v14744_v18  ;;  %v8656_v39 = vunpack.i.h.bf16 %v14744_v18  ;;  %v8655_v17 = vunpack.i.l.bf16 %v14744_v18 }
 0xebf   : > { %v6140_v42 = vsel %vm16659_vm15, %v8655_v17, %v8656_v39  ;;  %vm16666_vm15 = vmmov %vm16663_vm12 }
 0xec0   : > { %6211 = vmatpush.msrb.mxu3 %v6140_v42  ;;  %v6002_v50 = vsel %vm16666_vm15, %v14589_v15, %v14723_v54  ;;  %v6000_v15 = vsel %vm16668_vm14, %v14582_v29, %v14691_v22  ;;  %v5998_v29 = vsel %vm16663_vm12, %v14568_v37, %v14642_v4  ;;  %v5857_v37 = vsel %vm636_vm6, %v14702_v49, %v14655_v63 }
 0xec1   : > { %v5855_v63 = vsel %vm636_vm6, %v14653_v21, %v14632_v11 }
 0xec2   : > { %6212 = vmatpush.msrb.mxu3 %v6138_v58 }
 0xec3   : > { %v14762_v26 = vpop.permute.xlu2 %5802 }
 0xec4   : > { %v5899_v52 = vpop.permute.xlu0 %5898  ;;  %v14767_v18 = vpop.permute.xlu1 %5796  ;;  %6213 = vmatpush.msrb.mxu3 %v6136_v5 }
 0xec5   : > { %v5908_v17 = vsel %vm685_vm3, %v14612_v51, %v5899_v52  ;;  %v5909_v42 = vsel %vm685_vm3, %v5899_v52, %v5901_v25  ;;  %v5906_v51 = vsel %vm685_vm3, %v14578_v59, %v5893_v57  ;;  %v5907_v52 = vsel %vm685_vm3, %v5893_v57, %v5895_v28 }
 0xec6   : > { %7960 = vmatpush.msk.msrb.mxu1 %vm414_vm2, %v5908_v17  ;;  %6214 = vmatpush.msrb.mxu3 %v6134_v6  ;;  %v5905_v59 = vsel %vm685_vm3, %v14677_v33, %v14644_v43  ;;  %v5903_v43 = vsel %vm685_vm3, %v14667_v9, %v14636_v53  ;;  %v5861_v57 = vsel %vm636_vm6, %v5851_v3, %v5853_v10  ;;  %v8650_v9 = vunpack.i.l.bf16 %v14721_v23 }
 0xec7   : > { %7988 = vmatpush.msk.msra.mxu0 %vm16664_vm13, %v5909_v42  ;;  %vm16670_vm13 = vcmp.lt.s32.totalorder %v16337_v47, 15  ;;  %v5859_v3 = vsel %vm636_vm6, %v14732_v40, %v14725_v14  ;;  %v5856_v10 = vsel %vm636_vm6, %v14593_v20, %v14702_v49  ;;  %v5854_v53 = vsel %vm636_vm6, %v14580_v34, %v14653_v21 }
 0xec8   : > { %7961 = vmatpush.msk.msrb.mxu1 %vm414_vm2, %v5906_v51  ;;  %7972 = vmatpush.msk.msrb.mxu3 %vm414_vm2, %v6004_v41  ;;  %v8641_v20 = vunpack.i.h.bf16 %v14746_v61  ;;  %v8640_v14 = vunpack.i.l.bf16 %v14746_v61  ;;  %v8631_v17 = vunpack.i.h.bf16 %v14687_v1  ;;  %v8630_v42 = vunpack.i.l.bf16 %v14687_v1 }
 0xec9   : > { %7989 = vmatpush.msk.msra.mxu0 %vm16665_vm8, %v5907_v52  ;;  %vm16671_vm8 = vmmov %vm16670_vm13  ;;  %v8651_v61 = vunpack.i.h.bf16 %v14721_v23  ;;  %v8660_v6 = vunpack.i.l.bf16 %v14730_v62  ;;  %v8616_v41 = vunpack.i.h.bf16 %v14634_v38  ;;  %v8615_v1 = vunpack.i.l.bf16 %v14634_v38 }
 0xeca   : > { %7962 = vmatpush.msk.msrb.mxu1 %vm414_vm2, %v5904_v60  ;;  %7973 = vmatpush.msk.msrb.mxu3 %vm414_vm2, %v6002_v50  ;;  %vm16672_vm15 = vmmov %vm16671_vm8  ;;  %v6098_v51 = vsel %vm881_vm10, %v8640_v14, %v8641_v20  ;;  %v8661_v52 = vunpack.i.h.bf16 %v14730_v62  ;;  %v6096_v38 = vsel %vm881_vm10, %v8630_v42, %v8631_v17  ;;  %v16685_v14 = vld [vmem:[#allocation30_spill] sm:$0xff]  ;;  %v16688_v42 = vld [vmem:[#allocation33_spill] sm:$0xff] }
 0xecb   : > { %7990 = vmatpush.msk.msra.mxu0 %vm16667_vm4, %v5905_v59  ;;  %v14806_v5 = vpop.permute.xlu2 %6038  ;;  %vm16673_vm4 = vcmask 482304   ;;  %vm16674_vm14 = vmmov %vm16671_vm8  ;;  %v6099_v23 = vsel %vm881_vm10, %v8641_v20, %v8651_v61  ;;  %v6097_v62 = vsel %vm881_vm10, %v8631_v17, %v8660_v6  ;;  %v16687_v17 = vld [vmem:[#allocation7_spill] sm:$0xff]  ;;  %v8646_v61 = vunpack.i.h.bf16 %v16685_v14 }
 0xecc   : > { %v14814_v58 = vpop.permute.xlu0 %5948  ;;  %7963 = vmatpush.msk.msrb.mxu1 %vm414_vm2, %v5902_v36  ;;  %v14821_v33 = vpop.permute.xlu1 %5942  ;;  %7974 = vmatpush.msk.msrb.mxu3 %vm414_vm2, %v6000_v15  ;;  %vm16676_vm12 = vmmov %vm16673_vm4  ;;  %v6094_v36 = vsel %vm881_vm10, %v8615_v1, %v8616_v41  ;;  %v6095_v15 = vsel %vm881_vm10, %v8616_v41, %v8661_v52 }
 0xecd   : > { %7991 = vmatpush.msk.msra.mxu0 %vm16669_vm7, %v5903_v43  ;;  %vm16675_vm7 = vmmov %vm16673_vm4  ;;  %v16678_v43 = vld [vmem:[#allocation43_spill] sm:$0xff] }
 0xece   : > { %7964 = vmatpush.msk.msrb.mxu1 %vm412_vm5, %v5860_v46  ;;  %7975 = vmatpush.msk.msrb.mxu3 %vm414_vm2, %v5998_v29  ;;  %v5954_v11 = vsel %vm16675_vm7, %v14601_v24, %v14740_v35  ;;  %v5952_v24 = vsel %vm16676_vm12, %v14559_v30, %v14689_v12  ;;  %v16679_v46 = vld [vmem:[#allocation20_spill] sm:$0xff]  ;;  %vm16692_vm7 = vcmask 359424  }
 0xecf   : > { %7992 = vmatpush.msk.msra.mxu0 %vm16670_vm13, %v5861_v57  ;;  %vm16677_vm13 = vmmov %vm16673_vm4  ;;  %v5810_v29 = vsel %vm583_vm11, %v16679_v46, %v14767_v18  ;;  %v16680_v57 = vld [vmem:[#allocation46_spill] sm:$0xff] }
 0xed0   : > { %7965 = vmatpush.msk.msrb.mxu1 %vm412_vm5, %v5858_v19  ;;  %v5950_v50 = vsel %vm16677_vm13, %v14537_v56, %v14624_v55  ;;  %v5812_v56 = vsel %vm583_vm11, %v14626_v2, %v14762_v26  ;;  %v14931_v19 = vld [vmem:[%s15911_s1 + $0x248] sm:$0xff]  ;;  %vm16693_vm12 = vmmov %vm16692_vm7 }
 0xed1   : > { %7993 = vmatpush.msk.msra.mxu0 %vm16671_vm8, %v5859_v3  ;;  %v16681_v3 = vld [vmem:[#allocation38_spill] sm:$0xff]  ;;  %vm16683_vm8 = vcmask 351232   ;;  %v6139_v1 = vsel %vm16693_vm12, %v8636_v45, %v8646_v61  ;;  %vm16694_vm13 = vmmov %vm16692_vm7  ;;  %vm16700_vm12 = vcmp.ge.s32.totalorder %v16337_v47, 1 }
 0xed2   : > { %7966 = vmatpush.msk.msrb.mxu1 %vm412_vm5, %v5856_v10  ;;  %v16682_v10 = vld [vmem:[#allocation6_spill] sm:$0xff] }
 0xed3   : > { %7994 = vmatpush.msk.msra.mxu0 %vm16672_vm15, %v5857_v37  ;;  %v14859_v44 = vpop.permute.xlu2 %6030  ;;  %v5808_v37 = vsel %vm583_vm11, %v16682_v10, %v16681_v3  ;;  %vm16686_vm15 = vmmov %vm16683_vm8 }
 0xed4   : > { %v14866_v28 = vpop.permute.xlu0 %5946  ;;  %7967 = vmatpush.msk.msrb.mxu1 %vm412_vm5, %v5854_v53  ;;  %v8664_v49 = vpop.permute.xlu1 %8663 }
 0xed5   : > { %v5956_v34 = vsel %vm16673_vm4, %v14622_v32, %v14866_v28  ;;  %7995 = vmatpush.msk.msra.mxu0 %vm16674_vm14, %v5855_v63  ;;  %v8666_v40 = vunpack.i.h.bf16 %v8664_v49  ;;  %v8665_v25 = vunpack.i.l.bf16 %v8664_v49  ;;  %v16684_v63 = vld [vmem:[#allocation45_spill] sm:$0xff]  ;;  %v14943_v49 = vld [vmem:[%s15911_s1 + $0x240] sm:$0xff]  ;;  %vm16689_vm4 = vcmp.ge.s32.totalorder %v16337_v47, 1 }
 0xed6   : > { %7976 = vmatpush.msk.msrb.mxu3 %vm412_vm5, %v5956_v34  ;;  %v8645_v34 = vunpack.i.l.bf16 %v16685_v14 }
 0xed7   : > { %v6100_v21 = vsel %vm881_vm10, %v8665_v25, %v8666_v40  ;;  %v6101_v32 = vsel %vm881_vm10, %v8666_v40, %v8650_v9 }
 0xed8   : > { %6190 = vmatpush.msrb.mxu1 %v6100_v21  ;;  %7977 = vmatpush.msk.msrb.mxu3 %vm412_vm5, %v5954_v11  ;;  %v5806_v11 = vsel %vm583_vm11, %v16688_v42, %v16687_v17  ;;  %v16690_v21 = vld [vmem:[#allocation4_spill] sm:$0xff]  ;;  %v6141_v6 = vsel %vm16692_vm7, %v8656_v39, %v8645_v34 }
 0xed9   : > { %6277 = vmatpush.msra.mxu0 %v6101_v32  ;;  %v8620_v32 = vunpack.i.l.bf16 %v16690_v21  ;;  %v8621_v41 = vunpack.i.h.bf16 %v16690_v21 }
 0xeda   : > { %6191 = vmatpush.msrb.mxu1 %v6098_v51  ;;  %7978 = vmatpush.msk.msrb.mxu3 %vm412_vm5, %v5952_v24  ;;  %v14974_v51 = vld [vmem:[%s15911_s1 + $0x260] sm:$0xff] }
 0xedb   : > { %6278 = vmatpush.msra.mxu0 %v6099_v23  ;;  %v14902_v60 = vpop.permute.xlu2 %6022  ;;  %v6137_v24 = vsel %vm16694_vm13, %v8626_v0, %v8620_v32  ;;  %v14982_v23 = vld [vmem:[%s15911_s1 + $0x258] sm:$0xff]  ;;  %v16697_v0 = vld [vmem:[#allocation17_spill] sm:$0xff] }
 0xedc   : > { %v14908_v59 = vpop.permute.xlu0 %5936  ;;  %v6041_v30 = vpop.permute.xlu1 %6040  ;;  %6192 = vmatpush.msrb.mxu1 %v6096_v38  ;;  %7979 = vmatpush.msk.msrb.mxu3 %vm412_vm5, %v5950_v50 }
 0xedd   : > { %6279 = vmatpush.msra.mxu0 %v6097_v62 }
 0xede   : > { %6193 = vmatpush.msrb.mxu1 %v6094_v36  ;;  %6223 = vmatpush.msrb.mxu3 %v14417_v48  ;;  %v16707_v36 = vld [vmem:[#allocation29_spill] sm:$0xff] }
 0xedf   : > { %6280 = vmatpush.msra.mxu0 %v6095_v15 }
 0xee0   : > { %7968 = vmatpush.msk.msrb.mxu1 %vm414_vm2, %v5812_v56  ;;  %6224 = vmatpush.msrb.mxu3 %v16678_v43 }
 0xee2   : > { %7969 = vmatpush.msk.msrb.mxu1 %vm414_vm2, %v5810_v29  ;;  %6225 = vmatpush.msrb.mxu3 %v16680_v57 }
 0xee3   : > { %v6043_v2 = vpop.permute.xlu2 %6042 }
 0xee4   : > { %v6052_v53 = vsel %vm16683_vm8, %v6041_v30, %v6043_v2  ;;  %v6045_v9 = vpop.permute.xlu0 %6044  ;;  %v5805_v20 = vpop.permute.xlu1 %5804  ;;  %7970 = vmatpush.msk.msrb.mxu1 %vm414_vm2, %v5808_v37  ;;  %6226 = vmatpush.msrb.mxu3 %v16684_v63 }
 0xee5   : > { %v6053_v40 = vsel %vm16686_vm15, %v6043_v2, %v6045_v9  ;;  %v5813_v25 = vsel %vm583_vm11, %v14762_v26, %v5805_v20  ;;  %6227 = vmatmul.f32.vlgmr.msrb.gmra.mxu3 %v14931_v19  ;;  %7980 = vmatpush.msk.msra.mxu2 %vm412_vm5, %v6052_v53  ;;  %vm16695_vm15 = vmmov %vm16683_vm8  ;;  %v7946_v20 = vld [vmem:[%s15911_s1 + $0x250] sm:$0xff] }
 0xee6   : > { %7971 = vmatpush.msk.msrb.mxu1 %vm414_vm2, %v5806_v11  ;;  %7996 = vmatpush.msk.msra.mxu0 %vm16689_vm4, %v5813_v25  ;;  %vm16696_vm4 = vmmov %vm16692_vm7  ;;  %vm16699_vm7 = vcmp.lt.s32.totalorder %v16337_v47, 15 }
 0xee7   : > { %8008 = vmatpush.msk.msra.mxu3 %vm16674_vm14, %v6053_v40  ;;  %6198 = vmatmul.f32.vlgmr.msrb.gmra.mxu1 %v14943_v49  ;;  %v6135_v8 = vsel %vm16696_vm4, %v8611_v16, %v8621_v41  ;;  %vm16698_vm14 = vcmask 367616   ;;  %v16730_v40 = vld [vmem:[#allocation42_spill] sm:$0xff] }
 0xee8   : > { %6298 = vmatpush.msra.mxu1 %v6141_v6  ;;  %v6005_v38 = vsel %vm16698_vm14, %v14736_v7, %v16697_v0  ;;  %vm16702_vm13 = vmmov %vm16698_vm14  ;;  %v16704_v7 = vld [vmem:[#allocation26_spill] sm:$0xff] }
 0xee9   : > { %vm16708_vm14 = vmmov %vm16702_vm13 }
 0xeea   : > { %6299 = vmatpush.msra.mxu1 %v6139_v1  ;;  %v5999_v15 = vsel %vm16708_vm14, %v14642_v4, %v16707_v36 }
 0xeec   : > { %6300 = vmatpush.msra.mxu1 %v6137_v24  ;;  %v6035_v52 = vpop.permute.xlu0 %6034  ;;  %v6037_v39 = vpop.permute.xlu1 %6036 }
 0xeed   : > { %v6050_v45 = vsel %vm16683_vm8, %v6035_v52, %v6037_v39  ;;  %v6051_v27 = vsel %vm16695_vm15, %v6037_v39, %v14806_v5  ;;  %6230 = vmatmul.f32.gmra.mxu3 %v14974_v51  ;;  %v16701_v5 = vld [vmem:[#allocation41_spill] sm:$0xff]  ;;  %vm16703_vm8 = vmmov %vm16700_vm12 }
 0xeee   : > { %6301 = vmatpush.msra.mxu1 %v6135_v8  ;;  %7981 = vmatpush.msk.msra.mxu2 %vm412_vm5, %v6050_v45  ;;  %v6003_v16 = vsel %vm16702_vm13, %v14723_v54, %v16701_v5  ;;  %vm16705_vm15 = vmmov %vm16702_vm13  ;;  %v7950_v54 = vld [vmem:[%s15911_s1 + $0x270] sm:$0xff]  ;;  %vm16711_vm13 = vcmask 482304  }
 0xeef   : > { %8009 = vmatpush.msk.msra.mxu3 %vm16699_vm7, %v6051_v27  ;;  %6201 = vmatmul.f32.gmra.mxu1 %v14982_v23  ;;  %v6001_v50 = vsel %vm16705_vm15, %v14691_v22, %v16704_v7  ;;  %vm16706_vm4 = vmmov %vm16703_vm8  ;;  %vm16709_vm7 = vcmask 351232   ;;  %v5957_v22 = vsel %vm16711_vm13, %v14866_v28, %v14814_v58  ;;  %vm16713_vm15 = vcmp.lt.s32.totalorder %v16337_v47, 15  ;;  %v5787_v28 = vpop.permute.xlu2 %5786 }
 0xef0   : > { %8000 = vmatpush.msk.msra.mxu1 %vm16700_vm12, %v6005_v38  ;;  %vm16710_vm12 = vmmov %vm16706_vm4 }
 0xef1   : > { %vm16715_vm14 = vmmov %vm16713_vm15 }
 0xef2   : > { %8001 = vmatpush.msk.msra.mxu1 %vm16703_vm8, %v6003_v16  ;;  %vm16712_vm8 = vmmov %vm16706_vm4 }
 0xef4   : > { %8002 = vmatpush.msk.msra.mxu1 %vm16706_vm4, %v6001_v50  ;;  %v5799_v30 = vpop.permute.xlu0 %5798  ;;  %v6029_v62 = vpop.permute.xlu1 %6028  ;;  %vm16714_vm4 = vmmov %vm16711_vm13 }
 0xef5   : > { %v5811_v56 = vsel %vm583_vm11, %v14767_v18, %v5799_v30  ;;  %v6048_v46 = vsel %vm16709_vm7, %v6029_v62, %v14859_v44  ;;  %6233 = vmatmul.f32.gmra.mxu3 %v7951_v31  ;;  %v5955_v4 = vsel %vm16714_vm4, %v14740_v35, %v14821_v33  ;;  %v7954_v18 = vld [vmem:[%s15911_s1 + $0x290] sm:$0xff]  ;;  %vm16716_vm7 = vmmov %vm16714_vm4  ;;  %v7953_v35 = vld [vmem:[%s15911_s1 + $0x288] sm:$0xff] }
 0xef6   : > { %8003 = vmatpush.msk.msra.mxu1 %vm16710_vm12, %v5999_v15  ;;  %7982 = vmatpush.msk.msra.mxu2 %vm412_vm5, %v6048_v46  ;;  %v5953_v58 = vsel %vm16716_vm7, %v14689_v12, %v14908_v59  ;;  %vm16717_vm12 = vmmov %vm16715_vm14  ;;  %v16718_v33 = vld [vmem:[#allocation14_spill] sm:$0xff]  ;;  %v5807_v59 = vsel %vm583_vm11, %v16687_v17, %v5787_v28 }
 0xef7   : > { %7997 = vmatpush.msk.msra.mxu0 %vm16712_vm8, %v5811_v56  ;;  %6204 = vmatmul.f32.gmra.mxu1 %v7950_v54  ;;  %vm16719_vm13 = vmmov %vm16714_vm4  ;;  %vm16720_vm8 = vcmask 351232   ;;  %vm16722_vm4 = vcmp.ge.s32.totalorder %v16337_v47, 1  ;;  %v6158_v38 = vpop.permute.xlu2 %6157 }
 0xef8   : > { %8004 = vmatpush.msk.msra.mxu1 %vm16713_vm15, %v5957_v22  ;;  %v5951_v10 = vsel %vm16719_vm13, %v14624_v55, %v16718_v33  ;;  %vm16721_vm15 = vmmov %vm16717_vm12  ;;  %v16724_v55 = vld [vmem:[#allocation35_spill] sm:$0xff] }
 0xef9   : > { %vm16725_vm7 = vmmov %vm16722_vm4 }
 0xefa   : > { %8005 = vmatpush.msk.msra.mxu1 %vm16715_vm14, %v5955_v4  ;;  %vm16723_vm14 = vmmov %vm16717_vm12 }
 0xefb   : > { %vm16729_vm13 = vmmov %vm16720_vm8 }
 0xefc   : > { %8006 = vmatpush.msk.msra.mxu1 %vm16717_vm12, %v5953_v58  ;;  %v6033_v29 = vpop.permute.xlu0 %6032  ;;  %v5793_v2 = vpop.permute.xlu1 %5792  ;;  %vm16728_vm12 = vmmov %vm16720_vm8 }
 0xefd   : > { %v6049_v37 = vsel %vm16720_vm8, %v14859_v44, %v6033_v29  ;;  %v5809_v12 = vsel %vm583_vm11, %v16681_v3, %v5793_v2  ;;  %6236 = vmatmul.f32.gmra.mxu3 %v7954_v18  ;;  %v16726_v44 = vld [vmem:[#allocation37_spill] sm:$0xff]  ;;  %v16727_v3 = vld [vmem:[#allocation39_spill] sm:$0xff]  ;;  %vm16731_vm8 = vmmov %vm16723_vm14 }
 0xefe   : > { %8007 = vmatpush.msk.msra.mxu1 %vm16721_vm15, %v5951_v10  ;;  %7998 = vmatpush.msk.msra.mxu0 %vm16722_vm4, %v5809_v12  ;;  %vm16739_vm15 = vcmask 367616  }
 0xeff   : > { %8010 = vmatpush.msk.msra.mxu3 %vm16723_vm14, %v6049_v37  ;;  %6207 = vmatmul.f32.gmra.mxu1 %v7953_v35  ;;  %vm16741_vm4 = vmmov %vm16739_vm15 }
 0xf00   : > { %6310 = vmatpush.msra.mxu1 %v16724_v55  ;;  %7999 = vmatpush.msk.msra.mxu0 %vm16725_vm7, %v5807_v59  ;;  %vm16744_vm14 = vmmov %vm16725_vm7 }
 0xf01   : > { %6285 = vmatmul.f32.vlgmr.msra.gmra.mxu0 %v14943_v49  ;;  %v7952_v49 = vld [vmem:[%s15911_s1 + $0x280] sm:$0xff] }
 0xf02   : > { %6311 = vmatpush.msra.mxu1 %v16726_v44 }
 0xf04   : > { %6312 = vmatpush.msra.mxu1 %v16727_v3  ;;  %v6025_v53 = vpop.permute.xlu0 %6024  ;;  %v6027_v9 = vpop.permute.xlu1 %6026 }
 0xf05   : > { %v6046_v14 = vsel %vm16728_vm12, %v14902_v60, %v6025_v53  ;;  %v6047_v34 = vsel %vm16729_vm13, %v6025_v53, %v6027_v9  ;;  %v7949_v60 = vld [vmem:[%s15911_s1 + $0x268] sm:$0xff]  ;;  %vm16745_vm12 = vmmov %vm16725_vm7 }
 0xf06   : > { %6313 = vmatpush.msra.mxu1 %v16730_v40  ;;  %7983 = vmatpush.msk.msra.mxu2 %vm412_vm5, %v6046_v14  ;;  %v7060_v40 = vld [vmem:[%s15916_s6] sm:$0xff]  ;;  %vm16746_vm13 = vmmov %vm16725_vm7 }
 0xf07   : > { %8011 = vmatpush.msk.msra.mxu3 %vm16731_vm8, %v6047_v34  ;;  %7984 = vmatmul.msk.f32.vlgmr.msra.gmra.mxu2 %vm959_vm9, %v7946_v20 }
 0xf08   : > { %6314 = vmatmul.f32.vlgmr.msra.gmra.mxu1 %v14931_v19  ;;  %8012 = vmatmul.msk.f32.vlgmr.msra.gmra.mxu3 %vm959_vm9, %v7946_v20  ;;  %v7955_v19 = vld [vmem:[%s15911_s1 + $0x298] sm:$0xff] }
 0xf09   : > { %6288 = vmatmul.f32.gmra.mxu0 %v14982_v23 }
 0xf0c   : > { %v6168_v61 = vpop.permute.xlu0 %6167  ;;  %v6163_v46 = vpop.permute.xlu1 %6162 }
 0xf0f   : > { %7985 = vmatmul.msk.f32.gmra.mxu2 %vm959_vm9, %v7949_v60 }
 0xf10   : > { %6317 = vmatmul.f32.gmra.mxu1 %v14974_v51  ;;  %8013 = vmatmul.msk.f32.gmra.mxu3 %vm959_vm9, %v7949_v60 }
 0xf11   : > { %6291 = vmatmul.f32.gmra.mxu0 %v7950_v54 }
 0xf14   : > { %v6153_v51 = vpop.permute.xlu0 %6152 }
 0xf17   : > { %7986 = vmatmul.msk.f32.gmra.mxu2 %vm959_vm9, %v7952_v49 }
 0xf18   : > { %6320 = vmatmul.f32.gmra.mxu1 %v7951_v31  ;;  %8014 = vmatmul.msk.f32.gmra.mxu3 %vm959_vm9, %v7952_v49 }
 0xf19   : > { %6294 = vmatmul.f32.gmra.mxu0 %v7953_v35 }
 0xf1f   : > { %7987 = vmatmul.msk.f32.gmra.mxu2 %vm959_vm9, %v7955_v19 }
 0xf20   : > { %6323 = vmatmul.f32.gmra.mxu1 %v7954_v18  ;;  %8015 = vmatmul.msk.f32.gmra.mxu3 %vm959_vm9, %v7955_v19 }
 0xf64   : > { %v6199_v25 = vpop.f32.mrf.mxu1 }
 0xf65   : > { %v6200_v24 = vadd.f32 %v6199_v25, %v6153_v51 }
 0xf68   : > { %v6228_v17 = vpop.f32.mrf.mxu3 }
 0xf69   : > { %v6229_v52 = vadd.f32 %v6228_v17, %v6200_v24 }
 0xf6c   : > { %v6202_v42 = vpop.f32.mrf.mxu1 }
 0xf6d   : > { %v6203_v5 = vadd.f32 %v6202_v42, %v6158_v38 }
 0xf70   : > { %v6231_v11 = vpop.f32.mrf.mxu3 }
 0xf71   : > { %v6232_v31 = vadd.f32 %v6231_v11, %v6203_v5 }
 0xf74   : > { %v6205_v21 = vpop.f32.mrf.mxu1 }
 0xf75   : > { %v6206_v22 = vadd.f32 %v6205_v21, %v6163_v46 }
 0xf78   : > { %v6234_v32 = vpop.f32.mrf.mxu3 }
 0xf79   : > { %v6235_v58 = vadd.f32 %v6234_v32, %v6206_v22 }
 0xf7c   : > { %v6208_v26 = vpop.f32.mrf.mxu1 }
 0xf7d   : > { %v6209_v59 = vadd.f32 %v6208_v26, %v6168_v61 }
 0xf7e   : > { %v6286_v6 = vpop.f32.mrf.mxu0 }
 0xf7f   : > { %v6287_v50 = vadd.f32 %v6286_v6, %v6153_v51 }
 0xf80   : > { %v6237_v41 = vpop.f32.mrf.mxu3 }
 0xf81   : > { %v6238_v60 = vadd.f32 %v6237_v41, %v6209_v59 }
 0xf85   : > { %v6315_v1 = vpop.f32.mrf.mxu1 }
 0xf86   : > { %v6289_v39 = vpop.f32.mrf.mxu0  ;;  %v6316_v36 = vadd.f32 %v6315_v1, %v6287_v50 }
 0xf87   : > { %v6290_v29 = vadd.f32 %v6289_v39, %v6158_v38 }
 0xf8a   : > { %v6257_v23 = vpop.f32.mrf.mxu2 }
 0xf8b   : > { %v6258_v45 = vadd.f32 %v6257_v23, %v6229_v52  ;;  %v6344_v27 = vpop.f32.mrf.mxu3 }
 0xf8c   : > { %v6345_v4 = vadd.f32 %v6344_v27, %v6316_v36 }
 0xf8d   : > { %v6356_v8 = vmul.f32 0.2, %v6258_v45  ;;  %v6318_v0 = vpop.f32.mrf.mxu1 }
 0xf8e   : > { %v6292_v30 = vpop.f32.mrf.mxu0  ;;  %v6357_v2 = vmul.f32 0.2, %v6345_v4  ;;  %v6319_v10 = vadd.f32 %v6318_v0, %v6290_v29 }
 0xf8f   : > { %v15103_v16 = vmax.f32 %v6258_v45, %v6356_v8  ;;  %v6293_v25 = vadd.f32 %v6292_v30, %v6163_v46 }
 0xf90   : > { %v15111_v53 = vmax.f32 %v6345_v4, %v6357_v2 }
 0xf91   : > { %16732 = vst [vmem:[#allocation48_spill] sm:$0xff] %v15103_v16  ;;  %6398 = vrot.lane.b32.xlu1 %v15103_v16, %s8782_s23 }
 0xf92   : > { %v6260_v7 = vpop.f32.mrf.mxu2  ;;  %16733 = vst [vmem:[#allocation50_spill] sm:$0xff] %v15111_v53 }
 0xf93   : > { %v6261_v62 = vadd.f32 %v6260_v7, %v6232_v31  ;;  %v6347_v54 = vpop.f32.mrf.mxu3 }
 0xf94   : > { %v6348_v9 = vadd.f32 %v6347_v54, %v6319_v10 }
 0xf95   : > { %v6358_v15 = vmul.f32 0.2, %v6261_v62  ;;  %v6321_v56 = vpop.f32.mrf.mxu1 }
 0xf96   : > { %v6295_v37 = vpop.f32.mrf.mxu0  ;;  %v6359_v17 = vmul.f32 0.2, %v6348_v9  ;;  %v6322_v32 = vadd.f32 %v6321_v56, %v6293_v25 }
 0xf97   : > { %v15107_v18 = vmax.f32 %v6261_v62, %v6358_v15  ;;  %v6296_v34 = vadd.f32 %v6295_v37, %v6168_v61 }
 0xf98   : > { %v15119_v1 = vmax.f32 %v6348_v9, %v6359_v17 }
 0xf99   : > { %6402 = vrot.lane.b32.xlu2 %v15107_v18, %s8782_s23 }
 0xf9a   : > { %v6263_v28 = vpop.f32.mrf.mxu2  ;;  %16734 = vst [vmem:[#allocation11_spill] sm:$0xff] %v15119_v1 }
 0xf9b   : > { %v6264_v35 = vadd.f32 %v6263_v28, %v6235_v58  ;;  %v6350_v33 = vpop.f32.mrf.mxu3 }
 0xf9c   : > { %v6351_v61 = vadd.f32 %v6350_v33, %v6322_v32 }
 0xf9d   : > { %v6360_v12 = vmul.f32 0.2, %v6264_v35  ;;  %v6324_v14 = vpop.f32.mrf.mxu1 }
 0xf9e   : > { %v6325_v49 = vadd.f32 %v6324_v14, %v6296_v34  ;;  %v6361_v24 = vmul.f32 0.2, %v6351_v61 }
 0xf9f   : > { %v15113_v20 = vmax.f32 %v6264_v35, %v6360_v12 }
 0xfa0   : > { %v15131_v52 = vmax.f32 %v6351_v61, %v6361_v24 }
 0xfa1   : > { %6406 = vrot.lane.b32.xlu0 %v15113_v20, %s8782_s23  ;;  %6400 = vrot.lane.b32.xlu2 %v15111_v53, %s8782_s23 }
 0xfa2   : > { %v6266_v19 = vpop.f32.mrf.mxu2  ;;  %16736 = vst [vmem:[#allocation34_spill] sm:$0xff] %v15131_v52 }
 0xfa3   : > { %v6267_v42 = vadd.f32 %v6266_v19, %v6238_v60  ;;  %v6353_v11 = vpop.f32.mrf.mxu3 }
 0xfa4   : > { %v6354_v21 = vadd.f32 %v6353_v11, %v6325_v49 }
 0xfa5   : > { %v6362_v26 = vmul.f32 0.2, %v6267_v42 }
 0xfa6   : > { %v6363_v6 = vmul.f32 0.2, %v6354_v21 }
 0xfa7   : > { %v15121_v41 = vmax.f32 %v6267_v42, %v6362_v26 }
 0xfa8   : > { %v15123_v51 = vmax.f32 %v6354_v21, %v6363_v6 }
 0xfa9   : > { %6404 = vrot.lane.b32.xlu0 %v15119_v1, %s8782_s23  ;;  %6410 = vrot.lane.b32.xlu1 %v15121_v41, %s8782_s23 }
 0xfaa   : > { %16735 = vst [vmem:[#allocation13_spill] sm:$0xff] %v15123_v51  ;;  %6412 = vrot.lane.b32.xlu2 %v15123_v51, %s8782_s23 }
 0xfb1   : > { %6408 = vrot.lane.b32.xlu1 %v15131_v52, %s8782_s23 }
 0xff3   : > { %v6403_v39 = vpop.permute.xlu2 %6402 }
 0xff4   : > { %6433 = vst.msk [vmem:[#allocation2 + $0x20] sm:$0xff] %vm518_vm0, %v6403_v39 }
 0xffb   : > { %v6401_v23 = vpop.permute.xlu2 %6400  ;;  %v15136_v45 = vld [vmem:[#allocation2 + $0x20] sm:$0xff] }
 0xffc   : > { %6432 = vst.msk [vmem:[#allocation2 + $0x10] sm:$0xff] %vm501_vm1, %v6401_v23  ;;  %6568 = vrot.lane.b32.xlu1 %v15136_v45, %s8785_s26 }
0x1003   : > { %v6399_v27 = vpop.permute.xlu1 %6398  ;;  %v15187_v56 = vld [vmem:[#allocation2 + $0x10] sm:$0xff] }
0x1004   : > { %v6413_v8 = vpop.permute.xlu2 %6412  ;;  %v15142_v0 = vsel %vm501_vm1, %v6399_v27, %v6401_v23  ;;  %6430 = vst.msk [vmem:[#allocation2] sm:$0xff] %vm518_vm0, %v6399_v27  ;;  %6472 = vrot.lane.b32.xlu1 %v15136_v45, %s8783_s24 }
0x1005   : > { %6441 = vst.msk [vmem:[#allocation2 + $0x70] sm:$0xff] %vm501_vm1, %v6413_v8 }
0x100b   : > { %v15148_v38 = vld [vmem:[#allocation2] sm:$0xff] }
0x100c   : > { %6514 = vrot.lane.b32.xlu2 %v15148_v38, %s8784_s25  ;;  %6562 = vrot.lane.b32.xlu0 %v15148_v38, %s8785_s26  ;;  %v8667_v46 = vpack.i.bf16 %v15142_v0, %v15148_v38  ;;  %v6453_v49 = vld [vmem:[#allocation2 + $0x70] sm:$0xff] }
0x1013   : > { %v6407_v5 = vpop.permute.xlu0 %6406 }
0x1014   : > { %6436 = vst.msk [vmem:[#allocation2 + $0x40] sm:$0xff] %vm518_vm0, %v6407_v5  ;;  %6658 = vrot.lane.b32.xlu2 %v15148_v38, %s8787_s28  ;;  %6616 = vrot.lane.b32.xlu0 %v15136_v45, %s8786_s27 }
0x101b   : > { %v6405_v31 = vpop.permute.xlu0 %6404  ;;  %v6411_v7 = vpop.permute.xlu1 %6410  ;;  %v15159_v50 = vld [vmem:[#allocation2 + $0x40] sm:$0xff] }
0x101c   : > { %v15162_v30 = vsel %vm501_vm1, %v6403_v39, %v6405_v31  ;;  %6435 = vst.msk [vmem:[#allocation2 + $0x30] sm:$0xff] %vm501_vm1, %v6405_v31  ;;  %v15166_v62 = vsel %vm501_vm1, %v6411_v7, %v6413_v8  ;;  %6466 = vrot.lane.b32.xlu2 %v15148_v38, %s8783_s24  ;;  %6478 = vrot.lane.b32.xlu0 %v15159_v50, %s8783_s24 }
0x101d   : > { %6439 = vst.msk [vmem:[#allocation2 + $0x60] sm:$0xff] %vm518_vm0, %v6411_v7  ;;  %v8682_v22 = vpack.i.bf16 %v15162_v30, %v15136_v45  ;;  %vm16737_vm0 = vcmask 359424  }
0x1023   : > { %v6409_v54 = vpop.permute.xlu1 %6408  ;;  %v15215_v4 = vld [vmem:[#allocation2 + $0x30] sm:$0xff] }
0x1024   : > { %v15174_v36 = vsel %vm501_vm1, %v6407_v5, %v6409_v54  ;;  %6438 = vst.msk [vmem:[#allocation2 + $0x50] sm:$0xff] %vm501_vm1, %v6409_v54  ;;  %6610 = vrot.lane.b32.xlu2 %v15148_v38, %s8786_s27  ;;  %v15179_v15 = vld [vmem:[#allocation2 + $0x60] sm:$0xff]  ;;  %v8677_v35 = vpack.i.bf16 %v15187_v56, %v15215_v4  ;;  %vm16738_vm1 = vmmov %vm16737_vm0 }
0x1025   : > { %6628 = vrot.lane.b32.xlu1 %v15179_v15, %s8786_s27  ;;  %6580 = vrot.lane.b32.xlu0 %v15179_v15, %s8785_s26  ;;  %v8692_v33 = vpack.i.bf16 %v15174_v36, %v15159_v50  ;;  %v8707_v6 = vpack.i.bf16 %v15166_v62, %v15179_v15 }
0x102b   : > { %v15233_v58 = vld [vmem:[#allocation2 + $0x50] sm:$0xff] }
0x102c   : > { %6520 = vrot.lane.b32.xlu2 %v15136_v45, %s8784_s25  ;;  %v8702_v19 = vpack.i.bf16 %v15233_v58, %v6453_v49 }
0x102d   : > { %6566 = vrot.lane.b32.xlu1 %v15187_v56, %s8785_s26  ;;  %6516 = vrot.lane.b32.xlu0 %v15142_v0, %s8784_s25 }
0x1034   : > { %6664 = vrot.lane.b32.xlu2 %v15136_v45, %s8787_s28 }
0x1035   : > { %6564 = vrot.lane.b32.xlu1 %v15142_v0, %s8785_s26  ;;  %6660 = vrot.lane.b32.xlu0 %v15142_v0, %s8787_s28 }
0x103c   : > { %6574 = vrot.lane.b32.xlu2 %v15159_v50, %s8785_s26 }
0x103d   : > { %8668 = vrot.lane.b32.xlu1 %v8667_v46, %s8791_s12  ;;  %6468 = vrot.lane.b32.xlu0 %v15142_v0, %s8783_s24 }
0x1044   : > { %6526 = vrot.lane.b32.xlu2 %v15159_v50, %s8784_s25 }
0x1045   : > { %8673 = vrot.lane.b32.xlu1 %v8667_v46, %s8790_s30  ;;  %6612 = vrot.lane.b32.xlu0 %v15142_v0, %s8786_s27 }
0x104c   : > { %6670 = vrot.lane.b32.xlu2 %v15159_v50, %s8787_s28 }
0x104d   : > { %8683 = vrot.lane.b32.xlu1 %v8682_v22, %s8791_s12  ;;  %6572 = vrot.lane.b32.xlu0 %v15215_v4, %s8785_s26 }
0x1054   : > { %6622 = vrot.lane.b32.xlu2 %v15159_v50, %s8786_s27 }
0x1055   : > { %8688 = vrot.lane.b32.xlu1 %v8682_v22, %s8790_s30  ;;  %6524 = vrot.lane.b32.xlu0 %v15215_v4, %s8784_s25 }
0x105c   : > { %6532 = vrot.lane.b32.xlu2 %v15179_v15, %s8784_s25 }
0x105d   : > { %6618 = vrot.lane.b32.xlu1 %v15162_v30, %s8786_s27  ;;  %6668 = vrot.lane.b32.xlu0 %v15215_v4, %s8787_s28 }
0x1064   : > { %6676 = vrot.lane.b32.xlu2 %v15179_v15, %s8787_s28 }
0x1065   : > { %6522 = vrot.lane.b32.xlu0 %v15162_v30, %s8784_s25  ;;  %6578 = vrot.lane.b32.xlu1 %v15233_v58, %s8785_s26 }
0x1066   : > { %v6515_v28 = vpop.permute.xlu2 %6514 }
0x106c   : > { %6484 = vrot.lane.b32.xlu2 %v15179_v15, %s8783_s24 }
0x106d   : > { %6666 = vrot.lane.b32.xlu0 %v15162_v30, %s8787_s28  ;;  %6530 = vrot.lane.b32.xlu1 %v15233_v58, %s8784_s25 }
0x106e   : > { %v15245_v29 = vpop.permute.xlu2 %6658  ;;  %v15267_v12 = vpop.permute.xlu1 %6568 }
0x1074   : > { %6518 = vrot.lane.b32.xlu2 %v15187_v56, %s8784_s25 }
0x1075   : > { %6674 = vrot.lane.b32.xlu1 %v15233_v58, %s8787_s28  ;;  %6576 = vrot.lane.b32.xlu0 %v15174_v36, %s8785_s26 }
0x1076   : > { %v15253_v2 = vpop.permute.xlu2 %6466  ;;  %v15286_v60 = vpop.permute.xlu1 %6472 }
0x107c   : > { %8678 = vrot.lane.b32.xlu2 %v8677_v35, %s8791_s12 }
0x107d   : > { %8693 = vrot.lane.b32.xlu1 %v8692_v33, %s8791_s12  ;;  %6528 = vrot.lane.b32.xlu0 %v15174_v36, %s8784_s25 }
0x107e   : > { %v15263_v10 = vpop.permute.xlu2 %6610  ;;  %v6563_v37 = vpop.permute.xlu0 %6562 }
0x1084   : > { %6570 = vrot.lane.b32.xlu2 %v15162_v30, %s8785_s26 }
0x1085   : > { %8698 = vrot.lane.b32.xlu1 %v8692_v33, %s8790_s30  ;;  %6672 = vrot.lane.b32.xlu0 %v15174_v36, %s8787_s28 }
0x1086   : > { %v15272_v59 = vpop.permute.xlu2 %6520  ;;  %v15274_v9 = vpop.permute.xlu0 %6616 }
0x108c   : > { %6474 = vrot.lane.b32.xlu2 %v15162_v30, %s8783_s24 }
0x108d   : > { %6480 = vrot.lane.b32.xlu1 %v15174_v36, %s8783_s24  ;;  %6624 = vrot.lane.b32.xlu0 %v15174_v36, %s8786_s27 }
0x108e   : > { %v15282_v14 = vpop.permute.xlu2 %6664  ;;  %v15284_v34 = vpop.permute.xlu0 %6478 }
0x1094   : > { %8703 = vrot.lane.b32.xlu2 %v8702_v19, %s8791_s12 }
0x1095   : > { %6584 = vrot.lane.b32.xlu1 %v6453_v49, %s8785_s26  ;;  %6536 = vrot.lane.b32.xlu0 %v6453_v49, %s8784_s25 }
0x1096   : > { %v15292_v25 = vpop.permute.xlu2 %6574 }
0x1097   : > { %v15294_v17 = vpop.permute.xlu0 %6580  ;;  %v15296_v42 = vpop.permute.xlu1 %6628 }
0x109c   : > { %6680 = vrot.lane.b32.xlu2 %v6453_v49, %s8787_s28 }
0x109d   : > { %6582 = vrot.lane.b32.xlu1 %v15166_v62, %s8785_s26  ;;  %6534 = vrot.lane.b32.xlu0 %v15166_v62, %s8784_s25 }
0x109e   : > { %v15303_v11 = vpop.permute.xlu2 %6526 }
0x109f   : > { %v15305_v21 = vpop.permute.xlu0 %6516  ;;  %v6567_v32 = vpop.permute.xlu1 %6566 }
0x10a0   : > { %v15309_v26 = vsel %vm636_vm6, %v6515_v28, %v15305_v21 }
0x10a4   : > { %8718 = vrot.lane.b32.xlu2 %v8702_v19, %s8790_s30 }
0x10a5   : > { %8708 = vrot.lane.b32.xlu1 %v8707_v6, %s8791_s12  ;;  %6678 = vrot.lane.b32.xlu0 %v15166_v62, %s8787_s28 }
0x10a6   : > { %v15317_v61 = vpop.permute.xlu2 %6670 }
0x10a7   : > { %v15319_v24 = vpop.permute.xlu0 %6660  ;;  %v6565_v39 = vpop.permute.xlu1 %6564 }
0x10a8   : > { %v15322_v23 = vsel %vm685_vm3, %v6563_v37, %v6565_v39  ;;  %v15325_v27 = vsel %vm685_vm3, %v6565_v39, %v6567_v32 }
0x10ac   : > { %6630 = vrot.lane.b32.xlu2 %v15166_v62, %s8786_s27 }
0x10ad   : > { %8713 = vrot.lane.b32.xlu1 %v8707_v6, %s8790_s30  ;;  %6632 = vrot.lane.b32.xlu0 %v6453_v49, %s8786_s27 }
0x10ae   : > { %v15331_v8 = vpop.permute.xlu2 %6622 }
0x10af   : > { %v15333_v5 = vpop.permute.xlu0 %6468  ;;  %v15335_v31 = vpop.permute.xlu1 %8668 }
0x10b0   : > { %v16094_v48 = vunpack.i.h.bf16 %v15335_v31 }
0x10b4   : > { %8723 = vrot.lane.b32.xlu2 %v8677_v35, %s8790_s30  ;;  %s16811_s30 = sshll.u32 %s16813_s18, 6 }
0x10b5   : > { %6662 = vrot.lane.b32.xlu1 %v15187_v56, %s8787_s28  ;;  %6486 = vrot.lane.b32.xlu0 %v15166_v62, %s8783_s24  ;;  %s386_s15 = scalar_lea.vmem %s15921_s11, %s16811_s30 }
0x10b6   : > { %v15342_v7 = vpop.permute.xlu2 %6532 }
0x10b7   : > { %v15344_v54 = vpop.permute.xlu0 %6612  ;;  %v15346_v46 = vpop.permute.xlu1 %8673 }
0x10bc   : > { %6614 = vrot.lane.b32.xlu2 %v15187_v56, %s8786_s27 }
0x10bd   : > { %6626 = vrot.lane.b32.xlu1 %v15233_v58, %s8786_s27  ;;  %6620 = vrot.lane.b32.xlu0 %v15215_v4, %s8786_s27 }
0x10be   : > { %v15354_v22 = vpop.permute.xlu2 %6676 }
0x10bf   : > { %v15356_v28 = vpop.permute.xlu0 %6572  ;;  %v15358_v35 = vpop.permute.xlu1 %8683 }
0x10c0   : > { %v16095_v55 = vunpack.i.h.bf16 %v15358_v35 }
0x10c4   : > { %6470 = vrot.lane.b32.xlu2 %v15187_v56, %s8783_s24 }
0x10c5   : > { %6488 = vrot.lane.b32.xlu1 %v6453_v49, %s8783_s24  ;;  %6482 = vrot.lane.b32.xlu0 %v15233_v58, %s8783_s24 }
0x10c6   : > { %v15365_v33 = vpop.permute.xlu2 %6484 }
0x10c7   : > { %v6525_v37 = vpop.permute.xlu0 %6524  ;;  %v15367_v19 = vpop.permute.xlu1 %8688 }
0x10cc   : > { %6720 = vrot.lane.b32.xlu2 %v15174_v36, %s8788_s29 }
0x10cd   : > { %6476 = vrot.lane.b32.xlu1 %v15215_v4, %s8783_s24  ;;  %6722 = vrot.lane.b32.xlu0 %v15233_v58, %s8788_s29 }
0x10ce   : > { %v15375_v32 = vpop.permute.xlu2 %6518 }
0x10cf   : > { %v6669_v6 = vpop.permute.xlu0 %6668  ;;  %v15377_v39 = vpop.permute.xlu1 %6618 }
0x10d4   : > { %6716 = vrot.lane.b32.xlu2 %v15215_v4, %s8788_s29 }
0x10d5   : > { %6728 = vrot.lane.b32.xlu1 %v6453_v49, %s8788_s29  ;;  %6708 = vrot.lane.b32.xlu0 %v15142_v0, %s8788_s29 }
0x10d6   : > { %v8679_v36 = vpop.permute.xlu2 %8678 }
0x10d7   : > { %v8681_v43 = vunpack.i.h.bf16 %v8679_v36  ;;  %v8680_v58 = vunpack.i.l.bf16 %v8679_v36  ;;  %v15386_v44 = vpop.permute.xlu0 %6522  ;;  %v6579_v57 = vpop.permute.xlu1 %6578 }
0x10d8   : > { %v15390_v3 = vsel %vm636_vm6, %v15386_v44, %v6525_v37 }
0x10d9   : > { %v15395_v4 = vsel %vm16737_vm0, %v16095_v55, %v8680_v58  ;;  %v15400_v0 = vsel %vm16738_vm1, %v16094_v48, %v8681_v43  ;;  %v8030_v48 = vld [vmem:[%s15912_s2 + $0xf0] sm:$0xff]  ;;  %v8028_v55 = vld [vmem:[%s15912_s2 + $0xe0] sm:$0xff] }
0x10dc   : > { %6724 = vrot.lane.b32.xlu2 %v15179_v15, %s8788_s29 }
0x10dd   : > { %6714 = vrot.lane.b32.xlu1 %v15162_v30, %s8788_s29  ;;  %6726 = vrot.lane.b32.xlu0 %v15166_v62, %s8788_s29  ;;  %v8029_v62 = vld [vmem:[%s15912_s2 + $0xe8] sm:$0xff] }
0x10de   : > { %v6571_v36 = vpop.permute.xlu2 %6570 }
0x10df   : > { %v15408_v49 = vpop.permute.xlu0 %6666  ;;  %v15410_v37 = vpop.permute.xlu1 %6530 }
0x10e0   : > { %v15414_v58 = vsel %vm16739_vm15, %v15408_v49, %v6669_v6  ;;  %v8031_v6 = vld [vmem:[%s15912_s2 + $0xf8] sm:$0xff] }
0x10e1   : > { %16740 = vst [vmem:[#allocation27_spill] sm:$0xff] %v15414_v58 }
0x10e4   : > { %6706 = vrot.lane.b32.xlu2 %v15148_v38, %s8788_s29 }
0x10e5   : > { %6710 = vrot.lane.b32.xlu1 %v15187_v56, %s8788_s29  ;;  %6718 = vrot.lane.b32.xlu0 %v15159_v50, %s8788_s29  ;;  %v7061_v50 = vld [vmem:[%s15916_s6 + $0x8] sm:$0xff] }
0x10e6   : > { %v15425_v15 = vpop.permute.xlu2 %6474 }
0x10e7   : > { %v6577_v43 = vpop.permute.xlu0 %6576  ;;  %v6675_v30 = vpop.permute.xlu1 %6674 }
0x10ec   : > { %6841 = vperm.xlu2 %8204, %v8029_v62  }
0x10ed   : > { %6712 = vrot.lane.b32.xlu1 %v15136_v45, %s8788_s29  ;;  %6851 = vperm.xlu0 %8205, %v8031_v6  }
0x10ee   : > { %v15443_v62 = vpop.permute.xlu2 %8703 }
0x10ef   : > { %v6529_v38 = vpop.permute.xlu0 %6528  ;;  %v15432_v56 = vpop.permute.xlu1 %8693 }
0x10f4   : > { %7071 = vperm.xlu2 %8204, %v7061_v50   ;;  %v7062_v50 = vld [vmem:[%s15916_s6 + $0x10] sm:$0xff] }
0x10f5   : > { %6846 = vperm.xlu1 %8206, %v8030_v48   ;;  %6836 = vperm.xlu0 %8205, %v8028_v55  }
0x10f6   : > { %v15459_v48 = vpop.permute.xlu2 %6680 }
0x10f7   : > { %v15445_v45 = vpop.permute.xlu0 %6672  ;;  %v15447_v6 = vpop.permute.xlu1 %8698  ;;  %16743 = vst [vmem:[#allocation44_spill] sm:$0xff] %v15459_v48  ;;  %v6591_v48 = vsel %vm685_vm3, %v6577_v43, %v6579_v57  ;;  %v8696_v57 = vunpack.i.h.bf16 %v15432_v56 }
0x10f8   : > { %v15451_v63 = vsel %vm16741_vm4, %v15445_v45, %v6675_v30  ;;  %v7063_v30 = vld [vmem:[%s15916_s6 + $0x18] sm:$0xff]  ;;  %vm16752_vm4 = vmmov %vm16738_vm1 }
0x10f9   : > { %16742 = vst [vmem:[#allocation15_spill] sm:$0xff] %v15451_v63 }
0x10fd   : > { %7066 = vperm.xlu1 %8206, %v7060_v40   ;;  %7076 = vperm.xlu0 %8205, %v7062_v50  }
0x10fe   : > { %v15468_v51 = vpop.permute.xlu2 %8718 }
0x10ff   : > { %v15461_v55 = vpop.permute.xlu0 %6624  ;;  %v15463_v53 = vpop.permute.xlu1 %6480 }
0x1105   : > { %7081 = vperm.xlu1 %8206, %v7063_v30   ;;  %v6590_v30 = vsel %vm685_vm3, %v15292_v25, %v6577_v43  ;;  %v8695_v25 = vunpack.i.l.bf16 %v15432_v56  ;;  %v16765_v56 = vld [vmem:[#allocation48_spill] sm:$0xff] }
0x1106   : > { %v15480_v16 = vpop.permute.xlu2 %6630 }
0x1107   : > { %v6537_v1 = vpop.permute.xlu0 %6536  ;;  %v6585_v52 = vpop.permute.xlu1 %6584 }
0x110f   : > { %v6535_v58 = vpop.permute.xlu0 %6534  ;;  %v6583_v63 = vpop.permute.xlu1 %6582 }
0x1110   : > { %v6592_v40 = vsel %vm685_vm3, %v15294_v17, %v6583_v63  ;;  %v6593_v50 = vsel %vm685_vm3, %v6583_v63, %v6585_v52  ;;  %v6588_v63 = vsel %vm685_vm3, %v15267_v12, %v6571_v36  ;;  %v6589_v52 = vsel %vm685_vm3, %v6571_v36, %v15356_v28  ;;  %vm16747_vm3 = vmmov %vm16731_vm8 }
0x1111   : > { %8032 = vmatpush.msk.msrb.mxu2 %vm414_vm2, %v6592_v40  ;;  %8060 = vmatpush.msk.msrb.mxu3 %vm16744_vm14, %v6593_v50  ;;  %v6544_v28 = vsel %vm636_vm6, %v15342_v7, %v6535_v58  ;;  %v6545_v36 = vsel %vm636_vm6, %v6535_v58, %v6537_v1  ;;  %vm16748_vm8 = vmmov %vm16737_vm0  ;;  %v8670_v1 = vunpack.i.l.bf16 %v15335_v31  ;;  %v6543_v58 = vsel %vm636_vm6, %v6529_v38, %v15410_v37  ;;  %v8724_v50 = vpop.permute.xlu2 %8723 }
0x1112   : > { %v6540_v40 = vsel %vm636_vm6, %v15272_v59, %v15386_v44  ;;  %vm16749_vm0 = vmmov %vm16747_vm3  ;;  %v16751_v37 = vunpack.i.h.bf16 %v15358_v35  ;;  %v6539_v59 = vsel %vm636_vm6, %v15305_v21, %v15375_v32 }
0x1113   : > { %8033 = vmatpush.msk.msrb.mxu2 %vm414_vm2, %v6590_v30  ;;  %8061 = vmatpush.msk.msrb.mxu3 %vm16725_vm7, %v6591_v48  ;;  %vm16750_vm15 = vmmov %vm16749_vm0  ;;  %vm16756_vm7 = vcmask 367616  }
0x1114   : > { %vm16754_vm14 = vmmov %vm16738_vm1 }
0x1115   : > { %8034 = vmatpush.msk.msrb.mxu2 %vm414_vm2, %v6588_v63  ;;  %8062 = vmatpush.msk.msrb.mxu3 %vm16745_vm12, %v6589_v52  ;;  %v8700_v52 = vunpack.i.l.bf16 %v15447_v6  ;;  %vm16757_vm12 = vmmov %vm16756_vm7 }
0x1117   : > { %v15496_v17 = vpop.permute.xlu0 %6678  ;;  %8035 = vmatpush.msk.msrb.mxu2 %vm414_vm2, %v15322_v23  ;;  %8063 = vmatpush.msk.msrb.mxu3 %vm16746_vm13, %v15325_v27  ;;  %v15504_v12 = vpop.permute.xlu1 %8708  ;;  %v8685_v23 = vunpack.i.l.bf16 %v15358_v35  ;;  %v6542_v27 = vsel %vm636_vm6, %v15303_v11, %v6529_v38  ;;  %v6822_v11 = vsel %vm16738_vm1, %v8695_v25, %v8696_v57  ;;  %v8701_v38 = vunpack.i.h.bf16 %v15447_v6  ;;  %vm16755_vm6 = vmmov %vm16749_vm0 }
0x1118   : > { %v8711_v43 = vunpack.i.h.bf16 %v15504_v12  ;;  %v8710_v48 = vunpack.i.l.bf16 %v15504_v12  ;;  %v8720_v25 = vunpack.i.l.bf16 %v15468_v51  ;;  %vm16758_vm13 = vmmov %vm16756_vm7  ;;  %v8019_v12 = vld [vmem:[%s15911_s1 + $0x2b8] sm:$0xff] }
0x1119   : > { %8036 = vmatpush.msk.msrb.mxu2 %vm412_vm5, %v6544_v28  ;;  %8064 = vmatpush.msk.msrb.mxu3 %vm16747_vm3, %v6545_v36  ;;  %v6820_v44 = vsel %vm16752_vm4, %v8685_v23, %v16751_v37  ;;  %v8691_v28 = vunpack.i.h.bf16 %v15367_v19  ;;  %v8721_v36 = vunpack.i.h.bf16 %v15468_v51  ;;  %v8725_v23 = vunpack.i.l.bf16 %v8724_v50  ;;  %vm16759_vm3 = vmmov %vm16756_vm7 }
0x111a   : > { %v6824_v7 = vsel %vm16748_vm8, %v8710_v48, %v8711_v43  ;;  %v8675_v51 = vunpack.i.l.bf16 %v15346_v46  ;;  %vm16760_vm8 = vcmask 482304  }
0x111b   : > { %8037 = vmatpush.msk.msrb.mxu2 %vm412_vm5, %v6542_v27  ;;  %6895 = vmatpush.msrb.mxu0 %v6824_v7  ;;  %v8676_v27 = vunpack.i.h.bf16 %v15346_v46  ;;  %v8726_v7 = vunpack.i.h.bf16 %v8724_v50  ;;  %v6781_v50 = vsel %vm881_vm10, %v8691_v28, %v8725_v23  ;;  %v6640_v37 = vsel %vm16760_vm8, %v15296_v42, %v15480_v16  ;;  %v16788_v23 = vld [vmem:[#allocation34_spill] sm:$0xff] }
0x111c   : > { %8065 = vmatpush.msk.msrb.mxu3 %vm16749_vm0, %v6543_v58  ;;  %v6684_v58 = vsel %vm16758_vm13, %v15282_v14, %v15408_v49  ;;  %vm16761_vm0 = vmmov %vm16760_vm8 }
0x111d   : > { %8038 = vmatpush.msk.msrb.mxu2 %vm412_vm5, %v6540_v40  ;;  %6896 = vmatpush.msrb.mxu0 %v6822_v11  ;;  %v15580_v40 = vpop.permute.xlu2 %6614  ;;  %v6682_v11 = vsel %vm16759_vm3, %v15245_v29, %v15319_v24  ;;  %v6778_v14 = vsel %vm881_vm10, %v8675_v51, %v8676_v27  ;;  %v6779_v49 = vsel %vm881_vm10, %v8676_v27, %v8726_v7  ;;  %vm16763_vm1 = vmmov %vm16761_vm0  ;;  %v16789_v51 = vld [vmem:[#allocation11_spill] sm:$0xff] }
0x111e   : > { %8066 = vmatpush.msk.msrb.mxu3 %vm16750_vm15, %v15390_v3  ;;  %v16753_v3 = vunpack.i.h.bf16 %v15335_v31  ;;  %v6688_v31 = vsel %vm16756_vm7, %v15354_v22, %v15496_v17  ;;  %v6782_v22 = vsel %vm881_vm10, %v8700_v52, %v8701_v38  ;;  %v6638_v29 = vsel %vm16761_vm0, %v15331_v8, %v15461_v55  ;;  %vm16764_vm15 = vmmov %vm16752_vm4 }
0x111f   : > { %v15546_v30 = vpop.permute.xlu0 %6632  ;;  %8039 = vmatpush.msk.msrb.mxu2 %vm412_vm5, %v15309_v26  ;;  %v8714_v63 = vpop.permute.xlu1 %8713  ;;  %6897 = vmatpush.msrb.mxu0 %v6820_v44  ;;  %v8690_v26 = vunpack.i.l.bf16 %v15367_v19  ;;  %v6686_v19 = vsel %vm16757_vm12, %v15317_v61, %v15445_v45 }
0x1120   : > { %v6818_v35 = vsel %vm16754_vm14, %v8670_v1, %v16753_v3  ;;  %8067 = vmatpush.msk.msrb.mxu3 %vm16755_vm6, %v6539_v59  ;;  %v8716_v21 = vunpack.i.h.bf16 %v8714_v63  ;;  %v8715_v32 = vunpack.i.l.bf16 %v8714_v63  ;;  %v6783_v1 = vsel %vm881_vm10, %v8701_v38, %v8721_v36  ;;  %v8020_v36 = vld [vmem:[%s15911_s1 + $0x2c0] sm:$0xff] }
0x1121   : > { %6898 = vmatpush.msrb.mxu0 %v6818_v35  ;;  %v6780_v46 = vsel %vm881_vm10, %v8690_v26, %v8691_v28  ;;  %v6494_v59 = vsel %vm583_vm11, %v15284_v34, %v15463_v53  ;;  %v8016_v34 = vld [vmem:[%s15911_s1 + $0x2a0] sm:$0xff]  ;;  %v8706_v63 = vunpack.i.h.bf16 %v15443_v62  ;;  %v8705_v3 = vunpack.i.l.bf16 %v15443_v62 }
0x1122   : > { %v6784_v6 = vsel %vm881_vm10, %v8715_v32, %v8716_v21  ;;  %v6785_v48 = vsel %vm881_vm10, %v8716_v21, %v8720_v25  ;;  %vm16762_vm10 = vmmov %vm16761_vm0  ;;  %vm16768_vm14 = vcmp.ge.s32.totalorder %v16337_v47, 1 }
0x1123   : > { %6874 = vmatpush.msrb.mxu2 %v6784_v6  ;;  %8044 = vmatpush.msk.msrb.mxu0 %vm414_vm2, %v6688_v31  ;;  %v6636_v42 = vsel %vm16762_vm10, %v15274_v9, %v15377_v39  ;;  %v6490_v9 = vsel %vm583_vm11, %v15253_v2, %v15333_v5  ;;  %v6825_v2 = vsel %vm16764_vm15, %v8711_v43, %v8705_v3  ;;  %vm16769_vm6 = vmmov %vm16768_vm14  ;;  %v8025_v6 = vld [vmem:[%s15911_s1 + $0x2e8] sm:$0xff] }
0x1124   : > { %6961 = vmatpush.msrb.mxu3 %v6785_v48  ;;  %vm16770_vm7 = vmmov %vm16769_vm6  ;;  %v8023_v48 = vld [vmem:[%s15911_s1 + $0x2d8] sm:$0xff] }
0x1125   : > { %6875 = vmatpush.msrb.mxu2 %v6782_v22  ;;  %8045 = vmatpush.msk.msrb.mxu0 %vm414_vm2, %v6686_v19  ;;  %v6471_v35 = vpop.permute.xlu2 %6470  ;;  %vm16772_vm12 = vmmov %vm16769_vm6 }
0x1126   : > { %6962 = vmatpush.msrb.mxu3 %v6783_v1  ;;  %vm16774_vm13 = vmmov %vm16769_vm6  ;;  %v8026_v1 = vld [vmem:[%s15911_s1 + $0x2f0] sm:$0xff] }
0x1127   : > { %v6487_v61 = vpop.permute.xlu0 %6486  ;;  %v15583_v45 = vpop.permute.xlu1 %6662  ;;  %6876 = vmatpush.msrb.mxu2 %v6780_v46  ;;  %8046 = vmatpush.msk.msrb.mxu0 %vm414_vm2, %v6684_v58  ;;  %vm16776_vm8 = vmmov %vm16769_vm6  ;;  %v16792_v58 = vld [vmem:[#allocation50_spill] sm:$0xff] }
0x1128   : > { %6963 = vmatpush.msrb.mxu3 %v6781_v50  ;;  %v6496_v44 = vsel %vm583_vm11, %v15365_v33, %v6487_v61  ;;  %v6492_v33 = vsel %vm583_vm11, %v15286_v60, %v15425_v15  ;;  %v6634_v60 = vsel %vm16763_vm1, %v15263_v10, %v15344_v54  ;;  %v6823_v10 = vsel %vm16752_vm4, %v8696_v57, %v8706_v63  ;;  %vm16777_vm0 = vmmov %vm16769_vm6 }
0x1129   : > { %6877 = vmatpush.msrb.mxu2 %v6778_v14  ;;  %8047 = vmatpush.msk.msrb.mxu0 %vm414_vm2, %v6682_v11  ;;  %vm16778_vm10 = vmmov %vm16763_vm1  ;;  %vm16779_vm1 = vcmp.lt.s32.totalorder %v16337_v47, 15  ;;  %v8018_v14 = vld [vmem:[%s15911_s1 + $0x2b0] sm:$0xff]  ;;  %v8024_v47 = vld [vmem:[%s15911_s1 + $0x2e0] sm:$0xff] }
0x112a   : > { %6964 = vmatpush.msrb.mxu3 %v6779_v49  ;;  %v6641_v26 = vsel %vm16778_vm10, %v15480_v16, %v15546_v30  ;;  %vm16780_vm15 = vmmov %vm16778_vm10 }
0x112b   : > { %8040 = vmatpush.msk.msrb.mxu2 %vm414_vm2, %v6496_v44  ;;  %8048 = vmatpush.msk.msrb.mxu0 %vm412_vm5, %v6640_v37  ;;  %vm16781_vm4 = vmmov %vm16777_vm0  ;;  %v8021_v44 = vld [vmem:[%s15911_s1 + $0x2c8] sm:$0xff] }
0x112d   : > { %8041 = vmatpush.msk.msrb.mxu2 %vm414_vm2, %v6494_v59  ;;  %8049 = vmatpush.msk.msrb.mxu0 %vm412_vm5, %v6638_v29  ;;  %v6721_v57 = vpop.permute.xlu2 %6720 }
0x112f   : > { %v6621_v38 = vpop.permute.xlu0 %6620  ;;  %v6627_v8 = vpop.permute.xlu1 %6626  ;;  %8042 = vmatpush.msk.msrb.mxu2 %vm414_vm2, %v6492_v33  ;;  %8050 = vmatpush.msk.msrb.mxu0 %vm412_vm5, %v6636_v42  ;;  %v8027_v42 = vld [vmem:[%s15911_s1 + $0x2f8] sm:$0xff] }
0x1130   : > { %v6639_v31 = vsel %vm16780_vm15, %v15461_v55, %v6627_v8 }
0x1131   : > { %8043 = vmatpush.msk.msrb.mxu2 %vm414_vm2, %v6490_v9  ;;  %8051 = vmatpush.msk.msrb.mxu0 %vm412_vm5, %v6634_v60  ;;  %vm16767_vm2 = vmmov %vm16759_vm3 }
0x1132   : > { %6882 = vmatmul.f32.vlgmr.msrb.gmra.mxu2 %v8016_v34  ;;  %vm16775_vm3 = vmmov %vm16767_vm2 }
0x1133   : > { %6982 = vmatpush.msra.mxu2 %v6825_v2  ;;  %6907 = vmatpush.msrb.mxu0 %v15121_v41  ;;  %v8017_v41 = vld [vmem:[%s15911_s1 + $0x2a8] sm:$0xff]  ;;  %v6683_v32 = vsel %vm16775_vm3, %v15319_v24, %v15583_v45  ;;  %v6491_v24 = vsel %vm583_vm11, %v15333_v5, %v6471_v35  ;;  %vm16793_vm3 = vmmov %vm16779_vm1 }
0x1135   : > { %6983 = vmatpush.msra.mxu2 %v6823_v10  ;;  %6908 = vmatpush.msrb.mxu0 %v15113_v20  ;;  %v16766_v20 = vld [vmem:[#allocation44_spill] sm:$0xff] }
0x1137   : > { %6984 = vmatpush.msra.mxu2 %v15395_v4  ;;  %v6483_v62 = vpop.permute.xlu0 %6482  ;;  %v6489_v52 = vpop.permute.xlu1 %6488  ;;  %6909 = vmatpush.msrb.mxu0 %v15107_v18  ;;  %v6689_v4 = vsel %vm16767_vm2, %v15496_v17, %v16766_v20  ;;  %v16773_v17 = vld [vmem:[#allocation27_spill] sm:$0xff]  ;;  %vm16782_vm2 = vmmov %vm16779_vm1 }
0x1138   : > { %v6497_v43 = vsel %vm583_vm11, %v6487_v61, %v6489_v52  ;;  %v6495_v18 = vsel %vm583_vm11, %v15463_v53, %v6483_v62  ;;  %v8022_v53 = vld [vmem:[%s15911_s1 + $0x2d0] sm:$0xff] }
0x1139   : > { %6985 = vmatpush.msra.mxu2 %v15400_v0  ;;  %6910 = vmatpush.msrb.mxu0 %v16765_v56  ;;  %v16771_v0 = vld [vmem:[#allocation15_spill] sm:$0xff] }
0x113a   : > { %8068 = vmatpush.msk.msrb.mxu3 %vm16768_vm14, %v6497_v43  ;;  %6885 = vmatmul.f32.gmra.mxu2 %v8019_v12  ;;  %vm16783_vm14 = vmmov %vm16778_vm10 }
0x113b   : > { %6911 = vmatmul.f32.vlgmr.msrb.gmra.mxu0 %v8017_v41  ;;  %8072 = vmatpush.msk.msra.mxu2 %vm16769_vm6, %v6689_v4  ;;  %v6637_v16 = vsel %vm16783_vm14, %v15377_v39, %v6621_v38  ;;  %vm16785_vm6 = vmmov %vm16778_vm10  ;;  %v16787_v39 = vld [vmem:[#allocation13_spill] sm:$0xff] }
0x113c   : > { %8069 = vmatpush.msk.msrb.mxu3 %vm16770_vm7, %v6495_v18  ;;  %v6635_v55 = vsel %vm16785_vm6, %v15344_v54, %v15580_v40  ;;  %vm16786_vm7 = vmmov %vm16779_vm1 }
0x113d   : > { %8073 = vmatpush.msk.msra.mxu2 %vm16772_vm12, %v16771_v0  ;;  %vm16790_vm12 = vcmask 351232  }
0x113f   : > { %8074 = vmatpush.msk.msra.mxu2 %vm16774_vm13, %v16773_v17  ;;  %v6723_v25 = vpop.permute.xlu0 %6722  ;;  %v6477_v21 = vpop.permute.xlu1 %6476  ;;  %vm16791_vm13 = vmmov %vm16790_vm12 }
0x1140   : > { %v6493_v28 = vsel %vm583_vm11, %v15425_v15, %v6477_v21  ;;  %v6717_v15 = vpop.permute.xlu2 %6716  ;;  %vm16784_vm11 = vmmov %vm16779_vm1 }
0x1141   : > { %8075 = vmatpush.msk.msra.mxu2 %vm16776_vm8, %v6683_v32  ;;  %8070 = vmatpush.msk.msrb.mxu3 %vm16777_vm0, %v6493_v28  ;;  %vm16794_vm8 = vmmov %vm16790_vm12 }
0x1142   : > { %6888 = vmatmul.f32.gmra.mxu2 %v8022_v53  ;;  %v6735_v40 = vsel %vm16794_vm8, %v6721_v57, %v6723_v25  ;;  %vm16795_vm0 = vmmov %vm16779_vm1 }
0x1143   : > { %6914 = vmatmul.f32.gmra.mxu0 %v8020_v36  ;;  %8076 = vmatpush.msk.msra.mxu2 %vm16779_vm1, %v6641_v26  ;;  %vm16796_vm10 = vmmov %vm16794_vm8 }
0x1144   : > { %8071 = vmatpush.msk.msrb.mxu3 %vm16781_vm4, %v6491_v24  ;;  %vm16797_vm1 = vmmov %vm16795_vm0 }
0x1145   : > { %6969 = vmatmul.f32.vlgmr.msrb.gmra.mxu3 %v8016_v34  ;;  %8077 = vmatpush.msk.msra.mxu2 %vm16782_vm2, %v6639_v31  ;;  %vm16798_vm15 = vmmov %vm16794_vm8 }
0x1146   : > { %vm16799_vm4 = vmmov %vm16794_vm8 }
0x1147   : > { %8078 = vmatpush.msk.msra.mxu2 %vm16784_vm11, %v6637_v16  ;;  %v6709_v5 = vpop.permute.xlu0 %6708  ;;  %v6729_v30 = vpop.permute.xlu1 %6728  ;;  %vm16800_vm2 = vmmov %vm16795_vm0 }
0x1148   : > { %v6725_v27 = vpop.permute.xlu2 %6724  ;;  %vm16801_vm14 = vmmov %vm16799_vm4 }
0x1149   : > { %8079 = vmatpush.msk.msra.mxu2 %vm16786_vm7, %v6635_v55  ;;  %vm16802_vm11 = vmmov %vm16799_vm4 }
0x114a   : > { %6891 = vmatmul.f32.gmra.mxu2 %v8025_v6 }
0x114b   : > { %6917 = vmatmul.f32.gmra.mxu0 %v8023_v48  ;;  %6994 = vmatpush.msra.mxu2 %v16787_v39 }
0x114d   : > { %6972 = vmatmul.f32.gmra.mxu3 %v8019_v12  ;;  %6995 = vmatpush.msra.mxu2 %v16788_v23 }
0x114f   : > { %6996 = vmatpush.msra.mxu2 %v16789_v51  ;;  %v6727_v19 = vpop.permute.xlu0 %6726  ;;  %v6715_v22 = vpop.permute.xlu1 %6714 }
0x1150   : > { %v6736_v54 = vsel %vm16790_vm12, %v6725_v27, %v6727_v19  ;;  %v6737_v7 = vsel %vm16791_vm13, %v6727_v19, %v6729_v30  ;;  %v6733_v46 = vsel %vm16796_vm10, %v6715_v22, %v6717_v15  ;;  %v6707_v29 = vpop.permute.xlu2 %6706 }
0x1151   : > { %6997 = vmatpush.msra.mxu2 %v16792_v58  ;;  %8052 = vmatpush.msk.msrb.mxu1 %vm412_vm5, %v6736_v54  ;;  %v6730_v59 = vsel %vm16802_vm11, %v6707_v29, %v6709_v5 }
0x1152   : > { %8080 = vmatpush.msk.msra.mxu0 %vm16793_vm3, %v6737_v7  ;;  %6998 = vmatmul.f32.vlgmr.msra.gmra.mxu2 %v8017_v41 }
0x1153   : > { %6920 = vmatmul.f32.gmra.mxu0 %v8026_v1 }
0x1154   : > { %8081 = vmatpush.msk.msra.mxu0 %vm16795_vm0, %v6735_v40 }
0x1155   : > { %6975 = vmatmul.f32.gmra.mxu3 %v8022_v53 }
0x1156   : > { %8082 = vmatpush.msk.msra.mxu0 %vm16797_vm1, %v6733_v46 }
0x1157   : > { %v6719_v61 = vpop.permute.xlu0 %6718  ;;  %v6711_v45 = vpop.permute.xlu1 %6710 }
0x1158   : > { %v6734_v50 = vsel %vm16798_vm15, %v6719_v61, %v6721_v57  ;;  %v6731_v11 = vsel %vm16799_vm4, %v6709_v5, %v6711_v45  ;;  %v6842_v53 = vpop.permute.xlu2 %6841 }
0x1159   : > { %8053 = vmatpush.msk.msrb.mxu1 %vm412_vm5, %v6734_v50  ;;  %8083 = vmatpush.msk.msra.mxu0 %vm16800_vm2, %v6731_v11 }
0x115a   : > { %7001 = vmatmul.f32.gmra.mxu2 %v8020_v36 }
0x115b   : > { %8084 = vmatmul.msk.f32.vlgmr.msra.gmra.mxu0 %vm959_vm9, %v8018_v14 }
0x115d   : > { %6978 = vmatmul.f32.gmra.mxu3 %v8025_v6 }
0x115f   : > { %v6713_v49 = vpop.permute.xlu1 %6712  ;;  %v6852_v13 = vpop.permute.xlu0 %6851 }
0x1160   : > { %v6732_v37 = vsel %vm16801_vm14, %v6713_v49, %v6715_v22 }
0x1161   : > { %8054 = vmatpush.msk.msrb.mxu1 %vm412_vm5, %v6732_v37 }
0x1162   : > { %7004 = vmatmul.f32.gmra.mxu2 %v8023_v48 }
0x1163   : > { %8085 = vmatmul.msk.f32.gmra.mxu0 %vm959_vm9, %v8021_v44  ;;  %8055 = vmatpush.msk.msrb.mxu1 %vm412_vm5, %v6730_v59 }
0x1164   : > { %8056 = vmatmul.msk.f32.vlgmr.msrb.gmra.mxu1 %vm959_vm9, %v8018_v14 }
0x1167   : > { %v6837_v33 = vpop.permute.xlu0 %6836  ;;  %v6847_v18 = vpop.permute.xlu1 %6846 }
0x116a   : > { %7007 = vmatmul.f32.gmra.mxu2 %v8026_v1 }
0x116b   : > { %8086 = vmatmul.msk.f32.gmra.mxu0 %vm959_vm9, %v8024_v47 }
0x116c   : > { %8057 = vmatmul.msk.f32.gmra.mxu1 %vm959_vm9, %v8021_v44  ;;  %v7056_v44 = vld [vmem:[%s15915_s5] sm:$0xff] }
0x1173   : > { %8087 = vmatmul.msk.f32.gmra.mxu0 %vm959_vm9, %v8027_v42 }
0x1174   : > { %8058 = vmatmul.msk.f32.gmra.mxu1 %vm959_vm9, %v8024_v47 }
0x117c   : > { %8059 = vmatmul.msk.f32.gmra.mxu1 %vm959_vm9, %v8027_v42 }
0x11b5   : > { %v6883_v38 = vpop.f32.mrf.mxu2 }
0x11b6   : > { %v6884_v8 = vadd.f32 %v6883_v38, %v6837_v33 }
0x11b8   : > { %v6912_v34 = vpop.f32.mrf.mxu0 }
0x11b9   : > { %v6913_v9 = vadd.f32 %v6912_v34, %v6884_v8  ;;  %v7057_v34 = vld [vmem:[%s15915_s5 + $0x8] sm:$0xff] }
0x11bd   : > { %v6886_v60 = vpop.f32.mrf.mxu2 }
0x11be   : > { %v6887_v19 = vadd.f32 %v6886_v60, %v6842_v53 }
0x11c0   : > { %v6915_v63 = vpop.f32.mrf.mxu0 }
0x11c1   : > { %v6916_v46 = vadd.f32 %v6915_v63, %v6887_v19  ;;  %v7059_v63 = vld [vmem:[%s15915_s5 + $0x18] sm:$0xff] }
0x11c5   : > { %v6889_v3 = vpop.f32.mrf.mxu2 }
0x11c6   : > { %v6890_v39 = vadd.f32 %v6889_v3, %v6847_v18  ;;  %v7067_v3 = vpop.permute.xlu1 %7066 }
0x11c8   : > { %v6918_v35 = vpop.f32.mrf.mxu0  ;;  %v6970_v2 = vpop.f32.mrf.mxu3 }
0x11c9   : > { %v6971_v26 = vadd.f32 %v6970_v2, %v6837_v33  ;;  %v6919_v1 = vadd.f32 %v6918_v35, %v6890_v39 }
0x11cd   : > { %v6892_v10 = vpop.f32.mrf.mxu2 }
0x11ce   : > { %v6893_v22 = vadd.f32 %v6892_v10, %v6852_v13 }
0x11d0   : > { %v6921_v62 = vpop.f32.mrf.mxu0  ;;  %v6973_v52 = vpop.f32.mrf.mxu3 }
0x11d1   : > { %v6974_v32 = vadd.f32 %v6973_v52, %v6842_v53  ;;  %v6922_v61 = vadd.f32 %v6921_v62, %v6893_v22  ;;  %v16803_v62 = vld [vmem:[#allocation42_spill] sm:$0xff] }
0x11d5   : > { %v6999_v12 = vpop.f32.mrf.mxu2 }
0x11d6   : > { %v7000_v16 = vadd.f32 %v6999_v12, %v6971_v26 }
0x11d8   : > { %v7028_v43 = vpop.f32.mrf.mxu0  ;;  %v6976_v56 = vpop.f32.mrf.mxu3 }
0x11d9   : > { %v6977_v17 = vadd.f32 %v6976_v56, %v6847_v18  ;;  %v7029_v23 = vadd.f32 %v7028_v43, %v7000_v16  ;;  %v16804_v43 = vld [vmem:[#allocation45_spill] sm:$0xff]  ;;  %v7072_v56 = vpop.permute.xlu2 %7071 }
0x11db   : > { %v7041_v58 = vmul.f32 0.2, %v7029_v23 }
0x11dd   : > { %v7002_v41 = vpop.f32.mrf.mxu2  ;;  %v7049_v37 = vmax.f32 %v7029_v23, %v7041_v58  ;;  %v7082_v23 = vpop.permute.xlu1 %7081 }
0x11de   : > { %v7003_v24 = vadd.f32 %v7002_v41, %v6974_v32  ;;  %v16806_v32 = vld [vmem:[#allocation46_spill] sm:$0xff] }
0x11e0   : > { %v7031_v20 = vpop.f32.mrf.mxu0  ;;  %v6979_v25 = vpop.f32.mrf.mxu3 }
0x11e1   : > { %v6941_v4 = vpop.f32.mrf.mxu1  ;;  %v6980_v36 = vadd.f32 %v6979_v25, %v6852_v13  ;;  %v7032_v6 = vadd.f32 %v7031_v20, %v7003_v24  ;;  %v16805_v25 = vld [vmem:[#allocation39_spill] sm:$0xff] }
0x11e2   : > { %v6942_v29 = vadd.f32 %v6941_v4, %v6913_v9  ;;  %v7058_v9 = vld [vmem:[%s15915_s5 + $0x10] sm:$0xff] }
0x11e3   : > { %v7043_v54 = vmul.f32 0.2, %v7032_v6 }
0x11e4   : > { %v7040_v33 = vmul.f32 0.2, %v6942_v29 }
0x11e5   : > { %v7005_v57 = vpop.f32.mrf.mxu2  ;;  %v7051_v50 = vmax.f32 %v7032_v6, %v7043_v54 }
0x11e6   : > { %v7006_v28 = vadd.f32 %v7005_v57, %v6977_v17  ;;  %v7048_v60 = vmax.f32 %v6942_v29, %v7040_v33 }
0x11e8   : > { %v7034_v0 = vpop.f32.mrf.mxu0 }
0x11e9   : > { %v6944_v21 = vpop.f32.mrf.mxu1  ;;  %v7035_v5 = vadd.f32 %v7034_v0, %v7006_v28 }
0x11ea   : > { %v6945_v14 = vadd.f32 %v6944_v21, %v6916_v46  ;;  %v16810_v46 = vld [vmem:[#allocation40_spill] sm:$0xff] }
0x11eb   : > { %v7045_v27 = vmul.f32 0.2, %v7035_v5 }
0x11ec   : > { %v7042_v42 = vmul.f32 0.2, %v6945_v14 }
0x11ed   : > { %v7008_v15 = vpop.f32.mrf.mxu2  ;;  %v7053_v40 = vmax.f32 %v7035_v5, %v7045_v27 }
0x11ee   : > { %v7009_v31 = vadd.f32 %v7008_v15, %v6980_v36  ;;  %v7050_v8 = vmax.f32 %v6945_v14, %v7042_v42  ;;  %v7077_v36 = vpop.permute.xlu0 %7076  ;;  %v8812_v14 = vmov 256.0  }
0x11ef   : > { %8727 = vrcp.f32 %v8812_v14 }
0x11f0   : > { %v7037_v30 = vpop.f32.mrf.mxu0 }
0x11f1   : > { %v7038_v55 = vadd.f32 %v7037_v30, %v7009_v31  ;;  %v6947_v48 = vpop.f32.mrf.mxu1  ;;  %v16807_v30 = vld [vmem:[#allocation37_spill] sm:$0xff] }
0x11f2   : > { %v6948_v45 = vadd.f32 %v6947_v48, %v6919_v1  ;;  %v16808_v48 = vld [vmem:[#allocation43_spill] sm:$0xff] }
0x11f3   : > { %v7047_v51 = vmul.f32 0.2, %v7038_v55  ;;  %v16809_v1 = vld [vmem:[#allocation35_spill] sm:$0xff] }
0x11f4   : > { %v7044_v59 = vmul.f32 0.2, %v6948_v45 }
0x11f5   : > { %v7055_v7 = vmax.f32 %v7038_v55, %v7047_v51 }
0x11f6   : > { %v7052_v38 = vmax.f32 %v6948_v45, %v7044_v59 }
0x11f7   : > { %7137 = vmatpush.msra.mxu3 %v7055_v7 }
0x11f9   : > { %7138 = vmatpush.msra.mxu3 %v7053_v40  ;;  %v6950_v11 = vpop.f32.mrf.mxu1 }
0x11fa   : > { %v6951_v49 = vadd.f32 %v6950_v11, %v6922_v61 }
0x11fb   : > { %7139 = vmatpush.msra.mxu3 %v7051_v50 }
0x11fc   : > { %v7046_v47 = vmul.f32 0.2, %v6951_v49 }
0x11fd   : > { %7140 = vmatpush.msra.mxu3 %v7049_v37 }
0x11fe   : > { %v7054_v13 = vmax.f32 %v6951_v49, %v7046_v47  ;;  %8092 = vmatmul.msk.f32.vlgmr.msra.gmra.mxu3 %vm959_vm9, %v7056_v44  ;;  %v8728_v49 = vpop.eup %8727 }
0x11ff   : > { %v7183_v37 = vmul.f32 256.0, %v8728_v49  ;;  %vm7187_vm5 = vweird.f32 %v8728_v49 }
0x1200   : > { %7108 = vmatpush.msra.mxu1 %v7054_v13 }
0x1202   : > { %7109 = vmatpush.msra.mxu1 %v7052_v38  ;;  %v7194_v38 = vld [vmem:[%s15917_s7 + $0x8] sm:$0xff] }
0x1204   : > { %7110 = vmatpush.msra.mxu1 %v7050_v8 }
0x1206   : > { %8093 = vmatmul.msk.f32.gmra.mxu3 %vm959_vm9, %v7057_v34  ;;  %7111 = vmatpush.msra.mxu1 %v7048_v60 }
0x1207   : > { %8088 = vmatmul.msk.f32.vlgmr.msra.gmra.mxu1 %vm959_vm9, %v7056_v44  ;;  %v7184_v44 = vsub.f32 1.0, %v7183_v37  ;;  %v7222_v37 = vld [vmem:[%s15919_s9 + $0x18] sm:$0xff] }
0x1209   : > { %v7185_v29 = vmul.f32 %v8728_v49, %v7184_v44 }
0x120b   : > { %v7186_v59 = vadd.f32 %v8728_v49, %v7185_v29 }
0x120d   : > { %v7188_v42 = vsel %vm7187_vm5, %v8728_v49, %v7186_v59  ;;  %v7242_v59 = vld [vmem:[%s15920_s10 + $0x10] sm:$0xff] }
0x120e   : > { %8094 = vmatmul.msk.f32.gmra.mxu3 %vm959_vm9, %v7058_v9 }
0x120f   : > { %8089 = vmatmul.msk.f32.gmra.mxu1 %vm959_vm9, %v7057_v34 }
0x1216   : > { %8095 = vmatmul.msk.f32.gmra.mxu3 %vm959_vm9, %v7059_v63 }
0x1217   : > { %8090 = vmatmul.msk.f32.gmra.mxu1 %vm959_vm9, %v7058_v9  ;;  %v7193_v9 = vld [vmem:[%s15917_s7] sm:$0xff] }
0x121f   : > { %8091 = vmatmul.msk.f32.gmra.mxu1 %vm959_vm9, %v7059_v63  ;;  %v7195_v63 = vld [vmem:[%s15917_s7 + $0x10] sm:$0xff]  ;;  %vm7201_vm9 = vcmask 15360  }
0x1281   : > { %v7142_v35 = vpop.f32.mrf.mxu3 }
0x1282   : > { %v7143_v2 = vadd.f32 %v7142_v35, %v7067_v3 }
0x1284   : > { %v7113_v10 = vpop.f32.mrf.mxu1  ;;  %v15790_v52 = vadd.f32 %v7143_v2, %v16803_v62  ;;  %v7196_v62 = vld [vmem:[%s15917_s7 + $0x18] sm:$0xff] }
0x1285   : > { %v7114_v12 = vadd.f32 %v7113_v10, %v7067_v3 }
0x1286   : > { %v7163_v20 = vmax.f32 %v15790_v52, 0.0 }
0x1287   : > { %v15793_v41 = vadd.f32 %v7114_v12, %v16804_v43 }
0x1289   : > { %v7162_v4 = vmax.f32 %v15793_v41, 0.0  ;;  %v7145_v57 = vpop.f32.mrf.mxu3 }
0x128a   : > { %v7146_v18 = vadd.f32 %v7145_v57, %v7072_v56 }
0x128b   : > { %v7170_v0 = vadd.f32 %v7163_v20, %v7162_v4 }
0x128c   : > { %v7116_v17 = vpop.f32.mrf.mxu1  ;;  %v15802_v21 = vadd.f32 %v7146_v18, %v16805_v25 }
0x128d   : > { %v7117_v53 = vadd.f32 %v7116_v17, %v7072_v56  ;;  %7171 = vadd.xlane.f32.xlu2 %v7170_v0 }
0x128e   : > { %v7165_v26 = vmax.f32 %v15802_v21, 0.0 }
0x128f   : > { %v15805_v28 = vadd.f32 %v7117_v53, %v16806_v32 }
0x1291   : > { %v7164_v24 = vmax.f32 %v15805_v28, 0.0  ;;  %v7148_v15 = vpop.f32.mrf.mxu3 }
0x1292   : > { %v7149_v31 = vadd.f32 %v7148_v15, %v7077_v36 }
0x1293   : > { %v7173_v16 = vadd.f32 %v7165_v26, %v7164_v24 }
0x1294   : > { %v7119_v5 = vpop.f32.mrf.mxu1  ;;  %v15814_v6 = vadd.f32 %v7149_v31, %v16807_v30 }
0x1295   : > { %v7120_v55 = vadd.f32 %v7119_v5, %v7077_v36  ;;  %7174 = vadd.xlane.f32.xlu0 %v7173_v16  ;;  %v7215_v5 = vld [vmem:[%s15918_s8] sm:$0x1] }
0x1296   : > { %v7167_v27 = vmax.f32 %v15814_v6, 0.0 }
0x1297   : > { %v15817_v39 = vadd.f32 %v7120_v55, %v16808_v48 }
0x1299   : > { %v7166_v51 = vmax.f32 %v15817_v39, 0.0  ;;  %v7151_v19 = vpop.f32.mrf.mxu3 }
0x129a   : > { %v7152_v22 = vadd.f32 %v7151_v19, %v7082_v23  ;;  %v7221_v19 = vld [vmem:[%s15919_s9 + $0x10] sm:$0xff] }
0x129b   : > { %v7176_v54 = vadd.f32 %v7167_v27, %v7166_v51 }
0x129c   : > { %v7122_v7 = vpop.f32.mrf.mxu1  ;;  %v15826_v58 = vadd.f32 %v7152_v22, %v16809_v1  ;;  %v7220_v22 = vld [vmem:[%s15919_s9 + $0x8] sm:$0xff] }
0x129d   : > { %v7123_v40 = vadd.f32 %v7122_v7, %v7082_v23  ;;  %7177 = vadd.xlane.f32.xlu1 %v7176_v54  ;;  %v7219_v54 = vld [vmem:[%s15919_s9] sm:$0xff] }
0x129e   : > { %v7169_v45 = vmax.f32 %v15826_v58, 0.0 }
0x129f   : > { %v15829_v61 = vadd.f32 %v7123_v40, %v16810_v46 }
0x12a1   : > { %v7168_v50 = vmax.f32 %v15829_v61, 0.0 }
0x12a3   : > { %v7179_v11 = vadd.f32 %v7169_v45, %v7168_v50 }
0x12a5   : > { %7180 = vadd.xlane.f32.xlu2 %v7179_v11 }
0x1300   : > { %v7172_v13 = vpop.xlane.xlu2 %7171 }
0x1301   : > { %v7189_v34 = vmul.f32 %v7188_v42, %v7172_v13 }
0x1303   : > { %v7197_v35 = vmul.f32 %v7193_v9, %v7189_v34 }
0x1305   : > { %v7202_v43 = vsel %vm7201_vm9, %v7197_v35, 0.0  ;;  %v7243_v35 = vld [vmem:[%s15920_s10 + $0x18] sm:$0xff] }
0x1308   : > { %v7175_v47 = vpop.xlane.xlu0 %7174 }
0x1309   : > { %v7190_v33 = vmul.f32 %v7188_v42, %v7175_v47  ;;  %v7241_v47 = vld [vmem:[%s15920_s10 + $0x8] sm:$0xff] }
0x130b   : > { %v7198_v3 = vmul.f32 %v7194_v38, %v7190_v33 }
0x130d   : > { %v7203_v10 = vsel %vm7201_vm9, %v7198_v3, 0.0 }
0x130e   : > { %v7204_v18 = vadd.f32 %v7203_v10, %v7202_v43 }
0x1310   : > { %v7178_v8 = vpop.xlane.xlu1 %7177 }
0x1311   : > { %v7191_v60 = vmul.f32 %v7188_v42, %v7178_v8 }
0x1313   : > { %v7199_v2 = vmul.f32 %v7195_v63, %v7191_v60 }
0x1315   : > { %v7205_v56 = vsel %vm7201_vm9, %v7199_v2, 0.0 }
0x1316   : > { %v7206_v17 = vadd.f32 %v7205_v56, %v7204_v18 }
0x1318   : > { %v7181_v12 = vpop.xlane.xlu2 %7180 }
0x1319   : > { %v7192_v57 = vmul.f32 %v7188_v42, %v7181_v12  ;;  %v7240_v42 = vld [vmem:[%s15920_s10] sm:$0xff] }
0x131b   : > { %v7200_v0 = vmul.f32 %v7196_v62, %v7192_v57 }
0x131d   : > { %v7207_v25 = vsel %vm7201_vm9, %v7200_v0, 0.0 }
0x131e   : > { %v7208_v53 = vadd.f32 %v7207_v25, %v7206_v17 }
0x1320   : > { %v7209_v32 = vrot.slane %v7208_v53, 4 }
0x1322   : > { %v7210_v36 = vadd.f32 %v7209_v32, %v7208_v53 }
0x1324   : > { %v7211_v15 = vrot.slane %v7210_v36, 2 }
0x1326   : > { %v7212_v31 = vadd.f32 %v7211_v15, %v7210_v36 }
0x1328   : > { %v7213_v16 = vrot.slane %v7212_v31, 1 }
0x132a   : > { %v7214_v30 = vadd.f32 %v7213_v16, %v7212_v31 }
0x132c   : > { %v7216_v55 = vadd.f32 %v7215_v5, %v7214_v30 }
0x132e   : > { %v7217_v48 = vmul.f32 0.2, %v7216_v55 }
0x1330   : > { %v7218_v23 = vmax.f32 %v7216_v55, %v7217_v48 }
0x1332   : > { %v7223_v7 = vperm.slane %v7218_v23, 0 }
0x1334   : > { %v7226_v1 = vmul.f32 %v7223_v7, %v7221_v19  ;;  %v7225_v40 = vmul.f32 %v7223_v7, %v7220_v22  ;;  %v7224_v46 = vmul.f32 %v7223_v7, %v7219_v54  ;;  %v7227_v44 = vmul.f32 %v7223_v7, %v7222_v37 }
0x1336   : > { %v7234_v11 = vsel %vm7201_vm9, %v7226_v1, 0.0  ;;  %v7231_v14 = vsel %vm7201_vm9, %v7225_v40, 0.0  ;;  %v7228_v49 = vsel %vm7201_vm9, %v7224_v46, 0.0  ;;  %v7237_v29 = vsel %vm7201_vm9, %v7227_v44, 0.0 }
0x1337   : > { %7235 = vadd.xlane.f32.xlu1 %v7234_v11  ;;  %7232 = vadd.xlane.f32.xlu0 %v7231_v14 }
0x1338   : > { %7229 = vadd.xlane.f32.xlu2 %v7228_v49 }
0x1340   : > { %7238 = vadd.xlane.f32.xlu2 %v7237_v29 }
0x13aa   : > { %v7236_v13 = vpop.xlane.xlu1 %7235  ;;  %v7233_v33 = vpop.xlane.xlu0 %7232 }
0x13ab   : > { %v7246_v38 = vadd.f32 %v7242_v59, %v7236_v13  ;;  %v7245_v8 = vadd.f32 %v7241_v47, %v7233_v33  ;;  %v7230_v34 = vpop.xlane.xlu2 %7229 }
0x13ac   : > { %v7244_v60 = vadd.f32 %v7240_v42, %v7230_v34 }
0x13ad   : > { %v8098_v9 = vmul.f32 -1.442695, %v7246_v38  ;;  %v8097_v63 = vmul.f32 -1.442695, %v7245_v8 }
0x13ae   : > { %v8096_v3 = vmul.f32 -1.442695, %v7244_v60 }
0x13af   : > { %8729 = vpow2.f32 %v8098_v9 }
0x13b0   : > { %8731 = vpow2.f32 %v8097_v63 }
0x13b1   : > { %8733 = vpow2.f32 %v8096_v3 }
0x13b3   : > { %v7239_v2 = vpop.xlane.xlu2 %7238 }
0x13b4   : > { %v7247_v10 = vadd.f32 %v7243_v35, %v7239_v2 }
0x13b5   : > { %v8730_v62 = vpop.eup %8729 }
0x13b6   : > { %v8732_v12 = vpop.eup %8731  ;;  %v7262_v43 = vadd.f32 1.0, %v8730_v62  ;;  %v8099_v18 = vmul.f32 -1.442695, %v7247_v10 }
0x13b7   : > { %v8734_v56 = vpop.eup %8733  ;;  %v7261_v57 = vadd.f32 1.0, %v8732_v12 }
0x13b8   : > { %8735 = vrcp.f32 %v7262_v43  ;;  %v7260_v0 = vadd.f32 1.0, %v8734_v56  ;;  %vm7299_vm6 = vweird.f32 %v7262_v43  ;;  %v7303_v16 = vand.u32 2147483647, %v7262_v43 }
0x13b9   : > { %8737 = vrcp.f32 %v7261_v57  ;;  %v7288_v48 = vand.u32 2147483647, %v7261_v57  ;;  %v7305_v23 = vand.u32 2147483648, %v7262_v43  ;;  %v7290_v19 = vand.u32 2147483648, %v7261_v57 }
0x13ba   : > { %8739 = vrcp.f32 %v7260_v0  ;;  %v7275_v1 = vand.u32 2147483648, %v7260_v0  ;;  %v7273_v11 = vand.u32 2147483647, %v7260_v0  ;;  %vm7284_vm3 = vweird.f32 %v7261_v57 }
0x13bb   : > { %8741 = vpow2.f32 %v8099_v18  ;;  %vm7304_vm0 = vcmp.eq.f32.partialorder %v7303_v16, 8.507059e+37  ;;  %v7306_v49 = vor.u32 1.1754944e-38, %v7305_v23  ;;  %v7291_v37 = vor.u32 1.1754944e-38, %v7290_v19 }
0x13bc   : > { %vm7269_vm1 = vweird.f32 %v7260_v0  ;;  %vm7289_vm15 = vcmp.eq.f32.partialorder %v7288_v48, 8.507059e+37  ;;  %v7276_v42 = vor.u32 1.1754944e-38, %v7275_v1  ;;  %vm7274_vm2 = vcmp.eq.f32.partialorder %v7273_v11, 8.507059e+37 }
0x13be   : > { %v8736_v17 = vpop.eup %8735 }
0x13bf   : > { %v8738_v25 = vpop.eup %8737  ;;  %v7295_v53 = vmul.f32 %v8736_v17, %v7262_v43  ;;  %vm7300_vm7 = vweird.f32 %v8736_v17 }
0x13c0   : > { %v8740_v32 = vpop.eup %8739  ;;  %v7280_v36 = vmul.f32 %v8738_v25, %v7261_v57  ;;  %vm7285_vm12 = vweird.f32 %v8738_v25  ;;  %vm7301_vm8 = vmor %vm7299_vm6, %vm7300_vm7 }
0x13c1   : > { %v8742_v15 = vpop.eup %8741  ;;  %v7296_v31 = vsub.f32 1.0, %v7295_v53  ;;  %v7265_v5 = vmul.f32 %v8740_v32, %v7260_v0  ;;  %vm7270_vm13 = vweird.f32 %v8740_v32  ;;  %vm7286_vm10 = vmor %vm7284_vm3, %vm7285_vm12 }
0x13c2   : > { %v7263_v30 = vadd.f32 1.0, %v8742_v15  ;;  %v7281_v55 = vsub.f32 1.0, %v7280_v36  ;;  %vm7271_vm4 = vmor %vm7269_vm1, %vm7270_vm13 }
0x13c3   : > { %v7297_v22 = vmul.f32 %v8736_v17, %v7296_v31  ;;  %v7266_v54 = vsub.f32 1.0, %v7265_v5 }
0x13c4   : > { %8743 = vrcp.f32 %v7263_v30  ;;  %v7282_v7 = vmul.f32 %v8738_v25, %v7281_v55  ;;  %v7320_v9 = vand.u32 2147483648, %v7263_v30  ;;  %v7318_v3 = vand.u32 2147483647, %v7263_v30 }
0x13c5   : > { %v7298_v40 = vadd.f32 %v8736_v17, %v7297_v22  ;;  %v7267_v46 = vmul.f32 %v8740_v32, %v7266_v54  ;;  %vm7314_vm11 = vweird.f32 %v7263_v30 }
0x13c6   : > { %v7283_v14 = vadd.f32 %v8738_v25, %v7282_v7  ;;  %v7321_v2 = vor.u32 1.1754944e-38, %v7320_v9  ;;  %vm7319_vm9 = vcmp.eq.f32.partialorder %v7318_v3, 8.507059e+37 }
0x13c7   : > { %v7302_v44 = vsel %vm7301_vm8, %v8736_v17, %v7298_v40  ;;  %v7268_v29 = vadd.f32 %v8740_v32, %v7267_v46 }
0x13c8   : > { %v7287_v59 = vsel %vm7286_vm10, %v8738_v25, %v7283_v14  ;;  %v7307_v47 = vsel %vm7304_vm0, %v7306_v49, %v7302_v44 }
0x13c9   : > { %v7292_v13 = vsel %vm7289_vm15, %v7291_v37, %v7287_v59  ;;  %7336 = vperm.xlu2 %8204, %v7307_v47   ;;  %v7272_v33 = vsel %vm7271_vm4, %v8740_v32, %v7268_v29 }
0x13ca   : > { %v8744_v38 = vpop.eup %8743  ;;  %7331 = vperm.xlu1 %8206, %v7292_v13   ;;  %v7277_v8 = vsel %vm7274_vm2, %v7276_v42, %v7272_v33 }
0x13cb   : > { %7326 = vperm.xlu0 %8205, %v7277_v8   ;;  %v7310_v34 = vmul.f32 %v8744_v38, %v7263_v30  ;;  %vm7315_vm14 = vweird.f32 %v8744_v38 }
0x13cc   : > { %vm7316_vm5 = vmor %vm7314_vm11, %vm7315_vm14 }
0x13cd   : > { %v7311_v60 = vsub.f32 1.0, %v7310_v34 }
0x13cf   : > { %v7312_v63 = vmul.f32 %v8744_v38, %v7311_v60 }
0x13d1   : > { %v7313_v35 = vadd.f32 %v8744_v38, %v7312_v63 }
0x13d3   : > { %v7317_v10 = vsel %vm7316_vm5, %v8744_v38, %v7313_v35 }
0x13d4   : > { %v7322_v62 = vsel %vm7319_vm9, %v7321_v2, %v7317_v10 }
0x13d5   : > { %7341 = vperm.xlu0 %8205, %v7322_v62  }
0x1423   : > { %v7337_v12 = vpop.permute.xlu2 %7336 }
0x1424   : > { %v7348_v43 = vmul.f32 %v7337_v12, %v7166_v51  ;;  %v7349_v56 = vmul.f32 %v7337_v12, %v7167_v27 }
0x1426   : > { %7356 = vst [vmem:[%s386_s15 + $0x20] sm:$0xff] %v7348_v43 }
0x1427   : > { %7357 = vst [vmem:[%s386_s15 + $0x28] sm:$0xff] %v7349_v56 }
0x143c   : > { %v7332_v57 = vpop.permute.xlu1 %7331 }
0x143d   : > { %v7346_v18 = vmul.f32 %v7332_v57, %v7164_v24  ;;  %v7347_v0 = vmul.f32 %v7332_v57, %v7165_v26  ;;  %v7327_v17 = vpop.permute.xlu0 %7326 }
0x143e   : > { %v7344_v25 = vmul.f32 %v7327_v17, %v7162_v4  ;;  %v7345_v39 = vmul.f32 %v7327_v17, %v7163_v20 }
0x143f   : > { %7354 = vst [vmem:[%s386_s15 + $0x10] sm:$0xff] %v7346_v18 }
0x1440   : > { %7355 = vst [vmem:[%s386_s15 + $0x18] sm:$0xff] %v7347_v0 }
0x1441   : > { %7352 = vst [vmem:[%s386_s15] sm:$0xff] %v7344_v25 }
0x1442   : > { %7353 = vst [vmem:[%s386_s15 + $0x8] sm:$0xff] %v7345_v39 }
0x1447   : > { %v7342_v6 = vpop.permute.xlu0 %7341 }
0x1448   : > { %v7350_v27 = vmul.f32 %v7342_v6, %v7168_v50  ;;  %v7351_v28 = vmul.f32 %v7342_v6, %v7169_v45 }
0x144a   : > { %7358 = vst [vmem:[%s386_s15 + $0x30] sm:$0xff] %v7350_v27 }
0x144b   : > { %7359 = vst [vmem:[%s386_s15 + $0x38] sm:$0xff] %v7351_v28 }
0x144c PF: > { %s21_s17 = sadd.s32 1, %s8779_s17  }
0x144d   : > { %p18_p4 = scmp.ge.s32.totalorder %s21_s17, 4  }
0x144f   :  { %20 = sbr.rel (!%p18_p4) target bundleno = 1 (0x1), region = 108 }

</bundles_post_ra>
